<compile_context>
chip_gen: v6e
topology: v6e:2x2x1
jax: 0.10.0
libtpu: 0.0.40
codegen_flags: <defaults>
</compile_context>

<pallas_src>
import functools

import numpy as np
import jax
import jax.numpy as jnp
from jax.experimental import pallas as pl
from jax.experimental.pallas import tpu as pltpu

LATENT_DIM = 100
LATENT_PAD = 128   # lane-aligned contraction dim for the fc matmul
K = 4              # deconv kernel size
STRIDE = 2
PAD = 1
BN_EPS = 1e-5


# ---------------------------------------------------------------------------
# The single fused Pallas kernel
# ---------------------------------------------------------------------------
def generator_kernel(z_ref, wfc_ref, bfc_ref,
                     m1_ref, e1_ref, et1_ref, gb1_ref,
                     m2_ref, e2_ref, et2_ref, gb2_ref,
                     m3_ref, b3_ref, o_ref):
    f32 = jnp.float32
    bf16 = jnp.bfloat16

    def matmul(x, w_ref):
        # bf16 operands, fp32 accumulation on the MXU.
        return jnp.dot(x.astype(bf16), w_ref[...], preferred_element_type=f32)

    def bn_relu(y, e_ref, et_ref, gb_ref):
        # y: (B, C*P) channel-major flat activations (P = OH*OW), f32.
        # Training-mode BatchNorm with merged reductions / broadcasts:
        #   one (2, C*P) @ E matmul  -> per-channel [mean, E[y^2]]
        #   one (2, C)  @ E^T matmul -> broadcast [scale, shift] rows
        rows = y.shape[0]
        c = e_ref.shape[1]
        p = e_ref.shape[0] // c
        inv_n = 1.0 / float(rows * p)

        stats = jnp.concatenate(
            [jnp.sum(y, axis=0, keepdims=True),
             jnp.sum(y * y, axis=0, keepdims=True)], axis=0)            # (2, C*P)
        s = jnp.dot(stats.astype(bf16), e_ref[...],
                    preferred_element_type=f32) * inv_n                  # (2, C)
        mean_c = s[0:1, :]
        var_c = jnp.maximum(s[1:2, :] - mean_c * mean_c, 0.0)            # clamp >= 0
        scale_c = gb_ref[0:1, :] * jax.lax.rsqrt(var_c + BN_EPS)         # gamma / std
        shift_c = gb_ref[1:2, :] - mean_c * scale_c                      # beta - mean*scale
        row = jnp.dot(jnp.concatenate([scale_c, shift_c], axis=0).astype(bf16),
                      et_ref[...], preferred_element_type=f32)           # (2, C*P)
        return jnp.maximum(y * row[0:1, :] + row[1:2, :], 0.0)

    # Linear(latent_dim, 128*2*2) + ReLU.  Flat output already IS the
    # channel-major (c, y, x) layout implied by Unflatten(1, (128, 2, 2)).
    h = jnp.maximum(matmul(z_ref[...], wfc_ref) + bfc_ref[...], 0.0)     # (B, 512)

    # ConvTranspose2d(128->64, 4, s=2, p=1) + BatchNorm2d(64) + ReLU
    # (conv bias omitted: exactly cancelled by training-mode BN)
    a1 = bn_relu(matmul(h, m1_ref), e1_ref, et1_ref, gb1_ref)            # (B, 1024)

    # ConvTranspose2d(64->32, 4, s=2, p=1) + BatchNorm2d(32) + ReLU
    a2 = bn_relu(matmul(a1, m2_ref), e2_ref, et2_ref, gb2_ref)           # (B, 2048)

    # ConvTranspose2d(32->1, 4, s=2, p=1) + bias + Tanh  (lane-dense: N=256)
    o_ref[...] = jnp.tanh(matmul(a2, m3_ref) + b3_ref[...])              # (B, 256)


# ---------------------------------------------------------------------------
# pallas_call wrapper: one gridless call, full-array VMEM blocks
# ---------------------------------------------------------------------------
def _full_spec(shape):
    nd = len(shape)
    return pl.BlockSpec(shape, lambda *args, _nd=nd: (0,) * _nd)


def generator_forward(z, params):
    b = z.shape[0]
    # Zero-pad latent contraction dim to 128 (fc_w is padded the same way).
    z_pad = jnp.pad(z, ((0, 0), (0, LATENT_PAD - z.shape[1])))
    inputs = (
        z_pad,
        params["fc_w"], params["fc_b"],
        params["m1"], params["e1"], params["et1"], params["gb1"],
        params["m2"], params["e2"], params["et2"], params["gb2"],
        params["m3"], params["b3"],
    )
    out_flat = pl.pallas_call(
        generator_kernel,
        out_shape=jax.ShapeDtypeStruct((b, 16 * 16), jnp.float32),
        in_specs=[_full_spec(a.shape) for a in inputs],
        out_specs=_full_spec((b, 16 * 16)),
        compiler_params=pltpu.CompilerParams(vmem_limit_bytes=32 * 1024 * 1024),
    )(*inputs)
    # Final reshape to NCHW (B, 1, 16, 16): metadata-only, matches PyTorch.
    return out_flat.reshape(b, 1, 16, 16)


# ---------------------------------------------------------------------------
# Host-side parameter construction / folding (setup time, not hot path)
# ---------------------------------------------------------------------------
def _scatter_1d(n_in, n_out):
    # S[i, u, y] = 1  iff  y == STRIDE*i - PAD + u   (transposed-conv index map)
    i = np.arange(n_in)[:, None, None]
    u = np.arange(K)[None, :, None]
    y = np.arange(n_out)[None, None, :]
    return (y == STRIDE * i - PAD + u).astype(np.float32)


def _deconv_dense_matrix(w, h_in, w_in):
    """PyTorch ConvTranspose2d weight (C_in, C_out, K, K), stride=2, pad=1,
    acting on an (h_in, w_in) input -> dense (C_in*h*w, C_out*oh*ow) matrix on
    channel-major (c, y, x) flattened activations.  Stored as bf16."""
    w = np.asarray(w, np.float32)
    c_in, c_out = w.shape[0], w.shape[1]
    oh, ow = STRIDE * h_in, STRIDE * w_in
    s_h = _scatter_1d(h_in, oh)
    s_w = _scatter_1d(w_in, ow)
    m = np.einsum('cduv,iuy,jvx->cijdyx', w, s_h, s_w)
    return jnp.asarray(m.reshape(c_in * h_in * w_in, c_out * oh * ow),
                       dtype=jnp.bfloat16)


def _channel_reduce_matrices(c, p):
    # E[(ch*p + s), ch] = 1 for channel-major flat layout; bf16 is lossless
    # for 0/1 values and halves HBM traffic.  Returns (E, E^T).
    e = np.kron(np.eye(c, dtype=np.float32), np.ones((p, 1), np.float32))
    return (jnp.asarray(e, dtype=jnp.bfloat16),
            jnp.asarray(e.T, dtype=jnp.bfloat16))


def make_params(key):
    ks = jax.random.split(key, 12)
    s = 0.05  # small deterministic scale

    fc_w = s * jax.random.normal(ks[0], (LATENT_DIM, 128 * 2 * 2), jnp.float32)
    fc_w = jnp.pad(fc_w, ((0, LATENT_PAD - LATENT_DIM), (0, 0)))   # lane-align K
    fc_b = s * jax.random.normal(ks[1], (1, 128 * 2 * 2), jnp.float32)

    w1 = s * jax.random.normal(ks[2], (128, 64, K, K), jnp.float32)   # (C_in, C_out, K, K)
    g1 = 1.0 + s * jax.random.normal(ks[4], (64,), jnp.float32)
    beta1 = s * jax.random.normal(ks[5], (64,), jnp.float32)

    w2 = s * jax.random.normal(ks[6], (64, 32, K, K), jnp.float32)
    g2 = 1.0 + s * jax.random.normal(ks[8], (32,), jnp.float32)
    beta2 = s * jax.random.normal(ks[9], (32,), jnp.float32)

    w3 = s * jax.random.normal(ks[10], (32, 1, K, K), jnp.float32)
    b3 = s * jax.random.normal(ks[11], (1,), jnp.float32)

    e1, et1 = _channel_reduce_matrices(64, 4 * 4)
    e2, et2 = _channel_reduce_matrices(32, 8 * 8)

    return {
        "fc_w": fc_w.astype(jnp.bfloat16),            # (128, 512) bf16
        "fc_b": fc_b,
        "m1": _deconv_dense_matrix(w1, 2, 2),          # (512, 1024) bf16
        "e1": e1, "et1": et1,                          # (1024,64)/(64,1024) bf16
        "gb1": jnp.stack([g1, beta1], axis=0),         # (2, 64) f32
        "m2": _deconv_dense_matrix(w2, 4, 4),          # (1024, 2048) bf16
        "e2": e2, "et2": et2,                          # (2048,32)/(32,2048) bf16
        "gb2": jnp.stack([g2, beta2], axis=0),         # (2, 32) f32
        "m3": _deconv_dense_matrix(w3, 8, 8),          # (2048, 256) bf16
        "b3": jnp.full((1, 16 * 16), float(np.asarray(b3)[0]), jnp.float32),
    }


if __name__ == "__main__":
    key = jax.random.PRNGKey(0)
    pkey, zkey = jax.random.split(key)
    params = make_params(pkey)

    batch = 2
    z = jax.random.normal(zkey, (batch, LATENT_DIM), jnp.float32)

    fwd = jax.jit(functools.partial(generator_forward, params=params))
    out = fwd(z)
    jax.block_until_ready(out)

    assert out.shape == (batch, 1, 16, 16), out.shape
    assert out.dtype == jnp.float32
    assert bool(jnp.all(jnp.isfinite(out)))
    assert bool(jnp.all(jnp.abs(out) <= 1.0))   # tanh output range
    print("KERNEL_OK")
</pallas_src>

<mosaic_0001>
module attributes {stable_mosaic.version = 11 : i64} {
  func.func @generator_kernel(%arg0: memref<2x128xf32, #tpu.memory_space<vmem>>, %arg1: memref<128x512xbf16, #tpu.memory_space<vmem>>, %arg2: memref<1x512xf32, #tpu.memory_space<vmem>>, %arg3: memref<512x1024xbf16, #tpu.memory_space<vmem>>, %arg4: memref<1024x64xbf16, #tpu.memory_space<vmem>>, %arg5: memref<64x1024xbf16, #tpu.memory_space<vmem>>, %arg6: memref<2x64xf32, #tpu.memory_space<vmem>>, %arg7: memref<1024x2048xbf16, #tpu.memory_space<vmem>>, %arg8: memref<2048x32xbf16, #tpu.memory_space<vmem>>, %arg9: memref<32x2048xbf16, #tpu.memory_space<vmem>>, %arg10: memref<2x32xf32, #tpu.memory_space<vmem>>, %arg11: memref<2048x256xbf16, #tpu.memory_space<vmem>>, %arg12: memref<1x256xf32, #tpu.memory_space<vmem>>, %arg13: memref<2x256xf32, #tpu.memory_space<vmem>>) attributes {dimension_semantics = [], scalar_prefetch = 0 : i64, scratch_operands = 0 : i64, tpu.core_type = #tpu.core_type<tc>} {
    %c0 = arith.constant 0 : index
    %c0_0 = arith.constant 0 : index
    %0 = vector.load %arg0[%c0, %c0_0] : memref<2x128xf32, #tpu.memory_space<vmem>>, vector<2x128xf32>
    %1 = arith.truncf %0 : vector<2x128xf32> to vector<2x128xbf16>
    %c0_1 = arith.constant 0 : index
    %c0_2 = arith.constant 0 : index
    %2 = vector.load %arg1[%c0_1, %c0_2] : memref<128x512xbf16, #tpu.memory_space<vmem>>, vector<128x512xbf16>
    %cst = arith.constant dense<0.000000e+00> : vector<2x512xf32>
    %3 = tpu.matmul %1, %2, %cst {dimension_numbers = #tpu.dot_dimension_numbers<[1], [0], [0], [1], [0, 0, 1, 1], [], []>} : vector<2x128xbf16>, vector<128x512xbf16>, vector<2x512xf32> -> vector<2x512xf32>
    %c0_3 = arith.constant 0 : index
    %c0_4 = arith.constant 0 : index
    %4 = vector.load %arg2[%c0_3, %c0_4] : memref<1x512xf32, #tpu.memory_space<vmem>>, vector<1x512xf32>
    %5 = vector.broadcast %4 : vector<1x512xf32> to vector<2x512xf32>
    %6 = arith.addf %3, %5 : vector<2x512xf32>
    %cst_5 = arith.constant 0.000000e+00 : f32
    %7 = vector.broadcast %cst_5 : f32 to vector<2x512xf32>
    %8 = arith.maximumf %6, %7 : vector<2x512xf32>
    %9 = arith.truncf %8 : vector<2x512xf32> to vector<2x512xbf16>
    %c0_6 = arith.constant 0 : index
    %c0_7 = arith.constant 0 : index
    %10 = vector.load %arg3[%c0_6, %c0_7] : memref<512x1024xbf16, #tpu.memory_space<vmem>>, vector<512x1024xbf16>
    %cst_8 = arith.constant dense<0.000000e+00> : vector<2x1024xf32>
    %11 = tpu.matmul %9, %10, %cst_8 {dimension_numbers = #tpu.dot_dimension_numbers<[1], [0], [0], [1], [0, 0, 1, 1], [], []>} : vector<2x512xbf16>, vector<512x1024xbf16>, vector<2x1024xf32> -> vector<2x1024xf32>
    %cst_9 = arith.constant dense<0.000000e+00> : vector<1024xf32>
    %12 = vector.multi_reduction <add>, %11, %cst_9 [0] : vector<2x1024xf32> to vector<1024xf32>
    %13 = vector.shape_cast %12 : vector<1024xf32> to vector<1x1024xf32>
    %14 = arith.mulf %11, %11 : vector<2x1024xf32>
    %cst_10 = arith.constant dense<0.000000e+00> : vector<1024xf32>
    %15 = vector.multi_reduction <add>, %14, %cst_10 [0] : vector<2x1024xf32> to vector<1024xf32>
    %16 = vector.shape_cast %15 : vector<1024xf32> to vector<1x1024xf32>
    %17 = tpu.concatenate %13, %16 in 0 : vector<1x1024xf32>, vector<1x1024xf32> -> vector<2x1024xf32>
    %18 = arith.truncf %17 : vector<2x1024xf32> to vector<2x1024xbf16>
    %c0_11 = arith.constant 0 : index
    %c0_12 = arith.constant 0 : index
    %19 = vector.load %arg4[%c0_11, %c0_12] : memref<1024x64xbf16, #tpu.memory_space<vmem>>, vector<1024x64xbf16>
    %cst_13 = arith.constant dense<0.000000e+00> : vector<2x64xf32>
    %20 = tpu.matmul %18, %19, %cst_13 {dimension_numbers = #tpu.dot_dimension_numbers<[1], [0], [0], [1], [0, 0, 1, 1], [], []>} : vector<2x1024xbf16>, vector<1024x64xbf16>, vector<2x64xf32> -> vector<2x64xf32>
    %cst_14 = arith.constant 3.125000e-02 : f32
    %21 = vector.broadcast %cst_14 : f32 to vector<2x64xf32>
    %22 = arith.mulf %20, %21 : vector<2x64xf32>
    %23 = vector.extract_strided_slice %22 {offsets = [0, 0], sizes = [1, 64], strides = [1, 1]} : vector<2x64xf32> to vector<1x64xf32>
    %24 = vector.extract_strided_slice %22 {offsets = [1, 0], sizes = [1, 64], strides = [1, 1]} : vector<2x64xf32> to vector<1x64xf32>
    %25 = arith.mulf %23, %23 : vector<1x64xf32>
    %26 = arith.subf %24, %25 : vector<1x64xf32>
    %cst_15 = arith.constant 0.000000e+00 : f32
    %27 = vector.broadcast %cst_15 : f32 to vector<1x64xf32>
    %28 = arith.maximumf %26, %27 : vector<1x64xf32>
    %c0_16 = arith.constant 0 : index
    %c0_17 = arith.constant 0 : index
    %29 = vector.load %arg6[%c0_16, %c0_17] : memref<2x64xf32, #tpu.memory_space<vmem>>, vector<1x64xf32>
    %cst_18 = arith.constant 9.99999974E-6 : f32
    %30 = vector.broadcast %cst_18 : f32 to vector<1x64xf32>
    %31 = arith.addf %28, %30 : vector<1x64xf32>
    %32 = math.rsqrt %31 : vector<1x64xf32>
    %33 = arith.mulf %29, %32 : vector<1x64xf32>
    %c1 = arith.constant 1 : index
    %c0_19 = arith.constant 0 : index
    %34 = vector.load %arg6[%c1, %c0_19] : memref<2x64xf32, #tpu.memory_space<vmem>>, vector<1x64xf32>
    %35 = arith.mulf %23, %33 : vector<1x64xf32>
    %36 = arith.subf %34, %35 : vector<1x64xf32>
    %37 = tpu.concatenate %33, %36 in 0 : vector<1x64xf32>, vector<1x64xf32> -> vector<2x64xf32>
    %38 = arith.truncf %37 : vector<2x64xf32> to vector<2x64xbf16>
    %c0_20 = arith.constant 0 : index
    %c0_21 = arith.constant 0 : index
    %39 = vector.load %arg5[%c0_20, %c0_21] : memref<64x1024xbf16, #tpu.memory_space<vmem>>, vector<64x1024xbf16>
    %cst_22 = arith.constant dense<0.000000e+00> : vector<2x1024xf32>
    %40 = tpu.matmul %38, %39, %cst_22 {dimension_numbers = #tpu.dot_dimension_numbers<[1], [0], [0], [1], [0, 0, 1, 1], [], []>} : vector<2x64xbf16>, vector<64x1024xbf16>, vector<2x1024xf32> -> vector<2x1024xf32>
    %41 = vector.extract_strided_slice %40 {offsets = [0, 0], sizes = [1, 1024], strides = [1, 1]} : vector<2x1024xf32> to vector<1x1024xf32>
    %42 = vector.broadcast %41 : vector<1x1024xf32> to vector<2x1024xf32>
    %43 = arith.mulf %11, %42 : vector<2x1024xf32>
    %44 = vector.extract_strided_slice %40 {offsets = [1, 0], sizes = [1, 1024], strides = [1, 1]} : vector<2x1024xf32> to vector<1x1024xf32>
    %45 = vector.broadcast %44 : vector<1x1024xf32> to vector<2x1024xf32>
    %46 = arith.addf %43, %45 : vector<2x1024xf32>
    %cst_23 = arith.constant 0.000000e+00 : f32
    %47 = vector.broadcast %cst_23 : f32 to vector<2x1024xf32>
    %48 = arith.maximumf %46, %47 : vector<2x1024xf32>
    %49 = arith.truncf %48 : vector<2x1024xf32> to vector<2x1024xbf16>
    %c0_24 = arith.constant 0 : index
    %c0_25 = arith.constant 0 : index
    %50 = vector.load %arg7[%c0_24, %c0_25] : memref<1024x2048xbf16, #tpu.memory_space<vmem>>, vector<1024x2048xbf16>
    %cst_26 = arith.constant dense<0.000000e+00> : vector<2x2048xf32>
    %51 = tpu.matmul %49, %50, %cst_26 {dimension_numbers = #tpu.dot_dimension_numbers<[1], [0], [0], [1], [0, 0, 1, 1], [], []>} : vector<2x1024xbf16>, vector<1024x2048xbf16>, vector<2x2048xf32> -> vector<2x2048xf32>
    %cst_27 = arith.constant dense<0.000000e+00> : vector<2048xf32>
    %52 = vector.multi_reduction <add>, %51, %cst_27 [0] : vector<2x2048xf32> to vector<2048xf32>
    %53 = vector.shape_cast %52 : vector<2048xf32> to vector<1x2048xf32>
    %54 = arith.mulf %51, %51 : vector<2x2048xf32>
    %cst_28 = arith.constant dense<0.000000e+00> : vector<2048xf32>
    %55 = vector.multi_reduction <add>, %54, %cst_28 [0] : vector<2x2048xf32> to vector<2048xf32>
    %56 = vector.shape_cast %55 : vector<2048xf32> to vector<1x2048xf32>
    %57 = tpu.concatenate %53, %56 in 0 : vector<1x2048xf32>, vector<1x2048xf32> -> vector<2x2048xf32>
    %58 = arith.truncf %57 : vector<2x2048xf32> to vector<2x2048xbf16>
    %c0_29 = arith.constant 0 : index
    %c0_30 = arith.constant 0 : index
    %59 = vector.load %arg8[%c0_29, %c0_30] : memref<2048x32xbf16, #tpu.memory_space<vmem>>, vector<2048x32xbf16>
    %cst_31 = arith.constant dense<0.000000e+00> : vector<2x32xf32>
    %60 = tpu.matmul %58, %59, %cst_31 {dimension_numbers = #tpu.dot_dimension_numbers<[1], [0], [0], [1], [0, 0, 1, 1], [], []>} : vector<2x2048xbf16>, vector<2048x32xbf16>, vector<2x32xf32> -> vector<2x32xf32>
    %cst_32 = arith.constant 7.812500e-03 : f32
    %61 = vector.broadcast %cst_32 : f32 to vector<2x32xf32>
    %62 = arith.mulf %60, %61 : vector<2x32xf32>
    %63 = vector.extract_strided_slice %62 {offsets = [0, 0], sizes = [1, 32], strides = [1, 1]} : vector<2x32xf32> to vector<1x32xf32>
    %64 = vector.extract_strided_slice %62 {offsets = [1, 0], sizes = [1, 32], strides = [1, 1]} : vector<2x32xf32> to vector<1x32xf32>
    %65 = arith.mulf %63, %63 : vector<1x32xf32>
    %66 = arith.subf %64, %65 : vector<1x32xf32>
    %cst_33 = arith.constant 0.000000e+00 : f32
    %67 = vector.broadcast %cst_33 : f32 to vector<1x32xf32>
    %68 = arith.maximumf %66, %67 : vector<1x32xf32>
    %c0_34 = arith.constant 0 : index
    %c0_35 = arith.constant 0 : index
    %69 = vector.load %arg10[%c0_34, %c0_35] : memref<2x32xf32, #tpu.memory_space<vmem>>, vector<1x32xf32>
    %cst_36 = arith.constant 9.99999974E-6 : f32
    %70 = vector.broadcast %cst_36 : f32 to vector<1x32xf32>
    %71 = arith.addf %68, %70 : vector<1x32xf32>
    %72 = math.rsqrt %71 : vector<1x32xf32>
    %73 = arith.mulf %69, %72 : vector<1x32xf32>
    %c1_37 = arith.constant 1 : index
    %c0_38 = arith.constant 0 : index
    %74 = vector.load %arg10[%c1_37, %c0_38] : memref<2x32xf32, #tpu.memory_space<vmem>>, vector<1x32xf32>
    %75 = arith.mulf %63, %73 : vector<1x32xf32>
    %76 = arith.subf %74, %75 : vector<1x32xf32>
    %77 = tpu.concatenate %73, %76 in 0 : vector<1x32xf32>, vector<1x32xf32> -> vector<2x32xf32>
    %78 = arith.truncf %77 : vector<2x32xf32> to vector<2x32xbf16>
    %c0_39 = arith.constant 0 : index
    %c0_40 = arith.constant 0 : index
    %79 = vector.load %arg9[%c0_39, %c0_40] : memref<32x2048xbf16, #tpu.memory_space<vmem>>, vector<32x2048xbf16>
    %cst_41 = arith.constant dense<0.000000e+00> : vector<2x2048xf32>
    %80 = tpu.matmul %78, %79, %cst_41 {dimension_numbers = #tpu.dot_dimension_numbers<[1], [0], [0], [1], [0, 0, 1, 1], [], []>} : vector<2x32xbf16>, vector<32x2048xbf16>, vector<2x2048xf32> -> vector<2x2048xf32>
    %81 = vector.extract_strided_slice %80 {offsets = [0, 0], sizes = [1, 2048], strides = [1, 1]} : vector<2x2048xf32> to vector<1x2048xf32>
    %82 = vector.broadcast %81 : vector<1x2048xf32> to vector<2x2048xf32>
    %83 = arith.mulf %51, %82 : vector<2x2048xf32>
    %84 = vector.extract_strided_slice %80 {offsets = [1, 0], sizes = [1, 2048], strides = [1, 1]} : vector<2x2048xf32> to vector<1x2048xf32>
    %85 = vector.broadcast %84 : vector<1x2048xf32> to vector<2x2048xf32>
    %86 = arith.addf %83, %85 : vector<2x2048xf32>
    %cst_42 = arith.constant 0.000000e+00 : f32
    %87 = vector.broadcast %cst_42 : f32 to vector<2x2048xf32>
    %88 = arith.maximumf %86, %87 : vector<2x2048xf32>
    %89 = arith.truncf %88 : vector<2x2048xf32> to vector<2x2048xbf16>
    %c0_43 = arith.constant 0 : index
    %c0_44 = arith.constant 0 : index
    %90 = vector.load %arg11[%c0_43, %c0_44] : memref<2048x256xbf16, #tpu.memory_space<vmem>>, vector<2048x256xbf16>
    %cst_45 = arith.constant dense<0.000000e+00> : vector<2x256xf32>
    %91 = tpu.matmul %89, %90, %cst_45 {dimension_numbers = #tpu.dot_dimension_numbers<[1], [0], [0], [1], [0, 0, 1, 1], [], []>} : vector<2x2048xbf16>, vector<2048x256xbf16>, vector<2x256xf32> -> vector<2x256xf32>
    %c0_46 = arith.constant 0 : index
    %c0_47 = arith.constant 0 : index
    %92 = vector.load %arg12[%c0_46, %c0_47] : memref<1x256xf32, #tpu.memory_space<vmem>>, vector<1x256xf32>
    %93 = vector.broadcast %92 : vector<1x256xf32> to vector<2x256xf32>
    %94 = arith.addf %91, %93 : vector<2x256xf32>
    %95 = math.tanh %94 : vector<2x256xf32>
    %c0_48 = arith.constant 0 : index
    %c0_49 = arith.constant 0 : index
    %96 = vector.load %arg13[%c0_48, %c0_49] : memref<2x256xf32, #tpu.memory_space<vmem>>, vector<2x256xf32>
    tpu.vector_store %arg13[%c0_48, %c0_49], %95 {strides = array<i32>} : memref<2x256xf32, #tpu.memory_space<vmem>>, vector<2x256xf32>,
    return
  }
}

</mosaic_0001>

<bundles_post_ra>
// kernel: generator_forward.1
= control target key start
LH: loop header
LB: loop body
LE: loop exit
PB: predicated region body
PF: predicated region fallthrough
CT: control target
= control target key end

     0   :  { %18 = vsyncpa [#allocation3], 0  ;;  %s18994_s0 = inlined_call_operand.vmem [shape: f32[2,128], index: 0, kind: input, shape index: {}]   ;;  %s18995_s1 = inlined_call_operand.hbm [shape: bf16[128,512], index: 1, kind: input, shape index: {}]   ;;  %s18996_s2 = inlined_call_operand.hbm [shape: f32[1,512], index: 2, kind: input, shape index: {}]   ;;  %s18997_s3 = inlined_call_operand.hbm [shape: bf16[512,1024], index: 3, kind: input, shape index: {}]   ;;  %s18998_s4 = inlined_call_operand.hbm [shape: bf16[1024,64], index: 4, kind: input, shape index: {}]   ;;  %s18999_s5 = inlined_call_operand.hbm [shape: bf16[64,1024], index: 5, kind: input, shape index: {}]   ;;  %s19000_s6 = inlined_call_operand.hbm [shape: f32[2,64], index: 6, kind: input, shape index: {}]   ;;  %s19001_s7 = inlined_call_operand.hbm [shape: bf16[1024,2048], index: 7, kind: input, shape index: {}]   ;;  %s19002_s8 = inlined_call_operand.hbm [shape: bf16[2048,32], index: 8, kind: input, shape index: {}]   ;;  %s19003_s9 = inlined_call_operand.hbm [shape: bf16[32,2048], index: 9, kind: input, shape index: {}]   ;;  %s19004_s10 = inlined_call_operand.hbm [shape: f32[2,32], index: 10, kind: input, shape index: {}]   ;;  %s19005_s11 = inlined_call_operand.hbm [shape: bf16[2048,256], index: 11, kind: input, shape index: {}]   ;;  %s19006_s12 = inlined_call_operand.vmem [shape: f32[1,256], index: 12, kind: input, shape index: {}]   ;;  %s19007_s13 = inlined_call_operand.vmem [shape: f32[2,256], index: 13, kind: output, shape index: {}]  }
   0x1   :  { %19 = vsyncpa [#allocation5], 0 }
   0x2   :  { %20 = vsyncpa [#allocation8], 0 }
   0x3   :  { %21 = vsyncpa [#allocation11], 0 }
   0x4   :  { %22 = vsyncpa [#allocation14], 0 }
   0x5   :  { %23 = vsyncpa [#allocation17], 0  ;;  %s18342_s25 = smov [#allocation4]   ;;  %s18343_s27 = smov [#allocation7]  }
   0x6   :  { %s44_s26 = sshll.u32 %s18342_s25, 4  ;;  %s65_s28 = sshll.u32 %s18343_s27, 4  ;;  %s45_s26 = int_to_ptr.vmem [resolvable:$true] %s44_s26  ;;  %s66_s28 = int_to_ptr.vmem [resolvable:$true] %s65_s28 }
   0x7   :  { %s18118_s29 = scalar_lea.vmem %s45_s26, 64  ;;  %p18123_p1 = scmp.lt.s32.totalorder %s45_s26, %s45_s26 }
   0x8   :  { %p18119_p0 = scmp.ne.s32.totalorder %s45_s26, %s18118_s29  ;;  %p18124_p2 = scmp.lt.s32.totalorder %s18118_s29, %s18118_s29 }
   0xa   :  { %p18125_p3 = por %p18124_p2, %p18123_p1 }
   0xc   :  { %p18126_p4 = pnand %p18125_p3, %p18119_p0 }
   0xe   :  { %18129 = shalt.err (!%p18126_p4)
}
   0xf   :  { %47 = dma.hbm_to_vmem [thread:$0]  %s18996_s2, 64, %s45_s26, [#allocation5]  }
  0x10   :  { %s18138_s15 = scalar_lea.vmem %s66_s28, 8192  ;;  %p18143_p6 = scmp.lt.s32.totalorder %s66_s28, %s66_s28 }
  0x11   :  { %p18139_p5 = scmp.ne.s32.totalorder %s66_s28, %s18138_s15  ;;  %p18144_p7 = scmp.lt.s32.totalorder %s18138_s15, %s18138_s15 }
  0x13   :  { %p18145_p8 = por %p18144_p7, %p18143_p6 }
  0x15   :  { %p18146_p9 = pnand %p18145_p8, %p18139_p5 }
  0x17   :  { %18149 = shalt.err (!%p18146_p9)
}
  0x18   :  { %s18344_s16 = smov 64   ;;  %s18345_s17 = smov 4  }
  0x19   :  { %71 = dma.hbm_to_vmem [thread:$0]  %s18998_s4, 8192, %s66_s28, [#allocation8], %s18344_s16, %s18344_s16, %s18345_s17  }
  0x1a   :  { %s18346_s20 = smov [#allocation10]   ;;  %s18347_s22 = smov [#allocation13]  }
  0x1b   :  { %s90_s21 = sshll.u32 %s18346_s20, 4  ;;  %s111_s23 = sshll.u32 %s18347_s22, 4  ;;  %s91_s21 = int_to_ptr.vmem [resolvable:$true] %s90_s21  ;;  %s112_s23 = int_to_ptr.vmem [resolvable:$true] %s111_s23 }
  0x1c   :  { %s18158_s2 = scalar_lea.vmem %s91_s21, 32  ;;  %p18163_p11 = scmp.lt.s32.totalorder %s91_s21, %s91_s21 }
  0x1d   :  { %p18159_p10 = scmp.ne.s32.totalorder %s91_s21, %s18158_s2  ;;  %p18164_p12 = scmp.lt.s32.totalorder %s18158_s2, %s18158_s2 }
  0x1f   :  { %p18165_p13 = por %p18164_p12, %p18163_p11 }
  0x21   :  { %p18166_p0 = pnand %p18165_p13, %p18159_p10 }
  0x23   :  { %18169 = shalt.err (!%p18166_p0)
}
  0x24   :  { %93 = dma.hbm_to_vmem [thread:$0]  %s19000_s6, 32, %s91_s21, [#allocation11]  }
  0x25   :  { %s18178_s26 = scalar_lea.vmem %s112_s23, 16384  ;;  %p18183_p2 = scmp.lt.s32.totalorder %s112_s23, %s112_s23 }
  0x26   :  { %p18179_p1 = scmp.ne.s32.totalorder %s112_s23, %s18178_s26  ;;  %p18184_p3 = scmp.lt.s32.totalorder %s18178_s26, %s18178_s26 }
  0x28   :  { %p18185_p4 = por %p18184_p3, %p18183_p2 }
  0x2a   :  { %p18186_p5 = pnand %p18185_p4, %p18179_p1 }
  0x2c   :  { %18189 = shalt.err (!%p18186_p5)
}
  0x2d   :  { %117 = dma.hbm_to_vmem [thread:$0]  %s19002_s8, 16384, %s112_s23, [#allocation14], %s18344_s16, %s18344_s16, %s18345_s17  }
  0x2e   :  { %s18348_s28 = smov [#allocation16]   ;;  %s18349_s30 = smov [#allocation2]  }
  0x2f   :  { %s136_s29 = sshll.u32 %s18348_s28, 4  ;;  %s31_s14 = sshll.u32 %s18349_s30, 4  ;;  %s137_s29 = int_to_ptr.vmem [resolvable:$true] %s136_s29  ;;  %s32_s14 = int_to_ptr.vmem [resolvable:$true] %s31_s14 }
  0x30   :  { %s18198_s6 = scalar_lea.vmem %s137_s29, 32  ;;  %p18203_p7 = scmp.lt.s32.totalorder %s137_s29, %s137_s29 }
  0x31   :  { %p18199_p6 = scmp.ne.s32.totalorder %s137_s29, %s18198_s6  ;;  %p18204_p8 = scmp.lt.s32.totalorder %s18198_s6, %s18198_s6 }
  0x33   :  { %p18205_p9 = por %p18204_p8, %p18203_p7 }
  0x35   :  { %p18206_p10 = pnand %p18205_p9, %p18199_p6 }
  0x37   :  { %18209 = shalt.err (!%p18206_p10)
}
  0x38   :  { %139 = dma.hbm_to_vmem [thread:$0]  %s19004_s10, 32, %s137_s29, [#allocation17]  }
  0x39   :  { %s18218_s19 = scalar_lea.vmem %s32_s14, 4096  ;;  %p18223_p12 = scmp.lt.s32.totalorder %s32_s14, %s32_s14 }
  0x3a   :  { %p18219_p11 = scmp.ne.s32.totalorder %s32_s14, %s18218_s19  ;;  %p18224_p13 = scmp.lt.s32.totalorder %s18218_s19, %s18218_s19 }
  0x3c   :  { %p18225_p0 = por %p18224_p13, %p18223_p12 }
  0x3e   :  { %p18226_p1 = pnand %p18225_p0, %p18219_p11 }
  0x40   :  { %18229 = shalt.err (!%p18226_p1)
}
  0x41   :  { %s18350_s8 = smov 256   ;;  %s18351_s17 = smov 16  }
  0x42   :  { %37 = dma.hbm_to_vmem [thread:$0]  %s18995_s1, 4096, %s32_s14, [#allocation3], %s18350_s8, %s18350_s8, %s18351_s17  }
  0x43   :  { %s18352_s22 = smov [#allocation6]  }
  0x44   :  { %s53_s23 = sshll.u32 %s18352_s22, 4  ;;  %s54_s23 = int_to_ptr.vmem [resolvable:$true] %s53_s23 }
  0x45   :  { %s18238_s2 = scalar_lea.vmem %s54_s23, 32768  ;;  %p18243_p3 = scmp.lt.s32.totalorder %s54_s23, %s54_s23 }
  0x46   :  { %p18239_p2 = scmp.ne.s32.totalorder %s54_s23, %s18238_s2  ;;  %p18244_p4 = scmp.lt.s32.totalorder %s18238_s2, %s18238_s2 }
  0x48   :  { %p18245_p5 = por %p18244_p4, %p18243_p3 }
  0x4a   :  { %p18246_p6 = pnand %p18245_p5, %p18239_p2 }
  0x4c   :  { %18249 = shalt.err (!%p18246_p6)
}
  0x4d   :  { %s18353_s10 = smov 512   ;;  %s18354_s24 = smov 32  }
  0x4e   :  { %59 = dma.hbm_to_vmem [thread:$0]  %s18997_s3, 32768, %s54_s23, [#allocation5], %s18353_s10, %s18353_s10, %s18354_s24  }
  0x4f   :  { %s18355_s4 = smov [#allocation9]   ;;  %s18356_s1 = smov [#allocation12]  }
  0x50   :  { %s77_s27 = sshll.u32 %s18355_s4, 4  ;;  %s99_s28 = sshll.u32 %s18356_s1, 4  ;;  %s78_s27 = int_to_ptr.vmem [resolvable:$true] %s77_s27  ;;  %s100_s28 = int_to_ptr.vmem [resolvable:$true] %s99_s28 }
  0x51   :  { %s18258_s29 = scalar_lea.vmem %s78_s27, 4096  ;;  %p18263_p8 = scmp.lt.s32.totalorder %s78_s27, %s78_s27 }
  0x52   :  { %p18259_p7 = scmp.ne.s32.totalorder %s78_s27, %s18258_s29  ;;  %p18264_p9 = scmp.lt.s32.totalorder %s18258_s29, %s18258_s29 }
  0x54   :  { %p18265_p10 = por %p18264_p9, %p18263_p8 }
  0x56   :  { %p18266_p11 = pnand %p18265_p10, %p18259_p7 }
  0x58   :  { %18269 = shalt.err (!%p18266_p11)
}
  0x59   :  { %83 = dma.hbm_to_vmem [thread:$0]  %s18999_s5, 4096, %s78_s27, [#allocation8], %s18353_s10, %s18353_s10, %s18354_s24  }
  0x5a   :  { %s18278_s6 = scalar_lea.vmem %s100_s28, 131072  ;;  %p18283_p13 = scmp.lt.s32.totalorder %s100_s28, %s100_s28 }
  0x5b   :  { %p18279_p12 = scmp.ne.s32.totalorder %s100_s28, %s18278_s6  ;;  %p18284_p0 = scmp.lt.s32.totalorder %s18278_s6, %s18278_s6 }
  0x5d   :  { %p18285_p1 = por %p18284_p0, %p18283_p13 }
  0x5f   :  { %p18286_p2 = pnand %p18285_p1, %p18279_p12 }
  0x61   :  { %18289 = shalt.err (!%p18286_p2)
}
  0x62   :  { %s18357_s3 = smov 1024   ;;  %s18358_s19 = smov [#allocation15]  }
  0x63   :  { %105 = dma.hbm_to_vmem [thread:$0]  %s19001_s7, 131072, %s100_s28, [#allocation11], %s18357_s3, %s18357_s3, %s18344_s16  }
  0x64   :  { %s123_s8 = sshll.u32 %s18358_s19, 4  ;;  %s18359_s17 = smov [#allocation18]   ;;  %s124_s8 = int_to_ptr.vmem [resolvable:$true] %s123_s8 }
  0x65   :  { %s145_s20 = sshll.u32 %s18359_s17, 4  ;;  %s18298_s5 = scalar_lea.vmem %s124_s8, 4096  ;;  %s146_s20 = int_to_ptr.vmem [resolvable:$true] %s145_s20 }
  0x66   :  { %p18299_p3 = scmp.ne.s32.totalorder %s124_s8, %s18298_s5  ;;  %p18303_p4 = scmp.lt.s32.totalorder %s124_s8, %s124_s8 }
  0x67   :  { %p18304_p5 = scmp.lt.s32.totalorder %s18298_s5, %s18298_s5 }
  0x69   :  { %p18305_p6 = por %p18304_p5, %p18303_p4 }
  0x6b   :  { %p18306_p7 = pnand %p18305_p6, %p18299_p3 }
  0x6d   :  { %18309 = shalt.err (!%p18306_p7)
}
  0x6e   :  { %129 = dma.hbm_to_vmem [thread:$0]  %s19003_s9, 4096, %s124_s8, [#allocation14], %s18357_s3, %s18357_s3, %s18344_s16  }
  0x6f   :  { %s18318_s23 = scalar_lea.vmem %s146_s20, 32768  ;;  %p18323_p9 = scmp.lt.s32.totalorder %s146_s20, %s146_s20 }
  0x70   :  { %p18319_p8 = scmp.ne.s32.totalorder %s146_s20, %s18318_s23  ;;  %p18324_p10 = scmp.lt.s32.totalorder %s18318_s23, %s18318_s23 }
  0x72   :  { %p18325_p11 = por %p18324_p10, %p18323_p9 }
  0x74   :  { %p18326_p12 = pnand %p18325_p11, %p18319_p8 }
  0x76   :  { %18329 = shalt.err (!%p18326_p12)
}
  0x77   :  { %s18360_s7 = smov 128   ;;  %s18361_s2 = smov 8  }
  0x78   :  { %151 = dma.hbm_to_vmem [thread:$0]  %s19005_s11, 32768, %s146_s20, [#allocation17], %s18360_s7, %s18360_s7, %s18361_s2  }
  0x79   :  { %18330 = dma.done.wait [#allocation3], 4096  }
  0x7a   :  { %18331 = vsyncadd [#allocation3], 4294963200 }
  0x7b   :  { %18332 = dma.done.wait [#allocation5], 32832  }
  0x7c   :  { %18333 = vsyncadd [#allocation5], 4294934464 }
  0x7d   :  { %18334 = dma.done.wait [#allocation8], 12288  }
  0x7e   :  { %18335 = vsyncadd [#allocation8], 4294955008 }
  0x7f   :  { %18336 = dma.done.wait [#allocation11], 131104  }
  0x80   :  { %18337 = vsyncadd [#allocation11], 4294836192 }
  0x81   :  { %18338 = dma.done.wait [#allocation14], 20480  }
  0x82   :  { %18339 = vsyncadd [#allocation14], 4294946816 }
  0x83   :  { %18340 = dma.done.wait [#allocation17], 32800  }
  0x84   :  { %18341 = vsyncadd [#allocation17], 4294934496  ;;  %v18362_v0 = vmov 0   ;;  %v17478_v1 = vld [vmem:[#allocation2 + $0xe4] ss:$16 sps:$4 sm:$0xff]   ;;  %vm2358_vm0 = vcmask 1041408  }
  0x85   :  { %436 = vmatprep.mubr.bf16.mxu0 %v18362_v0  ;;  %477 = vmatprep.mubr.bf16.mxu1 %v18362_v0  ;;  %v17480_v2 = vld [vmem:[#allocation2 + $0xec] ss:$16 sps:$4 sm:$0xff]   ;;  %v17482_v3 = vld [vmem:[#allocation2 + $0xe0] ss:$16 sps:$4 sm:$0xff]   ;;  %v17483_v4 = vld [vmem:[#allocation2 + $0xe8] ss:$16 sps:$4 sm:$0xff]  }
  0x86   :  { %404 = vmatprep.subr.bf16.mxu0 %v17478_v1  ;;  %445 = vmatprep.subr.bf16.mxu1 %v17480_v2  ;;  %v17484_v5 = vld [vmem:[#allocation2 + $0xc4] ss:$16 sps:$4 sm:$0xff]   ;;  %v17486_v6 = vld [vmem:[#allocation2 + $0xcc] ss:$16 sps:$4 sm:$0xff]   ;;  %v17488_v7 = vld [vmem:[#allocation2 + $0xc0] ss:$16 sps:$4 sm:$0xff]  }
  0x87   :  { %405 = vmatpush1.bf16.msra.mxu0 %v17482_v3  ;;  %446 = vmatpush1.bf16.msra.mxu1 %v17483_v4  ;;  %v17489_v8 = vld [vmem:[#allocation2 + $0xc8] ss:$16 sps:$4 sm:$0xff]   ;;  %v17490_v9 = vld [vmem:[#allocation2 + $0xa4] ss:$16 sps:$4 sm:$0xff]   ;;  %v17492_v10 = vld [vmem:[#allocation2 + $0xac] ss:$16 sps:$4 sm:$0xff]  }
  0x88   :  { %406 = vmatprep.subr.bf16.mxu0 %v17484_v5  ;;  %447 = vmatprep.subr.bf16.mxu1 %v17486_v6  ;;  %v17494_v11 = vld [vmem:[#allocation2 + $0xa0] ss:$16 sps:$4 sm:$0xff]   ;;  %v17495_v12 = vld [vmem:[#allocation2 + $0xa8] ss:$16 sps:$4 sm:$0xff]   ;;  %v17496_v13 = vld [vmem:[#allocation2 + $0x84] ss:$16 sps:$4 sm:$0xff]  }
  0x89   :  { %v17498_v14 = vld [vmem:[#allocation2 + $0x8c] ss:$16 sps:$4 sm:$0xff]   ;;  %v17500_v15 = vld [vmem:[#allocation2 + $0x80] ss:$16 sps:$4 sm:$0xff]   ;;  %v17501_v16 = vld [vmem:[#allocation2 + $0x88] ss:$16 sps:$4 sm:$0xff]  }
  0x8a   :  { %v17502_v17 = vld [vmem:[#allocation2 + $0x64] ss:$16 sps:$4 sm:$0xff]   ;;  %v17504_v18 = vld [vmem:[#allocation2 + $0x6c] ss:$16 sps:$4 sm:$0xff]   ;;  %v17506_v19 = vld [vmem:[#allocation2 + $0x60] ss:$16 sps:$4 sm:$0xff]  }
  0x8b   :  { %407 = vmatpush1.bf16.msra.mxu0 %v17488_v7  ;;  %448 = vmatpush1.bf16.msra.mxu1 %v17489_v8  ;;  %v17507_v20 = vld [vmem:[#allocation2 + $0x68] ss:$16 sps:$4 sm:$0xff]   ;;  %v17508_v21 = vld [vmem:[#allocation2 + $0x44] ss:$16 sps:$4 sm:$0xff]   ;;  %v17510_v22 = vld [vmem:[#allocation2 + $0x4c] ss:$16 sps:$4 sm:$0xff]  }
  0x8c   :  { %408 = vmatprep.subr.bf16.mxu0 %v17490_v9  ;;  %449 = vmatprep.subr.bf16.mxu1 %v17492_v10  ;;  %v17512_v23 = vld [vmem:[#allocation2 + $0x40] ss:$16 sps:$4 sm:$0xff]   ;;  %v17513_v24 = vld [vmem:[#allocation2 + $0x48] ss:$16 sps:$4 sm:$0xff]   ;;  %v17514_v25 = vld [vmem:[#allocation2 + $0x24] ss:$16 sps:$4 sm:$0xff]  }
  0x8d   :  { %v17516_v26 = vld [vmem:[#allocation2 + $0x2c] ss:$16 sps:$4 sm:$0xff]   ;;  %v17518_v27 = vld [vmem:[#allocation2 + $0x20] ss:$16 sps:$4 sm:$0xff]   ;;  %v17519_v28 = vld [vmem:[#allocation2 + $0x28] ss:$16 sps:$4 sm:$0xff]  }
  0x8e   :  { %v17520_v29 = vld [vmem:[#allocation2 + $0x4] ss:$16 sps:$4 sm:$0xff]   ;;  %v17522_v30 = vld [vmem:[#allocation2 + $0xc] ss:$16 sps:$4 sm:$0xff]   ;;  %v17524_v35 = vld [vmem:[#allocation2] ss:$16 sps:$4 sm:$0xff]  }
  0x8f   :  { %409 = vmatpush1.bf16.msra.mxu0 %v17494_v11  ;;  %450 = vmatpush1.bf16.msra.mxu1 %v17495_v12  ;;  %v550_v31 = vld [vmem:[#allocation6 + $0x1c0] sm:$0xff]  ;;  %v188_v37 = vld [vmem:[%s18994_s0] sm:$0x3]  ;;  %vm2479_vm1 = vcmask 1040384   ;;  %vm3382_vm2 = vcmask 523264   ;;  %vm12932_vm3 = vcmask 261120  }
  0x90   :  { %410 = vmatprep.subr.bf16.mxu0 %v17496_v13  ;;  %451 = vmatprep.subr.bf16.mxu1 %v17498_v14  ;;  %v554_v32 = vld [vmem:[#allocation6 + $0x1e0] sm:$0xff]  ;;  %v189_v44 = vpack.c.bf16 %v188_v37, %v188_v37 }
  0x91   :  { %v678_v33 = vld [vmem:[#allocation6 + $0x5c0] sm:$0xff]  ;;  %v15445_v38 = vcombine.high %v550_v31, %v554_v32  ;;  %v15444_v45 = vcombine.low %v550_v31, %v554_v32 }
  0x92   :  { %v682_v34 = vld [vmem:[#allocation6 + $0x5e0] sm:$0xff] }
  0x93   :  { %411 = vmatpush1.bf16.msra.mxu0 %v17500_v15  ;;  %452 = vmatpush1.bf16.msra.mxu1 %v17501_v16  ;;  %v17525_v36 = vld [vmem:[#allocation2 + $0x8] ss:$16 sps:$4 sm:$0xff]   ;;  %v15573_v39 = vcombine.high %v678_v33, %v682_v34  ;;  %v15572_v46 = vcombine.low %v678_v33, %v682_v34 }
  0x94   :  { %412 = vmatprep.subr.bf16.mxu0 %v17502_v17  ;;  %453 = vmatprep.subr.bf16.mxu1 %v17504_v18  ;;  %v542_v40 = vld [vmem:[#allocation6 + $0x180] sm:$0xff] }
  0x95   :  { %v546_v41 = vld [vmem:[#allocation6 + $0x1a0] sm:$0xff] }
  0x96   :  { %v670_v42 = vld [vmem:[#allocation6 + $0x580] sm:$0xff]  ;;  %v15437_v47 = vcombine.high %v542_v40, %v546_v41  ;;  %v15436_v53 = vcombine.low %v542_v40, %v546_v41 }
  0x97   :  { %413 = vmatpush1.bf16.msra.mxu0 %v17506_v19  ;;  %454 = vmatpush1.bf16.msra.mxu1 %v17507_v20  ;;  %v674_v43 = vld [vmem:[#allocation6 + $0x5a0] sm:$0xff] }
  0x98   :  { %414 = vmatprep.subr.bf16.mxu0 %v17508_v21  ;;  %455 = vmatprep.subr.bf16.mxu1 %v17510_v22  ;;  %v15565_v48 = vcombine.high %v670_v42, %v674_v43  ;;  %v534_v49 = vld [vmem:[#allocation6 + $0x140] sm:$0xff]  ;;  %v15564_v54 = vcombine.low %v670_v42, %v674_v43 }
  0x99   :  { %v538_v50 = vld [vmem:[#allocation6 + $0x160] sm:$0xff] }
  0x9a   :  { %v662_v51 = vld [vmem:[#allocation6 + $0x540] sm:$0xff]  ;;  %v15429_v55 = vcombine.high %v534_v49, %v538_v50  ;;  %v15428_v61 = vcombine.low %v534_v49, %v538_v50 }
  0x9b   :  { %415 = vmatpush1.bf16.msra.mxu0 %v17512_v23  ;;  %456 = vmatpush1.bf16.msra.mxu1 %v17513_v24  ;;  %v666_v52 = vld [vmem:[#allocation6 + $0x560] sm:$0xff] }
  0x9c   :  { %416 = vmatprep.subr.bf16.mxu0 %v17514_v25  ;;  %457 = vmatprep.subr.bf16.mxu1 %v17516_v26  ;;  %v15557_v56 = vcombine.high %v662_v51, %v666_v52  ;;  %v526_v57 = vld [vmem:[#allocation6 + $0x100] sm:$0xff]  ;;  %v15556_v62 = vcombine.low %v662_v51, %v666_v52 }
  0x9d   :  { %v530_v58 = vld [vmem:[#allocation6 + $0x120] sm:$0xff] }
  0x9e   :  { %v654_v59 = vld [vmem:[#allocation6 + $0x500] sm:$0xff]  ;;  %v15421_v4 = vcombine.high %v526_v57, %v530_v58  ;;  %v15420_v6 = vcombine.low %v526_v57, %v530_v58 }
  0x9f   :  { %417 = vmatpush1.bf16.msra.mxu0 %v17518_v27  ;;  %458 = vmatpush1.bf16.msra.mxu1 %v17519_v28  ;;  %v658_v60 = vld [vmem:[#allocation6 + $0x520] sm:$0xff] }
  0xa0   :  { %418 = vmatprep.subr.bf16.mxu0 %v17520_v29  ;;  %459 = vmatprep.subr.bf16.mxu1 %v17522_v30  ;;  %v518_v63 = vld [vmem:[#allocation6 + $0xc0] sm:$0xff]  ;;  %v15549_v5 = vcombine.high %v654_v59, %v658_v60  ;;  %v15548_v7 = vcombine.low %v654_v59, %v658_v60 }
  0xa1   :  { %v522_v1 = vld [vmem:[#allocation6 + $0xe0] sm:$0xff] }
  0xa2   :  { %v646_v2 = vld [vmem:[#allocation6 + $0x4c0] sm:$0xff]  ;;  %v15413_v12 = vcombine.high %v518_v63, %v522_v1  ;;  %v15412_v14 = vcombine.low %v518_v63, %v522_v1 }
  0xa3   :  { %419 = vmatpush1.bf16.msra.mxu0 %v17524_v35  ;;  %460 = vmatpush1.bf16.msra.mxu1 %v17525_v36  ;;  %v650_v3 = vld [vmem:[#allocation6 + $0x4e0] sm:$0xff] }
  0xa4   :  { %2030 = vmatprep.subr.bf16.mxu0 %v15445_v38  ;;  %2071 = vmatprep.subr.bf16.mxu1 %v15573_v39  ;;  %v510_v8 = vld [vmem:[#allocation6 + $0x80] sm:$0xff]  ;;  %v15541_v13 = vcombine.high %v646_v2, %v650_v3  ;;  %v15540_v15 = vcombine.low %v646_v2, %v650_v3 }
  0xa5   :  { %v514_v9 = vld [vmem:[#allocation6 + $0xa0] sm:$0xff] }
  0xa6   :  { %437 = vmatmul.mubr.bf16.vlgmr.msra.gmra.mxu0 %v189_v44  ;;  %478 = vmatmul.mubr.bf16.vlgmr.msra.gmra.mxu1 %v189_v44  ;;  %v638_v10 = vld [vmem:[#allocation6 + $0x480] sm:$0xff]  ;;  %v15405_v20 = vcombine.high %v510_v8, %v514_v9  ;;  %v15404_v22 = vcombine.low %v510_v8, %v514_v9 }
  0xa7   :  { %2031 = vmatpush1.bf16.msra.mxu0 %v15444_v45  ;;  %2072 = vmatpush1.bf16.msra.mxu1 %v15572_v46  ;;  %v642_v11 = vld [vmem:[#allocation6 + $0x4a0] sm:$0xff] }
  0xa8   :  { %2032 = vmatprep.subr.bf16.mxu0 %v15437_v47  ;;  %2073 = vmatprep.subr.bf16.mxu1 %v15565_v48  ;;  %v502_v16 = vld [vmem:[#allocation6 + $0x40] sm:$0xff]  ;;  %v15533_v21 = vcombine.high %v638_v10, %v642_v11  ;;  %v15532_v23 = vcombine.low %v638_v10, %v642_v11 }
  0xa9   :  { %v506_v17 = vld [vmem:[#allocation6 + $0x60] sm:$0xff] }
  0xaa   :  { %v630_v18 = vld [vmem:[#allocation6 + $0x440] sm:$0xff]  ;;  %v15397_v28 = vcombine.high %v502_v16, %v506_v17  ;;  %v15396_v30 = vcombine.low %v502_v16, %v506_v17 }
  0xab   :  { %2033 = vmatpush1.bf16.msra.mxu0 %v15436_v53  ;;  %2074 = vmatpush1.bf16.msra.mxu1 %v15564_v54  ;;  %v634_v19 = vld [vmem:[#allocation6 + $0x460] sm:$0xff] }
  0xac   :  { %2034 = vmatprep.subr.bf16.mxu0 %v15429_v55  ;;  %2075 = vmatprep.subr.bf16.mxu1 %v15557_v56  ;;  %v494_v24 = vld [vmem:[#allocation6] sm:$0xff]  ;;  %v15525_v29 = vcombine.high %v630_v18, %v634_v19  ;;  %v15524_v31 = vcombine.low %v630_v18, %v634_v19 }
  0xad   :  { %v498_v25 = vld [vmem:[#allocation6 + $0x20] sm:$0xff] }
  0xae   :  { %v622_v26 = vld [vmem:[#allocation6 + $0x400] sm:$0xff]  ;;  %v15389_v36 = vcombine.high %v494_v24, %v498_v25  ;;  %v15388_v38 = vcombine.low %v494_v24, %v498_v25 }
  0xaf   :  { %2035 = vmatpush1.bf16.msra.mxu0 %v15428_v61  ;;  %2076 = vmatpush1.bf16.msra.mxu1 %v15556_v62  ;;  %v626_v27 = vld [vmem:[#allocation6 + $0x420] sm:$0xff] }
  0xb0   :  { %2036 = vmatprep.subr.bf16.mxu0 %v15421_v4  ;;  %2077 = vmatprep.subr.bf16.mxu1 %v15549_v5  ;;  %v614_v32 = vld [vmem:[#allocation6 + $0x3c0] sm:$0xff]  ;;  %v15517_v37 = vcombine.high %v622_v26, %v626_v27  ;;  %v15516_v39 = vcombine.low %v622_v26, %v626_v27 }
  0xb1   :  { %v618_v33 = vld [vmem:[#allocation6 + $0x3e0] sm:$0xff] }
  0xb2   :  { %v742_v34 = vld [vmem:[#allocation6 + $0x7c0] sm:$0xff]  ;;  %v15509_v44 = vcombine.high %v614_v32, %v618_v33  ;;  %v15508_v46 = vcombine.low %v614_v32, %v618_v33 }
  0xb3   :  { %2037 = vmatpush1.bf16.msra.mxu0 %v15420_v6  ;;  %2078 = vmatpush1.bf16.msra.mxu1 %v15548_v7  ;;  %v746_v35 = vld [vmem:[#allocation6 + $0x7e0] sm:$0xff] }
  0xb4   :  { %2038 = vmatprep.subr.bf16.mxu0 %v15413_v12  ;;  %2079 = vmatprep.subr.bf16.mxu1 %v15541_v13  ;;  %v606_v40 = vld [vmem:[#allocation6 + $0x380] sm:$0xff]  ;;  %v15637_v45 = vcombine.high %v742_v34, %v746_v35  ;;  %v15636_v47 = vcombine.low %v742_v34, %v746_v35 }
  0xb5   :  { %v610_v41 = vld [vmem:[#allocation6 + $0x3a0] sm:$0xff] }
  0xb6   :  { %v734_v42 = vld [vmem:[#allocation6 + $0x780] sm:$0xff]  ;;  %v15501_v52 = vcombine.high %v606_v40, %v610_v41  ;;  %v15500_v54 = vcombine.low %v606_v40, %v610_v41  ;;  %v683_v41 = vld [vmem:[#allocation6 + $0x5e8] sm:$0xff] }
  0xb7   :  { %2039 = vmatpush1.bf16.msra.mxu0 %v15412_v14  ;;  %2080 = vmatpush1.bf16.msra.mxu1 %v15540_v15  ;;  %v738_v43 = vld [vmem:[#allocation6 + $0x7a0] sm:$0xff] }
  0xb8   :  { %2040 = vmatprep.subr.bf16.mxu0 %v15405_v20  ;;  %2081 = vmatprep.subr.bf16.mxu1 %v15533_v21  ;;  %v598_v48 = vld [vmem:[#allocation6 + $0x340] sm:$0xff]  ;;  %v15629_v53 = vcombine.high %v734_v42, %v738_v43  ;;  %v15628_v55 = vcombine.low %v734_v42, %v738_v43 }
  0xb9   :  { %v602_v49 = vld [vmem:[#allocation6 + $0x360] sm:$0xff] }
  0xba   :  { %v726_v50 = vld [vmem:[#allocation6 + $0x740] sm:$0xff]  ;;  %v15493_v60 = vcombine.high %v598_v48, %v602_v49  ;;  %v15492_v62 = vcombine.low %v598_v48, %v602_v49 }
  0xbb   :  { %2041 = vmatpush1.bf16.msra.mxu0 %v15404_v22  ;;  %2082 = vmatpush1.bf16.msra.mxu1 %v15532_v23  ;;  %v730_v51 = vld [vmem:[#allocation6 + $0x760] sm:$0xff] }
  0xbc   :  { %2042 = vmatprep.subr.bf16.mxu0 %v15397_v28  ;;  %2083 = vmatprep.subr.bf16.mxu1 %v15525_v29  ;;  %v590_v56 = vld [vmem:[#allocation6 + $0x300] sm:$0xff]  ;;  %v15621_v61 = vcombine.high %v726_v50, %v730_v51  ;;  %v15620_v63 = vcombine.low %v726_v50, %v730_v51 }
  0xbd   :  { %v594_v57 = vld [vmem:[#allocation6 + $0x320] sm:$0xff] }
  0xbe   :  { %v718_v58 = vld [vmem:[#allocation6 + $0x700] sm:$0xff]  ;;  %v15485_v5 = vcombine.high %v590_v56, %v594_v57  ;;  %v15484_v7 = vcombine.low %v590_v56, %v594_v57 }
  0xbf   :  { %2043 = vmatpush1.bf16.msra.mxu0 %v15396_v30  ;;  %2084 = vmatpush1.bf16.msra.mxu1 %v15524_v31  ;;  %v722_v59 = vld [vmem:[#allocation6 + $0x720] sm:$0xff] }
  0xc0   :  { %2044 = vmatprep.subr.bf16.mxu0 %v15389_v36  ;;  %2085 = vmatprep.subr.bf16.mxu1 %v15517_v37  ;;  %v582_v1 = vld [vmem:[#allocation6 + $0x2c0] sm:$0xff]  ;;  %v15613_v6 = vcombine.high %v718_v58, %v722_v59  ;;  %v15612_v8 = vcombine.low %v718_v58, %v722_v59  ;;  %v551_v37 = vld [vmem:[#allocation6 + $0x1c8] sm:$0xff] }
  0xc1   :  { %v586_v2 = vld [vmem:[#allocation6 + $0x2e0] sm:$0xff] }
  0xc2   :  { %v710_v3 = vld [vmem:[#allocation6 + $0x6c0] sm:$0xff]  ;;  %v15477_v13 = vcombine.high %v582_v1, %v586_v2  ;;  %v15476_v15 = vcombine.low %v582_v1, %v586_v2 }
  0xc3   :  { %2045 = vmatpush1.bf16.msra.mxu0 %v15388_v38  ;;  %2086 = vmatpush1.bf16.msra.mxu1 %v15516_v39  ;;  %v714_v4 = vld [vmem:[#allocation6 + $0x6e0] sm:$0xff]  ;;  %v555_v38 = vld [vmem:[#allocation6 + $0x1e8] sm:$0xff] }
  0xc4   :  { %2046 = vmatprep.subr.bf16.mxu0 %v15509_v44  ;;  %2087 = vmatprep.subr.bf16.mxu1 %v15637_v45  ;;  %v574_v9 = vld [vmem:[#allocation6 + $0x280] sm:$0xff]  ;;  %v15605_v14 = vcombine.high %v710_v3, %v714_v4  ;;  %v15604_v16 = vcombine.low %v710_v3, %v714_v4  ;;  %v679_v39 = vld [vmem:[#allocation6 + $0x5c8] sm:$0xff]  ;;  %v15447_v40 = vcombine.high %v551_v37, %v555_v38  ;;  %v224_v45 = vlaneseq }
  0xc5   :  { %v578_v10 = vld [vmem:[#allocation6 + $0x2a0] sm:$0xff]  ;;  %v15446_v42 = vcombine.low %v551_v37, %v555_v38  ;;  %v15574_v43 = vcombine.low %v679_v39, %v683_v41  ;;  %v15575_v44 = vcombine.high %v679_v39, %v683_v41  ;;  %v647_v37 = vld [vmem:[#allocation6 + $0x4c8] sm:$0xff] }
  0xc6   :  { %v702_v11 = vld [vmem:[#allocation6 + $0x680] sm:$0xff]  ;;  %v15469_v17 = vcombine.high %v574_v9, %v578_v10  ;;  %v15468_v19 = vcombine.low %v574_v9, %v578_v10  ;;  %v675_v10 = vld [vmem:[#allocation6 + $0x5a8] sm:$0xff] }
  0xc7   :  { %2047 = vmatpush2.bf16.msra.mxu0 %v15508_v46  ;;  %2088 = vmatpush2.bf16.msra.mxu1 %v15636_v47  ;;  %v706_v12 = vld [vmem:[#allocation6 + $0x6a0] sm:$0xff]  ;;  %v225_v46 = vshrl.u32 %v224_v45, 7  ;;  %v222_v47 = vld [vmem:[#allocation4] sm:$0xf]  ;;  %v651_v38 = vld [vmem:[#allocation6 + $0x4e8] sm:$0xff] }
  0xc8   :  { %2048 = vmatprep.subr.bf16.mxu0 %v15501_v52  ;;  %2089 = vmatprep.subr.bf16.mxu1 %v15629_v53  ;;  %v15597_v18 = vcombine.high %v702_v11, %v706_v12  ;;  %v15596_v20 = vcombine.low %v702_v11, %v706_v12  ;;  %v566_v21 = vld [vmem:[#allocation6 + $0x240] sm:$0xff]  ;;  %v639_v45 = vld [vmem:[#allocation6 + $0x488] sm:$0xff] }
  0xc9   :  { %v570_v22 = vld [vmem:[#allocation6 + $0x260] sm:$0xff]  ;;  %v18477_v48 = vsub.s32 0, %v225_v46  ;;  %v234_v49 = vsub.s32 2, %v225_v46  ;;  %v18479_v50 = vsub.s32 1, %v225_v46  ;;  %v238_v51 = vsub.s32 3, %v225_v46  ;;  %v643_v46 = vld [vmem:[#allocation6 + $0x4a8] sm:$0xff] }
  0xca   :  { %v694_v23 = vld [vmem:[#allocation6 + $0x640] sm:$0xff]  ;;  %v15461_v24 = vcombine.high %v566_v21, %v570_v22  ;;  %v15460_v26 = vcombine.low %v566_v21, %v570_v22  ;;  %v667_v22 = vld [vmem:[#allocation6 + $0x568] sm:$0xff] }
  0xcb   :  { %2049 = vmatpush2.bf16.msra.mxu0 %v15500_v54  ;;  %2090 = vmatpush2.bf16.msra.mxu1 %v15628_v55  ;;  %v698_v25 = vld [vmem:[#allocation6 + $0x660] sm:$0xff]  ;;  %v227_v52 = vrot.slane %v222_v47, %v18477_v48  ;;  %v235_v53 = vrot.slane %v222_v47, %v234_v49  ;;  %v231_v54 = vrot.slane %v222_v47, %v18479_v50 }
  0xcc   :  { %2050 = vmatprep.subr.bf16.mxu0 %v15493_v60  ;;  %2091 = vmatprep.subr.bf16.mxu1 %v15621_v61  ;;  %v15588_v27 = vcombine.low %v694_v23, %v698_v25  ;;  %v15589_v28 = vcombine.high %v694_v23, %v698_v25  ;;  %v558_v29 = vld [vmem:[#allocation6 + $0x200] sm:$0xff]  ;;  %v239_v55 = vrot.slane %v222_v47, %v238_v51  ;;  %v527_v25 = vld [vmem:[#allocation6 + $0x108] sm:$0xff] }
  0xcd   :  { %v562_v30 = vld [vmem:[#allocation6 + $0x220] sm:$0xff]  ;;  %v15542_v49 = vcombine.low %v647_v37, %v651_v38 }
  0xce   :  { %v686_v31 = vld [vmem:[#allocation6 + $0x600] sm:$0xff]  ;;  %v15453_v32 = vcombine.high %v558_v29, %v562_v30  ;;  %v15452_v34 = vcombine.low %v558_v29, %v562_v30  ;;  %v655_v29 = vld [vmem:[#allocation6 + $0x508] sm:$0xff] }
  0xcf   :  { %2051 = vmatpush2.bf16.msra.mxu0 %v15492_v62  ;;  %2092 = vmatpush2.bf16.msra.mxu1 %v15620_v63  ;;  %v690_v33 = vld [vmem:[#allocation6 + $0x620] sm:$0xff]  ;;  %v659_v30 = vld [vmem:[#allocation6 + $0x528] sm:$0xff] }
  0xd0   :  { %2052 = vmatprep.subr.bf16.mxu0 %v15485_v5  ;;  %2093 = vmatprep.subr.bf16.mxu1 %v15613_v6  ;;  %v15580_v35 = vcombine.low %v686_v31, %v690_v33  ;;  %v15581_v36 = vcombine.high %v686_v31, %v690_v33  ;;  %v543_v5 = vld [vmem:[#allocation6 + $0x188] sm:$0xff] }
  0xd1   :  { %v547_v6 = vld [vmem:[#allocation6 + $0x1a8] sm:$0xff] }
  0xd2   :  { %v15438_v23 = vcombine.low %v543_v5, %v547_v6 }
  0xd3   :  { %2053 = vmatpush2.bf16.msra.mxu0 %v15484_v7  ;;  %2094 = vmatpush2.bf16.msra.mxu1 %v15612_v8  ;;  %v671_v7 = vld [vmem:[#allocation6 + $0x588] sm:$0xff] }
  0xd4   :  { %2054 = vmatprep.subr.bf16.mxu0 %v15477_v13  ;;  %2095 = vmatprep.subr.bf16.mxu1 %v15605_v14  ;;  %v15567_v21 = vcombine.high %v671_v7, %v675_v10 }
  0xd7   :  { %2055 = vmatpush2.bf16.msra.mxu0 %v15476_v15  ;;  %2096 = vmatpush2.bf16.msra.mxu1 %v15604_v16 }
  0xd8   :  { %2056 = vmatprep.subr.bf16.mxu0 %v15469_v17  ;;  %2097 = vmatprep.subr.bf16.mxu1 %v15597_v18  ;;  %v535_v17 = vld [vmem:[#allocation6 + $0x148] sm:$0xff] }
  0xd9   :  { %v539_v18 = vld [vmem:[#allocation6 + $0x168] sm:$0xff] }
  0xda   :  { %v15430_v31 = vcombine.low %v535_v17, %v539_v18 }
  0xdb   :  { %2057 = vmatpush2.bf16.msra.mxu0 %v15468_v19  ;;  %2098 = vmatpush2.bf16.msra.mxu1 %v15596_v20  ;;  %v663_v19 = vld [vmem:[#allocation6 + $0x548] sm:$0xff]  ;;  %v15439_v20 = vcombine.high %v543_v5, %v547_v6 }
  0xdc   :  { %2058 = vmatprep.subr.bf16.mxu0 %v15461_v24  ;;  %2099 = vmatprep.subr.bf16.mxu1 %v15589_v28  ;;  %v15566_v24 = vcombine.low %v671_v7, %v675_v10  ;;  %v531_v28 = vld [vmem:[#allocation6 + $0x128] sm:$0xff] }
  0xdd   :  { %v15423_v33 = vcombine.high %v527_v25, %v531_v28  ;;  %v15422_v39 = vcombine.low %v527_v25, %v531_v28  ;;  %v615_v6 = vld [vmem:[#allocation6 + $0x3c8] sm:$0xff] }
  0xde   :  { %v619_v7 = vld [vmem:[#allocation6 + $0x3e8] sm:$0xff] }
  0xdf   :  { %2059 = vmatpush2.bf16.msra.mxu0 %v15460_v26  ;;  %2100 = vmatpush2.bf16.msra.mxu1 %v15588_v27  ;;  %v15431_v26 = vcombine.high %v535_v17, %v539_v18  ;;  %v15559_v27 = vcombine.high %v663_v19, %v667_v22  ;;  %v607_v18 = vld [vmem:[#allocation6 + $0x388] sm:$0xff] }
  0xe0   :  { %2060 = vmatprep.subr.bf16.mxu0 %v15453_v32  ;;  %2101 = vmatprep.subr.bf16.mxu1 %v15581_v36  ;;  %v15558_v32 = vcombine.low %v663_v19, %v667_v22  ;;  %v523_v36 = vld [vmem:[#allocation6 + $0xe8] sm:$0xff]  ;;  %v15510_v22 = vcombine.low %v615_v6, %v619_v7 }
  0xe1   :  { %v611_v19 = vld [vmem:[#allocation6 + $0x3a8] sm:$0xff] }
  0xe2   :  { %v727_v28 = vld [vmem:[#allocation6 + $0x748] sm:$0xff] }
  0xe3   :  { %2061 = vmatpush2.bf16.msra.mxu0 %v15452_v34  ;;  %2102 = vmatpush2.bf16.msra.mxu1 %v15580_v35  ;;  %v15551_v34 = vcombine.high %v655_v29, %v659_v30  ;;  %v519_v35 = vld [vmem:[#allocation6 + $0xc8] sm:$0xff] }
  0xe4   :  { %2112 = vmatprep.subr.bf16.mxu0 %v15447_v40  ;;  %2153 = vmatprep.subr.bf16.mxu1 %v15575_v44  ;;  %v15550_v40 = vcombine.low %v655_v29, %v659_v30  ;;  %v15415_v41 = vcombine.high %v519_v35, %v523_v36  ;;  %v515_v44 = vld [vmem:[#allocation6 + $0xa8] sm:$0xff]  ;;  %v15414_v47 = vcombine.low %v519_v35, %v523_v36 }
  0xe5   :  { %v731_v29 = vld [vmem:[#allocation6 + $0x768] sm:$0xff]  ;;  %v15502_v30 = vcombine.low %v607_v18, %v611_v19 }
  0xe6   :  { %v595_v35 = vld [vmem:[#allocation6 + $0x328] sm:$0xff] }
  0xe7   :  { %v719_v36 = vld [vmem:[#allocation6 + $0x708] sm:$0xff] }
 0x166   :  { %v438_v56 = vpop.f32.mrf.mxu0  ;;  %v479_v57 = vpop.f32.mrf.mxu1 }
 0x167   :  { %v439_v58 = vadd.f32 %v438_v56, %v227_v52  ;;  %v480_v59 = vadd.f32 %v479_v57, %v235_v53  ;;  %v15535_v52 = vcombine.high %v639_v45, %v643_v46  ;;  %v503_v53 = vld [vmem:[#allocation6 + $0x48] sm:$0xff] }
 0x168   :  { %v440_v60 = vpop.f32.mrf.mxu0  ;;  %v481_v61 = vpop.f32.mrf.mxu1  ;;  %v635_v56 = vld [vmem:[#allocation6 + $0x468] sm:$0xff] }
 0x169   :  { %v441_v62 = vadd.f32 %v440_v60, %v231_v54  ;;  %v482_v63 = vadd.f32 %v481_v61, %v239_v55  ;;  %v486_v1 = vmax.f32 %v439_v58, 0.0  ;;  %v488_v2 = vmax.f32 %v480_v59, 0.0  ;;  %v507_v54 = vld [vmem:[#allocation6 + $0x68] sm:$0xff] }
 0x16a   :  { %v442_v3 = vpop.f32.mrf.mxu0  ;;  %v483_v4 = vpop.f32.mrf.mxu1  ;;  %v631_v55 = vld [vmem:[#allocation6 + $0x448] sm:$0xff]  ;;  %v15534_v58 = vcombine.low %v639_v45, %v643_v46  ;;  %v15399_v59 = vcombine.high %v503_v53, %v507_v54 }
 0x16b   :  { %v487_v8 = vmax.f32 %v441_v62, 0.0  ;;  %v489_v9 = vmax.f32 %v482_v63, 0.0  ;;  %v18487_v15 = vpack.c.bf16 %v486_v1, %v486_v1  ;;  %v18489_v16 = vpack.c.bf16 %v488_v2, %v488_v2  ;;  %v495_v61 = vld [vmem:[#allocation6 + $0x8] sm:$0xff] }
 0x16c   :  { %v443_v11 = vpop.f32.mrf.mxu0  ;;  %v484_v12 = vpop.f32.mrf.mxu1  ;;  %v15527_v60 = vcombine.high %v631_v55, %v635_v56  ;;  %v499_v62 = vld [vmem:[#allocation6 + $0x28] sm:$0xff]  ;;  %v15398_v2 = vcombine.low %v503_v53, %v507_v54  ;;  %v15526_v3 = vcombine.low %v631_v55, %v635_v56 }
 0x16d   :  { %v18483_v13 = vpack.c.bf16 %v487_v8, %v487_v8  ;;  %v18485_v14 = vpack.c.bf16 %v489_v9, %v489_v9  ;;  %v623_v63 = vld [vmem:[#allocation6 + $0x408] sm:$0xff]  ;;  %v15391_v4 = vcombine.high %v495_v61, %v499_v62  ;;  %v15390_v10 = vcombine.low %v495_v61, %v499_v62 }
 0x16e   :  { %v627_v1 = vld [vmem:[#allocation6 + $0x428] sm:$0xff]  ;;  %v15511_v12 = vcombine.high %v615_v6, %v619_v7 }
 0x16f   :  { %2062 = vmatprep.mubr.bf16.mxu0 %v18483_v13  ;;  %2103 = vmatprep.mubr.bf16.mxu1 %v18485_v14  ;;  %v15519_v5 = vcombine.high %v623_v63, %v627_v1  ;;  %v743_v8 = vld [vmem:[#allocation6 + $0x7c8] sm:$0xff]  ;;  %v15518_v11 = vcombine.low %v623_v63, %v627_v1 }
 0x170   :  { %2063 = vmatmul.mubr.bf16.vlgmr.msra.gmra.mxu0 %v18487_v15  ;;  %2104 = vmatmul.mubr.bf16.vlgmr.msra.gmra.mxu1 %v18489_v16  ;;  %v747_v9 = vld [vmem:[#allocation6 + $0x7e8] sm:$0xff] }
 0x171   :  { %2113 = vmatpush1.bf16.msra.mxu0 %v15446_v42  ;;  %2154 = vmatpush1.bf16.msra.mxu1 %v15574_v43  ;;  %v15543_v42 = vcombine.high %v647_v37, %v651_v38  ;;  %v511_v43 = vld [vmem:[#allocation6 + $0x88] sm:$0xff]  ;;  %v15639_v17 = vcombine.high %v743_v8, %v747_v9 }
 0x172   :  { %2144 = vmatprep.mubr.bf16.mxu0 %v18483_v13  ;;  %2185 = vmatprep.mubr.bf16.mxu1 %v18485_v14  ;;  %v15407_v51 = vcombine.high %v511_v43, %v515_v44  ;;  %v15406_v57 = vcombine.low %v511_v43, %v515_v44  ;;  %v723_v37 = vld [vmem:[#allocation6 + $0x728] sm:$0xff] }
 0x173   :  { %2114 = vmatprep.subr.bf16.mxu0 %v15439_v20  ;;  %2155 = vmatprep.subr.bf16.mxu1 %v15567_v21  ;;  %v735_v20 = vld [vmem:[#allocation6 + $0x788] sm:$0xff] }
 0x174   :  { %v739_v21 = vld [vmem:[#allocation6 + $0x7a8] sm:$0xff] }
 0x175   :  { %2115 = vmatpush1.bf16.msra.mxu0 %v15438_v23  ;;  %2156 = vmatpush1.bf16.msra.mxu1 %v15566_v24  ;;  %v15638_v23 = vcombine.low %v743_v8, %v747_v9  ;;  %v15503_v24 = vcombine.high %v607_v18, %v611_v19  ;;  %v15631_v25 = vcombine.high %v735_v20, %v739_v21  ;;  %v587_v43 = vld [vmem:[#allocation6 + $0x2e8] sm:$0xff]  ;;  %v556_v18 = vld [vmem:[#allocation6 + $0x1f0] sm:$0xff] }
 0x176   :  { %2116 = vmatprep.subr.bf16.mxu0 %v15431_v26  ;;  %2157 = vmatprep.subr.bf16.mxu1 %v15559_v27  ;;  %v599_v26 = vld [vmem:[#allocation6 + $0x348] sm:$0xff]  ;;  %v680_v19 = vld [vmem:[#allocation6 + $0x5d0] sm:$0xff] }
 0x177   :  { %v603_v27 = vld [vmem:[#allocation6 + $0x368] sm:$0xff] }
 0x178   :  { %v15494_v38 = vcombine.low %v599_v26, %v603_v27  ;;  %v711_v44 = vld [vmem:[#allocation6 + $0x6c8] sm:$0xff] }
 0x179   :  { %2117 = vmatpush1.bf16.msra.mxu0 %v15430_v31  ;;  %2158 = vmatpush1.bf16.msra.mxu1 %v15558_v32  ;;  %v15630_v31 = vcombine.low %v735_v20, %v739_v21  ;;  %v15495_v32 = vcombine.high %v599_v26, %v603_v27  ;;  %v715_v45 = vld [vmem:[#allocation6 + $0x6e8] sm:$0xff]  ;;  %v684_v20 = vld [vmem:[#allocation6 + $0x5f0] sm:$0xff] }
 0x17a   :  { %2118 = vmatprep.subr.bf16.mxu0 %v15423_v33  ;;  %2159 = vmatprep.subr.bf16.mxu1 %v15551_v34  ;;  %v15623_v33 = vcombine.high %v727_v28, %v731_v29  ;;  %v591_v34 = vld [vmem:[#allocation6 + $0x308] sm:$0xff]  ;;  %v548_v26 = vld [vmem:[#allocation6 + $0x1b0] sm:$0xff] }
 0x17b   :  { %v15486_v46 = vcombine.low %v591_v34, %v595_v35  ;;  %v579_v53 = vld [vmem:[#allocation6 + $0x2a8] sm:$0xff]  ;;  %v672_v27 = vld [vmem:[#allocation6 + $0x590] sm:$0xff] }
 0x17c   :  { %v703_v54 = vld [vmem:[#allocation6 + $0x688] sm:$0xff] }
 0x17d   :  { %2119 = vmatpush1.bf16.msra.mxu0 %v15422_v39  ;;  %2160 = vmatpush1.bf16.msra.mxu1 %v15550_v40  ;;  %v15622_v39 = vcombine.low %v727_v28, %v731_v29  ;;  %v15487_v40 = vcombine.high %v591_v34, %v595_v35  ;;  %v707_v55 = vld [vmem:[#allocation6 + $0x6a8] sm:$0xff]  ;;  %v676_v28 = vld [vmem:[#allocation6 + $0x5b0] sm:$0xff] }
 0x17e   :  { %2120 = vmatprep.subr.bf16.mxu0 %v15415_v41  ;;  %2161 = vmatprep.subr.bf16.mxu1 %v15543_v42  ;;  %v15615_v41 = vcombine.high %v719_v36, %v723_v37  ;;  %v583_v42 = vld [vmem:[#allocation6 + $0x2c8] sm:$0xff]  ;;  %v15569_v35 = vcombine.high %v672_v27, %v676_v28 }
 0x17f   :  { %v15478_v56 = vcombine.low %v583_v42, %v587_v43  ;;  %v571_v61 = vld [vmem:[#allocation6 + $0x268] sm:$0xff] }
 0x180   :  { %v695_v62 = vld [vmem:[#allocation6 + $0x648] sm:$0xff] }
 0x181   :  { %2121 = vmatpush1.bf16.msra.mxu0 %v15414_v47  ;;  %2162 = vmatpush1.bf16.msra.mxu1 %v15542_v49  ;;  %v15614_v47 = vcombine.low %v719_v36, %v723_v37  ;;  %v15479_v49 = vcombine.high %v583_v42, %v587_v43  ;;  %v699_v63 = vld [vmem:[#allocation6 + $0x668] sm:$0xff]  ;;  %v668_v36 = vld [vmem:[#allocation6 + $0x570] sm:$0xff] }
 0x182   :  { %2122 = vmatprep.subr.bf16.mxu0 %v15407_v51  ;;  %2163 = vmatprep.subr.bf16.mxu1 %v15535_v52  ;;  %v15607_v51 = vcombine.high %v711_v44, %v715_v45  ;;  %v575_v52 = vld [vmem:[#allocation6 + $0x288] sm:$0xff]  ;;  %v656_v42 = vld [vmem:[#allocation6 + $0x510] sm:$0xff] }
 0x183   :  { %v15470_v1 = vcombine.low %v575_v52, %v579_v53  ;;  %v563_v6 = vld [vmem:[#allocation6 + $0x228] sm:$0xff] }
 0x184   :  { %v687_v7 = vld [vmem:[#allocation6 + $0x608] sm:$0xff] }
 0x185   :  { %2123 = vmatpush1.bf16.msra.mxu0 %v15406_v57  ;;  %2164 = vmatpush1.bf16.msra.mxu1 %v15534_v58  ;;  %v15606_v57 = vcombine.low %v711_v44, %v715_v45  ;;  %v15471_v58 = vcombine.high %v575_v52, %v579_v53  ;;  %v691_v8 = vld [vmem:[#allocation6 + $0x628] sm:$0xff]  ;;  %v660_v44 = vld [vmem:[#allocation6 + $0x530] sm:$0xff] }
 0x186   :  { %2124 = vmatprep.subr.bf16.mxu0 %v15399_v59  ;;  %2165 = vmatprep.subr.bf16.mxu1 %v15527_v60  ;;  %v15599_v59 = vcombine.high %v703_v54, %v707_v55  ;;  %v567_v60 = vld [vmem:[#allocation6 + $0x248] sm:$0xff]  ;;  %v648_v52 = vld [vmem:[#allocation6 + $0x4d0] sm:$0xff]  ;;  %v15553_v53 = vcombine.high %v656_v42, %v660_v44 }
 0x187   :  { %v15462_v9 = vcombine.low %v567_v60, %v571_v61 }
 0x189   :  { %2125 = vmatpush1.bf16.msra.mxu0 %v15398_v2  ;;  %2166 = vmatpush1.bf16.msra.mxu1 %v15526_v3  ;;  %v15598_v2 = vcombine.low %v703_v54, %v707_v55  ;;  %v15463_v3 = vcombine.high %v567_v60, %v571_v61  ;;  %v652_v54 = vld [vmem:[#allocation6 + $0x4f0] sm:$0xff] }
 0x18a   :  { %2126 = vmatprep.subr.bf16.mxu0 %v15391_v4  ;;  %2167 = vmatprep.subr.bf16.mxu1 %v15519_v5  ;;  %v15591_v4 = vcombine.high %v695_v62, %v699_v63  ;;  %v559_v5 = vld [vmem:[#allocation6 + $0x208] sm:$0xff]  ;;  %v640_v60 = vld [vmem:[#allocation6 + $0x490] sm:$0xff]  ;;  %v15545_v61 = vcombine.high %v648_v52, %v652_v54 }
 0x18b   :  { %v15454_v21 = vcombine.low %v559_v5, %v563_v6 }
 0x18d   :  { %2127 = vmatpush1.bf16.msra.mxu0 %v15390_v10  ;;  %2168 = vmatpush1.bf16.msra.mxu1 %v15518_v11  ;;  %v15590_v10 = vcombine.low %v695_v62, %v699_v63  ;;  %v15455_v11 = vcombine.high %v559_v5, %v563_v6  ;;  %v644_v62 = vld [vmem:[#allocation6 + $0x4b0] sm:$0xff] }
 0x18e   :  { %2128 = vmatprep.subr.bf16.mxu0 %v15511_v12  ;;  %2169 = vmatprep.subr.bf16.mxu1 %v15639_v17  ;;  %v15583_v12 = vcombine.high %v687_v7, %v691_v8  ;;  %v552_v17 = vld [vmem:[#allocation6 + $0x1d0] sm:$0xff]  ;;  %v15537_v5 = vcombine.high %v640_v60, %v644_v62 }
 0x18f   :  { %v15448_v29 = vcombine.low %v552_v17, %v556_v18  ;;  %v632_v6 = vld [vmem:[#allocation6 + $0x450] sm:$0xff] }
 0x191   :  { %2129 = vmatpush2.bf16.msra.mxu0 %v15510_v22  ;;  %2170 = vmatpush2.bf16.msra.mxu1 %v15638_v23  ;;  %v15582_v22 = vcombine.low %v687_v7, %v691_v8  ;;  %v15449_v23 = vcombine.high %v552_v17, %v556_v18  ;;  %v636_v7 = vld [vmem:[#allocation6 + $0x470] sm:$0xff] }
 0x192   :  { %2130 = vmatprep.subr.bf16.mxu0 %v15503_v24  ;;  %2171 = vmatprep.subr.bf16.mxu1 %v15631_v25  ;;  %v15577_v24 = vcombine.high %v680_v19, %v684_v20  ;;  %v544_v25 = vld [vmem:[#allocation6 + $0x190] sm:$0xff] }
 0x193   :  { %v15441_v34 = vcombine.high %v544_v25, %v548_v26  ;;  %v15440_v37 = vcombine.low %v544_v25, %v548_v26  ;;  %v624_v17 = vld [vmem:[#allocation6 + $0x410] sm:$0xff] }
 0x194   :  { %v628_v18 = vld [vmem:[#allocation6 + $0x430] sm:$0xff] }
 0x195   :  { %2131 = vmatpush2.bf16.msra.mxu0 %v15502_v30  ;;  %2172 = vmatpush2.bf16.msra.mxu1 %v15630_v31  ;;  %v536_v30 = vld [vmem:[#allocation6 + $0x150] sm:$0xff] }
 0x196   :  { %2132 = vmatprep.subr.bf16.mxu0 %v15495_v32  ;;  %2173 = vmatprep.subr.bf16.mxu1 %v15623_v33  ;;  %v540_v31 = vld [vmem:[#allocation6 + $0x170] sm:$0xff]  ;;  %v15576_v32 = vcombine.low %v680_v19, %v684_v20  ;;  %v15529_v19 = vcombine.high %v632_v6, %v636_v7 }
 0x197   :  { %v664_v33 = vld [vmem:[#allocation6 + $0x550] sm:$0xff]  ;;  %v15432_v45 = vcombine.low %v536_v30, %v540_v31 }
 0x198   :  { %v15561_v43 = vcombine.high %v664_v33, %v668_v36  ;;  %v620_v25 = vld [vmem:[#allocation6 + $0x3f0] sm:$0xff] }
 0x199   :  { %2133 = vmatpush2.bf16.msra.mxu0 %v15494_v38  ;;  %2174 = vmatpush2.bf16.msra.mxu1 %v15622_v39  ;;  %v528_v38 = vld [vmem:[#allocation6 + $0x110] sm:$0xff] }
 0x19a   :  { %2134 = vmatprep.subr.bf16.mxu0 %v15487_v40  ;;  %2175 = vmatprep.subr.bf16.mxu1 %v15615_v41  ;;  %v532_v39 = vld [vmem:[#allocation6 + $0x130] sm:$0xff]  ;;  %v15568_v40 = vcombine.low %v672_v27, %v676_v28  ;;  %v15433_v41 = vcombine.high %v536_v30, %v540_v31 }
 0x19b   :  { %v15424_v55 = vcombine.low %v528_v38, %v532_v39  ;;  %v744_v26 = vld [vmem:[#allocation6 + $0x7d0] sm:$0xff] }
 0x19c   :  { %v748_v27 = vld [vmem:[#allocation6 + $0x7f0] sm:$0xff] }
 0x19d   :  { %2135 = vmatpush2.bf16.msra.mxu0 %v15486_v46  ;;  %2176 = vmatpush2.bf16.msra.mxu1 %v15614_v47  ;;  %v520_v46 = vld [vmem:[#allocation6 + $0xd0] sm:$0xff]  ;;  %v15641_v31 = vcombine.high %v744_v26, %v748_v27 }
 0x19e   :  { %2136 = vmatprep.subr.bf16.mxu0 %v15479_v49  ;;  %2177 = vmatprep.subr.bf16.mxu1 %v15607_v51  ;;  %v524_v47 = vld [vmem:[#allocation6 + $0xf0] sm:$0xff]  ;;  %v15560_v49 = vcombine.low %v664_v33, %v668_v36  ;;  %v15425_v51 = vcombine.high %v528_v38, %v532_v39 }
 0x19f   :  { %v15416_v63 = vcombine.low %v520_v46, %v524_v47  ;;  %v612_v33 = vld [vmem:[#allocation6 + $0x3b0] sm:$0xff] }
 0x1a1   :  { %2137 = vmatpush2.bf16.msra.mxu0 %v15478_v56  ;;  %2178 = vmatpush2.bf16.msra.mxu1 %v15606_v57  ;;  %v512_v56 = vld [vmem:[#allocation6 + $0x90] sm:$0xff] }
 0x1a2   :  { %2138 = vmatprep.subr.bf16.mxu0 %v15471_v58  ;;  %2179 = vmatprep.subr.bf16.mxu1 %v15599_v59  ;;  %v516_v57 = vld [vmem:[#allocation6 + $0xb0] sm:$0xff]  ;;  %v15552_v58 = vcombine.low %v656_v42, %v660_v44  ;;  %v15417_v59 = vcombine.high %v520_v46, %v524_v47 }
 0x1a3   :  { %v15408_v8 = vcombine.low %v512_v56, %v516_v57  ;;  %v728_v42 = vld [vmem:[#allocation6 + $0x750] sm:$0xff] }
 0x1a5   :  { %2139 = vmatpush2.bf16.msra.mxu0 %v15470_v1  ;;  %2180 = vmatpush2.bf16.msra.mxu1 %v15598_v2  ;;  %v504_v1 = vld [vmem:[#allocation6 + $0x50] sm:$0xff] }
 0x1a6   :  { %2140 = vmatprep.subr.bf16.mxu0 %v15463_v3  ;;  %2181 = vmatprep.subr.bf16.mxu1 %v15591_v4  ;;  %v508_v2 = vld [vmem:[#allocation6 + $0x70] sm:$0xff]  ;;  %v15544_v3 = vcombine.low %v648_v52, %v652_v54  ;;  %v15409_v4 = vcombine.high %v512_v56, %v516_v57 }
 0x1a7   :  { %v15400_v20 = vcombine.low %v504_v1, %v508_v2  ;;  %v720_v52 = vld [vmem:[#allocation6 + $0x710] sm:$0xff] }
 0x1a9   :  { %2141 = vmatpush2.bf16.msra.mxu0 %v15462_v9  ;;  %2182 = vmatpush2.bf16.msra.mxu1 %v15590_v10  ;;  %v496_v9 = vld [vmem:[#allocation6 + $0x10] sm:$0xff] }
 0x1aa   :  { %2142 = vmatprep.subr.bf16.mxu0 %v15455_v11  ;;  %2183 = vmatprep.subr.bf16.mxu1 %v15583_v12  ;;  %v500_v10 = vld [vmem:[#allocation6 + $0x30] sm:$0xff]  ;;  %v15536_v11 = vcombine.low %v640_v60, %v644_v62  ;;  %v15401_v12 = vcombine.high %v504_v1, %v508_v2 }
 0x1ab   :  { %v15392_v28 = vcombine.low %v496_v9, %v500_v10  ;;  %v712_v60 = vld [vmem:[#allocation6 + $0x6d0] sm:$0xff] }
 0x1ad   :  { %2143 = vmatpush2.bf16.msra.mxu0 %v15454_v21  ;;  %2184 = vmatpush2.bf16.msra.mxu1 %v15582_v22  ;;  %v616_v21 = vld [vmem:[#allocation6 + $0x3d0] sm:$0xff]  ;;  %v15528_v22 = vcombine.low %v632_v6, %v636_v7 }
 0x1ae   :  { %2194 = vmatprep.subr.bf16.mxu0 %v15449_v23  ;;  %2235 = vmatprep.subr.bf16.mxu1 %v15577_v24  ;;  %v15393_v23 = vcombine.high %v496_v9, %v500_v10  ;;  %v15521_v24 = vcombine.high %v624_v17, %v628_v18  ;;  %v15513_v30 = vcombine.high %v616_v21, %v620_v25  ;;  %v708_v6 = vld [vmem:[#allocation6 + $0x6b0] sm:$0xff] }
 0x1af   :  { %v15512_v36 = vcombine.low %v616_v21, %v620_v25  ;;  %v688_v25 = vld [vmem:[#allocation6 + $0x610] sm:$0xff] }
 0x1b0   :  { %2145 = vmatmul.mubr.bf16.vlgmr.msra.gmra.mxu0 %v18487_v15  ;;  %2186 = vmatmul.mubr.bf16.vlgmr.msra.gmra.mxu1 %v18489_v16 }
 0x1b1   :  { %2195 = vmatpush1.bf16.msra.mxu0 %v15448_v29  ;;  %2226 = vmatprep.mubr.bf16.mxu0 %v18483_v13  ;;  %v15520_v29 = vcombine.low %v624_v17, %v628_v18  ;;  %v696_v17 = vld [vmem:[#allocation6 + $0x650] sm:$0xff] }
 0x1b2   :  { %2236 = vmatpush1.bf16.msra.mxu1 %v15576_v32  ;;  %2267 = vmatprep.mubr.bf16.mxu1 %v18485_v14  ;;  %v608_v32 = vld [vmem:[#allocation6 + $0x390] sm:$0xff] }
 0x1b3   :  { %2196 = vmatprep.subr.bf16.mxu0 %v15441_v34  ;;  %2237 = vmatprep.subr.bf16.mxu1 %v15569_v35  ;;  %v736_v34 = vld [vmem:[#allocation6 + $0x790] sm:$0xff]  ;;  %v15505_v38 = vcombine.high %v608_v32, %v612_v33  ;;  %v15504_v44 = vcombine.low %v608_v32, %v612_v33  ;;  %v557_v32 = vld [vmem:[#allocation6 + $0x1f8] sm:$0xff] }
 0x1b4   :  { %v740_v35 = vld [vmem:[#allocation6 + $0x7b0] sm:$0xff]  ;;  %v681_v33 = vld [vmem:[#allocation6 + $0x5d8] sm:$0xff] }
 0x1b5   :  { %2197 = vmatpush1.bf16.msra.mxu0 %v15440_v37  ;;  %v15640_v37 = vcombine.low %v744_v26, %v748_v27  ;;  %v15633_v39 = vcombine.high %v736_v34, %v740_v35  ;;  %v700_v18 = vld [vmem:[#allocation6 + $0x670] sm:$0xff] }
 0x1b6   :  { %2238 = vmatpush1.bf16.msra.mxu1 %v15568_v40  ;;  %2198 = vmatprep.subr.bf16.mxu0 %v15433_v41  ;;  %v600_v40 = vld [vmem:[#allocation6 + $0x350] sm:$0xff] }
 0x1b7   :  { %2239 = vmatprep.subr.bf16.mxu1 %v15561_v43  ;;  %v604_v41 = vld [vmem:[#allocation6 + $0x370] sm:$0xff] }
 0x1b8   :  { %v732_v43 = vld [vmem:[#allocation6 + $0x770] sm:$0xff]  ;;  %v15497_v46 = vcombine.high %v600_v40, %v604_v41  ;;  %v15496_v54 = vcombine.low %v600_v40, %v604_v41  ;;  %v549_v40 = vld [vmem:[#allocation6 + $0x1b8] sm:$0xff] }
 0x1b9   :  { %2199 = vmatpush1.bf16.msra.mxu0 %v15432_v45  ;;  %v15632_v45 = vcombine.low %v736_v34, %v740_v35  ;;  %v15625_v47 = vcombine.high %v728_v42, %v732_v43  ;;  %v692_v26 = vld [vmem:[#allocation6 + $0x630] sm:$0xff]  ;;  %v685_v34 = vld [vmem:[#allocation6 + $0x5f8] sm:$0xff] }
 0x1ba   :  { %2240 = vmatpush1.bf16.msra.mxu1 %v15560_v49  ;;  %2200 = vmatprep.subr.bf16.mxu0 %v15425_v51  ;;  %v592_v49 = vld [vmem:[#allocation6 + $0x310] sm:$0xff] }
 0x1bb   :  { %2241 = vmatprep.subr.bf16.mxu1 %v15553_v53  ;;  %v596_v51 = vld [vmem:[#allocation6 + $0x330] sm:$0xff] }
 0x1bc   :  { %v724_v53 = vld [vmem:[#allocation6 + $0x730] sm:$0xff]  ;;  %v15489_v56 = vcombine.high %v592_v49, %v596_v51  ;;  %v15488_v62 = vcombine.low %v592_v49, %v596_v51  ;;  %v665_v51 = vld [vmem:[#allocation6 + $0x558] sm:$0xff] }
 0x1bd   :  { %2201 = vmatpush1.bf16.msra.mxu0 %v15424_v55  ;;  %v15624_v55 = vcombine.low %v728_v42, %v732_v43  ;;  %v15617_v57 = vcombine.high %v720_v52, %v724_v53  ;;  %v673_v42 = vld [vmem:[#allocation6 + $0x598] sm:$0xff] }
 0x1be   :  { %2242 = vmatpush1.bf16.msra.mxu1 %v15552_v58  ;;  %2202 = vmatprep.subr.bf16.mxu0 %v15417_v59  ;;  %v584_v58 = vld [vmem:[#allocation6 + $0x2d0] sm:$0xff]  ;;  %v677_v43 = vld [vmem:[#allocation6 + $0x5b8] sm:$0xff] }
 0x1bf   :  { %2243 = vmatprep.subr.bf16.mxu1 %v15545_v61  ;;  %v588_v59 = vld [vmem:[#allocation6 + $0x2f0] sm:$0xff]  ;;  %v15571_v49 = vcombine.high %v673_v42, %v677_v43 }
 0x1c0   :  { %v716_v61 = vld [vmem:[#allocation6 + $0x6f0] sm:$0xff]  ;;  %v15481_v1 = vcombine.high %v584_v58, %v588_v59  ;;  %v15480_v7 = vcombine.low %v584_v58, %v588_v59  ;;  %v533_v58 = vld [vmem:[#allocation6 + $0x138] sm:$0xff] }
 0x1c1   :  { %2203 = vmatpush1.bf16.msra.mxu0 %v15416_v63  ;;  %v15616_v63 = vcombine.low %v720_v52, %v724_v53  ;;  %v15609_v2 = vcombine.high %v712_v60, %v716_v61  ;;  %v669_v52 = vld [vmem:[#allocation6 + $0x578] sm:$0xff] }
 0x1c2   :  { %2244 = vmatpush1.bf16.msra.mxu1 %v15544_v3  ;;  %2204 = vmatprep.subr.bf16.mxu0 %v15409_v4  ;;  %v576_v3 = vld [vmem:[#allocation6 + $0x290] sm:$0xff]  ;;  %v657_v59 = vld [vmem:[#allocation6 + $0x518] sm:$0xff] }
 0x1c3   :  { %2245 = vmatprep.subr.bf16.mxu1 %v15537_v5  ;;  %v580_v4 = vld [vmem:[#allocation6 + $0x2b0] sm:$0xff] }
 0x1c4   :  { %v704_v5 = vld [vmem:[#allocation6 + $0x690] sm:$0xff]  ;;  %v15473_v9 = vcombine.high %v576_v3, %v580_v4 }
 0x1c5   :  { %2205 = vmatpush1.bf16.msra.mxu0 %v15408_v8  ;;  %v15608_v8 = vcombine.low %v712_v60, %v716_v61  ;;  %v15601_v10 = vcombine.high %v704_v5, %v708_v6  ;;  %v661_v60 = vld [vmem:[#allocation6 + $0x538] sm:$0xff] }
 0x1c6   :  { %2246 = vmatpush1.bf16.msra.mxu1 %v15536_v11  ;;  %2206 = vmatprep.subr.bf16.mxu0 %v15401_v12  ;;  %v568_v11 = vld [vmem:[#allocation6 + $0x250] sm:$0xff] }
 0x1c7   :  { %2247 = vmatprep.subr.bf16.mxu1 %v15529_v19  ;;  %v572_v12 = vld [vmem:[#allocation6 + $0x270] sm:$0xff]  ;;  %v15472_v19 = vcombine.low %v576_v3, %v580_v4  ;;  %v649_v3 = vld [vmem:[#allocation6 + $0x4d8] sm:$0xff] }
 0x1c8   :  { %v15465_v21 = vcombine.high %v568_v11, %v572_v12  ;;  %v15464_v27 = vcombine.low %v568_v11, %v572_v12  ;;  %v653_v4 = vld [vmem:[#allocation6 + $0x4f8] sm:$0xff] }
 0x1c9   :  { %2207 = vmatpush1.bf16.msra.mxu0 %v15400_v20  ;;  %v15600_v20 = vcombine.low %v704_v5, %v708_v6  ;;  %v15554_v5 = vcombine.low %v657_v59, %v661_v60  ;;  %v645_v11 = vld [vmem:[#allocation6 + $0x4b8] sm:$0xff] }
 0x1ca   :  { %2248 = vmatpush1.bf16.msra.mxu1 %v15528_v22  ;;  %2208 = vmatprep.subr.bf16.mxu0 %v15393_v23  ;;  %v15593_v22 = vcombine.high %v696_v17, %v700_v18  ;;  %v560_v23 = vld [vmem:[#allocation6 + $0x210] sm:$0xff] }
 0x1cb   :  { %2249 = vmatprep.subr.bf16.mxu1 %v15521_v24  ;;  %v564_v24 = vld [vmem:[#allocation6 + $0x230] sm:$0xff] }
 0x1cc   :  { %v15456_v35 = vcombine.low %v560_v23, %v564_v24 }
 0x1cd   :  { %2209 = vmatpush1.bf16.msra.mxu0 %v15392_v28  ;;  %v15592_v28 = vcombine.low %v696_v17, %v700_v18  ;;  %v15546_v17 = vcombine.low %v649_v3, %v653_v4 }
 0x1ce   :  { %2250 = vmatpush1.bf16.msra.mxu1 %v15520_v29  ;;  %2210 = vmatprep.subr.bf16.mxu0 %v15513_v30  ;;  %v15457_v29 = vcombine.high %v560_v23, %v564_v24  ;;  %v15585_v30 = vcombine.high %v688_v25, %v692_v26  ;;  %v637_v23 = vld [vmem:[#allocation6 + $0x478] sm:$0xff] }
 0x1cf   :  { %2251 = vmatprep.subr.bf16.mxu1 %v15641_v31  ;;  %v553_v31 = vld [vmem:[#allocation6 + $0x1d8] sm:$0xff] }
 0x1d0   :  { %v15450_v41 = vcombine.low %v553_v31, %v557_v32 }
 0x1d1   :  { %2211 = vmatpush2.bf16.msra.mxu0 %v15512_v36  ;;  %v15584_v36 = vcombine.low %v688_v25, %v692_v26 }
 0x1d2   :  { %2252 = vmatpush2.bf16.msra.mxu1 %v15640_v37  ;;  %2212 = vmatprep.subr.bf16.mxu0 %v15505_v38  ;;  %v15451_v37 = vcombine.high %v553_v31, %v557_v32  ;;  %v15579_v38 = vcombine.high %v681_v33, %v685_v34  ;;  %v629_v31 = vld [vmem:[#allocation6 + $0x438] sm:$0xff] }
 0x1d3   :  { %2253 = vmatprep.subr.bf16.mxu1 %v15633_v39  ;;  %v545_v39 = vld [vmem:[#allocation6 + $0x198] sm:$0xff] }
 0x1d4   :  { %v15442_v53 = vcombine.low %v545_v39, %v549_v40 }
 0x1d5   :  { %2213 = vmatpush2.bf16.msra.mxu0 %v15504_v44  ;;  %v15578_v44 = vcombine.low %v681_v33, %v685_v34 }
 0x1d6   :  { %2254 = vmatpush2.bf16.msra.mxu1 %v15632_v45  ;;  %2214 = vmatprep.subr.bf16.mxu0 %v15497_v46  ;;  %v15443_v45 = vcombine.high %v545_v39, %v549_v40  ;;  %v537_v46 = vld [vmem:[#allocation6 + $0x158] sm:$0xff] }
 0x1d7   :  { %2255 = vmatprep.subr.bf16.mxu1 %v15625_v47  ;;  %v541_v47 = vld [vmem:[#allocation6 + $0x178] sm:$0xff] }
 0x1d8   :  { %v15434_v61 = vcombine.low %v537_v46, %v541_v47  ;;  %v749_v39 = vld [vmem:[#allocation6 + $0x7f8] sm:$0xff] }
 0x1d9   :  { %2215 = vmatpush2.bf16.msra.mxu0 %v15496_v54  ;;  %v15570_v54 = vcombine.low %v673_v42, %v677_v43 }
 0x1da   :  { %2256 = vmatpush2.bf16.msra.mxu1 %v15624_v55  ;;  %2216 = vmatprep.subr.bf16.mxu0 %v15489_v56  ;;  %v15435_v55 = vcombine.high %v537_v46, %v541_v47  ;;  %v15563_v56 = vcombine.high %v665_v51, %v669_v52  ;;  %v737_v46 = vld [vmem:[#allocation6 + $0x798] sm:$0xff] }
 0x1db   :  { %2257 = vmatprep.subr.bf16.mxu1 %v15617_v57  ;;  %v529_v57 = vld [vmem:[#allocation6 + $0x118] sm:$0xff] }
 0x1dc   :  { %v741_v47 = vld [vmem:[#allocation6 + $0x7b8] sm:$0xff] }
 0x1dd   :  { %2217 = vmatpush2.bf16.msra.mxu0 %v15488_v62  ;;  %v15562_v62 = vcombine.low %v665_v51, %v669_v52 }
 0x1de   :  { %2258 = vmatpush2.bf16.msra.mxu1 %v15616_v63  ;;  %2218 = vmatprep.subr.bf16.mxu0 %v15481_v1  ;;  %v15427_v63 = vcombine.high %v529_v57, %v533_v58  ;;  %v521_v1 = vld [vmem:[#allocation6 + $0xd8] sm:$0xff] }
 0x1df   :  { %2259 = vmatprep.subr.bf16.mxu1 %v15609_v2  ;;  %v525_v2 = vld [vmem:[#allocation6 + $0xf8] sm:$0xff] }
 0x1e0   :  { %v15419_v6 = vcombine.high %v521_v1, %v525_v2  ;;  %v15418_v12 = vcombine.low %v521_v1, %v525_v2  ;;  %v725_v1 = vld [vmem:[#allocation6 + $0x738] sm:$0xff] }
 0x1e1   :  { %2219 = vmatpush2.bf16.msra.mxu0 %v15480_v7  ;;  %v15547_v7 = vcombine.high %v649_v3, %v653_v4 }
 0x1e2   :  { %2260 = vmatpush2.bf16.msra.mxu1 %v15608_v8  ;;  %2220 = vmatprep.subr.bf16.mxu0 %v15473_v9  ;;  %v513_v8 = vld [vmem:[#allocation6 + $0x98] sm:$0xff] }
 0x1e3   :  { %2261 = vmatprep.subr.bf16.mxu1 %v15601_v10  ;;  %v517_v9 = vld [vmem:[#allocation6 + $0xb8] sm:$0xff] }
 0x1e4   :  { %v641_v10 = vld [vmem:[#allocation6 + $0x498] sm:$0xff]  ;;  %v15411_v18 = vcombine.high %v513_v8, %v517_v9  ;;  %v15410_v24 = vcombine.low %v513_v8, %v517_v9 }
 0x1e5   :  { %2221 = vmatpush2.bf16.msra.mxu0 %v15472_v19  ;;  %v15539_v19 = vcombine.high %v641_v10, %v645_v11  ;;  %v15538_v25 = vcombine.low %v641_v10, %v645_v11  ;;  %v717_v8 = vld [vmem:[#allocation6 + $0x6f8] sm:$0xff] }
 0x1e6   :  { %2262 = vmatpush2.bf16.msra.mxu1 %v15600_v20  ;;  %2222 = vmatprep.subr.bf16.mxu0 %v15465_v21  ;;  %v505_v20 = vld [vmem:[#allocation6 + $0x58] sm:$0xff] }
 0x1e7   :  { %2263 = vmatprep.subr.bf16.mxu1 %v15593_v22  ;;  %v509_v21 = vld [vmem:[#allocation6 + $0x78] sm:$0xff] }
 0x1e8   :  { %v633_v22 = vld [vmem:[#allocation6 + $0x458] sm:$0xff]  ;;  %v15403_v26 = vcombine.high %v505_v20, %v509_v21  ;;  %v15402_v32 = vcombine.low %v505_v20, %v509_v21 }
 0x1e9   :  { %2223 = vmatpush2.bf16.msra.mxu0 %v15464_v27  ;;  %v15531_v27 = vcombine.high %v633_v22, %v637_v23  ;;  %v15530_v33 = vcombine.low %v633_v22, %v637_v23  ;;  %v709_v20 = vld [vmem:[#allocation6 + $0x6b8] sm:$0xff] }
 0x1ea   :  { %2264 = vmatpush2.bf16.msra.mxu1 %v15592_v28  ;;  %2224 = vmatprep.subr.bf16.mxu0 %v15457_v29  ;;  %v497_v28 = vld [vmem:[#allocation6 + $0x18] sm:$0xff] }
 0x1eb   :  { %2265 = vmatprep.subr.bf16.mxu1 %v15585_v30  ;;  %v501_v29 = vld [vmem:[#allocation6 + $0x38] sm:$0xff] }
 0x1ec   :  { %v625_v30 = vld [vmem:[#allocation6 + $0x418] sm:$0xff]  ;;  %v15395_v34 = vcombine.high %v497_v28, %v501_v29  ;;  %v15394_v40 = vcombine.low %v497_v28, %v501_v29 }
 0x1ed   :  { %2225 = vmatpush2.bf16.msra.mxu0 %v15456_v35  ;;  %v15523_v35 = vcombine.high %v625_v30, %v629_v31  ;;  %v701_v28 = vld [vmem:[#allocation6 + $0x678] sm:$0xff] }
 0x1ee   :  { %2266 = vmatpush2.bf16.msra.mxu1 %v15584_v36  ;;  %2276 = vmatprep.subr.bf16.mxu0 %v15451_v37  ;;  %v617_v36 = vld [vmem:[#allocation6 + $0x3d8] sm:$0xff] }
 0x1ef   :  { %2317 = vmatprep.subr.bf16.mxu1 %v15579_v38  ;;  %v621_v37 = vld [vmem:[#allocation6 + $0x3f8] sm:$0xff] }
 0x1f0   :  { %2227 = vmatmul.mubr.bf16.vlgmr.msra.gmra.mxu0 %v18487_v15  ;;  %v745_v38 = vld [vmem:[#allocation6 + $0x7d8] sm:$0xff]  ;;  %v15515_v42 = vcombine.high %v617_v36, %v621_v37 }
 0x1f1   :  { %2268 = vmatmul.mubr.bf16.vlgmr.msra.gmra.mxu1 %v18489_v16  ;;  %2277 = vmatpush1.bf16.msra.mxu0 %v15450_v41  ;;  %v15522_v41 = vcombine.low %v625_v30, %v629_v31  ;;  %v15643_v43 = vcombine.high %v745_v38, %v749_v39  ;;  %v15642_v51 = vcombine.low %v745_v38, %v749_v39 }
 0x1f2   :  { %2308 = vmatprep.mubr.bf16.mxu0 %v18483_v13  ;;  %2318 = vmatpush1.bf16.msra.mxu1 %v15578_v44  ;;  %v15555_v13 = vcombine.high %v657_v59, %v661_v60  ;;  %v609_v44 = vld [vmem:[#allocation6 + $0x398] sm:$0xff]  ;;  %v15634_v59 = vcombine.low %v737_v46, %v741_v47 }
 0x1f3   :  { %2349 = vmatprep.mubr.bf16.mxu1 %v18485_v14  ;;  %2278 = vmatprep.subr.bf16.mxu0 %v15443_v45  ;;  %v15426_v14 = vcombine.low %v529_v57, %v533_v58  ;;  %v613_v45 = vld [vmem:[#allocation6 + $0x3b8] sm:$0xff] }
 0x1f4   :  { %2319 = vmatprep.subr.bf16.mxu1 %v15571_v49  ;;  %v15514_v49 = vcombine.low %v617_v36, %v621_v37  ;;  %v15507_v52 = vcombine.high %v609_v44, %v613_v45  ;;  %v733_v57 = vld [vmem:[#allocation6 + $0x778] sm:$0xff]  ;;  %v15506_v58 = vcombine.low %v609_v44, %v613_v45 }
 0x1f5   :  { %2279 = vmatpush1.bf16.msra.mxu0 %v15442_v53  ;;  %v15635_v53 = vcombine.high %v737_v46, %v741_v47  ;;  %v693_v36 = vld [vmem:[#allocation6 + $0x638] sm:$0xff]  ;;  %v17528_v46 = vld [vmem:[#allocation7 + $0x70] sm:$0xff]  }
 0x1f6   :  { %2320 = vmatpush1.bf16.msra.mxu1 %v15570_v54  ;;  %2280 = vmatprep.subr.bf16.mxu0 %v15435_v55  ;;  %v601_v54 = vld [vmem:[#allocation6 + $0x358] sm:$0xff] }
 0x1f7   :  { %2321 = vmatprep.subr.bf16.mxu1 %v15563_v56  ;;  %v605_v55 = vld [vmem:[#allocation6 + $0x378] sm:$0xff] }
 0x1f8   :  { %v729_v56 = vld [vmem:[#allocation6 + $0x758] sm:$0xff]  ;;  %v15499_v60 = vcombine.high %v601_v54, %v605_v55  ;;  %v15498_v2 = vcombine.low %v601_v54, %v605_v55  ;;  %v17529_v54 = vld [vmem:[#allocation7 + $0x30] sm:$0xff]  }
 0x1f9   :  { %2281 = vmatpush1.bf16.msra.mxu0 %v15434_v61  ;;  %v15627_v61 = vcombine.high %v729_v56, %v733_v57  ;;  %v15626_v3 = vcombine.low %v729_v56, %v733_v57  ;;  %v17542_v44 = vld [vmem:[#allocation7 + $0xf8] sm:$0xff]   ;;  %v17530_v57 = vld [vmem:[#allocation7 + $0x68] sm:$0xff]  }
 0x1fa   :  { %2322 = vmatpush1.bf16.msra.mxu1 %v15562_v62  ;;  %2282 = vmatprep.subr.bf16.mxu0 %v15427_v63  ;;  %v593_v62 = vld [vmem:[#allocation6 + $0x318] sm:$0xff] }
 0x1fb   :  { %2323 = vmatprep.subr.bf16.mxu1 %v15555_v13  ;;  %v597_v63 = vld [vmem:[#allocation6 + $0x338] sm:$0xff] }
 0x1fc   :  { %v721_v13 = vld [vmem:[#allocation6 + $0x718] sm:$0xff]  ;;  %v15491_v4 = vcombine.high %v593_v62, %v597_v63  ;;  %v15490_v9 = vcombine.low %v593_v62, %v597_v63 }
 0x1fd   :  { %2283 = vmatpush1.bf16.msra.mxu0 %v15426_v14  ;;  %v15619_v14 = vcombine.high %v721_v13, %v725_v1  ;;  %v15618_v10 = vcombine.low %v721_v13, %v725_v1  ;;  %v17527_v45 = vld [vmem:[#allocation7 + $0x38] sm:$0xff]  }
 0x1fe   :  { %2324 = vmatpush1.bf16.msra.mxu1 %v15554_v5  ;;  %2284 = vmatprep.subr.bf16.mxu0 %v15419_v6  ;;  %v585_v5 = vld [vmem:[#allocation6 + $0x2d8] sm:$0xff] }
 0x1ff   :  { %2325 = vmatprep.subr.bf16.mxu1 %v15547_v7  ;;  %v589_v6 = vld [vmem:[#allocation6 + $0x2f8] sm:$0xff] }
 0x200   :  { %v713_v7 = vld [vmem:[#allocation6 + $0x6d8] sm:$0xff]  ;;  %v15483_v11 = vcombine.high %v585_v5, %v589_v6  ;;  %v15482_v21 = vcombine.low %v585_v5, %v589_v6 }
 0x201   :  { %2285 = vmatpush1.bf16.msra.mxu0 %v15418_v12  ;;  %v15611_v12 = vcombine.high %v713_v7, %v717_v8  ;;  %v15610_v22 = vcombine.low %v713_v7, %v717_v8  ;;  %v17543_v47 = vld [vmem:[#allocation7 + $0xb8] sm:$0xff]   ;;  %v17532_v7 = vld [vmem:[#allocation7 + $0x60] sm:$0xff]   ;;  %v17547_v8 = vld [vmem:[#allocation7 + $0xa8] sm:$0xff]  }
 0x202   :  { %2326 = vmatpush1.bf16.msra.mxu1 %v15546_v17  ;;  %2286 = vmatprep.subr.bf16.mxu0 %v15411_v18  ;;  %v577_v17 = vld [vmem:[#allocation6 + $0x298] sm:$0xff] }
 0x203   :  { %2327 = vmatprep.subr.bf16.mxu1 %v15539_v19  ;;  %v581_v18 = vld [vmem:[#allocation6 + $0x2b8] sm:$0xff] }
 0x204   :  { %v705_v19 = vld [vmem:[#allocation6 + $0x698] sm:$0xff]  ;;  %v15475_v23 = vcombine.high %v577_v17, %v581_v18  ;;  %v15474_v29 = vcombine.low %v577_v17, %v581_v18 }
 0x205   :  { %2287 = vmatpush1.bf16.msra.mxu0 %v15410_v24  ;;  %v15603_v24 = vcombine.high %v705_v19, %v709_v20  ;;  %v15602_v30 = vcombine.low %v705_v19, %v709_v20  ;;  %v17533_v19 = vld [vmem:[#allocation7 + $0x20] sm:$0xff]  }
 0x206   :  { %2328 = vmatpush1.bf16.msra.mxu1 %v15538_v25  ;;  %2288 = vmatprep.subr.bf16.mxu0 %v15403_v26  ;;  %v569_v25 = vld [vmem:[#allocation6 + $0x258] sm:$0xff] }
 0x207   :  { %2329 = vmatprep.subr.bf16.mxu1 %v15531_v27  ;;  %v573_v26 = vld [vmem:[#allocation6 + $0x278] sm:$0xff] }
 0x208   :  { %v697_v27 = vld [vmem:[#allocation6 + $0x658] sm:$0xff]  ;;  %v15467_v31 = vcombine.high %v569_v25, %v573_v26  ;;  %v15466_v37 = vcombine.low %v569_v25, %v573_v26 }
 0x209   :  { %2289 = vmatpush1.bf16.msra.mxu0 %v15402_v32  ;;  %v15595_v32 = vcombine.high %v697_v27, %v701_v28  ;;  %v15594_v38 = vcombine.low %v697_v27, %v701_v28  ;;  %v17550_v25 = vld [vmem:[#allocation7 + $0xd8] sm:$0xff]  }
 0x20a   :  { %2330 = vmatpush1.bf16.msra.mxu1 %v15530_v33  ;;  %2290 = vmatprep.subr.bf16.mxu0 %v15395_v34  ;;  %v561_v33 = vld [vmem:[#allocation6 + $0x218] sm:$0xff] }
 0x20b   :  { %2331 = vmatprep.subr.bf16.mxu1 %v15523_v35  ;;  %v565_v34 = vld [vmem:[#allocation6 + $0x238] sm:$0xff] }
 0x20c   :  { %v689_v35 = vld [vmem:[#allocation6 + $0x618] sm:$0xff]  ;;  %v15459_v39 = vcombine.high %v561_v33, %v565_v34 }
 0x20d   :  { %2291 = vmatpush1.bf16.msra.mxu0 %v15394_v40  ;;  %v15587_v40 = vcombine.high %v689_v35, %v693_v36 }
 0x20e   :  { %2332 = vmatpush1.bf16.msra.mxu1 %v15522_v41  ;;  %2292 = vmatprep.subr.bf16.mxu0 %v15515_v42  ;;  %v15458_v41 = vcombine.low %v561_v33, %v565_v34  ;;  %v15586_v42 = vcombine.low %v689_v35, %v693_v36  ;;  %v17551_v33 = vld [vmem:[#allocation7 + $0x98] sm:$0xff]   ;;  %v17552_v35 = vld [vmem:[#allocation7 + $0xd0] sm:$0xff]  }
 0x20f   :  { %2333 = vmatprep.subr.bf16.mxu1 %v15643_v43  ;;  %v17526_v43 = vld [vmem:[#allocation7 + $0x78] sm:$0xff]  }
 0x211   :  { %2293 = vmatpush2.bf16.msra.mxu0 %v15514_v49  ;;  %v17544_v49 = vld [vmem:[#allocation7 + $0xf0] sm:$0xff]  }
 0x212   :  { %2334 = vmatpush2.bf16.msra.mxu1 %v15642_v51  ;;  %2294 = vmatprep.subr.bf16.mxu0 %v15507_v52 }
 0x213   :  { %2335 = vmatprep.subr.bf16.mxu1 %v15635_v53 }
 0x215   :  { %2295 = vmatpush2.bf16.msra.mxu0 %v15506_v58  ;;  %v17545_v58 = vld [vmem:[#allocation7 + $0xb0] sm:$0xff]  }
 0x216   :  { %2336 = vmatpush2.bf16.msra.mxu1 %v15634_v59  ;;  %2296 = vmatprep.subr.bf16.mxu0 %v15499_v60 }
 0x217   :  { %2337 = vmatprep.subr.bf16.mxu1 %v15627_v61 }
 0x219   :  { %2297 = vmatpush2.bf16.msra.mxu0 %v15498_v2 }
 0x21a   :  { %2338 = vmatpush2.bf16.msra.mxu1 %v15626_v3  ;;  %2298 = vmatprep.subr.bf16.mxu0 %v15491_v4  ;;  %v17531_v3 = vld [vmem:[#allocation7 + $0x28] sm:$0xff]  }
 0x21b   :  { %2339 = vmatprep.subr.bf16.mxu1 %v15619_v14 }
 0x21d   :  { %2299 = vmatpush2.bf16.msra.mxu0 %v15490_v9 }
 0x21e   :  { %2340 = vmatpush2.bf16.msra.mxu1 %v15618_v10  ;;  %2300 = vmatprep.subr.bf16.mxu0 %v15483_v11  ;;  %v17548_v10 = vld [vmem:[#allocation7 + $0xe0] sm:$0xff]  }
 0x21f   :  { %2341 = vmatprep.subr.bf16.mxu1 %v15611_v12 }
 0x221   :  { %2301 = vmatpush2.bf16.msra.mxu0 %v15482_v21 }
 0x222   :  { %2342 = vmatpush2.bf16.msra.mxu1 %v15610_v22  ;;  %2302 = vmatprep.subr.bf16.mxu0 %v15475_v23  ;;  %v17534_v22 = vld [vmem:[#allocation7 + $0x58] sm:$0xff]   ;;  %v17549_v23 = vld [vmem:[#allocation7 + $0xa0] sm:$0xff]  }
 0x223   :  { %2343 = vmatprep.subr.bf16.mxu1 %v15603_v24 }
 0x225   :  { %2303 = vmatpush2.bf16.msra.mxu0 %v15474_v29  ;;  %v17535_v29 = vld [vmem:[#allocation7 + $0x18] sm:$0xff]  }
 0x226   :  { %2344 = vmatpush2.bf16.msra.mxu1 %v15602_v30  ;;  %2304 = vmatprep.subr.bf16.mxu0 %v15467_v31 }
 0x227   :  { %2345 = vmatprep.subr.bf16.mxu1 %v15595_v32  ;;  %v17536_v32 = vld [vmem:[#allocation7 + $0x50] sm:$0xff]  }
 0x229   :  { %2305 = vmatpush2.bf16.msra.mxu0 %v15466_v37 }
 0x22a   :  { %2346 = vmatpush2.bf16.msra.mxu1 %v15594_v38  ;;  %2306 = vmatprep.subr.bf16.mxu0 %v15459_v39  ;;  %v17537_v38 = vld [vmem:[#allocation7 + $0x10] sm:$0xff]   ;;  %v17538_v39 = vld [vmem:[#allocation7 + $0x48] sm:$0xff]  }
 0x22b   :  { %2347 = vmatprep.subr.bf16.mxu1 %v15587_v40 }
 0x22d   :  { %2307 = vmatpush2.bf16.msra.mxu0 %v15458_v41 }
 0x22e   :  { %2348 = vmatpush2.bf16.msra.mxu1 %v15586_v42  ;;  %17193 = vmatprep.subr.bf16.mxu0 %v17526_v43  ;;  %v17553_v42 = vld [vmem:[#allocation7 + $0x90] sm:$0xff]  }
 0x22f   :  { %17215 = vmatprep.subr.bf16.mxu1 %v17542_v44  ;;  %v17554_v44 = vld [vmem:[#allocation7 + $0xc8] sm:$0xff]  }
 0x230   :  { %2309 = vmatmul.mubr.bf16.vlgmr.msra.gmra.mxu0 %v18487_v15  ;;  %v2064_v51 = vpop.f32.mrf.mxu0  ;;  %v2105_v52 = vpop.f32.mrf.mxu1 }
 0x231   :  { %2350 = vmatmul.mubr.bf16.vlgmr.msra.gmra.mxu1 %v18489_v16  ;;  %v18507_v53 = vadd.f32 %v2105_v52, %v2064_v51  ;;  %17194 = vmatpush3.bf16.msra.mxu0 %v17527_v45  ;;  %v17546_v16 = vld [vmem:[#allocation7 + $0xe8] sm:$0xff]   ;;  %v17540_v51 = vld [vmem:[#allocation7 + $0x40] sm:$0xff]  }
 0x232   :  { %v2066_v55 = vpop.f32.mrf.mxu0  ;;  %v2107_v56 = vpop.f32.mrf.mxu1  ;;  %17195 = vmatprep.subr.bf16.mxu0 %v17528_v46  ;;  %17216 = vmatpush3.bf16.msra.mxu1 %v17543_v47  ;;  %v17555_v52 = vld [vmem:[#allocation7 + $0x88] sm:$0xff]  }
 0x233   :  { %v2359_v59 = vsel %vm2358_vm0, %v18507_v53, 0.0  ;;  %v2415_v15 = vmul.f32 %v18507_v53, %v18507_v53  ;;  %v18513_v60 = vadd.f32 %v2107_v56, %v2066_v55  ;;  %17217 = vmatprep.subr.bf16.mxu1 %v17544_v49  ;;  %v17539_v49 = vld [vmem:[#allocation7 + $0x8] sm:$0xff]   ;;  %v17556_v55 = vld [vmem:[#allocation7 + $0xc0] sm:$0xff]  }
 0x234   :  { %v2068_v61 = vpop.f32.mrf.mxu0  ;;  %v2109_v62 = vpop.f32.mrf.mxu1  ;;  %v2360_v63 = vrot.slane %v2359_v59, 4 }
 0x235   :  { %v2423_v13 = vsel %vm2358_vm0, %v2415_v15, 0.0  ;;  %v2366_v1 = vsel %vm2358_vm0, %v18513_v60, 0.0  ;;  %v2416_v2 = vmul.f32 %v18513_v60, %v18513_v60  ;;  %17196 = vmatpush3.bf16.msra.mxu0 %v17529_v54  ;;  %v17559_v61 = vld [vmem:[#allocation7 + $0x138] sm:$0xff]  }
 0x236   :  { %v2424_v4 = vrot.slane %v2423_v13, 4  ;;  %v2367_v14 = vrot.slane %v2366_v1, 4  ;;  %v2069_v5 = vpop.f32.mrf.mxu0  ;;  %v2110_v6 = vpop.f32.mrf.mxu1  ;;  %17197 = vmatprep.subr.bf16.mxu0 %v17530_v57  ;;  %17218 = vmatpush3.bf16.msra.mxu1 %v17545_v58  ;;  %v2361_v18 = vadd.f32 %v2360_v63, %v2359_v59  ;;  %v17541_v57 = vld [vmem:[#allocation7] sm:$0xff]   ;;  %v17558_v59 = vld [vmem:[#allocation7 + $0x178] sm:$0xff]   ;;  %v17560_v63 = vld [vmem:[#allocation7 + $0x170] sm:$0xff]  }
 0x237   :  { %v2430_v9 = vsel %vm2358_vm0, %v2416_v2, 0.0  ;;  %17219 = vmatprep.subr.bf16.mxu1 %v17546_v16  ;;  %v17557_v58 = vld [vmem:[#allocation7 + $0x80] sm:$0xff]   ;;  %v17574_v16 = vld [vmem:[#allocation7 + $0x1f8] sm:$0xff]   ;;  %v17563_v2 = vld [vmem:[#allocation7 + $0x128] sm:$0xff]  }
 0x238   :  { %v2425_v11 = vadd.f32 %v2424_v4, %v2423_v13  ;;  %v2368_v12 = vadd.f32 %v2367_v14, %v2366_v1  ;;  %v2431_v17 = vrot.slane %v2430_v9, 4  ;;  %v2362_v28 = vrot.slane %v2361_v18, 2  ;;  %v17561_v13 = vld [vmem:[#allocation7 + $0x130] sm:$0xff]   ;;  %v17562_v1 = vld [vmem:[#allocation7 + $0x168] sm:$0xff]   ;;  %v17565_v4 = vld [vmem:[#allocation7 + $0x120] sm:$0xff]  }
 0x239   :  { %17198 = vmatpush3.bf16.msra.mxu0 %v17531_v3  ;;  %v17564_v3 = vld [vmem:[#allocation7 + $0x160] sm:$0xff]   ;;  %v17566_v14 = vld [vmem:[#allocation7 + $0x158] sm:$0xff]   ;;  %v17568_v6 = vld [vmem:[#allocation7 + $0x150] sm:$0xff]  }
 0x23a   :  { %v2369_v20 = vrot.slane %v2368_v12, 2  ;;  %v2432_v21 = vadd.f32 %v2431_v17, %v2430_v9  ;;  %17199 = vmatprep.subr.bf16.mxu0 %v17532_v7  ;;  %17220 = vmatpush3.bf16.msra.mxu1 %v17547_v8  ;;  %v2426_v24 = vrot.slane %v2425_v11, 2  ;;  %v2363_v37 = vadd.f32 %v2362_v28, %v2361_v18  ;;  %v17567_v5 = vld [vmem:[#allocation7 + $0x118] sm:$0xff]   ;;  %v17569_v7 = vld [vmem:[#allocation7 + $0x110] sm:$0xff]   ;;  %v17570_v8 = vld [vmem:[#allocation7 + $0x148] sm:$0xff]  }
 0x23b   :  { %17221 = vmatprep.subr.bf16.mxu1 %v17548_v10  ;;  %v17571_v9 = vld [vmem:[#allocation7 + $0x108] sm:$0xff]   ;;  %v17572_v10 = vld [vmem:[#allocation7 + $0x140] sm:$0xff]  }
 0x23c   :  { %v2370_v26 = vadd.f32 %v2369_v20, %v2368_v12  ;;  %v2433_v27 = vrot.slane %v2432_v21, 2  ;;  %v2427_v34 = vadd.f32 %v2426_v24, %v2425_v11  ;;  %v2364_v46 = vrot.slane %v2363_v37, 1  ;;  %v17573_v11 = vld [vmem:[#allocation7 + $0x100] sm:$0xff]  }
 0x23d   :  { %17200 = vmatpush3.bf16.msra.mxu0 %v17533_v19 }
 0x23e   :  { %v2371_v30 = vrot.slane %v2370_v26, 1  ;;  %v2434_v31 = vadd.f32 %v2433_v27, %v2432_v21  ;;  %17201 = vmatprep.subr.bf16.mxu0 %v17534_v22  ;;  %17222 = vmatpush3.bf16.msra.mxu1 %v17549_v23  ;;  %v2428_v43 = vrot.slane %v2427_v34, 1  ;;  %v2365_v56 = vadd.f32 %v2364_v46, %v2363_v37 }
 0x23f   :  { %17223 = vmatprep.subr.bf16.mxu1 %v17550_v25 }
 0x240   :  { %v2435_v36 = vrot.slane %v2434_v31, 1  ;;  %v2372_v40 = vadd.f32 %v2371_v30, %v2370_v26  ;;  %v2429_v54 = vadd.f32 %v2428_v43, %v2427_v34 }
 0x241   :  { %17202 = vmatpush3.bf16.msra.mxu0 %v17535_v29 }
 0x242   :  { %17203 = vmatprep.subr.bf16.mxu0 %v17536_v32  ;;  %v2436_v41 = vadd.f32 %v2435_v36, %v2434_v31  ;;  %17224 = vmatpush3.bf16.msra.mxu1 %v17551_v33  ;;  %v2480_v15 = vsel %vm2479_vm1, %v2365_v56, %v2429_v54 }
 0x243   :  { %17225 = vmatprep.subr.bf16.mxu1 %v17552_v35  ;;  %v2488_v62 = vpack.c.bf16 %v2480_v15, %v2480_v15 }
 0x244   :  { %v2481_v45 = vsel %vm2479_vm1, %v2372_v40, %v2436_v41 }
 0x245   :  { %17204 = vmatpush3.bf16.msra.mxu0 %v17537_v38  ;;  %v2489_v47 = vpack.c.bf16 %v2481_v45, %v2481_v45 }
 0x246   :  { %17205 = vmatprep.subr.bf16.mxu0 %v17538_v39  ;;  %17226 = vmatpush3.bf16.msra.mxu1 %v17553_v42 }
 0x247   :  { %3040 = vmatprep.mubr.bf16.mxu0 %v2489_v47  ;;  %17227 = vmatprep.subr.bf16.mxu1 %v17554_v44 }
 0x249   :  { %17206 = vmatpush3.bf16.msra.mxu0 %v17539_v49 }
 0x24a   :  { %17207 = vmatprep.subr.bf16.mxu0 %v17540_v51  ;;  %17228 = vmatpush3.bf16.msra.mxu1 %v17555_v52 }
 0x24b   :  { %17229 = vmatprep.subr.bf16.mxu1 %v17556_v55 }
 0x24d   :  { %17208 = vmatpush3.bf16.msra.mxu0 %v17541_v57 }
 0x24e   :  { %17230 = vmatpush3.bf16.msra.mxu1 %v17557_v58  ;;  %17237 = vmatprep.subr.bf16.mxu0 %v17558_v59 }
 0x24f   :  { %17259 = vmatprep.subr.bf16.mxu1 %v17574_v16 }
 0x250   :  { %3041 = vmatmul.mubr.bf16.vlgmr.msra.gmra.mxu0 %v2488_v62 }
 0x251   :  { %17238 = vmatpush3.bf16.msra.mxu0 %v17559_v61  ;;  %v17575_v61 = vld [vmem:[#allocation7 + $0x1b8] sm:$0xff]  }
 0x252   :  { %17239 = vmatprep.subr.bf16.mxu0 %v17560_v63  ;;  %v17576_v63 = vld [vmem:[#allocation7 + $0x1f0] sm:$0xff]  }
 0x255   :  { %17240 = vmatpush3.bf16.msra.mxu0 %v17561_v13  ;;  %v17577_v13 = vld [vmem:[#allocation7 + $0x1b0] sm:$0xff]  }
 0x256   :  { %17241 = vmatprep.subr.bf16.mxu0 %v17562_v1  ;;  %v17578_v1 = vld [vmem:[#allocation7 + $0x1e8] sm:$0xff]  }
 0x259   :  { %17242 = vmatpush3.bf16.msra.mxu0 %v17563_v2  ;;  %v17579_v2 = vld [vmem:[#allocation7 + $0x1a8] sm:$0xff]  }
 0x25a   :  { %17243 = vmatprep.subr.bf16.mxu0 %v17564_v3  ;;  %v17580_v3 = vld [vmem:[#allocation7 + $0x1e0] sm:$0xff]  }
 0x25d   :  { %17244 = vmatpush3.bf16.msra.mxu0 %v17565_v4  ;;  %v17581_v4 = vld [vmem:[#allocation7 + $0x1a0] sm:$0xff]  }
 0x25e   :  { %17245 = vmatprep.subr.bf16.mxu0 %v17566_v14  ;;  %v17582_v14 = vld [vmem:[#allocation7 + $0x1d8] sm:$0xff]  }
 0x261   :  { %17246 = vmatpush3.bf16.msra.mxu0 %v17567_v5  ;;  %v17583_v5 = vld [vmem:[#allocation7 + $0x198] sm:$0xff]  }
 0x262   :  { %17247 = vmatprep.subr.bf16.mxu0 %v17568_v6  ;;  %v17584_v6 = vld [vmem:[#allocation7 + $0x1d0] sm:$0xff]  }
 0x265   :  { %17248 = vmatpush3.bf16.msra.mxu0 %v17569_v7  ;;  %v17585_v7 = vld [vmem:[#allocation7 + $0x190] sm:$0xff]  }
 0x266   :  { %17249 = vmatprep.subr.bf16.mxu0 %v17570_v8  ;;  %v17586_v8 = vld [vmem:[#allocation7 + $0x1c8] sm:$0xff]  }
 0x269   :  { %17250 = vmatpush3.bf16.msra.mxu0 %v17571_v9  ;;  %v17587_v9 = vld [vmem:[#allocation7 + $0x188] sm:$0xff]  }
 0x26a   :  { %17251 = vmatprep.subr.bf16.mxu0 %v17572_v10  ;;  %v17588_v10 = vld [vmem:[#allocation7 + $0x1c0] sm:$0xff]  }
 0x26d   :  { %17252 = vmatpush3.bf16.msra.mxu0 %v17573_v11  ;;  %v17589_v11 = vld [vmem:[#allocation7 + $0x180] sm:$0xff]  }
 0x270   :  { %v2146_v12 = vpop.f32.mrf.mxu0  ;;  %v2187_v17 = vpop.f32.mrf.mxu1 }
 0x271   :  { %v18523_v18 = vadd.f32 %v2187_v17, %v2146_v12 }
 0x272   :  { %v2148_v19 = vpop.f32.mrf.mxu0  ;;  %v2189_v20 = vpop.f32.mrf.mxu1 }
 0x273   :  { %v2373_v21 = vsel %vm2358_vm0, %v18523_v18, 0.0  ;;  %v2417_v22 = vmul.f32 %v18523_v18, %v18523_v18  ;;  %v18529_v23 = vadd.f32 %v2189_v20, %v2148_v19 }
 0x274   :  { %v2374_v24 = vrot.slane %v2373_v21, 4  ;;  %v2150_v25 = vpop.f32.mrf.mxu0  ;;  %v2191_v26 = vpop.f32.mrf.mxu1 }
 0x275   :  { %v2437_v27 = vsel %vm2358_vm0, %v2417_v22, 0.0  ;;  %v2380_v28 = vsel %vm2358_vm0, %v18529_v23, 0.0  ;;  %v2418_v29 = vmul.f32 %v18529_v23, %v18529_v23 }
 0x276   :  { %v2375_v30 = vadd.f32 %v2374_v24, %v2373_v21  ;;  %v2438_v31 = vrot.slane %v2437_v27, 4  ;;  %v2381_v32 = vrot.slane %v2380_v28, 4  ;;  %v2151_v33 = vpop.f32.mrf.mxu0  ;;  %v2192_v34 = vpop.f32.mrf.mxu1 }
 0x277   :  { %v2444_v35 = vsel %vm2358_vm0, %v2418_v29, 0.0 }
 0x278   :  { %v2376_v36 = vrot.slane %v2375_v30, 2  ;;  %v2439_v37 = vadd.f32 %v2438_v31, %v2437_v27  ;;  %v2382_v38 = vadd.f32 %v2381_v32, %v2380_v28  ;;  %v2445_v39 = vrot.slane %v2444_v35, 4 }
 0x27a   :  { %v2377_v40 = vadd.f32 %v2376_v36, %v2375_v30  ;;  %v2440_v41 = vrot.slane %v2439_v37, 2  ;;  %v2383_v42 = vrot.slane %v2382_v38, 2  ;;  %v2446_v43 = vadd.f32 %v2445_v39, %v2444_v35 }
 0x27c   :  { %v2441_v44 = vadd.f32 %v2440_v41, %v2439_v37  ;;  %v2384_v45 = vadd.f32 %v2383_v42, %v2382_v38  ;;  %v2447_v46 = vrot.slane %v2446_v43, 2  ;;  %v2378_v47 = vrot.slane %v2377_v40, 1 }
 0x27e   :  { %v2442_v49 = vrot.slane %v2441_v44, 1  ;;  %v2385_v51 = vrot.slane %v2384_v45, 1  ;;  %v2448_v52 = vadd.f32 %v2447_v46, %v2446_v43  ;;  %v2379_v56 = vadd.f32 %v2378_v47, %v2377_v40 }
 0x280   :  { %v2443_v54 = vadd.f32 %v2442_v49, %v2441_v44  ;;  %v2449_v55 = vrot.slane %v2448_v52, 1  ;;  %v2386_v57 = vadd.f32 %v2385_v51, %v2384_v45 }
 0x282   :  { %v2450_v58 = vadd.f32 %v2449_v55, %v2448_v52  ;;  %v2482_v59 = vsel %vm2479_vm1, %v2379_v56, %v2443_v54 }
 0x283   :  { %v2490_v62 = vpack.c.bf16 %v2482_v59, %v2482_v59 }
 0x284   :  { %v2483_v15 = vsel %vm2479_vm1, %v2386_v57, %v2450_v58 }
 0x285   :  { %v2491_v16 = vpack.c.bf16 %v2483_v15, %v2483_v15 }
 0x287   :  { %3080 = vmatprep.mubr.bf16.mxu1 %v2491_v16 }
 0x288   :  { %3081 = vmatmul.mubr.bf16.vlgmr.msra.gmra.mxu1 %v2490_v62 }
 0x289   :  { %17260 = vmatpush3.bf16.msra.mxu1 %v17575_v61 }
 0x28a   :  { %17261 = vmatprep.subr.bf16.mxu1 %v17576_v63 }
 0x28d   :  { %17262 = vmatpush3.bf16.msra.mxu1 %v17577_v13 }
 0x28e   :  { %17263 = vmatprep.subr.bf16.mxu1 %v17578_v1 }
 0x291   :  { %17264 = vmatpush3.bf16.msra.mxu1 %v17579_v2 }
 0x292   :  { %17265 = vmatprep.subr.bf16.mxu1 %v17580_v3 }
 0x295   :  { %17266 = vmatpush3.bf16.msra.mxu1 %v17581_v4 }
 0x296   :  { %17267 = vmatprep.subr.bf16.mxu1 %v17582_v14 }
 0x299   :  { %17268 = vmatpush3.bf16.msra.mxu1 %v17583_v5 }
 0x29a   :  { %17269 = vmatprep.subr.bf16.mxu1 %v17584_v6 }
 0x29d   :  { %17270 = vmatpush3.bf16.msra.mxu1 %v17585_v7 }
 0x29e   :  { %17271 = vmatprep.subr.bf16.mxu1 %v17586_v8 }
 0x2a1   :  { %17272 = vmatpush3.bf16.msra.mxu1 %v17587_v9 }
 0x2a2   :  { %17273 = vmatprep.subr.bf16.mxu1 %v17588_v10 }
 0x2a5   :  { %17274 = vmatpush3.bf16.msra.mxu1 %v17589_v11 }
 0x2b0   :  { %v2228_v12 = vpop.f32.mrf.mxu0 }
 0x2b1   :  { %v2269_v17 = vpop.f32.mrf.mxu1 }
 0x2b2   :  { %v18539_v19 = vadd.f32 %v2269_v17, %v2228_v12  ;;  %v2230_v20 = vpop.f32.mrf.mxu0 }
 0x2b3   :  { %v2271_v21 = vpop.f32.mrf.mxu1 }
 0x2b4   :  { %v2387_v22 = vsel %vm2358_vm0, %v18539_v19, 0.0  ;;  %v2419_v24 = vmul.f32 %v18539_v19, %v18539_v19  ;;  %v18545_v25 = vadd.f32 %v2271_v21, %v2230_v20  ;;  %v2232_v26 = vpop.f32.mrf.mxu0 }
 0x2b5   :  { %v2388_v27 = vrot.slane %v2387_v22, 4  ;;  %v2273_v28 = vpop.f32.mrf.mxu1 }
 0x2b6   :  { %v2451_v29 = vsel %vm2358_vm0, %v2419_v24, 0.0  ;;  %v2394_v30 = vsel %vm2358_vm0, %v18545_v25, 0.0  ;;  %v2420_v31 = vmul.f32 %v18545_v25, %v18545_v25  ;;  %v2233_v32 = vpop.f32.mrf.mxu0 }
 0x2b7   :  { %v2389_v33 = vadd.f32 %v2388_v27, %v2387_v22  ;;  %v2452_v34 = vrot.slane %v2451_v29, 4  ;;  %v2395_v35 = vrot.slane %v2394_v30, 4  ;;  %v2274_v36 = vpop.f32.mrf.mxu1 }
 0x2b8   :  { %v2458_v37 = vsel %vm2358_vm0, %v2420_v31, 0.0 }
 0x2b9   :  { %v2390_v38 = vrot.slane %v2389_v33, 2  ;;  %v2453_v39 = vadd.f32 %v2452_v34, %v2451_v29  ;;  %v2396_v40 = vadd.f32 %v2395_v35, %v2394_v30  ;;  %v2459_v41 = vrot.slane %v2458_v37, 4 }
 0x2bb   :  { %v2391_v42 = vadd.f32 %v2390_v38, %v2389_v33  ;;  %v2454_v43 = vrot.slane %v2453_v39, 2  ;;  %v2397_v44 = vrot.slane %v2396_v40, 2  ;;  %v2460_v45 = vadd.f32 %v2459_v41, %v2458_v37 }
 0x2bd   :  { %v2455_v46 = vadd.f32 %v2454_v43, %v2453_v39  ;;  %v2398_v47 = vadd.f32 %v2397_v44, %v2396_v40  ;;  %v2461_v49 = vrot.slane %v2460_v45, 2  ;;  %v2392_v51 = vrot.slane %v2391_v42, 1 }
 0x2bf   :  { %v2456_v52 = vrot.slane %v2455_v46, 1  ;;  %v2399_v54 = vrot.slane %v2398_v47, 1  ;;  %v2462_v55 = vadd.f32 %v2461_v49, %v2460_v45  ;;  %v2393_v58 = vadd.f32 %v2392_v51, %v2391_v42 }
 0x2c1   :  { %v2457_v56 = vadd.f32 %v2456_v52, %v2455_v46  ;;  %v2463_v57 = vrot.slane %v2462_v55, 1  ;;  %v2400_v59 = vadd.f32 %v2399_v54, %v2398_v47 }
 0x2c3   :  { %v2464_v15 = vadd.f32 %v2463_v57, %v2462_v55  ;;  %v2484_v16 = vsel %vm2479_vm1, %v2393_v58, %v2457_v56 }
 0x2c4   :  { %v2492_v63 = vpack.c.bf16 %v2484_v16, %v2484_v16 }
 0x2c5   :  { %v2485_v61 = vsel %vm2479_vm1, %v2400_v59, %v2464_v15 }
 0x2c6   :  { %v2493_v62 = vpack.c.bf16 %v2485_v61, %v2485_v61 }
 0x2c8   :  { %3120 = vmatprep.mubr.bf16.mxu0 %v2493_v62 }
 0x2c9   :  { %3121 = vmatmul.mubr.bf16.vlgmr.msra.gmra.mxu0 %v2492_v63 }
 0x2ca   :  { %3418 = vmatprep.mubr.bf16.mxu0 %v18362_v0 }
 0x2f0   :  { %v2310_v13 = vpop.f32.mrf.mxu0 }
 0x2f1   :  { %v2351_v1 = vpop.f32.mrf.mxu1 }
 0x2f2   :  { %v18556_v2 = vadd.f32 %v2351_v1, %v2310_v13  ;;  %v2312_v3 = vpop.f32.mrf.mxu0  ;;  %v3214_v13 = vld [vmem:[#allocation9 + $0xc0] sm:$0xff] }
 0x2f3   :  { %v2353_v4 = vpop.f32.mrf.mxu1  ;;  %v3218_v1 = vld [vmem:[#allocation9 + $0xe0] sm:$0xff] }
 0x2f4   :  { %v2401_v14 = vsel %vm2358_vm0, %v18556_v2, 0.0  ;;  %v2421_v5 = vmul.f32 %v18556_v2, %v18556_v2  ;;  %v18562_v6 = vadd.f32 %v2353_v4, %v2312_v3  ;;  %v2314_v7 = vpop.f32.mrf.mxu0  ;;  %v3215_v3 = vld [vmem:[#allocation9 + $0xc8] sm:$0xff]  ;;  %v15733_v4 = vcombine.high %v3214_v13, %v3218_v1 }
 0x2f5   :  { %v2402_v8 = vrot.slane %v2401_v14, 4  ;;  %v2355_v9 = vpop.f32.mrf.mxu1 }
 0x2f6   :  { %v2465_v10 = vsel %vm2358_vm0, %v2421_v5, 0.0  ;;  %v2408_v11 = vsel %vm2358_vm0, %v18562_v6, 0.0  ;;  %v2422_v12 = vmul.f32 %v18562_v6, %v18562_v6  ;;  %v2315_v17 = vpop.f32.mrf.mxu0  ;;  %v15732_v5 = vcombine.low %v3214_v13, %v3218_v1  ;;  %3394 = vmatprep.subr.bf16.mxu0 %v15733_v4  ;;  %v3206_v9 = vld [vmem:[#allocation9 + $0x80] sm:$0xff] }
 0x2f7   :  { %v2403_v20 = vadd.f32 %v2402_v8, %v2401_v14  ;;  %v2466_v21 = vrot.slane %v2465_v10, 4  ;;  %v2409_v22 = vrot.slane %v2408_v11, 4  ;;  %v2356_v24 = vpop.f32.mrf.mxu1  ;;  %v3219_v14 = vld [vmem:[#allocation9 + $0xe8] sm:$0xff] }
 0x2f8   :  { %v2472_v26 = vsel %vm2358_vm0, %v2422_v12, 0.0  ;;  %v15734_v7 = vcombine.low %v3215_v3, %v3219_v14  ;;  %v15735_v8 = vcombine.high %v3215_v3, %v3219_v14  ;;  %3395 = vmatpush1.bf16.msra.mxu0 %v15732_v5  ;;  %v3211_v17 = vld [vmem:[#allocation9 + $0xa8] sm:$0xff]  ;;  %v3198_v24 = vld [vmem:[#allocation9 + $0x40] sm:$0xff] }
 0x2f9   :  { %v2404_v27 = vrot.slane %v2403_v20, 2  ;;  %v2467_v28 = vadd.f32 %v2466_v21, %v2465_v10  ;;  %v2410_v29 = vadd.f32 %v2409_v22, %v2408_v11  ;;  %v2473_v30 = vrot.slane %v2472_v26, 4  ;;  %v3210_v10 = vld [vmem:[#allocation9 + $0xa0] sm:$0xff]  ;;  %v3207_v11 = vld [vmem:[#allocation9 + $0x88] sm:$0xff] }
 0x2fa   :  { %3435 = vmatprep.subr.bf16.mxu1 %v15735_v8  ;;  %v15725_v12 = vcombine.high %v3206_v9, %v3210_v10  ;;  %v15726_v21 = vcombine.low %v3207_v11, %v3211_v17  ;;  %v15727_v22 = vcombine.high %v3207_v11, %v3211_v17  ;;  %v3175_v8 = vld [vmem:[#allocation10] sm:$0x1]  ;;  %v3182_v11 = vld [vmem:[#allocation10 + $0x1] sm:$0x1]  ;;  %v3208_v17 = vld [vmem:[#allocation9 + $0x90] sm:$0xff] }
 0x2fb   :  { %v2405_v31 = vadd.f32 %v2404_v27, %v2403_v20  ;;  %v2468_v32 = vrot.slane %v2467_v28, 2  ;;  %v2411_v33 = vrot.slane %v2410_v29, 2  ;;  %v2474_v34 = vadd.f32 %v2473_v30, %v2472_v26  ;;  %v3202_v26 = vld [vmem:[#allocation9 + $0x60] sm:$0xff] }
 0x2fc   :  { %v15724_v20 = vcombine.low %v3206_v9, %v3210_v10  ;;  %3396 = vmatprep.subr.bf16.mxu0 %v15725_v12  ;;  %v15717_v27 = vcombine.high %v3198_v24, %v3202_v26  ;;  %v15716_v30 = vcombine.low %v3198_v24, %v3202_v26  ;;  %v3213_v24 = vld [vmem:[#allocation9 + $0xb8] sm:$0xff] }
 0x2fd   :  { %v2469_v35 = vadd.f32 %v2468_v32, %v2467_v28  ;;  %v2412_v36 = vadd.f32 %v2411_v33, %v2410_v29  ;;  %v2475_v37 = vrot.slane %v2474_v34, 2  ;;  %v2406_v38 = vrot.slane %v2405_v31, 1  ;;  %v3199_v28 = vld [vmem:[#allocation9 + $0x48] sm:$0xff]  ;;  %v3190_v33 = vld [vmem:[#allocation9] sm:$0xff] }
 0x2fe   :  { %3397 = vmatpush1.bf16.msra.mxu0 %v15724_v20  ;;  %v3203_v29 = vld [vmem:[#allocation9 + $0x68] sm:$0xff] }
 0x2ff   :  { %v2470_v39 = vrot.slane %v2469_v35, 1  ;;  %v2413_v40 = vrot.slane %v2412_v36, 1  ;;  %v2476_v41 = vadd.f32 %v2475_v37, %v2474_v34  ;;  %v2407_v44 = vadd.f32 %v2406_v38, %v2405_v31  ;;  %3398 = vmatprep.subr.bf16.mxu0 %v15717_v27  ;;  %v3194_v34 = vld [vmem:[#allocation9 + $0x20] sm:$0xff]  ;;  %v3195_v37 = vld [vmem:[#allocation9 + $0x28] sm:$0xff] }
 0x300   :  { %v15718_v31 = vcombine.low %v3199_v28, %v3203_v29  ;;  %v15719_v32 = vcombine.high %v3199_v28, %v3203_v29  ;;  %v15708_v38 = vcombine.low %v3190_v33, %v3194_v34 }
 0x301   :  { %v2471_v42 = vadd.f32 %v2470_v39, %v2469_v35  ;;  %v2477_v43 = vrot.slane %v2476_v41, 1  ;;  %v2414_v45 = vadd.f32 %v2413_v40, %v2412_v36  ;;  %v3191_v35 = vld [vmem:[#allocation9 + $0x8] sm:$0xff]  ;;  %v15709_v36 = vcombine.high %v3190_v33, %v3194_v34  ;;  %v3205_v33 = vld [vmem:[#allocation9 + $0x78] sm:$0xff] }
 0x302   :  { %3399 = vmatpush1.bf16.msra.mxu0 %v15716_v30  ;;  %v15710_v39 = vcombine.low %v3191_v35, %v3195_v37  ;;  %v15711_v40 = vcombine.high %v3191_v35, %v3195_v37  ;;  %v3200_v30 = vld [vmem:[#allocation9 + $0x50] sm:$0xff] }
 0x303   :  { %v2478_v46 = vadd.f32 %v2477_v43, %v2476_v41  ;;  %v2486_v47 = vsel %vm2479_vm1, %v2407_v44, %v2471_v42  ;;  %v3216_v41 = vld [vmem:[#allocation9 + $0xd0] sm:$0xff]  ;;  %v3217_v43 = vld [vmem:[#allocation9 + $0xd8] sm:$0xff]  ;;  %3400 = vmatprep.subr.bf16.mxu0 %v15709_v36 }
 0x304   :  { %v2494_v52 = vpack.c.bf16 %v2486_v47, %v2486_v47  ;;  %v3220_v42 = vld [vmem:[#allocation9 + $0xf0] sm:$0xff] }
 0x305   :  { %v2487_v49 = vsel %vm2479_vm1, %v2414_v45, %v2478_v46  ;;  %v15736_v44 = vcombine.low %v3216_v41, %v3220_v42  ;;  %v15737_v45 = vcombine.high %v3216_v41, %v3220_v42  ;;  %v3221_v46 = vld [vmem:[#allocation9 + $0xf8] sm:$0xff] }
 0x306   :  { %v2495_v51 = vpack.c.bf16 %v2487_v49, %v2487_v49  ;;  %3401 = vmatpush1.bf16.msra.mxu0 %v15708_v38  ;;  %v15738_v47 = vcombine.low %v3217_v43, %v3221_v46  ;;  %v15739_v49 = vcombine.high %v3217_v43, %v3221_v46  ;;  %v3192_v38 = vld [vmem:[#allocation9 + $0x10] sm:$0xff]  ;;  %v3197_v41 = vld [vmem:[#allocation9 + $0x38] sm:$0xff]  ;;  %v3758_v46 = vld [vmem:[#allocation12 + $0x380] sm:$0xff] }
 0x307   :  { %3476 = vmatprep.subr.bf16.mxu0 %v15737_v45 }
 0x308   :  { %3160 = vmatprep.mubr.bf16.mxu1 %v2495_v51 }
 0x309   :  { %3161 = vmatmul.mubr.bf16.vlgmr.msra.gmra.mxu1 %v2494_v52 }
 0x30a   :  { %3459 = vmatprep.mubr.bf16.mxu1 %v18362_v0  ;;  %3436 = vmatpush1.bf16.msra.mxu1 %v15734_v7 }
 0x30b   :  { %3437 = vmatprep.subr.bf16.mxu1 %v15727_v22  ;;  %v3209_v22 = vld [vmem:[#allocation9 + $0x98] sm:$0xff] }
 0x30c   :  { %v15731_v29 = vcombine.high %v3209_v22, %v3213_v24  ;;  %v15730_v35 = vcombine.low %v3209_v22, %v3213_v24  ;;  %v3694_v24 = vld [vmem:[#allocation12 + $0x180] sm:$0xff] }
 0x30e   :  { %3438 = vmatpush1.bf16.msra.mxu1 %v15726_v21  ;;  %v3212_v21 = vld [vmem:[#allocation9 + $0xb0] sm:$0xff] }
 0x30f   :  { %3439 = vmatprep.subr.bf16.mxu1 %v15719_v32  ;;  %v15729_v28 = vcombine.high %v3208_v17, %v3212_v21  ;;  %v3201_v32 = vld [vmem:[#allocation9 + $0x58] sm:$0xff]  ;;  %v15728_v34 = vcombine.low %v3208_v17, %v3212_v21 }
 0x310   :  { %v17209_v54 = vpop.f32.mrf.mxu0  ;;  %v15723_v37 = vcombine.high %v3201_v32, %v3205_v33  ;;  %v15722_v43 = vcombine.low %v3201_v32, %v3205_v33  ;;  %v3678_v33 = vld [vmem:[#allocation12 + $0x100] sm:$0xff] }
 0x312   :  { %v17210_v55 = vpop.f32.mrf.mxu0  ;;  %3440 = vmatpush1.bf16.msra.mxu1 %v15718_v31  ;;  %v3204_v31 = vld [vmem:[#allocation9 + $0x70] sm:$0xff] }
 0x313   :  { %v17211_v56 = vadd.f32 %v17210_v55, %v17209_v54  ;;  %3441 = vmatprep.subr.bf16.mxu1 %v15711_v40  ;;  %v15721_v36 = vcombine.high %v3200_v30, %v3204_v31  ;;  %v3193_v40 = vld [vmem:[#allocation9 + $0x18] sm:$0xff]  ;;  %v15720_v42 = vcombine.low %v3200_v30, %v3204_v31 }
 0x314   :  { %v17212_v57 = vpop.f32.mrf.mxu0  ;;  %v15715_v45 = vcombine.high %v3193_v40, %v3197_v41 }
 0x316   :  { %v17213_v58 = vpop.f32.mrf.mxu0  ;;  %3442 = vmatpush1.bf16.msra.mxu1 %v15710_v39  ;;  %v3196_v39 = vld [vmem:[#allocation9 + $0x30] sm:$0xff] }
 0x317   :  { %3517 = vmatprep.subr.bf16.mxu1 %v15739_v49  ;;  %v4014_v49 = vld [vmem:[#allocation12 + $0xb80] sm:$0xff] }
 0x348   :  { %v17231_v59 = vpop.f32.mrf.mxu1 }
 0x34a   :  { %v17232_v15 = vpop.f32.mrf.mxu1 }
 0x34b   :  { %v17233_v16 = vadd.f32 %v17232_v15, %v17231_v59 }
 0x34c   :  { %v17234_v61 = vpop.f32.mrf.mxu1 }
 0x34d   :  { %v18573_v62 = vadd.f32 %v17233_v16, %v17211_v56 }
 0x34e   :  { %v17235_v63 = vpop.f32.mrf.mxu1 }
 0x389   :  { %v17253_v51 = vpop.f32.mrf.mxu0 }
 0x38b   :  { %v17254_v52 = vpop.f32.mrf.mxu0 }
 0x38c   :  { %v17255_v54 = vadd.f32 %v17254_v52, %v17253_v51  ;;  %v4022_v51 = vld [vmem:[#allocation12 + $0xbc0] sm:$0xff]  ;;  %v15712_v52 = vcombine.low %v3192_v38, %v3196_v39 }
 0x38d   :  { %v17256_v55 = vpop.f32.mrf.mxu0 }
 0x38e   :  { %v3123_v56 = vadd.f32 %v17255_v54, %v18573_v62  ;;  %v15714_v54 = vcombine.low %v3193_v40, %v3197_v41  ;;  %v3662_v41 = vld [vmem:[#allocation12 + $0x80] sm:$0xff] }
 0x38f   :  { %v17257_v57 = vpop.f32.mrf.mxu0 }
 0x390   :  { %v3742_v57 = vld [vmem:[#allocation12 + $0x300] sm:$0xff] }
 0x3c9   :  { %v17275_v58 = vpop.f32.mrf.mxu1 }
 0x3cb   :  { %v17276_v59 = vpop.f32.mrf.mxu1 }
 0x3cc   :  { %v17277_v15 = vadd.f32 %v17276_v59, %v17275_v58  ;;  %v3750_v58 = vld [vmem:[#allocation12 + $0x340] sm:$0xff] }
 0x3cd   :  { %v17278_v16 = vpop.f32.mrf.mxu1  ;;  %v3998_v59 = vld [vmem:[#allocation12 + $0xb00] sm:$0xff] }
 0x3ce   :  { %v3163_v61 = vadd.f32 %v17277_v15, %v3123_v56  ;;  %v16113_v56 = vcombine.high %v4014_v49, %v4022_v51  ;;  %v4006_v15 = vld [vmem:[#allocation12 + $0xb40] sm:$0xff] }
 0x3cf   :  { %v17279_v63 = vpop.f32.mrf.mxu1 }
 0x3d0   :  { %v3168_v13 = vmul.f32 0.03125, %v3163_v61  ;;  %v16112_v61 = vcombine.low %v4014_v49, %v4022_v51  ;;  %v15841_v63 = vcombine.high %v3742_v57, %v3750_v58  ;;  %v3646_v51 = vld [vmem:[#allocation12] sm:$0xff] }
 0x3d2   :  { %v3169_v1 = vmul.f32 %v3168_v13, %v3168_v13 }
 0x3d4   :  { %v3171_v3 = vrot.slane %v3169_v1, 7  ;;  %v3726_v1 = vld [vmem:[#allocation12 + $0x280] sm:$0xff] }
 0x3d6   :  { %v3173_v4 = vsub.f32 %v3168_v13, %v3171_v3  ;;  %v3734_v3 = vld [vmem:[#allocation12 + $0x2c0] sm:$0xff] }
 0x3d7   :  { %v15824_v17 = vcombine.low %v3726_v1, %v3734_v3 }
 0x3d8   :  { %v3174_v14 = vmax.f32 %v3173_v4, 0.0  ;;  %v3982_v4 = vld [vmem:[#allocation12 + $0xa80] sm:$0xff] }
 0x3da   :  { %v3176_v5 = vadd.f32 1e-05, %v3174_v14  ;;  %v3990_v14 = vld [vmem:[#allocation12 + $0xac0] sm:$0xff] }
 0x3dc   :  { %18102 = vrsqrt.f32 %v3176_v5  ;;  %v15840_v5 = vcombine.low %v3742_v57, %v3750_v58 }
 0x3e9   :  { %v18103_v7 = vpop.eup %18102 }
 0x3ea   :  { %v3179_v9 = vrot.slane %v18103_v7, 1  ;;  %v16096_v7 = vcombine.low %v3998_v59, %v4006_v15 }
 0x3ec   :  { %v3181_v10 = vmul.f32 %v3179_v9, %v3175_v8  ;;  %v15825_v8 = vcombine.high %v3726_v1, %v3734_v3  ;;  %v16081_v9 = vcombine.high %v3982_v4, %v3990_v14 }
 0x3ee   :  { %v3183_v62 = vmul.f32 %v3181_v10, %v3168_v13  ;;  %v16097_v13 = vcombine.high %v3998_v59, %v4006_v15  ;;  %v3886_v15 = vld [vmem:[#allocation12 + $0x780] sm:$0xff] }
 0x3f0   :  { %v3184_v12 = vsub.f32 %v3182_v11, %v3183_v62  ;;  %v3718_v11 = vld [vmem:[#allocation12 + $0x240] sm:$0xff] }
 0x3f1   :  { %v3966_v62 = vld [vmem:[#allocation12 + $0xa00] sm:$0xff] }
 0x3f2   :  { %v3186_v20 = vrot.slane %v3184_v12, 7  ;;  %v3974_v12 = vld [vmem:[#allocation12 + $0xa40] sm:$0xff] }
 0x3f3   :  { %v16065_v22 = vcombine.high %v3966_v62, %v3974_v12  ;;  %v16064_v30 = vcombine.low %v3966_v62, %v3974_v12  ;;  %v3854_v12 = vld [vmem:[#allocation12 + $0x680] sm:$0xff] }
 0x3f4   :  { %v3188_v26 = vsel %vm2479_vm1, %v3181_v10, %v3186_v20  ;;  %v3710_v10 = vld [vmem:[#allocation12 + $0x200] sm:$0xff]  ;;  %v16080_v20 = vcombine.low %v3982_v4, %v3990_v14 }
 0x3f5   :  { %v3189_v27 = vpack.c.bf16 %v3188_v26, %v3188_v26  ;;  %v15809_v21 = vcombine.high %v3710_v10, %v3718_v11  ;;  %v3702_v26 = vld [vmem:[#allocation12 + $0x1c0] sm:$0xff] }
 0x3f6   :  { %v15793_v31 = vcombine.high %v3694_v24, %v3702_v26  ;;  %v3870_v14 = vld [vmem:[#allocation12 + $0x700] sm:$0xff] }
 0x3f7   :  { %15740 = vmatmul.mubr.msk.bf16.vlgmr.msra.gmra.mxu0 %vm3382_vm2, %v3189_v27  ;;  %15741 = vmatmul.mubr.msk.bf16.vlgmr.msra.gmra.mxu1 %vm3382_vm2, %v3189_v27 }
 0x3f8   :  { %3477 = vmatpush1.bf16.msra.mxu0 %v15736_v44  ;;  %3518 = vmatpush1.bf16.msra.mxu1 %v15738_v47  ;;  %v15713_v44 = vcombine.high %v3192_v38, %v3196_v39  ;;  %v3766_v47 = vld [vmem:[#allocation12 + $0x3c0] sm:$0xff] }
 0x3f9   :  { %3478 = vmatprep.subr.bf16.mxu0 %v15729_v28  ;;  %3519 = vmatprep.subr.bf16.mxu1 %v15731_v29  ;;  %v15857_v55 = vcombine.high %v3758_v46, %v3766_v47  ;;  %v15856_v16 = vcombine.low %v3758_v46, %v3766_v47  ;;  %v3958_v28 = vld [vmem:[#allocation12 + $0x9c0] sm:$0xff]  ;;  %v15808_v29 = vcombine.low %v3710_v10, %v3718_v11 }
 0x3fa   :  { %3500 = vmatprep.mubr.bf16.mxu0 %v18362_v0  ;;  %3541 = vmatprep.mubr.bf16.mxu1 %v18362_v0 }
 0x3fc   :  { %3479 = vmatpush1.bf16.msra.mxu0 %v15728_v34  ;;  %3520 = vmatpush1.bf16.msra.mxu1 %v15730_v35  ;;  %v3686_v34 = vld [vmem:[#allocation12 + $0x140] sm:$0xff] }
 0x3fd   :  { %3480 = vmatprep.subr.bf16.mxu0 %v15721_v36  ;;  %3521 = vmatprep.subr.bf16.mxu1 %v15723_v37  ;;  %v3934_v35 = vld [vmem:[#allocation12 + $0x900] sm:$0xff]  ;;  %v15792_v37 = vcombine.low %v3694_v24, %v3702_v26  ;;  %v15777_v39 = vcombine.high %v3678_v33, %v3686_v34 }
 0x3fe   :  { %v3942_v36 = vld [vmem:[#allocation12 + $0x940] sm:$0xff] }
 0x3ff   :  { %v16033_v40 = vcombine.high %v3934_v35, %v3942_v36  ;;  %v16032_v46 = vcombine.low %v3934_v35, %v3942_v36  ;;  %v3822_v36 = vld [vmem:[#allocation12 + $0x580] sm:$0xff] }
 0x400   :  { %3481 = vmatpush1.bf16.msra.mxu0 %v15720_v42  ;;  %3522 = vmatpush1.bf16.msra.mxu1 %v15722_v43  ;;  %v3670_v42 = vld [vmem:[#allocation12 + $0xc0] sm:$0xff] }
 0x401   :  { %3482 = vmatprep.subr.bf16.mxu0 %v15713_v44  ;;  %3523 = vmatprep.subr.bf16.mxu1 %v15715_v45  ;;  %v3918_v43 = vld [vmem:[#allocation12 + $0x880] sm:$0xff]  ;;  %v15776_v45 = vcombine.low %v3678_v33, %v3686_v34  ;;  %v15761_v47 = vcombine.high %v3662_v41, %v3670_v42 }
 0x402   :  { %v3926_v44 = vld [vmem:[#allocation12 + $0x8c0] sm:$0xff] }
 0x403   :  { %v16017_v49 = vcombine.high %v3918_v43, %v3926_v44  ;;  %v16016_v57 = vcombine.low %v3918_v43, %v3926_v44 }
 0x404   :  { %3483 = vmatpush1.bf16.msra.mxu0 %v15712_v52  ;;  %3524 = vmatpush1.bf16.msra.mxu1 %v15714_v54  ;;  %v3654_v52 = vld [vmem:[#allocation12 + $0x40] sm:$0xff] }
 0x405   :  { %9790 = vmatprep.subr.bf16.mxu0 %v15857_v55  ;;  %9831 = vmatprep.subr.bf16.mxu1 %v16113_v56  ;;  %v3902_v54 = vld [vmem:[#allocation12 + $0x800] sm:$0xff]  ;;  %v15760_v56 = vcombine.low %v3662_v41, %v3670_v42  ;;  %v15745_v58 = vcombine.high %v3646_v51, %v3654_v52 }
 0x406   :  { %v3910_v55 = vld [vmem:[#allocation12 + $0x840] sm:$0xff] }
 0x407   :  { %15742 = vmatmul.mubr.msk.bf16.vlgmr.msra.gmra.mxu0 %vm3382_vm2, %v3189_v27  ;;  %15743 = vmatmul.mubr.msk.bf16.vlgmr.msra.gmra.mxu1 %vm3382_vm2, %v3189_v27  ;;  %v3950_v27 = vld [vmem:[#allocation12 + $0x980] sm:$0xff]  ;;  %v16001_v59 = vcombine.high %v3902_v54, %v3910_v55  ;;  %v16000_v1 = vcombine.low %v3902_v54, %v3910_v55 }
 0x408   :  { %9791 = vmatpush1.bf16.msra.mxu0 %v15856_v16  ;;  %9832 = vmatpush1.bf16.msra.mxu1 %v16112_v61  ;;  %v16049_v32 = vcombine.high %v3950_v27, %v3958_v28  ;;  %v16048_v38 = vcombine.low %v3950_v27, %v3958_v28  ;;  %v3894_v16 = vld [vmem:[#allocation12 + $0x7c0] sm:$0xff] }
 0x409   :  { %9792 = vmatprep.subr.bf16.mxu0 %v15841_v63  ;;  %9833 = vmatprep.subr.bf16.mxu1 %v16097_v13  ;;  %v4142_v61 = vld [vmem:[#allocation12 + $0xf80] sm:$0xff]  ;;  %v15744_v13 = vcombine.low %v3646_v51, %v3654_v52  ;;  %v15985_v3 = vcombine.high %v3886_v15, %v3894_v16 }
 0x40a   :  { %v4150_v63 = vld [vmem:[#allocation12 + $0xfc0] sm:$0xff] }
 0x40b   :  { %v16241_v4 = vcombine.high %v4142_v61, %v4150_v63  ;;  %v16240_v10 = vcombine.low %v4142_v61, %v4150_v63  ;;  %v3838_v28 = vld [vmem:[#allocation12 + $0x600] sm:$0xff] }
 0x40c   :  { %9793 = vmatpush1.bf16.msra.mxu0 %v15840_v5  ;;  %9834 = vmatpush1.bf16.msra.mxu1 %v16096_v7  ;;  %v3878_v5 = vld [vmem:[#allocation12 + $0x740] sm:$0xff] }
 0x40d   :  { %9794 = vmatprep.subr.bf16.mxu0 %v15825_v8  ;;  %9835 = vmatprep.subr.bf16.mxu1 %v16081_v9  ;;  %v4126_v7 = vld [vmem:[#allocation12 + $0xf00] sm:$0xff]  ;;  %v15984_v9 = vcombine.low %v3886_v15, %v3894_v16  ;;  %v15969_v11 = vcombine.high %v3870_v14, %v3878_v5 }
 0x40e   :  { %v4134_v8 = vld [vmem:[#allocation12 + $0xf40] sm:$0xff] }
 0x40f   :  { %v16225_v62 = vcombine.high %v4126_v7, %v4134_v8  ;;  %v16224_v24 = vcombine.low %v4126_v7, %v4134_v8  ;;  %v4070_v52 = vld [vmem:[#allocation12 + $0xd40] sm:$0xff] }
 0x410   :  { %9795 = vmatpush1.bf16.msra.mxu0 %v15824_v17  ;;  %9836 = vmatpush1.bf16.msra.mxu1 %v16080_v20  ;;  %v3862_v17 = vld [vmem:[#allocation12 + $0x6c0] sm:$0xff] }
 0x411   :  { %9796 = vmatprep.subr.bf16.mxu0 %v15809_v21  ;;  %9837 = vmatprep.subr.bf16.mxu1 %v16065_v22  ;;  %v4110_v20 = vld [vmem:[#allocation12 + $0xe80] sm:$0xff]  ;;  %v15968_v22 = vcombine.low %v3870_v14, %v3878_v5  ;;  %v15953_v26 = vcombine.high %v3854_v12, %v3862_v17 }
 0x412   :  { %v4118_v21 = vld [vmem:[#allocation12 + $0xec0] sm:$0xff] }
 0x413   :  { %v16209_v27 = vcombine.high %v4110_v20, %v4118_v21  ;;  %v16208_v33 = vcombine.low %v4110_v20, %v4118_v21  ;;  %v4054_v16 = vld [vmem:[#allocation12 + $0xcc0] sm:$0xff] }
 0x414   :  { %9797 = vmatpush1.bf16.msra.mxu0 %v15808_v29  ;;  %9838 = vmatpush1.bf16.msra.mxu1 %v16064_v30  ;;  %v3846_v29 = vld [vmem:[#allocation12 + $0x640] sm:$0xff] }
 0x415   :  { %9798 = vmatprep.subr.bf16.mxu0 %v15793_v31  ;;  %9839 = vmatprep.subr.bf16.mxu1 %v16049_v32  ;;  %v4094_v30 = vld [vmem:[#allocation12 + $0xe00] sm:$0xff]  ;;  %v15952_v32 = vcombine.low %v3854_v12, %v3862_v17  ;;  %v15937_v34 = vcombine.high %v3838_v28, %v3846_v29 }
 0x416   :  { %v4102_v31 = vld [vmem:[#allocation12 + $0xe40] sm:$0xff] }
 0x417   :  { %v16193_v35 = vcombine.high %v4094_v30, %v4102_v31  ;;  %v16192_v41 = vcombine.low %v4094_v30, %v4102_v31  ;;  %v4038_v5 = vld [vmem:[#allocation12 + $0xc40] sm:$0xff] }
 0x418   :  { %9799 = vmatpush1.bf16.msra.mxu0 %v15792_v37  ;;  %9840 = vmatpush1.bf16.msra.mxu1 %v16048_v38  ;;  %v3830_v37 = vld [vmem:[#allocation12 + $0x5c0] sm:$0xff] }
 0x419   :  { %9800 = vmatprep.subr.bf16.mxu0 %v15777_v39  ;;  %9841 = vmatprep.subr.bf16.mxu1 %v16033_v40  ;;  %v4078_v38 = vld [vmem:[#allocation12 + $0xd80] sm:$0xff]  ;;  %v15936_v40 = vcombine.low %v3838_v28, %v3846_v29  ;;  %v15921_v42 = vcombine.high %v3822_v36, %v3830_v37  ;;  %v15920_v44 = vcombine.low %v3822_v36, %v3830_v37 }
 0x41a   :  { %v4086_v39 = vld [vmem:[#allocation12 + $0xdc0] sm:$0xff] }
 0x41b   :  { %v16177_v43 = vcombine.high %v4078_v38, %v4086_v39  ;;  %v4534_v17 = vld [vmem:[#allocation12 + $0x1bc0] sm:$0xff] }
 0x41c   :  { %9801 = vmatpush1.bf16.msra.mxu0 %v15776_v45  ;;  %9842 = vmatpush1.bf16.msra.mxu1 %v16032_v46  ;;  %v16176_v45 = vcombine.low %v4078_v38, %v4086_v39  ;;  %v3806_v46 = vld [vmem:[#allocation12 + $0x500] sm:$0xff] }
 0x41d   :  { %9802 = vmatprep.subr.bf16.mxu0 %v15761_v47  ;;  %9843 = vmatprep.subr.bf16.mxu1 %v16017_v49  ;;  %v3814_v47 = vld [vmem:[#allocation12 + $0x540] sm:$0xff] }
 0x41e   :  { %v4062_v49 = vld [vmem:[#allocation12 + $0xd00] sm:$0xff]  ;;  %v15905_v51 = vcombine.high %v3806_v46, %v3814_v47  ;;  %v15904_v54 = vcombine.low %v3806_v46, %v3814_v47 }
 0x41f   :  { %v16160_v55 = vcombine.low %v4062_v49, %v4070_v52 }
 0x420   :  { %9803 = vmatpush1.bf16.msra.mxu0 %v15760_v56  ;;  %9844 = vmatpush1.bf16.msra.mxu1 %v16016_v57  ;;  %v16161_v56 = vcombine.high %v4062_v49, %v4070_v52  ;;  %v3790_v57 = vld [vmem:[#allocation12 + $0x480] sm:$0xff] }
 0x421   :  { %9804 = vmatprep.subr.bf16.mxu0 %v15745_v58  ;;  %9845 = vmatprep.subr.bf16.mxu1 %v16001_v59  ;;  %v3798_v58 = vld [vmem:[#allocation12 + $0x4c0] sm:$0xff] }
 0x422   :  { %v4046_v59 = vld [vmem:[#allocation12 + $0xc80] sm:$0xff]  ;;  %v15889_v15 = vcombine.high %v3790_v57, %v3798_v58  ;;  %v15888_v61 = vcombine.low %v3790_v57, %v3798_v58 }
 0x423   :  { %v16144_v63 = vcombine.low %v4046_v59, %v4054_v16  ;;  %v4254_v52 = vld [vmem:[#allocation12 + $0x1300] sm:$0xff] }
 0x424   :  { %9805 = vmatpush1.bf16.msra.mxu0 %v15744_v13  ;;  %9846 = vmatpush1.bf16.msra.mxu1 %v16000_v1  ;;  %v16145_v13 = vcombine.high %v4046_v59, %v4054_v16  ;;  %v3774_v1 = vld [vmem:[#allocation12 + $0x400] sm:$0xff] }
 0x425   :  { %9806 = vmatprep.subr.bf16.mxu0 %v15985_v3  ;;  %9847 = vmatprep.subr.bf16.mxu1 %v16241_v4  ;;  %v3782_v3 = vld [vmem:[#allocation12 + $0x440] sm:$0xff] }
 0x426   :  { %v4030_v4 = vld [vmem:[#allocation12 + $0xc00] sm:$0xff]  ;;  %v15873_v14 = vcombine.high %v3774_v1, %v3782_v3  ;;  %v15872_v7 = vcombine.low %v3774_v1, %v3782_v3 }
 0x427   :  { %v16128_v8 = vcombine.low %v4030_v4, %v4038_v5  ;;  %v4518_v57 = vld [vmem:[#allocation12 + $0x1b40] sm:$0xff] }
 0x428   :  { %9807 = vmatpush2.bf16.msra.mxu0 %v15984_v9  ;;  %9848 = vmatpush2.bf16.msra.mxu1 %v16240_v10  ;;  %v16129_v9 = vcombine.high %v4030_v4, %v4038_v5  ;;  %v4270_v10 = vld [vmem:[#allocation12 + $0x1380] sm:$0xff] }
 0x429   :  { %9808 = vmatprep.subr.bf16.mxu0 %v15969_v11  ;;  %9849 = vmatprep.subr.bf16.mxu1 %v16225_v62  ;;  %v4278_v11 = vld [vmem:[#allocation12 + $0x13c0] sm:$0xff] }
 0x42a   :  { %v4526_v62 = vld [vmem:[#allocation12 + $0x1b80] sm:$0xff]  ;;  %v16369_v12 = vcombine.high %v4270_v10, %v4278_v11  ;;  %v16368_v20 = vcombine.low %v4270_v10, %v4278_v11 }
 0x42b   :  { %v16624_v21 = vcombine.low %v4526_v62, %v4534_v17  ;;  %v4502_v1 = vld [vmem:[#allocation12 + $0x1ac0] sm:$0xff] }
 0x42c   :  { %9809 = vmatpush2.bf16.msra.mxu0 %v15968_v22  ;;  %9850 = vmatpush2.bf16.msra.mxu1 %v16224_v24  ;;  %v16625_v22 = vcombine.high %v4526_v62, %v4534_v17  ;;  %v4230_v10 = vld [vmem:[#allocation12 + $0x1240] sm:$0xff] }
 0x42d   :  { %9810 = vmatprep.subr.bf16.mxu0 %v15953_v26  ;;  %9851 = vmatprep.subr.bf16.mxu1 %v16209_v27  ;;  %v4486_v17 = vld [vmem:[#allocation12 + $0x1a40] sm:$0xff] }
 0x430   :  { %9811 = vmatpush2.bf16.msra.mxu0 %v15952_v32  ;;  %9852 = vmatpush2.bf16.msra.mxu1 %v16208_v33 }
 0x431   :  { %9812 = vmatprep.subr.bf16.mxu0 %v15937_v34  ;;  %9853 = vmatprep.subr.bf16.mxu1 %v16193_v35 }
 0x434   :  { %9813 = vmatpush2.bf16.msra.mxu0 %v15936_v40  ;;  %9854 = vmatpush2.bf16.msra.mxu1 %v16192_v41 }
 0x435   :  { %9814 = vmatprep.subr.bf16.mxu0 %v15921_v42  ;;  %9855 = vmatprep.subr.bf16.mxu1 %v16177_v43 }
 0x438   :  { %9815 = vmatpush2.bf16.msra.mxu0 %v15920_v44  ;;  %9856 = vmatpush2.bf16.msra.mxu1 %v16176_v45 }
 0x439   :  { %9816 = vmatprep.subr.bf16.mxu0 %v15905_v51  ;;  %9857 = vmatprep.subr.bf16.mxu1 %v16161_v56  ;;  %v4510_v56 = vld [vmem:[#allocation12 + $0x1b00] sm:$0xff] }
 0x43a   :  { %v16609_v16 = vcombine.high %v4510_v56, %v4518_v57  ;;  %v16608_v5 = vcombine.low %v4510_v56, %v4518_v57  ;;  %v4174_v57 = vld [vmem:[#allocation12 + $0x1080] sm:$0xff] }
 0x43c   :  { %9817 = vmatpush2.bf16.msra.mxu0 %v15904_v54  ;;  %9858 = vmatpush2.bf16.msra.mxu1 %v16160_v55  ;;  %v4262_v54 = vld [vmem:[#allocation12 + $0x1340] sm:$0xff] }
 0x43d   :  { %9818 = vmatprep.subr.bf16.mxu0 %v15889_v15  ;;  %9859 = vmatprep.subr.bf16.mxu1 %v16145_v13  ;;  %v4494_v13 = vld [vmem:[#allocation12 + $0x1a80] sm:$0xff]  ;;  %v16352_v3 = vcombine.low %v4254_v52, %v4262_v54 }
 0x440   :  { %9819 = vmatpush2.bf16.msra.mxu0 %v15888_v61  ;;  %9860 = vmatpush2.bf16.msra.mxu1 %v16144_v63  ;;  %v4238_v61 = vld [vmem:[#allocation12 + $0x1280] sm:$0xff] }
 0x441   :  { %9820 = vmatprep.subr.bf16.mxu0 %v15873_v14  ;;  %9861 = vmatprep.subr.bf16.mxu1 %v16129_v9  ;;  %v4246_v63 = vld [vmem:[#allocation12 + $0x12c0] sm:$0xff] }
 0x442   :  { %v4222_v9 = vld [vmem:[#allocation12 + $0x1200] sm:$0xff] }
 0x444   :  { %9821 = vmatpush2.bf16.msra.mxu0 %v15872_v7  ;;  %9862 = vmatpush2.bf16.msra.mxu1 %v16128_v8  ;;  %v16337_v7 = vcombine.high %v4238_v61, %v4246_v63  ;;  %v16593_v8 = vcombine.high %v4494_v13, %v4502_v1 }
 0x445   :  { %9872 = vmatprep.subr.bf16.mxu0 %v16369_v12  ;;  %9913 = vmatprep.subr.bf16.mxu1 %v16625_v22  ;;  %v4478_v12 = vld [vmem:[#allocation12 + $0x1a00] sm:$0xff] }
 0x4b7   :  { %v3420_v24 = vpop.f32.mrf.mxu0  ;;  %v3461_v26 = vpop.f32.mrf.mxu1 }
 0x4b8   :  { %v3553_v27 = vrot.slane %v3420_v24, %v18477_v48  ;;  %v3561_v28 = vrot.slane %v3461_v26, %v18477_v48  ;;  %v3593_v29 = vrot.slane %v3420_v24, %v18479_v50  ;;  %v3601_v34 = vrot.slane %v3461_v26, %v18479_v50 }
 0x4b9   :  { %v3422_v30 = vpop.f32.mrf.mxu0  ;;  %v3463_v31 = vpop.f32.mrf.mxu1 }
 0x4ba   :  { %v3582_v32 = vmul.f32 %v3553_v27, %v18507_v53  ;;  %v3584_v33 = vmul.f32 %v3561_v28, %v18523_v18  ;;  %v3557_v35 = vrot.slane %v3422_v30, %v18477_v48  ;;  %v3565_v36 = vrot.slane %v3463_v31, %v18477_v48 }
 0x4bb   :  { %v3424_v37 = vpop.f32.mrf.mxu0  ;;  %v3465_v38 = vpop.f32.mrf.mxu1  ;;  %v3597_v42 = vrot.slane %v3422_v30, %v18479_v50  ;;  %v3605_v53 = vrot.slane %v3463_v31, %v18479_v50  ;;  %v16592_v27 = vcombine.low %v4494_v13, %v4502_v1  ;;  %v16321_v28 = vcombine.high %v4222_v9, %v4230_v10 }
 0x4bc   :  { %v3622_v39 = vadd.f32 %v3593_v29, %v3582_v32  ;;  %v3624_v40 = vadd.f32 %v3601_v34, %v3584_v33  ;;  %v3583_v41 = vmul.f32 %v3557_v35, %v18513_v60  ;;  %v3585_v43 = vmul.f32 %v3565_v36, %v18529_v23  ;;  %v4206_v32 = vld [vmem:[#allocation12 + $0x1180] sm:$0xff] }
 0x4bd   :  { %v3425_v44 = vpop.f32.mrf.mxu0  ;;  %v3466_v18 = vpop.f32.mrf.mxu1  ;;  %v16353_v23 = vcombine.high %v4254_v52, %v4262_v54  ;;  %v16577_v31 = vcombine.high %v4478_v12, %v4486_v17  ;;  %v4214_v33 = vld [vmem:[#allocation12 + $0x11c0] sm:$0xff] }
 0x4be   :  { %v3623_v45 = vadd.f32 %v3597_v42, %v3583_v41  ;;  %v3630_v46 = vmax.f32 %v3622_v39, 0.0  ;;  %v3625_v47 = vadd.f32 %v3605_v53, %v3585_v43  ;;  %v3632_v49 = vmax.f32 %v3624_v40, 0.0  ;;  %v4462_v38 = vld [vmem:[#allocation12 + $0x1980] sm:$0xff] }
 0x4bf   :  { %v4470_v39 = vld [vmem:[#allocation12 + $0x19c0] sm:$0xff]  ;;  %v16320_v41 = vcombine.low %v4222_v9, %v4230_v10  ;;  %v16305_v43 = vcombine.high %v4206_v32, %v4214_v33 }
 0x4c0   :  { %v3631_v51 = vmax.f32 %v3623_v45, 0.0  ;;  %v3633_v55 = vmax.f32 %v3625_v47, 0.0  ;;  %v18597_v60 = vpack.c.bf16 %v3630_v46, %v3630_v46  ;;  %v18601_v15 = vpack.c.bf16 %v3632_v49, %v3632_v49  ;;  %v4190_v18 = vld [vmem:[#allocation12 + $0x1100] sm:$0xff] }
 0x4c1   :  { %v16561_v44 = vcombine.high %v4462_v38, %v4470_v39  ;;  %v4198_v45 = vld [vmem:[#allocation12 + $0x1140] sm:$0xff]  ;;  %v16560_v54 = vcombine.low %v4462_v38, %v4470_v39 }
 0x4c2   :  { %v18595_v58 = vpack.c.bf16 %v3631_v51, %v3631_v51  ;;  %v18599_v59 = vpack.c.bf16 %v3633_v55, %v3633_v55  ;;  %v4446_v46 = vld [vmem:[#allocation12 + $0x1900] sm:$0xff]  ;;  %v16304_v51 = vcombine.low %v4206_v32, %v4214_v33  ;;  %v16289_v55 = vcombine.high %v4190_v18, %v4198_v45 }
 0x4c3   :  { %v4454_v47 = vld [vmem:[#allocation12 + $0x1940] sm:$0xff] }
 0x4c4   :  { %9822 = vmatprep.mubr.bf16.mxu0 %v18595_v58  ;;  %9863 = vmatprep.mubr.bf16.mxu1 %v18599_v59  ;;  %v16545_v56 = vcombine.high %v4446_v46, %v4454_v47  ;;  %v16544_v13 = vcombine.low %v4446_v46, %v4454_v47  ;;  %v4422_v9 = vld [vmem:[#allocation12 + $0x1840] sm:$0xff] }
 0x4c5   :  { %9823 = vmatmul.mubr.bf16.vlgmr.msra.gmra.mxu0 %v18597_v60  ;;  %9864 = vmatmul.mubr.bf16.vlgmr.msra.gmra.mxu1 %v18601_v15  ;;  %v4646_v32 = vld [vmem:[#allocation12 + $0x1f40] sm:$0xff] }
 0x4c6   :  { %9873 = vmatpush1.bf16.msra.mxu0 %v16368_v20  ;;  %9914 = vmatpush1.bf16.msra.mxu1 %v16624_v21  ;;  %v16336_v20 = vcombine.low %v4238_v61, %v4246_v63  ;;  %v4438_v61 = vld [vmem:[#allocation12 + $0x18c0] sm:$0xff]  ;;  %v16288_v63 = vcombine.low %v4190_v18, %v4198_v45 }
 0x4c7   :  { %v18607_v4 = vpop.f32.mrf.mxu0  ;;  %v18609_v14 = vpop.f32.mrf.mxu1  ;;  %9874 = vmatprep.subr.bf16.mxu0 %v16353_v23  ;;  %9915 = vmatprep.subr.bf16.mxu1 %v16609_v16  ;;  %v4182_v23 = vld [vmem:[#allocation12 + $0x10c0] sm:$0xff] }
 0x4c8   :  { %v4430_v16 = vld [vmem:[#allocation12 + $0x1880] sm:$0xff]  ;;  %v16273_v1 = vcombine.high %v4174_v57, %v4182_v23  ;;  %v16272_v10 = vcombine.low %v4174_v57, %v4182_v23 }
 0x4c9   :  { %v3504_v11 = vpop.f32.mrf.mxu0  ;;  %v3545_v62 = vpop.f32.mrf.mxu1  ;;  %v4374_v38 = vld [vmem:[#allocation12 + $0x16c0] sm:$0xff] }
 0x4ca   :  { %v3573_v22 = vrot.slane %v3504_v11, %v18477_v48  ;;  %9875 = vmatpush1.bf16.msra.mxu0 %v16352_v3  ;;  %v3581_v21 = vrot.slane %v3545_v62, %v18477_v48  ;;  %9916 = vmatpush1.bf16.msra.mxu1 %v16608_v5  ;;  %v3613_v30 = vrot.slane %v3504_v11, %v18479_v50  ;;  %v4158_v5 = vld [vmem:[#allocation12 + $0x1000] sm:$0xff] }
 0x4cb   :  { %v3506_v24 = vpop.f32.mrf.mxu0  ;;  %v3547_v26 = vpop.f32.mrf.mxu1  ;;  %9876 = vmatprep.subr.bf16.mxu0 %v16337_v7  ;;  %9917 = vmatprep.subr.bf16.mxu1 %v16593_v8  ;;  %v3621_v35 = vrot.slane %v3545_v62, %v18479_v50  ;;  %v16529_v3 = vcombine.high %v4430_v16, %v4438_v61  ;;  %v4166_v7 = vld [vmem:[#allocation12 + $0x1040] sm:$0xff]  ;;  %v16528_v11 = vcombine.low %v4430_v16, %v4438_v61 }
 0x4cc   :  { %v3587_v29 = vmul.f32 %v3573_v22, %v18545_v25  ;;  %v3589_v34 = vmul.f32 %v3581_v21, %v18562_v6  ;;  %v16576_v25 = vcombine.low %v4478_v12, %v4486_v17  ;;  %v4414_v8 = vld [vmem:[#allocation12 + $0x1800] sm:$0xff]  ;;  %v16257_v62 = vcombine.high %v4158_v5, %v4166_v7 }
 0x4cd   :  { %v3507_v36 = vpop.f32.mrf.mxu0  ;;  %v3548_v37 = vpop.f32.mrf.mxu1  ;;  %v16513_v12 = vcombine.high %v4414_v8, %v4422_v9  ;;  %v4398_v17 = vld [vmem:[#allocation12 + $0x1780] sm:$0xff]  ;;  %v16256_v24 = vcombine.low %v4158_v5, %v4166_v7  ;;  %v16512_v26 = vcombine.low %v4414_v8, %v4422_v9  ;;  %v3569_v8 = vrot.slane %v18607_v4, %v18477_v48 }
 0x4ce   :  { %v3627_v40 = vadd.f32 %v3613_v30, %v3587_v29  ;;  %9877 = vmatpush1.bf16.msra.mxu0 %v16336_v20  ;;  %v3629_v42 = vadd.f32 %v3621_v35, %v3589_v34  ;;  %9918 = vmatpush1.bf16.msra.mxu1 %v16592_v27  ;;  %v4406_v22 = vld [vmem:[#allocation12 + $0x17c0] sm:$0xff] }
 0x4cf   :  { %9878 = vmatprep.subr.bf16.mxu0 %v16321_v28  ;;  %9919 = vmatprep.subr.bf16.mxu1 %v16577_v31  ;;  %v4654_v20 = vld [vmem:[#allocation12 + $0x1f80] sm:$0xff]  ;;  %v16497_v27 = vcombine.high %v4398_v17, %v4406_v22  ;;  %v16496_v33 = vcombine.low %v4398_v17, %v4406_v22 }
 0x4d0   :  { %v3635_v53 = vmax.f32 %v3627_v40, 0.0  ;;  %v3637_v6 = vmax.f32 %v3629_v42, 0.0  ;;  %v4662_v21 = vld [vmem:[#allocation12 + $0x1fc0] sm:$0xff] }
 0x4d1   :  { %v16753_v28 = vcombine.high %v4654_v20, %v4662_v21  ;;  %v4382_v29 = vld [vmem:[#allocation12 + $0x1700] sm:$0xff]  ;;  %v16752_v34 = vcombine.low %v4654_v20, %v4662_v21 }
 0x4d2   :  { %v18617_v49 = vpack.c.bf16 %v3635_v53, %v3635_v53  ;;  %9879 = vmatpush1.bf16.msra.mxu0 %v16320_v41  ;;  %v18619_v52 = vpack.c.bf16 %v3637_v6, %v3637_v6  ;;  %9920 = vmatpush1.bf16.msra.mxu1 %v16576_v25  ;;  %v4390_v30 = vld [vmem:[#allocation12 + $0x1740] sm:$0xff] }
 0x4d3   :  { %9880 = vmatprep.subr.bf16.mxu0 %v16305_v43  ;;  %9921 = vmatprep.subr.bf16.mxu1 %v16561_v44  ;;  %v4638_v31 = vld [vmem:[#allocation12 + $0x1f00] sm:$0xff]  ;;  %v16481_v35 = vcombine.high %v4382_v29, %v4390_v30  ;;  %v16480_v41 = vcombine.low %v4382_v29, %v4390_v30 }
 0x4d4   :  { %9904 = vmatprep.mubr.bf16.mxu0 %v18617_v49  ;;  %9945 = vmatprep.mubr.bf16.mxu1 %v18619_v52  ;;  %v16737_v36 = vcombine.high %v4638_v31, %v4646_v32  ;;  %v4366_v37 = vld [vmem:[#allocation12 + $0x1680] sm:$0xff]  ;;  %v16736_v42 = vcombine.low %v4638_v31, %v4646_v32  ;;  %v3609_v32 = vrot.slane %v18607_v4, %v18479_v50 }
 0x4d5   :  { %v4622_v39 = vld [vmem:[#allocation12 + $0x1e80] sm:$0xff]  ;;  %v16465_v25 = vcombine.high %v4366_v37, %v4374_v38  ;;  %v16464_v6 = vcombine.low %v4366_v37, %v4374_v38 }
 0x4d6   :  { %9881 = vmatpush1.bf16.msra.mxu0 %v16304_v51  ;;  %9922 = vmatpush1.bf16.msra.mxu1 %v16560_v54  ;;  %v4630_v40 = vld [vmem:[#allocation12 + $0x1ec0] sm:$0xff] }
 0x4d7   :  { %9882 = vmatprep.subr.bf16.mxu0 %v16289_v55  ;;  %9923 = vmatprep.subr.bf16.mxu1 %v16545_v56  ;;  %v16721_v43 = vcombine.high %v4622_v39, %v4630_v40  ;;  %v4350_v53 = vld [vmem:[#allocation12 + $0x1600] sm:$0xff]  ;;  %v16720_v46 = vcombine.low %v4622_v39, %v4630_v40  ;;  %v3759_v40 = vld [vmem:[#allocation12 + $0x388] sm:$0xff] }
 0x4d8   :  { %v4358_v44 = vld [vmem:[#allocation12 + $0x1640] sm:$0xff] }
 0x4d9   :  { %v4606_v18 = vld [vmem:[#allocation12 + $0x1e00] sm:$0xff]  ;;  %v16449_v47 = vcombine.high %v4350_v53, %v4358_v44  ;;  %v16448_v23 = vcombine.low %v4350_v53, %v4358_v44 }
 0x4da   :  { %9883 = vmatpush1.bf16.msra.mxu0 %v16288_v63  ;;  %9924 = vmatpush1.bf16.msra.mxu1 %v16544_v13  ;;  %v4614_v45 = vld [vmem:[#allocation12 + $0x1e40] sm:$0xff] }
 0x4db   :  { %9884 = vmatprep.subr.bf16.mxu0 %v16273_v1  ;;  %9925 = vmatprep.subr.bf16.mxu1 %v16529_v3  ;;  %v16705_v51 = vcombine.high %v4606_v18, %v4614_v45  ;;  %v4334_v54 = vld [vmem:[#allocation12 + $0x1580] sm:$0xff]  ;;  %v16704_v16 = vcombine.low %v4606_v18, %v4614_v45  ;;  %v3743_v45 = vld [vmem:[#allocation12 + $0x308] sm:$0xff] }
 0x4dc   :  { %v4342_v55 = vld [vmem:[#allocation12 + $0x15c0] sm:$0xff] }
 0x4dd   :  { %v4590_v56 = vld [vmem:[#allocation12 + $0x1d80] sm:$0xff]  ;;  %v16433_v61 = vcombine.high %v4334_v54, %v4342_v55  ;;  %v16432_v7 = vcombine.low %v4334_v54, %v4342_v55 }
 0x4de   :  { %9885 = vmatpush1.bf16.msra.mxu0 %v16272_v10  ;;  %9926 = vmatpush1.bf16.msra.mxu1 %v16528_v11  ;;  %v4598_v57 = vld [vmem:[#allocation12 + $0x1dc0] sm:$0xff]  ;;  %v3577_v11 = vrot.slane %v18609_v14, %v18477_v48 }
 0x4df   :  { %9886 = vmatprep.subr.bf16.mxu0 %v16257_v62  ;;  %9927 = vmatprep.subr.bf16.mxu1 %v16513_v12  ;;  %v16689_v63 = vcombine.high %v4590_v56, %v4598_v57  ;;  %v4318_v13 = vld [vmem:[#allocation12 + $0x1500] sm:$0xff]  ;;  %v16688_v9 = vcombine.low %v4590_v56, %v4598_v57 }
 0x4e0   :  { %v4326_v1 = vld [vmem:[#allocation12 + $0x1540] sm:$0xff] }
 0x4e1   :  { %v4574_v3 = vld [vmem:[#allocation12 + $0x1d00] sm:$0xff]  ;;  %v16417_v10 = vcombine.high %v4318_v13, %v4326_v1  ;;  %v16416_v21 = vcombine.low %v4318_v13, %v4326_v1  ;;  %v3991_v13 = vld [vmem:[#allocation12 + $0xac8] sm:$0xff] }
 0x4e2   :  { %9887 = vmatpush1.bf16.msra.mxu0 %v16256_v24  ;;  %9928 = vmatpush1.bf16.msra.mxu1 %v16512_v26  ;;  %v4582_v5 = vld [vmem:[#allocation12 + $0x1d40] sm:$0xff]  ;;  %v3586_v24 = vmul.f32 %v3569_v8, %v18539_v19  ;;  %v3711_v8 = vld [vmem:[#allocation12 + $0x208] sm:$0xff] }
 0x4e3   :  { %9888 = vmatprep.subr.bf16.mxu0 %v16497_v27  ;;  %9929 = vmatprep.subr.bf16.mxu1 %v16753_v28  ;;  %v16673_v62 = vcombine.high %v4574_v3, %v4582_v5  ;;  %v4302_v12 = vld [vmem:[#allocation12 + $0x1480] sm:$0xff]  ;;  %v16672_v26 = vcombine.low %v4574_v3, %v4582_v5  ;;  %v3588_v28 = vmul.f32 %v3577_v11, %v18556_v2  ;;  %v3975_v11 = vld [vmem:[#allocation12 + $0xa48] sm:$0xff] }
 0x4e4   :  { %v4310_v17 = vld [vmem:[#allocation12 + $0x14c0] sm:$0xff] }
 0x4e5   :  { %v4558_v22 = vld [vmem:[#allocation12 + $0x1c80] sm:$0xff]  ;;  %v16401_v27 = vcombine.high %v4302_v12, %v4310_v17  ;;  %v16400_v19 = vcombine.low %v4302_v12, %v4310_v17 }
 0x4e6   :  { %9889 = vmatpush2.bf16.msra.mxu0 %v16496_v33  ;;  %9930 = vmatpush2.bf16.msra.mxu1 %v16752_v34  ;;  %v4566_v20 = vld [vmem:[#allocation12 + $0x1cc0] sm:$0xff] }
 0x4e7   :  { %9890 = vmatprep.subr.bf16.mxu0 %v16481_v35  ;;  %9931 = vmatprep.subr.bf16.mxu1 %v16737_v36  ;;  %v16657_v29 = vcombine.high %v4558_v22, %v4566_v20  ;;  %v4286_v30 = vld [vmem:[#allocation12 + $0x1400] sm:$0xff]  ;;  %v3617_v35 = vrot.slane %v18609_v14, %v18479_v50  ;;  %v3626_v36 = vadd.f32 %v3609_v32, %v3586_v24  ;;  %v3951_v24 = vld [vmem:[#allocation12 + $0x988] sm:$0xff] }
 0x4e8   :  { %v4294_v31 = vld [vmem:[#allocation12 + $0x1440] sm:$0xff]  ;;  %v16656_v37 = vcombine.low %v4558_v22, %v4566_v20  ;;  %v3695_v20 = vld [vmem:[#allocation12 + $0x188] sm:$0xff] }
 0x4e9   :  { %v4542_v33 = vld [vmem:[#allocation12 + $0x1c00] sm:$0xff]  ;;  %v16385_v38 = vcombine.high %v4286_v30, %v4294_v31  ;;  %v3628_v2 = vadd.f32 %v3617_v35, %v3588_v28  ;;  %v16384_v4 = vcombine.low %v4286_v30, %v4294_v31  ;;  %v3679_v31 = vld [vmem:[#allocation12 + $0x108] sm:$0xff] }
 0x4ea   :  { %9891 = vmatpush2.bf16.msra.mxu0 %v16480_v41  ;;  %9932 = vmatpush2.bf16.msra.mxu1 %v16736_v42  ;;  %v4550_v34 = vld [vmem:[#allocation12 + $0x1c40] sm:$0xff]  ;;  %v3767_v41 = vld [vmem:[#allocation12 + $0x3c8] sm:$0xff] }
 0x4eb   :  { %9892 = vmatprep.subr.bf16.mxu0 %v16465_v25  ;;  %9933 = vmatprep.subr.bf16.mxu1 %v16721_v43  ;;  %v16641_v39 = vcombine.high %v4542_v33, %v4550_v34  ;;  %v4015_v42 = vld [vmem:[#allocation12 + $0xb88] sm:$0xff]  ;;  %v3634_v43 = vmax.f32 %v3626_v36, 0.0  ;;  %v16640_v14 = vcombine.low %v4542_v33, %v4550_v34  ;;  %v15859_v53 = vcombine.high %v3759_v40, %v3767_v41 }
 0x4ec   :  { %v4023_v25 = vld [vmem:[#allocation12 + $0xbc8] sm:$0xff]  ;;  %v3636_v44 = vmax.f32 %v3628_v2, 0.0 }
 0x4ed   :  { %v16115_v18 = vcombine.high %v4015_v42, %v4023_v25  ;;  %v18633_v54 = vpack.c.bf16 %v3634_v43, %v3634_v43  ;;  %v16114_v55 = vcombine.low %v4015_v42, %v4023_v25  ;;  %v3687_v32 = vld [vmem:[#allocation12 + $0x148] sm:$0xff] }
 0x4ee   :  { %9893 = vmatpush2.bf16.msra.mxu0 %v16464_v6  ;;  %9934 = vmatpush2.bf16.msra.mxu1 %v16720_v46  ;;  %v3751_v6 = vld [vmem:[#allocation12 + $0x348] sm:$0xff]  ;;  %v15858_v46 = vcombine.low %v3759_v40, %v3767_v41  ;;  %v18635_v56 = vpack.c.bf16 %v3636_v44, %v3636_v44  ;;  %v15779_v36 = vcombine.high %v3679_v31, %v3687_v32 }
 0x4ef   :  { %9894 = vmatprep.subr.bf16.mxu0 %v16449_v47  ;;  %9935 = vmatprep.subr.bf16.mxu1 %v16705_v51  ;;  %v3999_v47 = vld [vmem:[#allocation12 + $0xb08] sm:$0xff]  ;;  %v15843_v57 = vcombine.high %v3743_v45, %v3751_v6  ;;  %v15842_v1 = vcombine.low %v3743_v45, %v3751_v6  ;;  %v15778_v41 = vcombine.low %v3679_v31, %v3687_v32 }
 0x4f0   :  { %v4007_v51 = vld [vmem:[#allocation12 + $0xb48] sm:$0xff] }
 0x4f1   :  { %v16098_v3 = vcombine.low %v3999_v47, %v4007_v51  ;;  %v3935_v33 = vld [vmem:[#allocation12 + $0x908] sm:$0xff] }
 0x4f2   :  { %9895 = vmatpush2.bf16.msra.mxu0 %v16448_v23  ;;  %9936 = vmatpush2.bf16.msra.mxu1 %v16704_v16  ;;  %v3727_v23 = vld [vmem:[#allocation12 + $0x288] sm:$0xff] }
 0x4f3   :  { %9896 = vmatprep.subr.bf16.mxu0 %v16433_v61  ;;  %9937 = vmatprep.subr.bf16.mxu1 %v16689_v63  ;;  %v3735_v16 = vld [vmem:[#allocation12 + $0x2c8] sm:$0xff]  ;;  %v16099_v61 = vcombine.high %v3999_v47, %v4007_v51 }
 0x4f4   :  { %v3983_v63 = vld [vmem:[#allocation12 + $0xa88] sm:$0xff]  ;;  %v15827_v5 = vcombine.high %v3727_v23, %v3735_v16 }
 0x4f5   :  { %v16082_v12 = vcombine.low %v3983_v63, %v3991_v13  ;;  %v3943_v34 = vld [vmem:[#allocation12 + $0x948] sm:$0xff] }
 0x4f6   :  { %9897 = vmatpush2.bf16.msra.mxu0 %v16432_v7  ;;  %9938 = vmatpush2.bf16.msra.mxu1 %v16688_v9  ;;  %v16083_v7 = vcombine.high %v3983_v63, %v3991_v13  ;;  %v3719_v9 = vld [vmem:[#allocation12 + $0x248] sm:$0xff]  ;;  %v16034_v42 = vcombine.low %v3935_v33, %v3943_v34 }
 0x4f7   :  { %9898 = vmatprep.subr.bf16.mxu0 %v16417_v10  ;;  %9939 = vmatprep.subr.bf16.mxu1 %v16673_v62  ;;  %v3967_v10 = vld [vmem:[#allocation12 + $0xa08] sm:$0xff]  ;;  %v15826_v62 = vcombine.low %v3727_v23, %v3735_v16  ;;  %v15811_v17 = vcombine.high %v3711_v8, %v3719_v9 }
 0x4f8   :  { %v16067_v22 = vcombine.high %v3967_v10, %v3975_v11  ;;  %v16066_v28 = vcombine.low %v3967_v10, %v3975_v11  ;;  %v3671_v2 = vld [vmem:[#allocation12 + $0xc8] sm:$0xff] }
 0x4f9   :  { %v3927_v40 = vld [vmem:[#allocation12 + $0x8c8] sm:$0xff] }
 0x4fa   :  { %9899 = vmatpush2.bf16.msra.mxu0 %v16416_v21  ;;  %9940 = vmatpush2.bf16.msra.mxu1 %v16672_v26  ;;  %v3703_v21 = vld [vmem:[#allocation12 + $0x1c8] sm:$0xff] }
 0x4fb   :  { %9900 = vmatprep.subr.bf16.mxu0 %v16401_v27  ;;  %9941 = vmatprep.subr.bf16.mxu1 %v16657_v29  ;;  %v3959_v26 = vld [vmem:[#allocation12 + $0x9c8] sm:$0xff]  ;;  %v15810_v27 = vcombine.low %v3711_v8, %v3719_v9  ;;  %v15795_v29 = vcombine.high %v3695_v20, %v3703_v21  ;;  %v15794_v35 = vcombine.low %v3695_v20, %v3703_v21 }
 0x4fc   :  { %v16051_v30 = vcombine.high %v3951_v24, %v3959_v26  ;;  %v3647_v43 = vld [vmem:[#allocation12 + $0x8] sm:$0xff] }
 0x4fd   :  { %v3911_v44 = vld [vmem:[#allocation12 + $0x848] sm:$0xff] }
 0x4fe   :  { %9901 = vmatpush2.bf16.msra.mxu0 %v16400_v19  ;;  %9942 = vmatpush2.bf16.msra.mxu1 %v16656_v37  ;;  %v16050_v19 = vcombine.low %v3951_v24, %v3959_v26  ;;  %v16035_v37 = vcombine.high %v3935_v33, %v3943_v34  ;;  %v3887_v47 = vld [vmem:[#allocation12 + $0x788] sm:$0xff] }
 0x4ff   :  { %9902 = vmatprep.subr.bf16.mxu0 %v16385_v38  ;;  %9943 = vmatprep.subr.bf16.mxu1 %v16641_v39  ;;  %v3663_v38 = vld [vmem:[#allocation12 + $0x88] sm:$0xff] }
 0x500   :  { %v3919_v39 = vld [vmem:[#allocation12 + $0x888] sm:$0xff]  ;;  %v15763_v25 = vcombine.high %v3663_v38, %v3671_v2 }
 0x501   :  { %v16018_v45 = vcombine.low %v3919_v39, %v3927_v40  ;;  %v3895_v51 = vld [vmem:[#allocation12 + $0x7c8] sm:$0xff] }
 0x502   :  { %9903 = vmatpush2.bf16.msra.mxu0 %v16384_v4  ;;  %9944 = vmatpush2.bf16.msra.mxu1 %v16640_v14  ;;  %v16019_v4 = vcombine.high %v3919_v39, %v3927_v40  ;;  %v3655_v14 = vld [vmem:[#allocation12 + $0x48] sm:$0xff] }
 0x503   :  { %9954 = vmatprep.subr.bf16.mxu0 %v15859_v53  ;;  %9995 = vmatprep.subr.bf16.mxu1 %v16115_v18  ;;  %v3903_v53 = vld [vmem:[#allocation12 + $0x808] sm:$0xff]  ;;  %v15762_v18 = vcombine.low %v3663_v38, %v3671_v2  ;;  %v15747_v6 = vcombine.high %v3647_v43, %v3655_v14  ;;  %v15746_v23 = vcombine.low %v3647_v43, %v3655_v14 }
 0x504   :  { %v16002_v16 = vcombine.low %v3903_v53, %v3911_v44  ;;  %v3871_v13 = vld [vmem:[#allocation12 + $0x708] sm:$0xff] }
 0x505   :  { %9905 = vmatmul.mubr.bf16.vlgmr.msra.gmra.mxu0 %v18633_v54  ;;  %9946 = vmatmul.mubr.bf16.vlgmr.msra.gmra.mxu1 %v18635_v56  ;;  %v3855_v11 = vld [vmem:[#allocation12 + $0x688] sm:$0xff] }
 0x506   :  { %9955 = vmatpush1.bf16.msra.mxu0 %v15858_v46  ;;  %9986 = vmatprep.mubr.bf16.mxu0 %v18595_v58  ;;  %v16003_v46 = vcombine.high %v3903_v53, %v3911_v44  ;;  %v3839_v26 = vld [vmem:[#allocation12 + $0x608] sm:$0xff] }
 0x507   :  { %9996 = vmatpush1.bf16.msra.mxu1 %v16114_v55  ;;  %10027 = vmatprep.mubr.bf16.mxu1 %v18599_v59  ;;  %v4143_v55 = vld [vmem:[#allocation12 + $0xf88] sm:$0xff] }
 0x508   :  { %9956 = vmatprep.subr.bf16.mxu0 %v15843_v57  ;;  %9997 = vmatprep.subr.bf16.mxu1 %v16099_v61  ;;  %v4151_v57 = vld [vmem:[#allocation12 + $0xfc8] sm:$0xff]  ;;  %v15987_v61 = vcombine.high %v3887_v47, %v3895_v51 }
 0x509   :  { %v16243_v63 = vcombine.high %v4143_v55, %v4151_v57  ;;  %v16242_v8 = vcombine.low %v4143_v55, %v4151_v57  ;;  %v3823_v34 = vld [vmem:[#allocation12 + $0x588] sm:$0xff] }
 0x50a   :  { %9957 = vmatpush1.bf16.msra.mxu0 %v15842_v1  ;;  %v3879_v1 = vld [vmem:[#allocation12 + $0x748] sm:$0xff] }
 0x50b   :  { %9998 = vmatpush1.bf16.msra.mxu1 %v16098_v3  ;;  %9958 = vmatprep.subr.bf16.mxu0 %v15827_v5  ;;  %v4127_v3 = vld [vmem:[#allocation12 + $0xf08] sm:$0xff]  ;;  %v15971_v9 = vcombine.high %v3871_v13, %v3879_v1 }
 0x50c   :  { %9999 = vmatprep.subr.bf16.mxu1 %v16083_v7  ;;  %v4135_v5 = vld [vmem:[#allocation12 + $0xf48] sm:$0xff]  ;;  %v15986_v7 = vcombine.low %v3887_v47, %v3895_v51 }
 0x50d   :  { %v16227_v10 = vcombine.high %v4127_v3, %v4135_v5  ;;  %v16226_v20 = vcombine.low %v4127_v3, %v4135_v5  ;;  %v3807_v40 = vld [vmem:[#allocation12 + $0x508] sm:$0xff] }
 0x50e   :  { %9959 = vmatpush1.bf16.msra.mxu0 %v15826_v62  ;;  %v3863_v62 = vld [vmem:[#allocation12 + $0x6c8] sm:$0xff] }
 0x50f   :  { %10000 = vmatpush1.bf16.msra.mxu1 %v16082_v12  ;;  %9960 = vmatprep.subr.bf16.mxu0 %v15811_v17  ;;  %v4111_v12 = vld [vmem:[#allocation12 + $0xe88] sm:$0xff]  ;;  %v15955_v21 = vcombine.high %v3855_v11, %v3863_v62 }
 0x510   :  { %10001 = vmatprep.subr.bf16.mxu1 %v16067_v22  ;;  %v4119_v17 = vld [vmem:[#allocation12 + $0xec8] sm:$0xff]  ;;  %v15970_v22 = vcombine.low %v3871_v13, %v3879_v1 }
 0x511   :  { %v16211_v24 = vcombine.high %v4111_v12, %v4119_v17  ;;  %v16210_v31 = vcombine.low %v4111_v12, %v4119_v17  ;;  %v3791_v44 = vld [vmem:[#allocation12 + $0x488] sm:$0xff] }
 0x512   :  { %9961 = vmatpush1.bf16.msra.mxu0 %v15810_v27  ;;  %v3847_v27 = vld [vmem:[#allocation12 + $0x648] sm:$0xff] }
 0x513   :  { %10002 = vmatpush1.bf16.msra.mxu1 %v16066_v28  ;;  %9962 = vmatprep.subr.bf16.mxu0 %v15795_v29  ;;  %v4095_v28 = vld [vmem:[#allocation12 + $0xe08] sm:$0xff]  ;;  %v15939_v32 = vcombine.high %v3839_v26, %v3847_v27 }
 0x514   :  { %10003 = vmatprep.subr.bf16.mxu1 %v16051_v30  ;;  %v4103_v29 = vld [vmem:[#allocation12 + $0xe48] sm:$0xff]  ;;  %v15954_v30 = vcombine.low %v3855_v11, %v3863_v62 }
 0x515   :  { %v16195_v33 = vcombine.high %v4095_v28, %v4103_v29  ;;  %v16194_v38 = vcombine.low %v4095_v28, %v4103_v29  ;;  %v3775_v57 = vld [vmem:[#allocation12 + $0x408] sm:$0xff] }
 0x516   :  { %9963 = vmatpush1.bf16.msra.mxu0 %v15794_v35  ;;  %v3831_v35 = vld [vmem:[#allocation12 + $0x5c8] sm:$0xff] }
 0x517   :  { %10004 = vmatpush1.bf16.msra.mxu1 %v16050_v19  ;;  %9964 = vmatprep.subr.bf16.mxu0 %v15779_v36  ;;  %v4079_v19 = vld [vmem:[#allocation12 + $0xd88] sm:$0xff]  ;;  %v15923_v2 = vcombine.high %v3823_v34, %v3831_v35 }
 0x518   :  { %10005 = vmatprep.subr.bf16.mxu1 %v16035_v37  ;;  %v4087_v36 = vld [vmem:[#allocation12 + $0xdc8] sm:$0xff]  ;;  %v15938_v37 = vcombine.low %v3839_v26, %v3847_v27 }
 0x519   :  { %v16179_v39 = vcombine.high %v4079_v19, %v4087_v36  ;;  %v16178_v43 = vcombine.low %v4079_v19, %v4087_v36  ;;  %v4271_v5 = vld [vmem:[#allocation12 + $0x1388] sm:$0xff] }
 0x51a   :  { %9965 = vmatpush1.bf16.msra.mxu0 %v15778_v41  ;;  %v3815_v41 = vld [vmem:[#allocation12 + $0x548] sm:$0xff] }
 0x51b   :  { %10006 = vmatpush1.bf16.msra.mxu1 %v16034_v42  ;;  %9966 = vmatprep.subr.bf16.mxu0 %v15763_v25  ;;  %v4063_v42 = vld [vmem:[#allocation12 + $0xd08] sm:$0xff]  ;;  %v15907_v14 = vcombine.high %v3807_v40, %v3815_v41 }
 0x51c   :  { %10007 = vmatprep.subr.bf16.mxu1 %v16019_v4  ;;  %v4071_v25 = vld [vmem:[#allocation12 + $0xd48] sm:$0xff]  ;;  %v15922_v4 = vcombine.low %v3823_v34, %v3831_v35 }
 0x51d   :  { %v16163_v53 = vcombine.high %v4063_v42, %v4071_v25  ;;  %v16162_v47 = vcombine.low %v4063_v42, %v4071_v25  ;;  %v4255_v17 = vld [vmem:[#allocation12 + $0x1308] sm:$0xff] }
 0x51e   :  { %9967 = vmatpush1.bf16.msra.mxu0 %v15762_v18  ;;  %v3799_v18 = vld [vmem:[#allocation12 + $0x4c8] sm:$0xff] }
 0x51f   :  { %10008 = vmatpush1.bf16.msra.mxu1 %v16018_v45  ;;  %9968 = vmatprep.subr.bf16.mxu0 %v15747_v6  ;;  %v4047_v45 = vld [vmem:[#allocation12 + $0xc88] sm:$0xff]  ;;  %v15891_v51 = vcombine.high %v3791_v44, %v3799_v18 }
 0x520   :  { %10009 = vmatprep.subr.bf16.mxu1 %v16003_v46  ;;  %v4055_v6 = vld [vmem:[#allocation12 + $0xcc8] sm:$0xff]  ;;  %v15906_v46 = vcombine.low %v3807_v40, %v3815_v41 }
 0x521   :  { %v16147_v55 = vcombine.high %v4047_v45, %v4055_v6  ;;  %v16146_v13 = vcombine.low %v4047_v45, %v4055_v6  ;;  %v4239_v28 = vld [vmem:[#allocation12 + $0x1288] sm:$0xff] }
 0x522   :  { %9969 = vmatpush1.bf16.msra.mxu0 %v15746_v23  ;;  %v3783_v23 = vld [vmem:[#allocation12 + $0x448] sm:$0xff] }
 0x523   :  { %10010 = vmatpush1.bf16.msra.mxu1 %v16002_v16  ;;  %9970 = vmatprep.subr.bf16.mxu0 %v15987_v61  ;;  %v4031_v16 = vld [vmem:[#allocation12 + $0xc08] sm:$0xff]  ;;  %v15875_v1 = vcombine.high %v3775_v57, %v3783_v23 }
 0x524   :  { %10011 = vmatprep.subr.bf16.mxu1 %v16243_v63  ;;  %v4039_v61 = vld [vmem:[#allocation12 + $0xc48] sm:$0xff]  ;;  %v15890_v63 = vcombine.low %v3791_v44, %v3799_v18 }
 0x525   :  { %v16131_v3 = vcombine.high %v4031_v16, %v4039_v61  ;;  %v16130_v11 = vcombine.low %v4031_v16, %v4039_v61  ;;  %v4247_v29 = vld [vmem:[#allocation12 + $0x12c8] sm:$0xff] }
 0x526   :  { %9971 = vmatpush2.bf16.msra.mxu0 %v15986_v7  ;;  %v4279_v7 = vld [vmem:[#allocation12 + $0x13c8] sm:$0xff]  ;;  %v16339_v35 = vcombine.high %v4239_v28, %v4247_v29 }
 0x527   :  { %10012 = vmatpush2.bf16.msra.mxu1 %v16242_v8  ;;  %9972 = vmatprep.subr.bf16.mxu0 %v15971_v9  ;;  %v4527_v8 = vld [vmem:[#allocation12 + $0x1b88] sm:$0xff]  ;;  %v16371_v62 = vcombine.high %v4271_v5, %v4279_v7 }
 0x528   :  { %10013 = vmatprep.subr.bf16.mxu1 %v16227_v10  ;;  %v4535_v9 = vld [vmem:[#allocation12 + $0x1bc8] sm:$0xff]  ;;  %v15874_v10 = vcombine.low %v3775_v57, %v3783_v23 }
 0x529   :  { %v16627_v12 = vcombine.high %v4527_v8, %v4535_v9  ;;  %v16626_v26 = vcombine.low %v4527_v8, %v4535_v9  ;;  %v4223_v36 = vld [vmem:[#allocation12 + $0x1208] sm:$0xff] }
 0x52a   :  { %9973 = vmatpush2.bf16.msra.mxu0 %v15970_v22  ;;  %v4263_v22 = vld [vmem:[#allocation12 + $0x1348] sm:$0xff] }
 0x52b   :  { %10014 = vmatpush2.bf16.msra.mxu1 %v16226_v20  ;;  %9974 = vmatprep.subr.bf16.mxu0 %v15955_v21  ;;  %v16370_v20 = vcombine.low %v4271_v5, %v4279_v7  ;;  %v4511_v21 = vld [vmem:[#allocation12 + $0x1b08] sm:$0xff]  ;;  %v16355_v27 = vcombine.high %v4255_v17, %v4263_v22 }
 0x52c   :  { %10015 = vmatprep.subr.bf16.mxu1 %v16211_v24  ;;  %v4519_v24 = vld [vmem:[#allocation12 + $0x1b48] sm:$0xff] }
 0x52d   :  { %v16610_v34 = vcombine.low %v4511_v21, %v4519_v24  ;;  %v4207_v25 = vld [vmem:[#allocation12 + $0x1188] sm:$0xff] }
 0x52e   :  { %9975 = vmatpush2.bf16.msra.mxu0 %v15954_v30  ;;  %v16611_v30 = vcombine.high %v4511_v21, %v4519_v24  ;;  %v4191_v6 = vld [vmem:[#allocation12 + $0x1108] sm:$0xff] }
 0x52f   :  { %10016 = vmatpush2.bf16.msra.mxu1 %v16210_v31  ;;  %9976 = vmatprep.subr.bf16.mxu0 %v15939_v32  ;;  %v4495_v31 = vld [vmem:[#allocation12 + $0x1a88] sm:$0xff] }
 0x530   :  { %10017 = vmatprep.subr.bf16.mxu1 %v16195_v33  ;;  %v4503_v32 = vld [vmem:[#allocation12 + $0x1ac8] sm:$0xff]  ;;  %v16354_v33 = vcombine.low %v4255_v17, %v4263_v22 }
 0x531   :  { %v16595_v19 = vcombine.high %v4495_v31, %v4503_v32  ;;  %v16594_v40 = vcombine.low %v4495_v31, %v4503_v32  ;;  %v4175_v61 = vld [vmem:[#allocation12 + $0x1088] sm:$0xff] }
 0x532   :  { %9977 = vmatpush2.bf16.msra.mxu0 %v15938_v37  ;;  %v4231_v37 = vld [vmem:[#allocation12 + $0x1248] sm:$0xff] }
 0x533   :  { %10018 = vmatpush2.bf16.msra.mxu1 %v16194_v38  ;;  %9978 = vmatprep.subr.bf16.mxu0 %v15923_v2  ;;  %v4479_v38 = vld [vmem:[#allocation12 + $0x1a08] sm:$0xff]  ;;  %v16323_v41 = vcombine.high %v4223_v36, %v4231_v37 }
 0x534   :  { %10019 = vmatprep.subr.bf16.mxu1 %v16179_v39  ;;  %v4487_v2 = vld [vmem:[#allocation12 + $0x1a48] sm:$0xff]  ;;  %v16338_v39 = vcombine.low %v4239_v28, %v4247_v29 }
 0x535   :  { %v16579_v42 = vcombine.high %v4479_v38, %v4487_v2  ;;  %v16578_v44 = vcombine.low %v4479_v38, %v4487_v2  ;;  %v4159_v9 = vld [vmem:[#allocation12 + $0x1008] sm:$0xff] }
 0x536   :  { %9979 = vmatpush2.bf16.msra.mxu0 %v15922_v4  ;;  %v4215_v4 = vld [vmem:[#allocation12 + $0x11c8] sm:$0xff] }
 0x537   :  { %10020 = vmatpush2.bf16.msra.mxu1 %v16178_v43  ;;  %9980 = vmatprep.subr.bf16.mxu0 %v15907_v14  ;;  %v4463_v43 = vld [vmem:[#allocation12 + $0x1988] sm:$0xff]  ;;  %v16307_v18 = vcombine.high %v4207_v25, %v4215_v4 }
 0x538   :  { %10021 = vmatprep.subr.bf16.mxu1 %v16163_v53  ;;  %v4471_v14 = vld [vmem:[#allocation12 + $0x19c8] sm:$0xff]  ;;  %v16322_v53 = vcombine.low %v4223_v36, %v4231_v37 }
 0x539   :  { %v16563_v45 = vcombine.high %v4463_v43, %v4471_v14  ;;  %v16562_v57 = vcombine.low %v4463_v43, %v4471_v14  ;;  %v4399_v21 = vld [vmem:[#allocation12 + $0x1788] sm:$0xff] }
 0x53a   :  { %9981 = vmatpush2.bf16.msra.mxu0 %v15906_v46  ;;  %v4199_v46 = vld [vmem:[#allocation12 + $0x1148] sm:$0xff] }
 0x53b   :  { %10022 = vmatpush2.bf16.msra.mxu1 %v16162_v47  ;;  %9982 = vmatprep.subr.bf16.mxu0 %v15891_v51  ;;  %v4447_v47 = vld [vmem:[#allocation12 + $0x1908] sm:$0xff]  ;;  %v16291_v23 = vcombine.high %v4191_v6, %v4199_v46 }
 0x53c   :  { %10023 = vmatprep.subr.bf16.mxu1 %v16147_v55  ;;  %v4455_v51 = vld [vmem:[#allocation12 + $0x1948] sm:$0xff]  ;;  %v16306_v55 = vcombine.low %v4207_v25, %v4215_v4 }
 0x53d   :  { %v16547_v16 = vcombine.high %v4447_v47, %v4455_v51  ;;  %v16546_v5 = vcombine.low %v4447_v47, %v4455_v51  ;;  %v4407_v24 = vld [vmem:[#allocation12 + $0x17c8] sm:$0xff] }
 0x53e   :  { %9983 = vmatpush2.bf16.msra.mxu0 %v15890_v63  ;;  %v4183_v63 = vld [vmem:[#allocation12 + $0x10c8] sm:$0xff] }
 0x53f   :  { %10024 = vmatpush2.bf16.msra.mxu1 %v16146_v13  ;;  %9984 = vmatprep.subr.bf16.mxu0 %v15875_v1  ;;  %v4431_v13 = vld [vmem:[#allocation12 + $0x1888] sm:$0xff]  ;;  %v16275_v7 = vcombine.high %v4175_v61, %v4183_v63 }
 0x540   :  { %10025 = vmatprep.subr.bf16.mxu1 %v16131_v3  ;;  %v4439_v1 = vld [vmem:[#allocation12 + $0x18c8] sm:$0xff]  ;;  %v16290_v3 = vcombine.low %v4191_v6, %v4199_v46 }
 0x541   :  { %v16531_v8 = vcombine.high %v4431_v13, %v4439_v1  ;;  %v16530_v17 = vcombine.low %v4431_v13, %v4439_v1  ;;  %v4383_v32 = vld [vmem:[#allocation12 + $0x1708] sm:$0xff] }
 0x542   :  { %9985 = vmatpush2.bf16.msra.mxu0 %v15874_v10  ;;  %v4167_v10 = vld [vmem:[#allocation12 + $0x1048] sm:$0xff] }
 0x543   :  { %10026 = vmatpush2.bf16.msra.mxu1 %v16130_v11  ;;  %10036 = vmatprep.subr.bf16.mxu0 %v16371_v62  ;;  %v4415_v11 = vld [vmem:[#allocation12 + $0x1808] sm:$0xff]  ;;  %v16259_v22 = vcombine.high %v4159_v9, %v4167_v10  ;;  %v16258_v28 = vcombine.low %v4159_v9, %v4167_v10 }
 0x544   :  { %10077 = vmatprep.subr.bf16.mxu1 %v16627_v12  ;;  %v4423_v62 = vld [vmem:[#allocation12 + $0x1848] sm:$0xff]  ;;  %v16274_v12 = vcombine.low %v4175_v61, %v4183_v63 }
 0x545   :  { %9987 = vmatmul.mubr.bf16.vlgmr.msra.gmra.mxu0 %v18597_v60  ;;  %v16514_v29 = vcombine.low %v4415_v11, %v4423_v62  ;;  %v4367_v2 = vld [vmem:[#allocation12 + $0x1688] sm:$0xff] }
 0x546   :  { %10028 = vmatmul.mubr.bf16.vlgmr.msra.gmra.mxu1 %v18601_v15  ;;  %10037 = vmatpush1.bf16.msra.mxu0 %v16370_v20  ;;  %v16515_v20 = vcombine.high %v4415_v11, %v4423_v62  ;;  %v4351_v14 = vld [vmem:[#allocation12 + $0x1608] sm:$0xff] }
 0x547   :  { %10068 = vmatprep.mubr.bf16.mxu0 %v18617_v49  ;;  %10078 = vmatpush1.bf16.msra.mxu1 %v16626_v26  ;;  %v4655_v26 = vld [vmem:[#allocation12 + $0x1f88] sm:$0xff] }
 0x548   :  { %10109 = vmatprep.mubr.bf16.mxu1 %v18619_v52  ;;  %10038 = vmatprep.subr.bf16.mxu0 %v16355_v27  ;;  %v4663_v27 = vld [vmem:[#allocation12 + $0x1fc8] sm:$0xff] }
 0x549   :  { %10079 = vmatprep.subr.bf16.mxu1 %v16611_v30  ;;  %v16499_v30 = vcombine.high %v4399_v21, %v4407_v24  ;;  %v16755_v31 = vcombine.high %v4655_v26, %v4663_v27  ;;  %v16754_v36 = vcombine.low %v4655_v26, %v4663_v27  ;;  %v4335_v51 = vld [vmem:[#allocation12 + $0x1588] sm:$0xff] }
 0x54a   :  { %10039 = vmatpush1.bf16.msra.mxu0 %v16354_v33  ;;  %v4391_v33 = vld [vmem:[#allocation12 + $0x1748] sm:$0xff] }
 0x54b   :  { %10080 = vmatpush1.bf16.msra.mxu1 %v16610_v34  ;;  %10040 = vmatprep.subr.bf16.mxu0 %v16339_v35  ;;  %v4639_v34 = vld [vmem:[#allocation12 + $0x1f08] sm:$0xff]  ;;  %v16483_v37 = vcombine.high %v4383_v32, %v4391_v33 }
 0x54c   :  { %10081 = vmatprep.subr.bf16.mxu1 %v16595_v19  ;;  %v4647_v35 = vld [vmem:[#allocation12 + $0x1f48] sm:$0xff]  ;;  %v16498_v19 = vcombine.low %v4399_v21, %v4407_v24 }
 0x54d   :  { %v16739_v38 = vcombine.high %v4639_v34, %v4647_v35  ;;  %v16738_v25 = vcombine.low %v4639_v34, %v4647_v35  ;;  %v4319_v1 = vld [vmem:[#allocation12 + $0x1508] sm:$0xff]  ;;  %v3760_v35 = vld [vmem:[#allocation12 + $0x390] sm:$0xff] }
 0x54e   :  { %10041 = vmatpush1.bf16.msra.mxu0 %v16338_v39  ;;  %v4375_v39 = vld [vmem:[#allocation12 + $0x16c8] sm:$0xff] }
 0x54f   :  { %10082 = vmatpush1.bf16.msra.mxu1 %v16594_v40  ;;  %10042 = vmatprep.subr.bf16.mxu0 %v16323_v41  ;;  %v4623_v40 = vld [vmem:[#allocation12 + $0x1e88] sm:$0xff]  ;;  %v16467_v4 = vcombine.high %v4367_v2, %v4375_v39 }
 0x550   :  { %10083 = vmatprep.subr.bf16.mxu1 %v16579_v42  ;;  %v4631_v41 = vld [vmem:[#allocation12 + $0x1ec8] sm:$0xff]  ;;  %v16482_v42 = vcombine.low %v4383_v32, %v4391_v33 }
 0x551   :  { %v16723_v43 = vcombine.high %v4623_v40, %v4631_v41  ;;  %v16722_v6 = vcombine.low %v4623_v40, %v4631_v41  ;;  %v4303_v62 = vld [vmem:[#allocation12 + $0x1488] sm:$0xff]  ;;  %v3744_v41 = vld [vmem:[#allocation12 + $0x310] sm:$0xff] }
 0x552   :  { %10043 = vmatpush1.bf16.msra.mxu0 %v16322_v53  ;;  %v4359_v53 = vld [vmem:[#allocation12 + $0x1648] sm:$0xff] }
 0x553   :  { %10084 = vmatpush1.bf16.msra.mxu1 %v16578_v44  ;;  %10044 = vmatprep.subr.bf16.mxu0 %v16307_v18  ;;  %v4607_v44 = vld [vmem:[#allocation12 + $0x1e08] sm:$0xff]  ;;  %v16451_v46 = vcombine.high %v4351_v14, %v4359_v53 }
 0x554   :  { %10085 = vmatprep.subr.bf16.mxu1 %v16563_v45  ;;  %v4615_v18 = vld [vmem:[#allocation12 + $0x1e48] sm:$0xff]  ;;  %v16466_v45 = vcombine.low %v4367_v2, %v4375_v39 }
 0x555   :  { %v16707_v47 = vcombine.high %v4607_v44, %v4615_v18  ;;  %v16706_v61 = vcombine.low %v4607_v44, %v4615_v18  ;;  %v4287_v27 = vld [vmem:[#allocation12 + $0x1408] sm:$0xff]  ;;  %v3728_v44 = vld [vmem:[#allocation12 + $0x290] sm:$0xff] }
 0x556   :  { %10045 = vmatpush1.bf16.msra.mxu0 %v16306_v55  ;;  %v4343_v55 = vld [vmem:[#allocation12 + $0x15c8] sm:$0xff]  ;;  %v3736_v18 = vld [vmem:[#allocation12 + $0x2d0] sm:$0xff] }
 0x557   :  { %10086 = vmatpush1.bf16.msra.mxu1 %v16562_v57  ;;  %10046 = vmatprep.subr.bf16.mxu0 %v16291_v23  ;;  %v4591_v57 = vld [vmem:[#allocation12 + $0x1d88] sm:$0xff]  ;;  %v16435_v63 = vcombine.high %v4335_v51, %v4343_v55 }
 0x558   :  { %10087 = vmatprep.subr.bf16.mxu1 %v16547_v16  ;;  %v4599_v23 = vld [vmem:[#allocation12 + $0x1dc8] sm:$0xff]  ;;  %v16450_v16 = vcombine.low %v4351_v14, %v4359_v53 }
 0x559   :  { %v16691_v13 = vcombine.high %v4591_v57, %v4599_v23  ;;  %v16690_v9 = vcombine.low %v4591_v57, %v4599_v23 }
 0x55a   :  { %10047 = vmatpush1.bf16.msra.mxu0 %v16290_v3  ;;  %v4327_v3 = vld [vmem:[#allocation12 + $0x1548] sm:$0xff] }
 0x55b   :  { %10088 = vmatpush1.bf16.msra.mxu1 %v16546_v5  ;;  %10048 = vmatprep.subr.bf16.mxu0 %v16275_v7  ;;  %v4575_v5 = vld [vmem:[#allocation12 + $0x1d08] sm:$0xff]  ;;  %v16419_v10 = vcombine.high %v4319_v1, %v4327_v3 }
 0x55c   :  { %10089 = vmatprep.subr.bf16.mxu1 %v16531_v8  ;;  %v4583_v7 = vld [vmem:[#allocation12 + $0x1d48] sm:$0xff]  ;;  %v16434_v8 = vcombine.low %v4335_v51, %v4343_v55 }
 0x55d   :  { %v16675_v11 = vcombine.high %v4575_v5, %v4583_v7  ;;  %v16674_v21 = vcombine.low %v4575_v5, %v4583_v7 }
 0x55e   :  { %10049 = vmatpush1.bf16.msra.mxu0 %v16274_v12  ;;  %v4311_v12 = vld [vmem:[#allocation12 + $0x14c8] sm:$0xff] }
 0x55f   :  { %10090 = vmatpush1.bf16.msra.mxu1 %v16530_v17  ;;  %10050 = vmatprep.subr.bf16.mxu0 %v16259_v22  ;;  %v4559_v17 = vld [vmem:[#allocation12 + $0x1c88] sm:$0xff]  ;;  %v16403_v24 = vcombine.high %v4303_v62, %v4311_v12 }
 0x560   :  { %10091 = vmatprep.subr.bf16.mxu1 %v16515_v20  ;;  %v4567_v22 = vld [vmem:[#allocation12 + $0x1cc8] sm:$0xff]  ;;  %v16418_v20 = vcombine.low %v4319_v1, %v4327_v3  ;;  %v3712_v1 = vld [vmem:[#allocation12 + $0x210] sm:$0xff] }
 0x561   :  { %v16659_v26 = vcombine.high %v4559_v17, %v4567_v22  ;;  %v16658_v32 = vcombine.low %v4559_v17, %v4567_v22  ;;  %v3720_v3 = vld [vmem:[#allocation12 + $0x250] sm:$0xff] }
 0x562   :  { %10051 = vmatpush1.bf16.msra.mxu0 %v16258_v28  ;;  %v4295_v28 = vld [vmem:[#allocation12 + $0x1448] sm:$0xff]  ;;  %v15813_v17 = vcombine.high %v3712_v1, %v3720_v3 }
 0x563   :  { %10092 = vmatpush1.bf16.msra.mxu1 %v16514_v29  ;;  %10052 = vmatprep.subr.bf16.mxu0 %v16499_v30  ;;  %v4543_v29 = vld [vmem:[#allocation12 + $0x1c08] sm:$0xff]  ;;  %v16387_v33 = vcombine.high %v4287_v27, %v4295_v28 }
 0x564   :  { %10093 = vmatprep.subr.bf16.mxu1 %v16755_v31  ;;  %v4551_v30 = vld [vmem:[#allocation12 + $0x1c48] sm:$0xff]  ;;  %v16402_v31 = vcombine.low %v4303_v62, %v4311_v12 }
 0x565   :  { %v16643_v34 = vcombine.high %v4543_v29, %v4551_v30  ;;  %v16642_v2 = vcombine.low %v4543_v29, %v4551_v30 }
 0x566   :  { %10053 = vmatpush2.bf16.msra.mxu0 %v16498_v19  ;;  %v3768_v19 = vld [vmem:[#allocation12 + $0x3d0] sm:$0xff] }
 0x567   :  { %10094 = vmatpush2.bf16.msra.mxu1 %v16754_v36  ;;  %10054 = vmatprep.subr.bf16.mxu0 %v16483_v37  ;;  %v4016_v36 = vld [vmem:[#allocation12 + $0xb90] sm:$0xff]  ;;  %v15861_v39 = vcombine.high %v3760_v35, %v3768_v19 }
 0x568   :  { %10095 = vmatprep.subr.bf16.mxu1 %v16739_v38  ;;  %v4024_v37 = vld [vmem:[#allocation12 + $0xbd0] sm:$0xff]  ;;  %v16386_v38 = vcombine.low %v4287_v27, %v4295_v28  ;;  %v15812_v28 = vcombine.low %v3712_v1, %v3720_v3 }
 0x569   :  { %v16117_v40 = vcombine.high %v4016_v36, %v4024_v37  ;;  %v16116_v14 = vcombine.low %v4016_v36, %v4024_v37  ;;  %v3960_v27 = vld [vmem:[#allocation12 + $0x9d0] sm:$0xff] }
 0x56a   :  { %10055 = vmatpush2.bf16.msra.mxu0 %v16482_v42  ;;  %v3752_v42 = vld [vmem:[#allocation12 + $0x350] sm:$0xff] }
 0x56b   :  { %10096 = vmatpush2.bf16.msra.mxu1 %v16738_v25  ;;  %10056 = vmatprep.subr.bf16.mxu0 %v16467_v4  ;;  %v15860_v25 = vcombine.low %v3760_v35, %v3768_v19  ;;  %v4000_v4 = vld [vmem:[#allocation12 + $0xb10] sm:$0xff]  ;;  %v15845_v53 = vcombine.high %v3744_v41, %v3752_v42  ;;  %v15844_v55 = vcombine.low %v3744_v41, %v3752_v42 }
 0x56c   :  { %10097 = vmatprep.subr.bf16.mxu1 %v16723_v43  ;;  %v4008_v43 = vld [vmem:[#allocation12 + $0xb50] sm:$0xff] }
 0x56d   :  { %v3944_v35 = vld [vmem:[#allocation12 + $0x950] sm:$0xff] }
 0x56e   :  { %10057 = vmatpush2.bf16.msra.mxu0 %v16466_v45  ;;  %v3928_v41 = vld [vmem:[#allocation12 + $0x8d0] sm:$0xff] }
 0x56f   :  { %10098 = vmatpush2.bf16.msra.mxu1 %v16722_v6  ;;  %10058 = vmatprep.subr.bf16.mxu0 %v16451_v46  ;;  %v16101_v6 = vcombine.high %v4000_v4, %v4008_v43  ;;  %v3984_v46 = vld [vmem:[#allocation12 + $0xa90] sm:$0xff] }
 0x570   :  { %10099 = vmatprep.subr.bf16.mxu1 %v16707_v47  ;;  %v3992_v47 = vld [vmem:[#allocation12 + $0xad0] sm:$0xff] }
 0x571   :  { %v16084_v12 = vcombine.low %v3984_v46, %v3992_v47  ;;  %v3872_v3 = vld [vmem:[#allocation12 + $0x710] sm:$0xff] }
 0x572   :  { %10059 = vmatpush2.bf16.msra.mxu0 %v16450_v16  ;;  %v16100_v16 = vcombine.low %v4000_v4, %v4008_v43 }
 0x573   :  { %10100 = vmatpush2.bf16.msra.mxu1 %v16706_v61  ;;  %10060 = vmatprep.subr.bf16.mxu0 %v16435_v63  ;;  %v15829_v61 = vcombine.high %v3728_v44, %v3736_v18 }
 0x574   :  { %10101 = vmatprep.subr.bf16.mxu1 %v16691_v13  ;;  %v16085_v13 = vcombine.high %v3984_v46, %v3992_v47 }
 0x576   :  { %10061 = vmatpush2.bf16.msra.mxu0 %v16434_v8  ;;  %v3968_v8 = vld [vmem:[#allocation12 + $0xa10] sm:$0xff] }
 0x577   :  { %10102 = vmatpush2.bf16.msra.mxu1 %v16690_v9  ;;  %10062 = vmatprep.subr.bf16.mxu0 %v16419_v10  ;;  %v3976_v9 = vld [vmem:[#allocation12 + $0xa50] sm:$0xff] }
 0x578   :  { %10103 = vmatprep.subr.bf16.mxu1 %v16675_v11  ;;  %v15828_v11 = vcombine.low %v3728_v44, %v3736_v18  ;;  %v16068_v29 = vcombine.low %v3968_v8, %v3976_v9  ;;  %v3904_v44 = vld [vmem:[#allocation12 + $0x810] sm:$0xff] }
 0x579   :  { %v3912_v18 = vld [vmem:[#allocation12 + $0x850] sm:$0xff] }
 0x57a   :  { %10063 = vmatpush2.bf16.msra.mxu0 %v16418_v20  ;;  %v16069_v20 = vcombine.high %v3968_v8, %v3976_v9  ;;  %v16005_v47 = vcombine.high %v3904_v44, %v3912_v18  ;;  %v4128_v8 = vld [vmem:[#allocation12 + $0xf10] sm:$0xff] }
 0x57b   :  { %10104 = vmatpush2.bf16.msra.mxu1 %v16674_v21  ;;  %10064 = vmatprep.subr.bf16.mxu0 %v16403_v24  ;;  %v3696_v21 = vld [vmem:[#allocation12 + $0x190] sm:$0xff] }
 0x57c   :  { %10105 = vmatprep.subr.bf16.mxu1 %v16659_v26  ;;  %v3704_v24 = vld [vmem:[#allocation12 + $0x1d0] sm:$0xff] }
 0x57d   :  { %v3952_v26 = vld [vmem:[#allocation12 + $0x990] sm:$0xff]  ;;  %v15797_v30 = vcombine.high %v3696_v21, %v3704_v24  ;;  %v15796_v19 = vcombine.low %v3696_v21, %v3704_v24 }
 0x57e   :  { %10065 = vmatpush2.bf16.msra.mxu0 %v16402_v31  ;;  %v16053_v31 = vcombine.high %v3952_v26, %v3960_v27  ;;  %v16052_v36 = vcombine.low %v3952_v26, %v3960_v27  ;;  %v4136_v9 = vld [vmem:[#allocation12 + $0xf50] sm:$0xff] }
 0x57f   :  { %10106 = vmatpush2.bf16.msra.mxu1 %v16658_v32  ;;  %10066 = vmatprep.subr.bf16.mxu0 %v16387_v33  ;;  %v3680_v32 = vld [vmem:[#allocation12 + $0x110] sm:$0xff]  ;;  %v16228_v26 = vcombine.low %v4128_v8, %v4136_v9 }
 0x580   :  { %10107 = vmatprep.subr.bf16.mxu1 %v16643_v34  ;;  %v3688_v33 = vld [vmem:[#allocation12 + $0x150] sm:$0xff] }
 0x581   :  { %v3936_v34 = vld [vmem:[#allocation12 + $0x910] sm:$0xff]  ;;  %v15781_v37 = vcombine.high %v3680_v32, %v3688_v33  ;;  %v15780_v42 = vcombine.low %v3680_v32, %v3688_v33 }
 0x582   :  { %10067 = vmatpush2.bf16.msra.mxu0 %v16386_v38  ;;  %v16037_v38 = vcombine.high %v3936_v34, %v3944_v35  ;;  %v4120_v21 = vld [vmem:[#allocation12 + $0xed0] sm:$0xff] }
 0x583   :  { %10108 = vmatpush2.bf16.msra.mxu1 %v16642_v2  ;;  %10118 = vmatprep.subr.bf16.mxu0 %v15861_v39  ;;  %v3664_v2 = vld [vmem:[#allocation12 + $0x90] sm:$0xff] }
 0x584   :  { %10159 = vmatprep.subr.bf16.mxu1 %v16117_v40  ;;  %v3672_v39 = vld [vmem:[#allocation12 + $0xd0] sm:$0xff] }
 0x585   :  { %10069 = vmatmul.mubr.bf16.vlgmr.msra.gmra.mxu0 %v18633_v54  ;;  %v9824_v45 = vpop.f32.mrf.mxu0  ;;  %v9865_v51 = vpop.f32.mrf.mxu1  ;;  %v3920_v40 = vld [vmem:[#allocation12 + $0x890] sm:$0xff]  ;;  %v15765_v4 = vcombine.high %v3664_v2, %v3672_v39 }
 0x586   :  { %10110 = vmatmul.mubr.bf16.vlgmr.msra.gmra.mxu1 %v18635_v56  ;;  %10119 = vmatpush1.bf16.msra.mxu0 %v15860_v25  ;;  %v18647_v57 = vadd.f32 %v9865_v51, %v9824_v45  ;;  %v16036_v25 = vcombine.low %v3936_v34, %v3944_v35  ;;  %v16021_v43 = vcombine.high %v3920_v40, %v3928_v41  ;;  %v3888_v51 = vld [vmem:[#allocation12 + $0x790] sm:$0xff] }
 0x587   :  { %10150 = vmatprep.mubr.bf16.mxu0 %v18595_v58  ;;  %10160 = vmatpush1.bf16.msra.mxu1 %v16116_v14  ;;  %v9826_v23 = vpop.f32.mrf.mxu0  ;;  %v9867_v63 = vpop.f32.mrf.mxu1  ;;  %v3648_v14 = vld [vmem:[#allocation12 + $0x10] sm:$0xff]  ;;  %v15764_v45 = vcombine.low %v3664_v2, %v3672_v39 }
 0x588   :  { %10191 = vmatprep.mubr.bf16.mxu1 %v18599_v59  ;;  %10120 = vmatprep.subr.bf16.mxu0 %v15845_v53  ;;  %v18651_v5 = vadd.f32 %v9867_v63, %v9826_v23  ;;  %v3656_v53 = vld [vmem:[#allocation12 + $0x50] sm:$0xff]  ;;  %v16004_v63 = vcombine.low %v3904_v44, %v3912_v18 }
 0x589   :  { %10161 = vmatprep.subr.bf16.mxu1 %v16101_v6  ;;  %v9828_v7 = vpop.f32.mrf.mxu0  ;;  %v9869_v10 = vpop.f32.mrf.mxu1  ;;  %v16020_v6 = vcombine.low %v3920_v40, %v3928_v41  ;;  %v15749_v46 = vcombine.high %v3648_v14, %v3656_v53  ;;  %v4144_v23 = vld [vmem:[#allocation12 + $0xf90] sm:$0xff] }
 0x58a   :  { %10121 = vmatpush1.bf16.msra.mxu0 %v15844_v55  ;;  %v3896_v55 = vld [vmem:[#allocation12 + $0x7d0] sm:$0xff] }
 0x58b   :  { %10162 = vmatpush1.bf16.msra.mxu1 %v16100_v16  ;;  %v9829_v62 = vpop.f32.mrf.mxu0  ;;  %10122 = vmatprep.subr.bf16.mxu0 %v15829_v61  ;;  %v9870_v22 = vpop.f32.mrf.mxu1  ;;  %v4152_v16 = vld [vmem:[#allocation12 + $0xfd0] sm:$0xff]  ;;  %v15748_v61 = vcombine.low %v3648_v14, %v3656_v53  ;;  %v15988_v10 = vcombine.low %v3888_v51, %v3896_v55 }
 0x58c   :  { %10163 = vmatprep.subr.bf16.mxu1 %v16085_v13  ;;  %v15989_v13 = vcombine.high %v3888_v51, %v3896_v55  ;;  %v16245_v1 = vcombine.high %v4144_v23, %v4152_v16  ;;  %v3880_v7 = vld [vmem:[#allocation12 + $0x750] sm:$0xff] }
 0x58d   :  { %v15973_v62 = vcombine.high %v3872_v3, %v3880_v7  ;;  %v3864_v22 = vld [vmem:[#allocation12 + $0x6d0] sm:$0xff]  ;;  %v15972_v24 = vcombine.low %v3872_v3, %v3880_v7 }
 0x58e   :  { %10123 = vmatpush1.bf16.msra.mxu0 %v15828_v11  ;;  %v16244_v11 = vcombine.low %v4144_v23, %v4152_v16  ;;  %v4104_v32 = vld [vmem:[#allocation12 + $0xe50] sm:$0xff] }
 0x58f   :  { %10164 = vmatpush1.bf16.msra.mxu1 %v16084_v12  ;;  %10124 = vmatprep.subr.bf16.mxu0 %v15813_v17  ;;  %v16229_v12 = vcombine.high %v4128_v8, %v4136_v9  ;;  %v3856_v17 = vld [vmem:[#allocation12 + $0x690] sm:$0xff] }
 0x590   :  { %10165 = vmatprep.subr.bf16.mxu1 %v16069_v20  ;;  %v4112_v20 = vld [vmem:[#allocation12 + $0xe90] sm:$0xff]  ;;  %v15957_v27 = vcombine.high %v3856_v17, %v3864_v22  ;;  %v15956_v33 = vcombine.low %v3856_v17, %v3864_v22 }
 0x591   :  { %v16212_v34 = vcombine.low %v4112_v20, %v4120_v21  ;;  %v4088_v2 = vld [vmem:[#allocation12 + $0xdd0] sm:$0xff] }
 0x592   :  { %10125 = vmatpush1.bf16.msra.mxu0 %v15812_v28  ;;  %v16213_v28 = vcombine.high %v4112_v20, %v4120_v21  ;;  %v4072_v14 = vld [vmem:[#allocation12 + $0xd50] sm:$0xff] }
 0x593   :  { %10166 = vmatpush1.bf16.msra.mxu1 %v16068_v29  ;;  %10126 = vmatprep.subr.bf16.mxu0 %v15797_v30  ;;  %v3840_v29 = vld [vmem:[#allocation12 + $0x610] sm:$0xff] }
 0x594   :  { %10167 = vmatprep.subr.bf16.mxu1 %v16053_v31  ;;  %v3848_v30 = vld [vmem:[#allocation12 + $0x650] sm:$0xff] }
 0x595   :  { %v4096_v31 = vld [vmem:[#allocation12 + $0xe10] sm:$0xff]  ;;  %v15941_v35 = vcombine.high %v3840_v29, %v3848_v30  ;;  %v15940_v39 = vcombine.low %v3840_v29, %v3848_v30 }
 0x596   :  { %10127 = vmatpush1.bf16.msra.mxu0 %v15796_v19  ;;  %v16197_v19 = vcombine.high %v4096_v31, %v4104_v32  ;;  %v16196_v40 = vcombine.low %v4096_v31, %v4104_v32  ;;  %v4056_v51 = vld [vmem:[#allocation12 + $0xcd0] sm:$0xff] }
 0x597   :  { %10168 = vmatpush1.bf16.msra.mxu1 %v16052_v36  ;;  %10128 = vmatprep.subr.bf16.mxu0 %v15781_v37  ;;  %v3824_v36 = vld [vmem:[#allocation12 + $0x590] sm:$0xff] }
 0x598   :  { %10169 = vmatprep.subr.bf16.mxu1 %v16037_v38  ;;  %v3832_v37 = vld [vmem:[#allocation12 + $0x5d0] sm:$0xff] }
 0x599   :  { %v4080_v38 = vld [vmem:[#allocation12 + $0xd90] sm:$0xff]  ;;  %v15925_v41 = vcombine.high %v3824_v36, %v3832_v37  ;;  %v15924_v53 = vcombine.low %v3824_v36, %v3832_v37 }
 0x59a   :  { %10129 = vmatpush1.bf16.msra.mxu0 %v15780_v42  ;;  %v16181_v42 = vcombine.high %v4080_v38, %v4088_v2  ;;  %v16180_v44 = vcombine.low %v4080_v38, %v4088_v2  ;;  %v4040_v3 = vld [vmem:[#allocation12 + $0xc50] sm:$0xff] }
 0x59b   :  { %10170 = vmatpush1.bf16.msra.mxu1 %v16036_v25  ;;  %10130 = vmatprep.subr.bf16.mxu0 %v15765_v4  ;;  %v3808_v25 = vld [vmem:[#allocation12 + $0x510] sm:$0xff] }
 0x59c   :  { %10171 = vmatprep.subr.bf16.mxu1 %v16021_v43  ;;  %v3816_v4 = vld [vmem:[#allocation12 + $0x550] sm:$0xff] }
 0x59d   :  { %v4064_v43 = vld [vmem:[#allocation12 + $0xd10] sm:$0xff]  ;;  %v15909_v18 = vcombine.high %v3808_v25, %v3816_v4  ;;  %v15908_v55 = vcombine.low %v3808_v25, %v3816_v4 }
 0x59e   :  { %10131 = vmatpush1.bf16.msra.mxu0 %v15764_v45  ;;  %v16165_v45 = vcombine.high %v4064_v43, %v4072_v14  ;;  %v16164_v23 = vcombine.low %v4064_v43, %v4072_v14  ;;  %v4536_v17 = vld [vmem:[#allocation12 + $0x1bd0] sm:$0xff] }
 0x59f   :  { %10172 = vmatpush1.bf16.msra.mxu1 %v16020_v6  ;;  %10132 = vmatprep.subr.bf16.mxu0 %v15749_v46  ;;  %v3792_v6 = vld [vmem:[#allocation12 + $0x490] sm:$0xff] }
 0x5a0   :  { %10173 = vmatprep.subr.bf16.mxu1 %v16005_v47  ;;  %v3800_v46 = vld [vmem:[#allocation12 + $0x4d0] sm:$0xff] }
 0x5a1   :  { %v4048_v47 = vld [vmem:[#allocation12 + $0xc90] sm:$0xff]  ;;  %v15893_v16 = vcombine.high %v3792_v6, %v3800_v46  ;;  %v15892_v7 = vcombine.low %v3792_v6, %v3800_v46 }
 0x5a2   :  { %10133 = vmatpush1.bf16.msra.mxu0 %v15748_v61  ;;  %v16149_v61 = vcombine.high %v4048_v47, %v4056_v51  ;;  %v16148_v8 = vcombine.low %v4048_v47, %v4056_v51  ;;  %v4512_v29 = vld [vmem:[#allocation12 + $0x1b10] sm:$0xff] }
 0x5a3   :  { %10174 = vmatpush1.bf16.msra.mxu1 %v16004_v63  ;;  %10134 = vmatprep.subr.bf16.mxu0 %v15989_v13  ;;  %v3776_v63 = vld [vmem:[#allocation12 + $0x410] sm:$0xff] }
 0x5a4   :  { %10175 = vmatprep.subr.bf16.mxu1 %v16245_v1  ;;  %v3784_v13 = vld [vmem:[#allocation12 + $0x450] sm:$0xff] }
 0x5a5   :  { %v4032_v1 = vld [vmem:[#allocation12 + $0xc10] sm:$0xff]  ;;  %v15877_v9 = vcombine.high %v3776_v63, %v3784_v13  ;;  %v15876_v22 = vcombine.low %v3776_v63, %v3784_v13 }
 0x5a6   :  { %10135 = vmatpush2.bf16.msra.mxu0 %v15988_v10  ;;  %v16133_v10 = vcombine.high %v4032_v1, %v4040_v3  ;;  %v16132_v20 = vcombine.low %v4032_v1, %v4040_v3  ;;  %v4520_v30 = vld [vmem:[#allocation12 + $0x1b50] sm:$0xff] }
 0x5a7   :  { %10176 = vmatpush2.bf16.msra.mxu1 %v16244_v11  ;;  %10136 = vmatprep.subr.bf16.mxu0 %v15973_v62  ;;  %v4272_v11 = vld [vmem:[#allocation12 + $0x1390] sm:$0xff] }
 0x5a8   :  { %10177 = vmatprep.subr.bf16.mxu1 %v16229_v12  ;;  %v4280_v62 = vld [vmem:[#allocation12 + $0x13d0] sm:$0xff] }
 0x5a9   :  { %v4528_v12 = vld [vmem:[#allocation12 + $0x1b90] sm:$0xff]  ;;  %v16373_v21 = vcombine.high %v4272_v11, %v4280_v62 }
 0x5aa   :  { %10137 = vmatpush2.bf16.msra.mxu0 %v15972_v24  ;;  %v16629_v24 = vcombine.high %v4528_v12, %v4536_v17  ;;  %v16628_v31 = vcombine.low %v4528_v12, %v4536_v17  ;;  %v4496_v36 = vld [vmem:[#allocation12 + $0x1a90] sm:$0xff] }
 0x5ab   :  { %10178 = vmatpush2.bf16.msra.mxu1 %v16228_v26  ;;  %10138 = vmatprep.subr.bf16.mxu0 %v15957_v27  ;;  %v4256_v26 = vld [vmem:[#allocation12 + $0x1310] sm:$0xff] }
 0x5ac   :  { %10179 = vmatprep.subr.bf16.mxu1 %v16213_v28  ;;  %v4264_v27 = vld [vmem:[#allocation12 + $0x1350] sm:$0xff]  ;;  %v16372_v28 = vcombine.low %v4272_v11, %v4280_v62 }
 0x5ad   :  { %v16357_v32 = vcombine.high %v4256_v26, %v4264_v27  ;;  %v4504_v37 = vld [vmem:[#allocation12 + $0x1ad0] sm:$0xff] }
 0x5ae   :  { %10139 = vmatpush2.bf16.msra.mxu0 %v15956_v33  ;;  %v4240_v33 = vld [vmem:[#allocation12 + $0x1290] sm:$0xff] }
 0x5af   :  { %10180 = vmatpush2.bf16.msra.mxu1 %v16212_v34  ;;  %10140 = vmatprep.subr.bf16.mxu0 %v15941_v35  ;;  %v4248_v34 = vld [vmem:[#allocation12 + $0x12d0] sm:$0xff] }
 0x5b0   :  { %10181 = vmatprep.subr.bf16.mxu1 %v16197_v19  ;;  %v16613_v19 = vcombine.high %v4512_v29, %v4520_v30  ;;  %v4224_v14 = vld [vmem:[#allocation12 + $0x1210] sm:$0xff]  ;;  %v16340_v47 = vcombine.low %v4240_v33, %v4248_v34 }
 0x5b1   :  { %v4216_v63 = vld [vmem:[#allocation12 + $0x11d0] sm:$0xff] }
 0x5b2   :  { %10141 = vmatpush2.bf16.msra.mxu0 %v15940_v39  ;;  %v16356_v39 = vcombine.low %v4256_v26, %v4264_v27  ;;  %v4464_v13 = vld [vmem:[#allocation12 + $0x1990] sm:$0xff] }
 0x5b3   :  { %10182 = vmatpush2.bf16.msra.mxu1 %v16196_v40  ;;  %10142 = vmatprep.subr.bf16.mxu0 %v15925_v41  ;;  %v16612_v41 = vcombine.low %v4512_v29, %v4520_v30  ;;  %v4472_v1 = vld [vmem:[#allocation12 + $0x19d0] sm:$0xff] }
 0x5b4   :  { %10183 = vmatprep.subr.bf16.mxu1 %v16181_v42  ;;  %v16341_v42 = vcombine.high %v4240_v33, %v4248_v34  ;;  %v4200_v11 = vld [vmem:[#allocation12 + $0x1150] sm:$0xff] }
 0x5b5   :  { %v4448_v62 = vld [vmem:[#allocation12 + $0x1910] sm:$0xff] }
 0x5b6   :  { %10143 = vmatpush2.bf16.msra.mxu0 %v15924_v53  ;;  %v4232_v53 = vld [vmem:[#allocation12 + $0x1250] sm:$0xff] }
 0x5b7   :  { %10184 = vmatpush2.bf16.msra.mxu1 %v16180_v44  ;;  %10144 = vmatprep.subr.bf16.mxu0 %v15909_v18  ;;  %v4480_v18 = vld [vmem:[#allocation12 + $0x1a10] sm:$0xff]  ;;  %v16324_v3 = vcombine.low %v4224_v14, %v4232_v53 }
 0x5b8   :  { %10185 = vmatprep.subr.bf16.mxu1 %v16165_v45  ;;  %v4488_v45 = vld [vmem:[#allocation12 + $0x1a50] sm:$0xff] }
 0x5b9   :  { %v4456_v12 = vld [vmem:[#allocation12 + $0x1950] sm:$0xff] }
 0x5ba   :  { %10145 = vmatpush2.bf16.msra.mxu0 %v15908_v55  ;;  %v16596_v55 = vcombine.low %v4496_v36, %v4504_v37  ;;  %v4184_v26 = vld [vmem:[#allocation12 + $0x10d0] sm:$0xff]  ;;  %v16548_v30 = vcombine.low %v4448_v62, %v4456_v12 }
 0x5bb   :  { %10186 = vmatpush2.bf16.msra.mxu1 %v16164_v23  ;;  %10146 = vmatprep.subr.bf16.mxu0 %v15893_v16  ;;  %v16325_v23 = vcombine.high %v4224_v14, %v4232_v53  ;;  %v16581_v16 = vcombine.high %v4480_v18, %v4488_v45  ;;  %v4432_v27 = vld [vmem:[#allocation12 + $0x1890] sm:$0xff] }
 0x5bc   :  { %10187 = vmatprep.subr.bf16.mxu1 %v16149_v61  ;;  %v4208_v61 = vld [vmem:[#allocation12 + $0x1190] sm:$0xff] }
 0x5bd   :  { %v16308_v17 = vcombine.low %v4208_v61, %v4216_v63  ;;  %v4160_v33 = vld [vmem:[#allocation12 + $0x1010] sm:$0xff] }
 0x5be   :  { %10147 = vmatpush2.bf16.msra.mxu0 %v15892_v7  ;;  %v16580_v7 = vcombine.low %v4480_v18, %v4488_v45  ;;  %v4168_v34 = vld [vmem:[#allocation12 + $0x1050] sm:$0xff] }
 0x5bf   :  { %10188 = vmatpush2.bf16.msra.mxu1 %v16148_v8  ;;  %10148 = vmatprep.subr.bf16.mxu0 %v15877_v9  ;;  %v16309_v8 = vcombine.high %v4208_v61, %v4216_v63  ;;  %v16565_v9 = vcombine.high %v4464_v13, %v4472_v1  ;;  %v4384_v53 = vld [vmem:[#allocation12 + $0x1710] sm:$0xff] }
 0x5c0   :  { %10189 = vmatprep.subr.bf16.mxu1 %v16133_v10  ;;  %v4192_v10 = vld [vmem:[#allocation12 + $0x1110] sm:$0xff] }
 0x5c1   :  { %v16292_v29 = vcombine.low %v4192_v10, %v4200_v11  ;;  %v4640_v18 = vld [vmem:[#allocation12 + $0x1f10] sm:$0xff] }
 0x5c2   :  { %10149 = vmatpush2.bf16.msra.mxu0 %v15876_v22  ;;  %v16564_v22 = vcombine.low %v4464_v13, %v4472_v1  ;;  %v4648_v45 = vld [vmem:[#allocation12 + $0x1f50] sm:$0xff] }
 0x5c3   :  { %10190 = vmatpush2.bf16.msra.mxu1 %v16132_v20  ;;  %10200 = vmatprep.subr.bf16.mxu0 %v16373_v21  ;;  %v16293_v20 = vcombine.high %v4192_v10, %v4200_v11  ;;  %v16549_v21 = vcombine.high %v4448_v62, %v4456_v12  ;;  %v4632_v61 = vld [vmem:[#allocation12 + $0x1ed0] sm:$0xff]  ;;  %v16740_v13 = vcombine.low %v4640_v18, %v4648_v45 }
 0x5c4   :  { %10241 = vmatprep.subr.bf16.mxu1 %v16629_v24  ;;  %v4176_v24 = vld [vmem:[#allocation12 + $0x1090] sm:$0xff] }
 0x5c5   :  { %v9906_v35 = vpop.f32.mrf.mxu0  ;;  %10151 = vmatmul.mubr.bf16.vlgmr.msra.gmra.mxu0 %v18597_v60  ;;  %v9947_v2 = vpop.f32.mrf.mxu1  ;;  %v4616_v10 = vld [vmem:[#allocation12 + $0x1e50] sm:$0xff] }
 0x5c6   :  { %v9907_v38 = vadd.f32 %v9906_v35, %v18647_v57  ;;  %10192 = vmatmul.mubr.bf16.vlgmr.msra.gmra.mxu1 %v18601_v15  ;;  %10201 = vmatpush1.bf16.msra.mxu0 %v16372_v28  ;;  %v16597_v57 = vcombine.high %v4496_v36, %v4504_v37  ;;  %v4440_v28 = vld [vmem:[#allocation12 + $0x18d0] sm:$0xff]  ;;  %v16276_v36 = vcombine.low %v4176_v24, %v4184_v26 }
 0x5c7   :  { %10232 = vmatprep.mubr.bf16.mxu0 %v18617_v49  ;;  %10242 = vmatpush1.bf16.msra.mxu1 %v16628_v31  ;;  %v9908_v40 = vpop.f32.mrf.mxu0  ;;  %v9949_v43 = vpop.f32.mrf.mxu1  ;;  %v16277_v31 = vcombine.high %v4176_v24, %v4184_v26  ;;  %v4416_v35 = vld [vmem:[#allocation12 + $0x1810] sm:$0xff]  ;;  %v16532_v37 = vcombine.low %v4432_v27, %v4440_v28 }
 0x5c8   :  { %v18657_v25 = vadd.f32 %v9947_v2, %v9907_v38  ;;  %10273 = vmatprep.mubr.bf16.mxu1 %v18619_v52  ;;  %v9909_v4 = vadd.f32 %v9908_v40, %v18651_v5  ;;  %10202 = vmatprep.subr.bf16.mxu0 %v16357_v32  ;;  %v16533_v32 = vcombine.high %v4432_v27, %v4440_v28  ;;  %v4408_v40 = vld [vmem:[#allocation12 + $0x17d0] sm:$0xff] }
 0x5c9   :  { %v9910_v44 = vpop.f32.mrf.mxu0  ;;  %10243 = vmatprep.subr.bf16.mxu1 %v16613_v19  ;;  %v9951_v46 = vpop.f32.mrf.mxu1  ;;  %v4424_v19 = vld [vmem:[#allocation12 + $0x1850] sm:$0xff]  ;;  %v16261_v38 = vcombine.high %v4160_v33, %v4168_v34 }
 0x5ca   :  { %v18661_v6 = vadd.f32 %v9949_v43, %v9909_v4  ;;  %10203 = vmatpush1.bf16.msra.mxu0 %v16356_v39  ;;  %v16517_v2 = vcombine.high %v4416_v35, %v4424_v19  ;;  %v4400_v39 = vld [vmem:[#allocation12 + $0x1790] sm:$0xff]  ;;  %v16260_v4 = vcombine.low %v4160_v33, %v4168_v34  ;;  %v16516_v43 = vcombine.low %v4416_v35, %v4424_v19 }
 0x5cb   :  { %10244 = vmatpush1.bf16.msra.mxu1 %v16612_v41  ;;  %v9911_v51 = vpop.f32.mrf.mxu0  ;;  %10204 = vmatprep.subr.bf16.mxu0 %v16341_v42  ;;  %v9952_v5 = vpop.f32.mrf.mxu1  ;;  %v4656_v41 = vld [vmem:[#allocation12 + $0x1f90] sm:$0xff]  ;;  %v16500_v46 = vcombine.low %v4400_v39, %v4408_v40 }
 0x5cc   :  { %10245 = vmatprep.subr.bf16.mxu1 %v16597_v57  ;;  %v4664_v42 = vld [vmem:[#allocation12 + $0x1fd0] sm:$0xff]  ;;  %v16501_v57 = vcombine.high %v4400_v39, %v4408_v40 }
 0x5cd   :  { %v16757_v14 = vcombine.high %v4656_v41, %v4664_v42  ;;  %v4392_v44 = vld [vmem:[#allocation12 + $0x1750] sm:$0xff] }
 0x5ce   :  { %10205 = vmatpush1.bf16.msra.mxu0 %v16340_v47  ;;  %v16756_v47 = vcombine.low %v4656_v41, %v4664_v42  ;;  %v16485_v51 = vcombine.high %v4384_v53, %v4392_v44  ;;  %v4376_v5 = vld [vmem:[#allocation12 + $0x16d0] sm:$0xff]  ;;  %v16484_v63 = vcombine.low %v4384_v53, %v4392_v44 }
 0x5cf   :  { %10246 = vmatpush1.bf16.msra.mxu1 %v16596_v55  ;;  %10206 = vmatprep.subr.bf16.mxu0 %v16325_v23  ;;  %v16741_v55 = vcombine.high %v4640_v18, %v4648_v45  ;;  %v4368_v23 = vld [vmem:[#allocation12 + $0x1690] sm:$0xff] }
 0x5d0   :  { %10247 = vmatprep.subr.bf16.mxu1 %v16581_v16  ;;  %v4624_v16 = vld [vmem:[#allocation12 + $0x1e90] sm:$0xff]  ;;  %v16469_v1 = vcombine.high %v4368_v23, %v4376_v5  ;;  %v16468_v11 = vcombine.low %v4368_v23, %v4376_v5  ;;  %v4025_v23 = vld [vmem:[#allocation12 + $0xbd8] sm:$0xff] }
 0x5d1   :  { %v16724_v62 = vcombine.low %v4624_v16, %v4632_v61  ;;  %v4600_v24 = vld [vmem:[#allocation12 + $0x1dd0] sm:$0xff] }
 0x5d2   :  { %10207 = vmatpush1.bf16.msra.mxu0 %v16324_v3  ;;  %v16725_v3 = vcombine.high %v4624_v16, %v4632_v61  ;;  %v4584_v33 = vld [vmem:[#allocation12 + $0x1d50] sm:$0xff] }
 0x5d3   :  { %10248 = vmatpush1.bf16.msra.mxu1 %v16580_v7  ;;  %10208 = vmatprep.subr.bf16.mxu0 %v16309_v8  ;;  %v4352_v7 = vld [vmem:[#allocation12 + $0x1610] sm:$0xff] }
 0x5d4   :  { %10249 = vmatprep.subr.bf16.mxu1 %v16565_v9  ;;  %v4360_v8 = vld [vmem:[#allocation12 + $0x1650] sm:$0xff] }
 0x5d5   :  { %v4608_v9 = vld [vmem:[#allocation12 + $0x1e10] sm:$0xff]  ;;  %v16453_v12 = vcombine.high %v4352_v7, %v4360_v8  ;;  %v16452_v26 = vcombine.low %v4352_v7, %v4360_v8  ;;  %v4001_v7 = vld [vmem:[#allocation12 + $0xb18] sm:$0xff] }
 0x5d6   :  { %10209 = vmatpush1.bf16.msra.mxu0 %v16308_v17  ;;  %v16709_v17 = vcombine.high %v4608_v9, %v4616_v10  ;;  %v16708_v27 = vcombine.low %v4608_v9, %v4616_v10  ;;  %v4568_v39 = vld [vmem:[#allocation12 + $0x1cd0] sm:$0xff]  ;;  %v4009_v8 = vld [vmem:[#allocation12 + $0xb58] sm:$0xff] }
 0x5d7   :  { %10250 = vmatpush1.bf16.msra.mxu1 %v16564_v22  ;;  %10210 = vmatprep.subr.bf16.mxu0 %v16293_v20  ;;  %v4336_v22 = vld [vmem:[#allocation12 + $0x1590] sm:$0xff] }
 0x5d8   :  { %10251 = vmatprep.subr.bf16.mxu1 %v16549_v21  ;;  %v4344_v20 = vld [vmem:[#allocation12 + $0x15d0] sm:$0xff] }
 0x5d9   :  { %v4592_v21 = vld [vmem:[#allocation12 + $0x1d90] sm:$0xff]  ;;  %v16437_v28 = vcombine.high %v4336_v22, %v4344_v20  ;;  %v16436_v34 = vcombine.low %v4336_v22, %v4344_v20  ;;  %v3985_v22 = vld [vmem:[#allocation12 + $0xa98] sm:$0xff] }
 0x5da   :  { %10211 = vmatpush1.bf16.msra.mxu0 %v16292_v29  ;;  %v16693_v29 = vcombine.high %v4592_v21, %v4600_v24  ;;  %v16692_v35 = vcombine.low %v4592_v21, %v4600_v24  ;;  %v4552_v53 = vld [vmem:[#allocation12 + $0x1c50] sm:$0xff]  ;;  %v3993_v20 = vld [vmem:[#allocation12 + $0xad8] sm:$0xff] }
 0x5db   :  { %10252 = vmatpush1.bf16.msra.mxu1 %v16548_v30  ;;  %10212 = vmatprep.subr.bf16.mxu0 %v16277_v31  ;;  %v4320_v30 = vld [vmem:[#allocation12 + $0x1510] sm:$0xff] }
 0x5dc   :  { %10253 = vmatprep.subr.bf16.mxu1 %v16533_v32  ;;  %v4328_v31 = vld [vmem:[#allocation12 + $0x1550] sm:$0xff] }
 0x5dd   :  { %v4576_v32 = vld [vmem:[#allocation12 + $0x1d10] sm:$0xff]  ;;  %v16421_v19 = vcombine.high %v4320_v30, %v4328_v31  ;;  %v16420_v40 = vcombine.low %v4320_v30, %v4328_v31  ;;  %v16087_v31 = vcombine.high %v3985_v22, %v3993_v20 }
 0x5de   :  { %10213 = vmatpush1.bf16.msra.mxu0 %v16276_v36  ;;  %v16677_v36 = vcombine.high %v4576_v32, %v4584_v33  ;;  %v16676_v41 = vcombine.low %v4576_v32, %v4584_v33  ;;  %v3713_v32 = vld [vmem:[#allocation12 + $0x218] sm:$0xff] }
 0x5df   :  { %10254 = vmatpush1.bf16.msra.mxu1 %v16532_v37  ;;  %10214 = vmatprep.subr.bf16.mxu0 %v16261_v38  ;;  %v4304_v37 = vld [vmem:[#allocation12 + $0x1490] sm:$0xff]  ;;  %v3721_v33 = vld [vmem:[#allocation12 + $0x258] sm:$0xff] }
 0x5e0   :  { %10255 = vmatprep.subr.bf16.mxu1 %v16517_v2  ;;  %v4312_v38 = vld [vmem:[#allocation12 + $0x14d0] sm:$0xff] }
 0x5e1   :  { %v4560_v2 = vld [vmem:[#allocation12 + $0x1c90] sm:$0xff]  ;;  %v16405_v42 = vcombine.high %v4304_v37, %v4312_v38  ;;  %v16404_v44 = vcombine.low %v4304_v37, %v4312_v38 }
 0x5e2   :  { %10215 = vmatpush1.bf16.msra.mxu0 %v16260_v4  ;;  %v16661_v4 = vcombine.high %v4560_v2, %v4568_v39  ;;  %v16660_v18 = vcombine.low %v4560_v2, %v4568_v39  ;;  %v16086_v39 = vcombine.low %v3985_v22, %v3993_v20 }
 0x5e3   :  { %10256 = vmatpush1.bf16.msra.mxu1 %v16516_v43  ;;  %10216 = vmatprep.subr.bf16.mxu0 %v16501_v57  ;;  %v4288_v43 = vld [vmem:[#allocation12 + $0x1410] sm:$0xff] }
 0x5e4   :  { %10257 = vmatprep.subr.bf16.mxu1 %v16757_v14  ;;  %v4296_v57 = vld [vmem:[#allocation12 + $0x1450] sm:$0xff] }
 0x5e5   :  { %v4544_v14 = vld [vmem:[#allocation12 + $0x1c10] sm:$0xff]  ;;  %v16389_v45 = vcombine.high %v4288_v43, %v4296_v57  ;;  %v16388_v5 = vcombine.low %v4288_v43, %v4296_v57  ;;  %v3705_v43 = vld [vmem:[#allocation12 + $0x1d8] sm:$0xff] }
 0x5e6   :  { %10217 = vmatpush2.bf16.msra.mxu0 %v16500_v46  ;;  %v16645_v46 = vcombine.high %v4544_v14, %v4552_v53  ;;  %v16644_v16 = vcombine.low %v4544_v14, %v4552_v53  ;;  %v3953_v57 = vld [vmem:[#allocation12 + $0x998] sm:$0xff]  ;;  %v15814_v53 = vcombine.low %v3713_v32, %v3721_v33 }
 0x5e7   :  { %10258 = vmatpush2.bf16.msra.mxu1 %v16756_v47  ;;  %10218 = vmatprep.subr.bf16.mxu0 %v16485_v51  ;;  %v3761_v47 = vld [vmem:[#allocation12 + $0x398] sm:$0xff] }
 0x5e8   :  { %10259 = vmatprep.subr.bf16.mxu1 %v16741_v55  ;;  %v3769_v51 = vld [vmem:[#allocation12 + $0x3d8] sm:$0xff] }
 0x5e9   :  { %v4017_v55 = vld [vmem:[#allocation12 + $0xb98] sm:$0xff]  ;;  %v15863_v61 = vcombine.high %v3761_v47, %v3769_v51 }
 0x5ea   :  { %10219 = vmatpush2.bf16.msra.mxu0 %v16484_v63  ;;  %v16119_v63 = vcombine.high %v4017_v55, %v4025_v23  ;;  %v16118_v9 = vcombine.low %v4017_v55, %v4025_v23  ;;  %v3961_v14 = vld [vmem:[#allocation12 + $0x9d8] sm:$0xff] }
 0x5eb   :  { %10260 = vmatpush2.bf16.msra.mxu1 %v16740_v13  ;;  %10220 = vmatprep.subr.bf16.mxu0 %v16469_v1  ;;  %v3745_v13 = vld [vmem:[#allocation12 + $0x318] sm:$0xff] }
 0x5ec   :  { %10261 = vmatprep.subr.bf16.mxu1 %v16725_v3  ;;  %v3753_v1 = vld [vmem:[#allocation12 + $0x358] sm:$0xff]  ;;  %v15862_v3 = vcombine.low %v3761_v47, %v3769_v51 }
 0x5ed   :  { %v15847_v10 = vcombine.high %v3745_v13, %v3753_v1  ;;  %v15846_v24 = vcombine.low %v3745_v13, %v3753_v1  ;;  %v3689_v47 = vld [vmem:[#allocation12 + $0x158] sm:$0xff] }
 0x5ee   :  { %10221 = vmatpush2.bf16.msra.mxu0 %v16468_v11  ;;  %v3729_v11 = vld [vmem:[#allocation12 + $0x298] sm:$0xff] }
 0x5ef   :  { %10262 = vmatpush2.bf16.msra.mxu1 %v16724_v62  ;;  %10222 = vmatprep.subr.bf16.mxu0 %v16453_v12  ;;  %v3737_v62 = vld [vmem:[#allocation12 + $0x2d8] sm:$0xff] }
 0x5f0   :  { %10263 = vmatprep.subr.bf16.mxu1 %v16709_v17  ;;  %v16103_v17 = vcombine.high %v4001_v7, %v4009_v8  ;;  %v15830_v38 = vcombine.low %v3729_v11, %v3737_v62  ;;  %v3937_v51 = vld [vmem:[#allocation12 + $0x918] sm:$0xff] }
 0x5f1   :  { %v3945_v55 = vld [vmem:[#allocation12 + $0x958] sm:$0xff] }
 0x5f2   :  { %10223 = vmatpush2.bf16.msra.mxu0 %v16452_v26  ;;  %v3673_v13 = vld [vmem:[#allocation12 + $0xd8] sm:$0xff] }
 0x5f3   :  { %10264 = vmatpush2.bf16.msra.mxu1 %v16708_v27  ;;  %10224 = vmatprep.subr.bf16.mxu0 %v16437_v28  ;;  %v16102_v28 = vcombine.low %v4001_v7, %v4009_v8  ;;  %v3921_v1 = vld [vmem:[#allocation12 + $0x898] sm:$0xff]  ;;  %v16038_v8 = vcombine.low %v3937_v51, %v3945_v55 }
 0x5f4   :  { %10265 = vmatprep.subr.bf16.mxu1 %v16693_v29  ;;  %v15831_v29 = vcombine.high %v3729_v11, %v3737_v62  ;;  %v3649_v11 = vld [vmem:[#allocation12 + $0x18] sm:$0xff] }
 0x5f5   :  { %v3657_v62 = vld [vmem:[#allocation12 + $0x58] sm:$0xff] }
 0x5f6   :  { %10225 = vmatpush2.bf16.msra.mxu0 %v16436_v34 }
 0x5f7   :  { %10266 = vmatpush2.bf16.msra.mxu1 %v16692_v35  ;;  %10226 = vmatprep.subr.bf16.mxu0 %v16421_v19  ;;  %v3969_v19 = vld [vmem:[#allocation12 + $0xa18] sm:$0xff] }
 0x5f8   :  { %10267 = vmatprep.subr.bf16.mxu1 %v16677_v36  ;;  %v3977_v36 = vld [vmem:[#allocation12 + $0xa58] sm:$0xff] }
 0x5fa   :  { %10227 = vmatpush2.bf16.msra.mxu0 %v16420_v40  ;;  %v15815_v40 = vcombine.high %v3713_v32, %v3721_v33 }
 0x5fb   :  { %10268 = vmatpush2.bf16.msra.mxu1 %v16676_v41  ;;  %10228 = vmatprep.subr.bf16.mxu0 %v16405_v42  ;;  %v16071_v42 = vcombine.high %v3969_v19, %v3977_v36 }
 0x5fc   :  { %10269 = vmatprep.subr.bf16.mxu1 %v16661_v4  ;;  %v3697_v4 = vld [vmem:[#allocation12 + $0x198] sm:$0xff] }
 0x5fd   :  { %v15798_v23 = vcombine.low %v3697_v4, %v3705_v43 }
 0x5fe   :  { %10229 = vmatpush2.bf16.msra.mxu0 %v16404_v44  ;;  %v16070_v44 = vcombine.low %v3969_v19, %v3977_v36  ;;  %v3873_v19 = vld [vmem:[#allocation12 + $0x718] sm:$0xff] }
 0x5ff   :  { %10270 = vmatpush2.bf16.msra.mxu1 %v16660_v18  ;;  %10230 = vmatprep.subr.bf16.mxu0 %v16389_v45  ;;  %v15799_v18 = vcombine.high %v3697_v4, %v3705_v43  ;;  %v16055_v45 = vcombine.high %v3953_v57, %v3961_v14  ;;  %v3881_v36 = vld [vmem:[#allocation12 + $0x758] sm:$0xff] }
 0x600   :  { %10271 = vmatprep.subr.bf16.mxu1 %v16645_v46  ;;  %v3681_v46 = vld [vmem:[#allocation12 + $0x118] sm:$0xff] }
 0x601   :  { %v15782_v7 = vcombine.low %v3681_v46, %v3689_v47  ;;  %v3865_v4 = vld [vmem:[#allocation12 + $0x6d8] sm:$0xff] }
 0x602   :  { %10231 = vmatpush2.bf16.msra.mxu0 %v16388_v5  ;;  %v16054_v5 = vcombine.low %v3953_v57, %v3961_v14  ;;  %v4113_v43 = vld [vmem:[#allocation12 + $0xe98] sm:$0xff]  ;;  %v15974_v14 = vcombine.low %v3873_v19, %v3881_v36 }
 0x603   :  { %10272 = vmatpush2.bf16.msra.mxu1 %v16644_v16  ;;  %10282 = vmatprep.subr.bf16.mxu0 %v15863_v61  ;;  %v15783_v16 = vcombine.high %v3681_v46, %v3689_v47  ;;  %v16039_v61 = vcombine.high %v3937_v51, %v3945_v55  ;;  %v4121_v57 = vld [vmem:[#allocation12 + $0xed8] sm:$0xff] }
 0x604   :  { %10323 = vmatprep.subr.bf16.mxu1 %v16119_v63  ;;  %v3665_v63 = vld [vmem:[#allocation12 + $0x98] sm:$0xff] }
 0x605   :  { %v9988_v12 = vpop.f32.mrf.mxu0  ;;  %10233 = vmatmul.mubr.bf16.vlgmr.msra.gmra.mxu0 %v18633_v54  ;;  %v15766_v22 = vcombine.low %v3665_v63, %v3673_v13  ;;  %v3849_v46 = vld [vmem:[#allocation12 + $0x658] sm:$0xff] }
 0x606   :  { %v10029_v21 = vpop.f32.mrf.mxu1  ;;  %10274 = vmatmul.mubr.bf16.vlgmr.msra.gmra.mxu1 %v18635_v56  ;;  %10283 = vmatpush1.bf16.msra.mxu0 %v15862_v3  ;;  %v3929_v3 = vld [vmem:[#allocation12 + $0x8d8] sm:$0xff] }
 0x607   :  { %v18665_v26 = vadd.f32 %v10029_v21, %v9988_v12  ;;  %10314 = vmatprep.mubr.bf16.mxu0 %v18595_v58  ;;  %10324 = vmatpush1.bf16.msra.mxu1 %v16118_v9  ;;  %v9990_v27 = vpop.f32.mrf.mxu0  ;;  %v15767_v9 = vcombine.high %v3665_v63, %v3673_v13  ;;  %v3905_v12 = vld [vmem:[#allocation12 + $0x818] sm:$0xff]  ;;  %v16022_v20 = vcombine.low %v3921_v1, %v3929_v3 }
 0x608   :  { %10355 = vmatprep.mubr.bf16.mxu1 %v18599_v59  ;;  %v10031_v30 = vpop.f32.mrf.mxu1  ;;  %10284 = vmatprep.subr.bf16.mxu0 %v15847_v10  ;;  %v16023_v10 = vcombine.high %v3921_v1, %v3929_v3  ;;  %v15751_v21 = vcombine.high %v3649_v11, %v3657_v62  ;;  %v4097_v47 = vld [vmem:[#allocation12 + $0xe18] sm:$0xff] }
 0x609   :  { %v18669_v34 = vadd.f32 %v10031_v30, %v9990_v27  ;;  %v9992_v35 = vpop.f32.mrf.mxu0  ;;  %10325 = vmatprep.subr.bf16.mxu1 %v16103_v17  ;;  %v3913_v17 = vld [vmem:[#allocation12 + $0x858] sm:$0xff] }
 0x60a   :  { %v10033_v37 = vpop.f32.mrf.mxu1  ;;  %10285 = vmatpush1.bf16.msra.mxu0 %v15846_v24  ;;  %v16007_v24 = vcombine.high %v3905_v12, %v3913_v17  ;;  %v3889_v27 = vld [vmem:[#allocation12 + $0x798] sm:$0xff]  ;;  %v16006_v32 = vcombine.low %v3905_v12, %v3913_v17 }
 0x60b   :  { %10326 = vmatpush1.bf16.msra.mxu1 %v16102_v28  ;;  %v9993_v2 = vpop.f32.mrf.mxu0  ;;  %10286 = vmatprep.subr.bf16.mxu0 %v15831_v29  ;;  %v3897_v28 = vld [vmem:[#allocation12 + $0x7d8] sm:$0xff] }
 0x60c   :  { %v10034_v41 = vpop.f32.mrf.mxu1  ;;  %10327 = vmatprep.subr.bf16.mxu1 %v16087_v31  ;;  %v4145_v29 = vld [vmem:[#allocation12 + $0xf98] sm:$0xff]  ;;  %v15750_v31 = vcombine.low %v3649_v11, %v3657_v62  ;;  %v15991_v33 = vcombine.high %v3889_v27, %v3897_v28  ;;  %v15990_v2 = vcombine.low %v3889_v27, %v3897_v28 }
 0x60d   :  { %v4153_v30 = vld [vmem:[#allocation12 + $0xfd8] sm:$0xff] }
 0x60e   :  { %10287 = vmatpush1.bf16.msra.mxu0 %v15830_v38  ;;  %v16247_v35 = vcombine.high %v4145_v29, %v4153_v30  ;;  %v4129_v37 = vld [vmem:[#allocation12 + $0xf18] sm:$0xff] }
 0x60f   :  { %10328 = vmatpush1.bf16.msra.mxu1 %v16086_v39  ;;  %10288 = vmatprep.subr.bf16.mxu0 %v15815_v40  ;;  %v4137_v38 = vld [vmem:[#allocation12 + $0xf58] sm:$0xff]  ;;  %v16246_v39 = vcombine.low %v4145_v29, %v4153_v30  ;;  %v15975_v40 = vcombine.high %v3873_v19, %v3881_v36 }
 0x610   :  { %10329 = vmatprep.subr.bf16.mxu1 %v16071_v42  ;;  %v16231_v41 = vcombine.high %v4129_v37, %v4137_v38  ;;  %v3857_v42 = vld [vmem:[#allocation12 + $0x698] sm:$0xff] }
 0x611   :  { %v4105_v51 = vld [vmem:[#allocation12 + $0xe58] sm:$0xff]  ;;  %v15958_v55 = vcombine.low %v3857_v42, %v3865_v4 }
 0x612   :  { %10289 = vmatpush1.bf16.msra.mxu0 %v15814_v53  ;;  %v16230_v53 = vcombine.low %v4129_v37, %v4137_v38  ;;  %v3833_v63 = vld [vmem:[#allocation12 + $0x5d8] sm:$0xff] }
 0x613   :  { %10330 = vmatpush1.bf16.msra.mxu1 %v16070_v44  ;;  %10290 = vmatprep.subr.bf16.mxu0 %v15799_v18  ;;  %v15959_v44 = vcombine.high %v3857_v42, %v3865_v4  ;;  %v16215_v18 = vcombine.high %v4113_v43, %v4121_v57  ;;  %v4081_v13 = vld [vmem:[#allocation12 + $0xd98] sm:$0xff] }
 0x614   :  { %10331 = vmatprep.subr.bf16.mxu1 %v16055_v45  ;;  %v3841_v45 = vld [vmem:[#allocation12 + $0x618] sm:$0xff] }
 0x615   :  { %v4089_v1 = vld [vmem:[#allocation12 + $0xdd8] sm:$0xff]  ;;  %v15942_v3 = vcombine.low %v3841_v45, %v3849_v46 }
 0x616   :  { %10291 = vmatpush1.bf16.msra.mxu0 %v15798_v23  ;;  %v16214_v23 = vcombine.low %v4113_v43, %v4121_v57  ;;  %v3817_v11 = vld [vmem:[#allocation12 + $0x558] sm:$0xff] }
 0x617   :  { %10332 = vmatpush1.bf16.msra.mxu1 %v16054_v5  ;;  %10292 = vmatprep.subr.bf16.mxu0 %v15783_v16  ;;  %v15943_v5 = vcombine.high %v3841_v45, %v3849_v46  ;;  %v16199_v16 = vcombine.high %v4097_v47, %v4105_v51  ;;  %v4065_v62 = vld [vmem:[#allocation12 + $0xd18] sm:$0xff] }
 0x618   :  { %10333 = vmatprep.subr.bf16.mxu1 %v16039_v61  ;;  %v3825_v61 = vld [vmem:[#allocation12 + $0x598] sm:$0xff] }
 0x619   :  { %v4073_v12 = vld [vmem:[#allocation12 + $0xd58] sm:$0xff]  ;;  %v15926_v17 = vcombine.low %v3825_v61, %v3833_v63 }
 0x61a   :  { %10293 = vmatpush1.bf16.msra.mxu0 %v15782_v7  ;;  %v16198_v7 = vcombine.low %v4097_v47, %v4105_v51  ;;  %v3801_v27 = vld [vmem:[#allocation12 + $0x4d8] sm:$0xff] }
 0x61b   :  { %10334 = vmatpush1.bf16.msra.mxu1 %v16038_v8  ;;  %10294 = vmatprep.subr.bf16.mxu0 %v15767_v9  ;;  %v15927_v8 = vcombine.high %v3825_v61, %v3833_v63  ;;  %v16183_v9 = vcombine.high %v4081_v13, %v4089_v1  ;;  %v4049_v28 = vld [vmem:[#allocation12 + $0xc98] sm:$0xff] }
 0x61c   :  { %10335 = vmatprep.subr.bf16.mxu1 %v16023_v10  ;;  %v3809_v10 = vld [vmem:[#allocation12 + $0x518] sm:$0xff] }
 0x61d   :  { %v4057_v29 = vld [vmem:[#allocation12 + $0xcd8] sm:$0xff]  ;;  %v15910_v30 = vcombine.low %v3809_v10, %v3817_v11 }
 0x61e   :  { %10295 = vmatpush1.bf16.msra.mxu0 %v15766_v22  ;;  %v16182_v22 = vcombine.low %v4081_v13, %v4089_v1  ;;  %v3785_v19 = vld [vmem:[#allocation12 + $0x458] sm:$0xff] }
 0x61f   :  { %10336 = vmatpush1.bf16.msra.mxu1 %v16022_v20  ;;  %10296 = vmatprep.subr.bf16.mxu0 %v15751_v21  ;;  %v15911_v20 = vcombine.high %v3809_v10, %v3817_v11  ;;  %v16167_v21 = vcombine.high %v4065_v62, %v4073_v12  ;;  %v4033_v36 = vld [vmem:[#allocation12 + $0xc18] sm:$0xff] }
 0x620   :  { %10337 = vmatprep.subr.bf16.mxu1 %v16007_v24  ;;  %v3793_v24 = vld [vmem:[#allocation12 + $0x498] sm:$0xff] }
 0x621   :  { %v4041_v37 = vld [vmem:[#allocation12 + $0xc58] sm:$0xff]  ;;  %v15894_v38 = vcombine.low %v3793_v24, %v3801_v27 }
 0x622   :  { %10297 = vmatpush1.bf16.msra.mxu0 %v15750_v31  ;;  %v16166_v31 = vcombine.low %v4065_v62, %v4073_v12  ;;  %v4281_v42 = vld [vmem:[#allocation12 + $0x13d8] sm:$0xff] }
 0x623   :  { %10338 = vmatpush1.bf16.msra.mxu1 %v16006_v32  ;;  %10298 = vmatprep.subr.bf16.mxu0 %v15991_v33  ;;  %v15895_v32 = vcombine.high %v3793_v24, %v3801_v27  ;;  %v16151_v33 = vcombine.high %v4049_v28, %v4057_v29  ;;  %v4529_v4 = vld [vmem:[#allocation12 + $0x1b98] sm:$0xff] }
 0x624   :  { %10339 = vmatprep.subr.bf16.mxu1 %v16247_v35  ;;  %v3777_v35 = vld [vmem:[#allocation12 + $0x418] sm:$0xff] }
 0x625   :  { %v4537_v43 = vld [vmem:[#allocation12 + $0x1bd8] sm:$0xff]  ;;  %v15878_v57 = vcombine.low %v3777_v35, %v3785_v19 }
 0x626   :  { %10299 = vmatpush2.bf16.msra.mxu0 %v15990_v2  ;;  %v16150_v2 = vcombine.low %v4049_v28, %v4057_v29  ;;  %v4265_v45 = vld [vmem:[#allocation12 + $0x1358] sm:$0xff] }
 0x627   :  { %10340 = vmatpush2.bf16.msra.mxu1 %v16246_v39  ;;  %10300 = vmatprep.subr.bf16.mxu0 %v15975_v40  ;;  %v15879_v39 = vcombine.high %v3777_v35, %v3785_v19  ;;  %v16135_v40 = vcombine.high %v4033_v36, %v4041_v37  ;;  %v4513_v47 = vld [vmem:[#allocation12 + $0x1b18] sm:$0xff] }
 0x628   :  { %10341 = vmatprep.subr.bf16.mxu1 %v16231_v41  ;;  %v4273_v41 = vld [vmem:[#allocation12 + $0x1398] sm:$0xff] }
 0x629   :  { %v16374_v46 = vcombine.low %v4273_v41, %v4281_v42  ;;  %v4521_v51 = vld [vmem:[#allocation12 + $0x1b58] sm:$0xff] }
 0x62a   :  { %10301 = vmatpush2.bf16.msra.mxu0 %v15974_v14  ;;  %v16134_v14 = vcombine.low %v4033_v36, %v4041_v37  ;;  %v16615_v63 = vcombine.high %v4513_v47, %v4521_v51  ;;  %v4497_v13 = vld [vmem:[#allocation12 + $0x1a98] sm:$0xff]  ;;  %v16614_v10 = vcombine.low %v4513_v47, %v4521_v51 }
 0x62b   :  { %10342 = vmatpush2.bf16.msra.mxu1 %v16230_v53  ;;  %10302 = vmatprep.subr.bf16.mxu0 %v15959_v44  ;;  %v16375_v53 = vcombine.high %v4273_v41, %v4281_v42  ;;  %v16631_v44 = vcombine.high %v4529_v4, %v4537_v43  ;;  %v4505_v1 = vld [vmem:[#allocation12 + $0x1ad8] sm:$0xff] }
 0x62c   :  { %10343 = vmatprep.subr.bf16.mxu1 %v16215_v18  ;;  %v4257_v18 = vld [vmem:[#allocation12 + $0x1318] sm:$0xff] }
 0x62d   :  { %v4481_v24 = vld [vmem:[#allocation12 + $0x1a18] sm:$0xff] }
 0x62e   :  { %10303 = vmatpush2.bf16.msra.mxu0 %v15958_v55  ;;  %v16630_v55 = vcombine.low %v4529_v4, %v4537_v43  ;;  %v4489_v27 = vld [vmem:[#allocation12 + $0x1a58] sm:$0xff] }
 0x62f   :  { %10344 = vmatpush2.bf16.msra.mxu1 %v16214_v23  ;;  %10304 = vmatprep.subr.bf16.mxu0 %v15943_v5  ;;  %v16359_v23 = vcombine.high %v4257_v18, %v4265_v45  ;;  %v4241_v5 = vld [vmem:[#allocation12 + $0x1298] sm:$0xff]  ;;  %v16583_v35 = vcombine.high %v4481_v24, %v4489_v27 }
 0x630   :  { %10345 = vmatprep.subr.bf16.mxu1 %v16199_v16  ;;  %v4249_v16 = vld [vmem:[#allocation12 + $0x12d8] sm:$0xff] }
 0x631   :  { %v16343_v11 = vcombine.high %v4241_v5, %v4249_v16  ;;  %v4209_v19 = vld [vmem:[#allocation12 + $0x1198] sm:$0xff] }
 0x632   :  { %10305 = vmatpush2.bf16.msra.mxu0 %v15942_v3  ;;  %v4217_v36 = vld [vmem:[#allocation12 + $0x11d8] sm:$0xff] }
 0x633   :  { %10346 = vmatpush2.bf16.msra.mxu1 %v16198_v7  ;;  %10306 = vmatprep.subr.bf16.mxu0 %v15927_v8  ;;  %v16358_v8 = vcombine.low %v4257_v18, %v4265_v45  ;;  %v4465_v37 = vld [vmem:[#allocation12 + $0x1998] sm:$0xff] }
 0x634   :  { %10347 = vmatprep.subr.bf16.mxu1 %v16183_v9  ;;  %v4193_v42 = vld [vmem:[#allocation12 + $0x1118] sm:$0xff] }
 0x635   :  { %v4201_v4 = vld [vmem:[#allocation12 + $0x1158] sm:$0xff] }
 0x636   :  { %10307 = vmatpush2.bf16.msra.mxu0 %v15926_v17  ;;  %v4449_v43 = vld [vmem:[#allocation12 + $0x1918] sm:$0xff] }
 0x637   :  { %10348 = vmatpush2.bf16.msra.mxu1 %v16182_v22  ;;  %10308 = vmatprep.subr.bf16.mxu0 %v15911_v20  ;;  %v4225_v22 = vld [vmem:[#allocation12 + $0x1218] sm:$0xff] }
 0x638   :  { %10349 = vmatprep.subr.bf16.mxu1 %v16167_v21  ;;  %v4233_v20 = vld [vmem:[#allocation12 + $0x1258] sm:$0xff] }
 0x639   :  { %v4177_v45 = vld [vmem:[#allocation12 + $0x1098] sm:$0xff] }
 0x63a   :  { %10309 = vmatpush2.bf16.msra.mxu0 %v15910_v30  ;;  %v16342_v30 = vcombine.low %v4241_v5, %v4249_v16  ;;  %v4433_v47 = vld [vmem:[#allocation12 + $0x1898] sm:$0xff] }
 0x63b   :  { %10350 = vmatpush2.bf16.msra.mxu1 %v16166_v31  ;;  %10310 = vmatprep.subr.bf16.mxu0 %v15895_v32  ;;  %v16598_v32 = vcombine.low %v4497_v13, %v4505_v1  ;;  %v4441_v51 = vld [vmem:[#allocation12 + $0x18d8] sm:$0xff] }
 0x63c   :  { %10351 = vmatprep.subr.bf16.mxu1 %v16151_v33  ;;  %v16327_v33 = vcombine.high %v4225_v22, %v4233_v20  ;;  %v16535_v16 = vcombine.high %v4433_v47, %v4441_v51 }
 0x63e   :  { %10311 = vmatpush2.bf16.msra.mxu0 %v15894_v38  ;;  %v4473_v38 = vld [vmem:[#allocation12 + $0x19d8] sm:$0xff] }
 0x63f   :  { %10352 = vmatpush2.bf16.msra.mxu1 %v16150_v2  ;;  %10312 = vmatprep.subr.bf16.mxu0 %v15879_v39  ;;  %v16326_v2 = vcombine.low %v4225_v22, %v4233_v20  ;;  %v16582_v39 = vcombine.low %v4481_v24, %v4489_v27  ;;  %v16567_v41 = vcombine.high %v4465_v37, %v4473_v38  ;;  %v4385_v24 = vld [vmem:[#allocation12 + $0x1718] sm:$0xff] }
 0x640   :  { %10353 = vmatprep.subr.bf16.mxu1 %v16135_v40  ;;  %v16311_v40 = vcombine.high %v4209_v19, %v4217_v36  ;;  %v4393_v27 = vld [vmem:[#allocation12 + $0x1758] sm:$0xff] }
 0x642   :  { %10313 = vmatpush2.bf16.msra.mxu0 %v15878_v57  ;;  %v4457_v57 = vld [vmem:[#allocation12 + $0x1958] sm:$0xff] }
 0x643   :  { %10354 = vmatpush2.bf16.msra.mxu1 %v16134_v14  ;;  %10364 = vmatprep.subr.bf16.mxu0 %v16375_v53  ;;  %v16310_v14 = vcombine.low %v4209_v19, %v4217_v36  ;;  %v16566_v53 = vcombine.low %v4465_v37, %v4473_v38  ;;  %v16551_v18 = vcombine.high %v4449_v43, %v4457_v57  ;;  %v4377_v19 = vld [vmem:[#allocation12 + $0x16d8] sm:$0xff] }
 0x644   :  { %10405 = vmatprep.subr.bf16.mxu1 %v16631_v44  ;;  %v16295_v44 = vcombine.high %v4193_v42, %v4201_v4  ;;  %v4625_v36 = vld [vmem:[#allocation12 + $0x1e98] sm:$0xff]  ;;  %v16486_v38 = vcombine.low %v4385_v24, %v4393_v27 }
 0x645   :  { %v10070_v61 = vpop.f32.mrf.mxu0  ;;  %10315 = vmatmul.mubr.bf16.vlgmr.msra.gmra.mxu0 %v18597_v60  ;;  %v4633_v37 = vld [vmem:[#allocation12 + $0x1ed8] sm:$0xff] }
 0x646   :  { %v10071_v3 = vadd.f32 %v10070_v61, %v18665_v26  ;;  %v10111_v7 = vpop.f32.mrf.mxu1  ;;  %10356 = vmatmul.mubr.bf16.vlgmr.msra.gmra.mxu1 %v18601_v15  ;;  %10365 = vmatpush1.bf16.msra.mxu0 %v16374_v46  ;;  %v16599_v26 = vcombine.high %v4497_v13, %v4505_v1  ;;  %v4185_v46 = vld [vmem:[#allocation12 + $0x10d8] sm:$0xff] }
 0x647   :  { %10396 = vmatprep.mubr.bf16.mxu0 %v18617_v49  ;;  %10406 = vmatpush1.bf16.msra.mxu1 %v16630_v55  ;;  %v10072_v9 = vpop.f32.mrf.mxu0  ;;  %v16294_v55 = vcombine.low %v4193_v42, %v4201_v4  ;;  %v16279_v5 = vcombine.high %v4177_v45, %v4185_v46  ;;  %v4161_v61 = vld [vmem:[#allocation12 + $0x1018] sm:$0xff] }
 0x648   :  { %v18675_v62 = vadd.f32 %v10111_v7, %v10071_v3  ;;  %10437 = vmatprep.mubr.bf16.mxu1 %v18619_v52  ;;  %v10073_v12 = vadd.f32 %v10072_v9, %v18669_v34  ;;  %v10113_v17 = vpop.f32.mrf.mxu1  ;;  %10366 = vmatprep.subr.bf16.mxu0 %v16359_v23  ;;  %v16550_v23 = vcombine.low %v4449_v43, %v4457_v57  ;;  %v4417_v13 = vld [vmem:[#allocation12 + $0x1818] sm:$0xff] }
 0x649   :  { %v10074_v21 = vpop.f32.mrf.mxu0  ;;  %10407 = vmatprep.subr.bf16.mxu1 %v16615_v63  ;;  %v4169_v63 = vld [vmem:[#allocation12 + $0x1058] sm:$0xff]  ;;  %v16278_v3 = vcombine.low %v4177_v45, %v4185_v46  ;;  %v16534_v7 = vcombine.low %v4433_v47, %v4441_v51 }
 0x64a   :  { %v18679_v28 = vadd.f32 %v10113_v17, %v10073_v12  ;;  %v10115_v29 = vpop.f32.mrf.mxu1  ;;  %10367 = vmatpush1.bf16.msra.mxu0 %v16358_v8  ;;  %v4425_v1 = vld [vmem:[#allocation12 + $0x1858] sm:$0xff]  ;;  %v16263_v8 = vcombine.high %v4161_v61, %v4169_v63 }
 0x64b   :  { %10408 = vmatpush1.bf16.msra.mxu1 %v16614_v10  ;;  %v10075_v31 = vpop.f32.mrf.mxu0  ;;  %10368 = vmatprep.subr.bf16.mxu0 %v16343_v11  ;;  %v16519_v9 = vcombine.high %v4417_v13, %v4425_v1  ;;  %v4401_v10 = vld [vmem:[#allocation12 + $0x1798] sm:$0xff]  ;;  %v16518_v22 = vcombine.low %v4417_v13, %v4425_v1 }
 0x64c   :  { %v10116_v34 = vpop.f32.mrf.mxu1  ;;  %10409 = vmatprep.subr.bf16.mxu1 %v16599_v26  ;;  %v4409_v11 = vld [vmem:[#allocation12 + $0x17d8] sm:$0xff]  ;;  %v16262_v26 = vcombine.low %v4161_v61, %v4169_v63 }
 0x64d   :  { %v4657_v12 = vld [vmem:[#allocation12 + $0x1f98] sm:$0xff]  ;;  %v16503_v20 = vcombine.high %v4401_v10, %v4409_v11  ;;  %v16502_v31 = vcombine.low %v4401_v10, %v4409_v11 }
 0x64e   :  { %10369 = vmatpush1.bf16.msra.mxu0 %v16342_v30  ;;  %v4665_v17 = vld [vmem:[#allocation12 + $0x1fd8] sm:$0xff] }
 0x64f   :  { %10410 = vmatpush1.bf16.msra.mxu1 %v16598_v32  ;;  %10370 = vmatprep.subr.bf16.mxu0 %v16327_v33  ;;  %v16759_v21 = vcombine.high %v4657_v12, %v4665_v17  ;;  %v4641_v29 = vld [vmem:[#allocation12 + $0x1f18] sm:$0xff]  ;;  %v16758_v32 = vcombine.low %v4657_v12, %v4665_v17  ;;  %v16487_v33 = vcombine.high %v4385_v24, %v4393_v27 }
 0x650   :  { %10411 = vmatprep.subr.bf16.mxu1 %v16583_v35  ;;  %v4649_v30 = vld [vmem:[#allocation12 + $0x1f58] sm:$0xff] }
 0x651   :  { %v16743_v34 = vcombine.high %v4641_v29, %v4649_v30  ;;  %v4369_v35 = vld [vmem:[#allocation12 + $0x1698] sm:$0xff] }
 0x652   :  { %10371 = vmatpush1.bf16.msra.mxu0 %v16326_v2  ;;  %v16742_v2 = vcombine.low %v4641_v29, %v4649_v30  ;;  %v4361_v42 = vld [vmem:[#allocation12 + $0x1658] sm:$0xff]  ;;  %v16470_v57 = vcombine.low %v4369_v35, %v4377_v19 }
 0x653   :  { %10412 = vmatpush1.bf16.msra.mxu1 %v16582_v39  ;;  %10372 = vmatprep.subr.bf16.mxu0 %v16311_v40  ;;  %v16471_v39 = vcombine.high %v4369_v35, %v4377_v19  ;;  %v16727_v40 = vcombine.high %v4625_v36, %v4633_v37  ;;  %v4609_v4 = vld [vmem:[#allocation12 + $0x1e18] sm:$0xff]  ;;  %v3770_v35 = vld [vmem:[#allocation12 + $0x3e0] sm:$0xff] }
 0x654   :  { %10413 = vmatprep.subr.bf16.mxu1 %v16567_v41  ;;  %v4353_v41 = vld [vmem:[#allocation12 + $0x1618] sm:$0xff]  ;;  %v4018_v19 = vld [vmem:[#allocation12 + $0xba0] sm:$0xff] }
 0x655   :  { %v4617_v43 = vld [vmem:[#allocation12 + $0x1e58] sm:$0xff]  ;;  %v16454_v51 = vcombine.low %v4353_v41, %v4361_v42 }
 0x656   :  { %10373 = vmatpush1.bf16.msra.mxu0 %v16310_v14  ;;  %v16726_v14 = vcombine.low %v4625_v36, %v4633_v37  ;;  %v4345_v45 = vld [vmem:[#allocation12 + $0x15d8] sm:$0xff]  ;;  %v4026_v36 = vld [vmem:[#allocation12 + $0xbe0] sm:$0xff] }
 0x657   :  { %10414 = vmatpush1.bf16.msra.mxu1 %v16566_v53  ;;  %10374 = vmatprep.subr.bf16.mxu0 %v16295_v44  ;;  %v16455_v53 = vcombine.high %v4353_v41, %v4361_v42  ;;  %v16711_v44 = vcombine.high %v4609_v4, %v4617_v43  ;;  %v4593_v46 = vld [vmem:[#allocation12 + $0x1d98] sm:$0xff]  ;;  %v3754_v41 = vld [vmem:[#allocation12 + $0x360] sm:$0xff] }
 0x658   :  { %10415 = vmatprep.subr.bf16.mxu1 %v16551_v18  ;;  %v4337_v18 = vld [vmem:[#allocation12 + $0x1598] sm:$0xff] }
 0x659   :  { %v4601_v47 = vld [vmem:[#allocation12 + $0x1dd8] sm:$0xff]  ;;  %v16438_v1 = vcombine.low %v4337_v18, %v4345_v45 }
 0x65a   :  { %10375 = vmatpush1.bf16.msra.mxu0 %v16294_v55  ;;  %v16710_v55 = vcombine.low %v4609_v4, %v4617_v43  ;;  %v4329_v61 = vld [vmem:[#allocation12 + $0x1558] sm:$0xff]  ;;  %v4002_v4 = vld [vmem:[#allocation12 + $0xb20] sm:$0xff] }
 0x65b   :  { %10416 = vmatpush1.bf16.msra.mxu1 %v16550_v23  ;;  %10376 = vmatprep.subr.bf16.mxu0 %v16279_v5  ;;  %v16439_v23 = vcombine.high %v4337_v18, %v4345_v45  ;;  %v16695_v5 = vcombine.high %v4593_v46, %v4601_v47  ;;  %v4577_v63 = vld [vmem:[#allocation12 + $0x1d18] sm:$0xff]  ;;  %v4010_v43 = vld [vmem:[#allocation12 + $0xb60] sm:$0xff] }
 0x65c   :  { %10417 = vmatprep.subr.bf16.mxu1 %v16535_v16  ;;  %v4321_v16 = vld [vmem:[#allocation12 + $0x1518] sm:$0xff]  ;;  %v16105_v45 = vcombine.high %v4002_v4, %v4010_v43 }
 0x65d   :  { %v4585_v13 = vld [vmem:[#allocation12 + $0x1d58] sm:$0xff]  ;;  %v16422_v17 = vcombine.low %v4321_v16, %v4329_v61 }
 0x65e   :  { %10377 = vmatpush1.bf16.msra.mxu0 %v16278_v3  ;;  %v16694_v3 = vcombine.low %v4593_v46, %v4601_v47  ;;  %v4313_v10 = vld [vmem:[#allocation12 + $0x14d8] sm:$0xff]  ;;  %v3986_v46 = vld [vmem:[#allocation12 + $0xaa0] sm:$0xff] }
 0x65f   :  { %10418 = vmatpush1.bf16.msra.mxu1 %v16534_v7  ;;  %10378 = vmatprep.subr.bf16.mxu0 %v16263_v8  ;;  %v16423_v7 = vcombine.high %v4321_v16, %v4329_v61  ;;  %v16679_v8 = vcombine.high %v4577_v63, %v4585_v13  ;;  %v4561_v11 = vld [vmem:[#allocation12 + $0x1c98] sm:$0xff]  ;;  %v3994_v47 = vld [vmem:[#allocation12 + $0xae0] sm:$0xff]  ;;  %v16104_v16 = vcombine.low %v4002_v4, %v4010_v43 }
 0x660   :  { %10419 = vmatprep.subr.bf16.mxu1 %v16519_v9  ;;  %v4305_v9 = vld [vmem:[#allocation12 + $0x1498] sm:$0xff]  ;;  %v3922_v4 = vld [vmem:[#allocation12 + $0x8a0] sm:$0xff] }
 0x661   :  { %v4569_v12 = vld [vmem:[#allocation12 + $0x1cd8] sm:$0xff]  ;;  %v16406_v30 = vcombine.low %v4305_v9, %v4313_v10  ;;  %v3930_v43 = vld [vmem:[#allocation12 + $0x8e0] sm:$0xff] }
 0x662   :  { %10379 = vmatpush1.bf16.msra.mxu0 %v16262_v26  ;;  %v16678_v26 = vcombine.low %v4577_v63, %v4585_v13  ;;  %v4297_v24 = vld [vmem:[#allocation12 + $0x1458] sm:$0xff]  ;;  %v16089_v13 = vcombine.high %v3986_v46, %v3994_v47 }
 0x663   :  { %10420 = vmatpush1.bf16.msra.mxu1 %v16518_v22  ;;  %10380 = vmatprep.subr.bf16.mxu0 %v16503_v20  ;;  %v16407_v22 = vcombine.high %v4305_v9, %v4313_v10  ;;  %v16663_v20 = vcombine.high %v4561_v11, %v4569_v12  ;;  %v4545_v27 = vld [vmem:[#allocation12 + $0x1c18] sm:$0xff]  ;;  %v3970_v9 = vld [vmem:[#allocation12 + $0xa20] sm:$0xff] }
 0x664   :  { %10421 = vmatprep.subr.bf16.mxu1 %v16759_v21  ;;  %v4289_v21 = vld [vmem:[#allocation12 + $0x1418] sm:$0xff]  ;;  %v3978_v10 = vld [vmem:[#allocation12 + $0xa60] sm:$0xff] }
 0x665   :  { %v4553_v29 = vld [vmem:[#allocation12 + $0x1c58] sm:$0xff]  ;;  %v16390_v37 = vcombine.low %v4289_v21, %v4297_v24 }
 0x666   :  { %10381 = vmatpush2.bf16.msra.mxu0 %v16502_v31  ;;  %v16662_v31 = vcombine.low %v4561_v11, %v4569_v12 }
 0x667   :  { %10422 = vmatpush2.bf16.msra.mxu1 %v16758_v32  ;;  %10382 = vmatprep.subr.bf16.mxu0 %v16487_v33  ;;  %v16391_v32 = vcombine.high %v4289_v21, %v4297_v24  ;;  %v16647_v33 = vcombine.high %v4545_v27, %v4553_v29  ;;  %v16073_v21 = vcombine.high %v3970_v9, %v3978_v10  ;;  %v3698_v24 = vld [vmem:[#allocation12 + $0x1a0] sm:$0xff] }
 0x668   :  { %10423 = vmatprep.subr.bf16.mxu1 %v16743_v34  ;;  %v3762_v34 = vld [vmem:[#allocation12 + $0x3a0] sm:$0xff] }
 0x669   :  { %v15864_v42 = vcombine.low %v3762_v34, %v3770_v35 }
 0x66a   :  { %10383 = vmatpush2.bf16.msra.mxu0 %v16486_v38  ;;  %v16646_v38 = vcombine.low %v4545_v27, %v4553_v29  ;;  %v3706_v27 = vld [vmem:[#allocation12 + $0x1e0] sm:$0xff] }
 0x66b   :  { %10424 = vmatpush2.bf16.msra.mxu1 %v16742_v2  ;;  %10384 = vmatprep.subr.bf16.mxu0 %v16471_v39  ;;  %v15865_v2 = vcombine.high %v3762_v34, %v3770_v35  ;;  %v16121_v39 = vcombine.high %v4018_v19, %v4026_v36  ;;  %v3954_v29 = vld [vmem:[#allocation12 + $0x9a0] sm:$0xff] }
 0x66c   :  { %10425 = vmatprep.subr.bf16.mxu1 %v16727_v40  ;;  %v3746_v40 = vld [vmem:[#allocation12 + $0x320] sm:$0xff] }
 0x66d   :  { %v3682_v35 = vld [vmem:[#allocation12 + $0x120] sm:$0xff] }
 0x66e   :  { %10385 = vmatpush2.bf16.msra.mxu0 %v16470_v57  ;;  %v16120_v57 = vcombine.low %v4018_v19, %v4026_v36  ;;  %v3690_v19 = vld [vmem:[#allocation12 + $0x160] sm:$0xff] }
 0x66f   :  { %10426 = vmatpush2.bf16.msra.mxu1 %v16726_v14  ;;  %10386 = vmatprep.subr.bf16.mxu0 %v16455_v53  ;;  %v15849_v14 = vcombine.high %v3746_v40, %v3754_v41  ;;  %v3730_v53 = vld [vmem:[#allocation12 + $0x2a0] sm:$0xff] }
 0x670   :  { %10427 = vmatprep.subr.bf16.mxu1 %v16711_v44  ;;  %v3738_v44 = vld [vmem:[#allocation12 + $0x2e0] sm:$0xff] }
 0x671   :  { %v15833_v61 = vcombine.high %v3730_v53, %v3738_v44  ;;  %v15832_v12 = vcombine.low %v3730_v53, %v3738_v44  ;;  %v3938_v36 = vld [vmem:[#allocation12 + $0x920] sm:$0xff]  ;;  %v16025_v44 = vcombine.high %v3922_v4, %v3930_v43 }
 0x672   :  { %10387 = vmatpush2.bf16.msra.mxu0 %v16454_v51 }
 0x673   :  { %10428 = vmatpush2.bf16.msra.mxu1 %v16710_v55  ;;  %10388 = vmatprep.subr.bf16.mxu0 %v16439_v23  ;;  %v15848_v55 = vcombine.low %v3746_v40, %v3754_v41  ;;  %v3666_v41 = vld [vmem:[#allocation12 + $0xa0] sm:$0xff] }
 0x674   :  { %10429 = vmatprep.subr.bf16.mxu1 %v16695_v5 }
 0x676   :  { %10389 = vmatpush2.bf16.msra.mxu0 %v16438_v1  ;;  %v3714_v1 = vld [vmem:[#allocation12 + $0x220] sm:$0xff] }
 0x677   :  { %10430 = vmatpush2.bf16.msra.mxu1 %v16694_v3  ;;  %10390 = vmatprep.subr.bf16.mxu0 %v16423_v7  ;;  %v3722_v3 = vld [vmem:[#allocation12 + $0x260] sm:$0xff] }
 0x678   :  { %10431 = vmatprep.subr.bf16.mxu1 %v16679_v8 }
 0x67a   :  { %10391 = vmatpush2.bf16.msra.mxu0 %v16422_v17 }
 0x67b   :  { %10432 = vmatpush2.bf16.msra.mxu1 %v16678_v26  ;;  %10392 = vmatprep.subr.bf16.mxu0 %v16407_v22  ;;  %v16088_v26 = vcombine.low %v3986_v46, %v3994_v47  ;;  %v15817_v22 = vcombine.high %v3714_v1, %v3722_v3  ;;  %v3906_v46 = vld [vmem:[#allocation12 + $0x820] sm:$0xff] }
 0x67c   :  { %10433 = vmatprep.subr.bf16.mxu1 %v16663_v20  ;;  %v3914_v47 = vld [vmem:[#allocation12 + $0x860] sm:$0xff] }
 0x67e   :  { %10393 = vmatpush2.bf16.msra.mxu0 %v16406_v30  ;;  %v3962_v30 = vld [vmem:[#allocation12 + $0x9e0] sm:$0xff] }
 0x67f   :  { %10434 = vmatpush2.bf16.msra.mxu1 %v16662_v31  ;;  %10394 = vmatprep.subr.bf16.mxu0 %v16391_v32  ;;  %v15816_v31 = vcombine.low %v3714_v1, %v3722_v3  ;;  %v16072_v32 = vcombine.low %v3970_v9, %v3978_v10  ;;  %v16057_v34 = vcombine.high %v3954_v29, %v3962_v30  ;;  %v4154_v1 = vld [vmem:[#allocation12 + $0xfe0] sm:$0xff] }
 0x680   :  { %10435 = vmatprep.subr.bf16.mxu1 %v16647_v33  ;;  %v15801_v33 = vcombine.high %v3698_v24, %v3706_v27 }
 0x682   :  { %10395 = vmatpush2.bf16.msra.mxu0 %v16390_v37  ;;  %v3946_v37 = vld [vmem:[#allocation12 + $0x960] sm:$0xff] }
 0x683   :  { %10436 = vmatpush2.bf16.msra.mxu1 %v16646_v38  ;;  %10446 = vmatprep.subr.bf16.mxu0 %v15865_v2  ;;  %v15800_v38 = vcombine.low %v3698_v24, %v3706_v27  ;;  %v16056_v2 = vcombine.low %v3954_v29, %v3962_v30  ;;  %v16041_v40 = vcombine.high %v3938_v36, %v3946_v37  ;;  %v3858_v27 = vld [vmem:[#allocation12 + $0x6a0] sm:$0xff] }
 0x684   :  { %10487 = vmatprep.subr.bf16.mxu1 %v16121_v39  ;;  %v15785_v39 = vcombine.high %v3682_v35, %v3690_v19  ;;  %v3866_v29 = vld [vmem:[#allocation12 + $0x6e0] sm:$0xff] }
 0x685   :  { %v10152_v18 = vpop.f32.mrf.mxu0  ;;  %10397 = vmatmul.mubr.bf16.vlgmr.msra.gmra.mxu0 %v18633_v54  ;;  %v4114_v30 = vld [vmem:[#allocation12 + $0xea0] sm:$0xff] }
 0x686   :  { %v10193_v51 = vpop.f32.mrf.mxu1  ;;  %10438 = vmatmul.mubr.bf16.vlgmr.msra.gmra.mxu1 %v18635_v56  ;;  %10447 = vmatpush1.bf16.msra.mxu0 %v15864_v42  ;;  %v3674_v42 = vld [vmem:[#allocation12 + $0xe0] sm:$0xff] }
 0x687   :  { %v18683_v23 = vadd.f32 %v10193_v51, %v10152_v18  ;;  %10478 = vmatprep.mubr.bf16.mxu0 %v18595_v58  ;;  %10488 = vmatpush1.bf16.msra.mxu1 %v16120_v57  ;;  %v10154_v5 = vpop.f32.mrf.mxu0  ;;  %v15784_v57 = vcombine.low %v3682_v35, %v3690_v19  ;;  %v15769_v53 = vcombine.high %v3666_v41, %v3674_v42  ;;  %v3650_v18 = vld [vmem:[#allocation12 + $0x20] sm:$0xff] }
 0x688   :  { %10519 = vmatprep.mubr.bf16.mxu1 %v18599_v59  ;;  %v10195_v63 = vpop.f32.mrf.mxu1  ;;  %10448 = vmatprep.subr.bf16.mxu0 %v15849_v14  ;;  %v16040_v14 = vcombine.low %v3938_v36, %v3946_v37  ;;  %v15768_v51 = vcombine.low %v3666_v41, %v3674_v42  ;;  %v3842_v19 = vld [vmem:[#allocation12 + $0x620] sm:$0xff] }
 0x689   :  { %v18687_v7 = vadd.f32 %v10195_v63, %v10154_v5  ;;  %v10156_v8 = vpop.f32.mrf.mxu0  ;;  %10489 = vmatprep.subr.bf16.mxu1 %v16105_v45  ;;  %v3658_v45 = vld [vmem:[#allocation12 + $0x60] sm:$0xff] }
 0x68a   :  { %v10197_v11 = vpop.f32.mrf.mxu1  ;;  %10449 = vmatpush1.bf16.msra.mxu0 %v15848_v55  ;;  %v16024_v55 = vcombine.low %v3922_v4, %v3930_v43  ;;  %v15753_v5 = vcombine.high %v3650_v18, %v3658_v45  ;;  %v3898_v63 = vld [vmem:[#allocation12 + $0x7e0] sm:$0xff]  ;;  %v15752_v3 = vcombine.low %v3650_v18, %v3658_v45  ;;  %v16008_v8 = vcombine.low %v3906_v46, %v3914_v47 }
 0x68b   :  { %10490 = vmatpush1.bf16.msra.mxu1 %v16104_v16  ;;  %v10157_v17 = vpop.f32.mrf.mxu0  ;;  %10450 = vmatprep.subr.bf16.mxu0 %v15833_v61  ;;  %v16009_v16 = vcombine.high %v3906_v46, %v3914_v47  ;;  %v3890_v61 = vld [vmem:[#allocation12 + $0x7a0] sm:$0xff] }
 0x68c   :  { %v10198_v20 = vpop.f32.mrf.mxu1  ;;  %10491 = vmatprep.subr.bf16.mxu1 %v16089_v13  ;;  %v4146_v13 = vld [vmem:[#allocation12 + $0xfa0] sm:$0xff]  ;;  %v15993_v9 = vcombine.high %v3890_v61, %v3898_v63 }
 0x68d   :  { %v16249_v10 = vcombine.high %v4146_v13, %v4154_v1  ;;  %v3874_v11 = vld [vmem:[#allocation12 + $0x720] sm:$0xff]  ;;  %v16248_v20 = vcombine.low %v4146_v13, %v4154_v1 }
 0x68e   :  { %10451 = vmatpush1.bf16.msra.mxu0 %v15832_v12  ;;  %v3882_v12 = vld [vmem:[#allocation12 + $0x760] sm:$0xff] }
 0x68f   :  { %10492 = vmatpush1.bf16.msra.mxu1 %v16088_v26  ;;  %10452 = vmatprep.subr.bf16.mxu0 %v15817_v22  ;;  %v4130_v17 = vld [vmem:[#allocation12 + $0xf20] sm:$0xff]  ;;  %v15992_v22 = vcombine.low %v3890_v61, %v3898_v63 }
 0x690   :  { %10493 = vmatprep.subr.bf16.mxu1 %v16073_v21  ;;  %v4138_v26 = vld [vmem:[#allocation12 + $0xf60] sm:$0xff]  ;;  %v15977_v21 = vcombine.high %v3874_v11, %v3882_v12 }
 0x691   :  { %v16233_v24 = vcombine.high %v4130_v17, %v4138_v26  ;;  %v3850_v36 = vld [vmem:[#allocation12 + $0x660] sm:$0xff] }
 0x692   :  { %10453 = vmatpush1.bf16.msra.mxu0 %v15816_v31  ;;  %v4122_v31 = vld [vmem:[#allocation12 + $0xee0] sm:$0xff] }
 0x693   :  { %10494 = vmatpush1.bf16.msra.mxu1 %v16072_v32  ;;  %10454 = vmatprep.subr.bf16.mxu0 %v15801_v33  ;;  %v15976_v32 = vcombine.low %v3874_v11, %v3882_v12  ;;  %v16232_v33 = vcombine.low %v4130_v17, %v4138_v26  ;;  %v16217_v35 = vcombine.high %v4114_v30, %v4122_v31  ;;  %v4098_v37 = vld [vmem:[#allocation12 + $0xe20] sm:$0xff] }
 0x694   :  { %10495 = vmatprep.subr.bf16.mxu1 %v16057_v34  ;;  %v15961_v34 = vcombine.high %v3858_v27, %v3866_v29  ;;  %v3826_v42 = vld [vmem:[#allocation12 + $0x5a0] sm:$0xff] }
 0x695   :  { %v3834_v4 = vld [vmem:[#allocation12 + $0x5e0] sm:$0xff] }
 0x696   :  { %10455 = vmatpush1.bf16.msra.mxu0 %v15800_v38  ;;  %v4106_v38 = vld [vmem:[#allocation12 + $0xe60] sm:$0xff] }
 0x697   :  { %10496 = vmatpush1.bf16.msra.mxu1 %v16056_v2  ;;  %10456 = vmatprep.subr.bf16.mxu0 %v15785_v39  ;;  %v15960_v2 = vcombine.low %v3858_v27, %v3866_v29  ;;  %v16216_v39 = vcombine.low %v4114_v30, %v4122_v31  ;;  %v16201_v41 = vcombine.high %v4098_v37, %v4106_v38  ;;  %v4082_v43 = vld [vmem:[#allocation12 + $0xda0] sm:$0xff] }
 0x698   :  { %10497 = vmatprep.subr.bf16.mxu1 %v16041_v40  ;;  %v15945_v40 = vcombine.high %v3842_v19, %v3850_v36  ;;  %v3810_v45 = vld [vmem:[#allocation12 + $0x520] sm:$0xff] }
 0x699   :  { %v3818_v46 = vld [vmem:[#allocation12 + $0x560] sm:$0xff] }
 0x69a   :  { %10457 = vmatpush1.bf16.msra.mxu0 %v15784_v57  ;;  %v4090_v57 = vld [vmem:[#allocation12 + $0xde0] sm:$0xff] }
 0x69b   :  { %10498 = vmatpush1.bf16.msra.mxu1 %v16040_v14  ;;  %10458 = vmatprep.subr.bf16.mxu0 %v15769_v53  ;;  %v15944_v14 = vcombine.low %v3842_v19, %v3850_v36  ;;  %v16200_v53 = vcombine.low %v4098_v37, %v4106_v38  ;;  %v16185_v18 = vcombine.high %v4082_v43, %v4090_v57  ;;  %v4066_v47 = vld [vmem:[#allocation12 + $0xd20] sm:$0xff] }
 0x69c   :  { %10499 = vmatprep.subr.bf16.mxu1 %v16025_v44  ;;  %v15929_v44 = vcombine.high %v3826_v42, %v3834_v4  ;;  %v3794_v63 = vld [vmem:[#allocation12 + $0x4a0] sm:$0xff] }
 0x69d   :  { %v3802_v13 = vld [vmem:[#allocation12 + $0x4e0] sm:$0xff] }
 0x69e   :  { %10459 = vmatpush1.bf16.msra.mxu0 %v15768_v51  ;;  %v4074_v51 = vld [vmem:[#allocation12 + $0xd60] sm:$0xff] }
 0x69f   :  { %10500 = vmatpush1.bf16.msra.mxu1 %v16024_v55  ;;  %10460 = vmatprep.subr.bf16.mxu0 %v15753_v5  ;;  %v15928_v55 = vcombine.low %v3826_v42, %v3834_v4  ;;  %v16184_v5 = vcombine.low %v4082_v43, %v4090_v57  ;;  %v16169_v61 = vcombine.high %v4066_v47, %v4074_v51  ;;  %v4050_v1 = vld [vmem:[#allocation12 + $0xca0] sm:$0xff] }
 0x6a0   :  { %10501 = vmatprep.subr.bf16.mxu1 %v16009_v16  ;;  %v15913_v16 = vcombine.high %v3810_v45, %v3818_v46  ;;  %v3778_v12 = vld [vmem:[#allocation12 + $0x420] sm:$0xff] }
 0x6a1   :  { %v3786_v17 = vld [vmem:[#allocation12 + $0x460] sm:$0xff] }
 0x6a2   :  { %10461 = vmatpush1.bf16.msra.mxu0 %v15752_v3  ;;  %v4058_v3 = vld [vmem:[#allocation12 + $0xce0] sm:$0xff] }
 0x6a3   :  { %10502 = vmatpush1.bf16.msra.mxu1 %v16008_v8  ;;  %10462 = vmatprep.subr.bf16.mxu0 %v15993_v9  ;;  %v15912_v8 = vcombine.low %v3810_v45, %v3818_v46  ;;  %v16168_v9 = vcombine.low %v4066_v47, %v4074_v51  ;;  %v16153_v11 = vcombine.high %v4050_v1, %v4058_v3  ;;  %v4034_v26 = vld [vmem:[#allocation12 + $0xc20] sm:$0xff] }
 0x6a4   :  { %10503 = vmatprep.subr.bf16.mxu1 %v16249_v10  ;;  %v15897_v10 = vcombine.high %v3794_v63, %v3802_v13  ;;  %v4274_v29 = vld [vmem:[#allocation12 + $0x13a0] sm:$0xff] }
 0x6a5   :  { %v4282_v30 = vld [vmem:[#allocation12 + $0x13e0] sm:$0xff] }
 0x6a6   :  { %10463 = vmatpush2.bf16.msra.mxu0 %v15992_v22  ;;  %v4042_v22 = vld [vmem:[#allocation12 + $0xc60] sm:$0xff]  ;;  %v16376_v38 = vcombine.low %v4274_v29, %v4282_v30 }
 0x6a7   :  { %10504 = vmatpush2.bf16.msra.mxu1 %v16248_v20  ;;  %10464 = vmatprep.subr.bf16.mxu0 %v15977_v21  ;;  %v15896_v20 = vcombine.low %v3794_v63, %v3802_v13  ;;  %v16152_v21 = vcombine.low %v4050_v1, %v4058_v3  ;;  %v16137_v27 = vcombine.high %v4034_v26, %v4042_v22  ;;  %v4530_v31 = vld [vmem:[#allocation12 + $0x1ba0] sm:$0xff] }
 0x6a8   :  { %10505 = vmatprep.subr.bf16.mxu1 %v16233_v24  ;;  %v15881_v24 = vcombine.high %v3778_v12, %v3786_v17  ;;  %v4258_v36 = vld [vmem:[#allocation12 + $0x1320] sm:$0xff] }
 0x6a9   :  { %v4266_v37 = vld [vmem:[#allocation12 + $0x1360] sm:$0xff] }
 0x6aa   :  { %10465 = vmatpush2.bf16.msra.mxu0 %v15976_v32  ;;  %v4538_v32 = vld [vmem:[#allocation12 + $0x1be0] sm:$0xff]  ;;  %v16360_v45 = vcombine.low %v4258_v36, %v4266_v37 }
 0x6ab   :  { %10506 = vmatpush2.bf16.msra.mxu1 %v16232_v33  ;;  %10466 = vmatprep.subr.bf16.mxu0 %v15961_v34  ;;  %v15880_v33 = vcombine.low %v3778_v12, %v3786_v17  ;;  %v16136_v34 = vcombine.low %v4034_v26, %v4042_v22  ;;  %v16633_v19 = vcombine.high %v4530_v31, %v4538_v32  ;;  %v4242_v42 = vld [vmem:[#allocation12 + $0x12a0] sm:$0xff] }
 0x6ac   :  { %10507 = vmatprep.subr.bf16.mxu1 %v16217_v35  ;;  %v16377_v35 = vcombine.high %v4274_v29, %v4282_v30  ;;  %v4250_v4 = vld [vmem:[#allocation12 + $0x12e0] sm:$0xff] }
 0x6ad   :  { %v16345_v51 = vcombine.high %v4242_v42, %v4250_v4  ;;  %v4234_v63 = vld [vmem:[#allocation12 + $0x1260] sm:$0xff] }
 0x6ae   :  { %10467 = vmatpush2.bf16.msra.mxu0 %v15960_v2  ;;  %v4514_v2 = vld [vmem:[#allocation12 + $0x1b20] sm:$0xff] }
 0x6af   :  { %10508 = vmatpush2.bf16.msra.mxu1 %v16216_v39  ;;  %10468 = vmatprep.subr.bf16.mxu0 %v15945_v40  ;;  %v4522_v39 = vld [vmem:[#allocation12 + $0x1b60] sm:$0xff]  ;;  %v16632_v40 = vcombine.low %v4530_v31, %v4538_v32 }
 0x6b0   :  { %10509 = vmatprep.subr.bf16.mxu1 %v16201_v41  ;;  %v16361_v41 = vcombine.high %v4258_v36, %v4266_v37  ;;  %v16617_v57 = vcombine.high %v4514_v2, %v4522_v39  ;;  %v16616_v47 = vcombine.low %v4514_v2, %v4522_v39  ;;  %v4482_v1 = vld [vmem:[#allocation12 + $0x1a20] sm:$0xff] }
 0x6b1   :  { %v4490_v3 = vld [vmem:[#allocation12 + $0x1a60] sm:$0xff] }
 0x6b2   :  { %10469 = vmatpush2.bf16.msra.mxu0 %v15944_v14  ;;  %v4498_v14 = vld [vmem:[#allocation12 + $0x1aa0] sm:$0xff]  ;;  %v16585_v26 = vcombine.high %v4482_v1, %v4490_v3  ;;  %v16584_v29 = vcombine.low %v4482_v1, %v4490_v3 }
 0x6b3   :  { %10510 = vmatpush2.bf16.msra.mxu1 %v16200_v53  ;;  %10470 = vmatprep.subr.bf16.mxu0 %v15929_v44  ;;  %v4506_v53 = vld [vmem:[#allocation12 + $0x1ae0] sm:$0xff] }
 0x6b4   :  { %10511 = vmatprep.subr.bf16.mxu1 %v16185_v18  ;;  %v16600_v12 = vcombine.low %v4498_v14, %v4506_v53  ;;  %v4210_v22 = vld [vmem:[#allocation12 + $0x11a0] sm:$0xff] }
 0x6b5   :  { %v4194_v32 = vld [vmem:[#allocation12 + $0x1120] sm:$0xff] }
 0x6b6   :  { %10471 = vmatpush2.bf16.msra.mxu0 %v15928_v55  ;;  %v4178_v2 = vld [vmem:[#allocation12 + $0x10a0] sm:$0xff] }
 0x6b7   :  { %10512 = vmatpush2.bf16.msra.mxu1 %v16184_v5  ;;  %10472 = vmatprep.subr.bf16.mxu0 %v15913_v16  ;;  %v4186_v39 = vld [vmem:[#allocation12 + $0x10e0] sm:$0xff] }
 0x6b8   :  { %10513 = vmatprep.subr.bf16.mxu1 %v16169_v61  ;;  %v4226_v61 = vld [vmem:[#allocation12 + $0x1220] sm:$0xff] }
 0x6b9   :  { %v16329_v17 = vcombine.high %v4226_v61, %v4234_v63 }
 0x6ba   :  { %10473 = vmatpush2.bf16.msra.mxu0 %v15912_v8 }
 0x6bb   :  { %10514 = vmatpush2.bf16.msra.mxu1 %v16168_v9  ;;  %10474 = vmatprep.subr.bf16.mxu0 %v15897_v10  ;;  %v16344_v10 = vcombine.low %v4242_v42, %v4250_v4 }
 0x6bc   :  { %10515 = vmatprep.subr.bf16.mxu1 %v16153_v11 }
 0x6be   :  { %10475 = vmatpush2.bf16.msra.mxu0 %v15896_v20  ;;  %v4218_v20 = vld [vmem:[#allocation12 + $0x11e0] sm:$0xff] }
 0x6bf   :  { %10516 = vmatpush2.bf16.msra.mxu1 %v16152_v21  ;;  %10476 = vmatprep.subr.bf16.mxu0 %v15881_v24  ;;  %v4466_v21 = vld [vmem:[#allocation12 + $0x19a0] sm:$0xff]  ;;  %v16313_v30 = vcombine.high %v4210_v22, %v4218_v20 }
 0x6c0   :  { %10517 = vmatprep.subr.bf16.mxu1 %v16137_v27  ;;  %v4474_v24 = vld [vmem:[#allocation12 + $0x19e0] sm:$0xff]  ;;  %v16328_v27 = vcombine.low %v4226_v61, %v4234_v63 }
 0x6c1   :  { %v16569_v31 = vcombine.high %v4466_v21, %v4474_v24  ;;  %v16568_v36 = vcombine.low %v4466_v21, %v4474_v24  ;;  %v4666_v61 = vld [vmem:[#allocation12 + $0x1fe0] sm:$0xff] }
 0x6c2   :  { %10477 = vmatpush2.bf16.msra.mxu0 %v15880_v33  ;;  %v4202_v33 = vld [vmem:[#allocation12 + $0x1160] sm:$0xff] }
 0x6c3   :  { %10518 = vmatpush2.bf16.msra.mxu1 %v16136_v34  ;;  %10528 = vmatprep.subr.bf16.mxu0 %v16377_v35  ;;  %v4450_v34 = vld [vmem:[#allocation12 + $0x1920] sm:$0xff]  ;;  %v16297_v37 = vcombine.high %v4194_v32, %v4202_v33  ;;  %v16296_v42 = vcombine.low %v4194_v32, %v4202_v33 }
 0x6c4   :  { %10569 = vmatprep.subr.bf16.mxu1 %v16633_v19  ;;  %v4458_v35 = vld [vmem:[#allocation12 + $0x1960] sm:$0xff]  ;;  %v16312_v19 = vcombine.low %v4210_v22, %v4218_v20 }
 0x6c5   :  { %v10234_v43 = vpop.f32.mrf.mxu0  ;;  %10479 = vmatmul.mubr.bf16.vlgmr.msra.gmra.mxu0 %v18597_v60  ;;  %v16552_v4 = vcombine.low %v4450_v34, %v4458_v35  ;;  %v4370_v20 = vld [vmem:[#allocation12 + $0x16a0] sm:$0xff] }
 0x6c6   :  { %v10235_v44 = vadd.f32 %v10234_v43, %v18683_v23  ;;  %v10275_v18 = vpop.f32.mrf.mxu1  ;;  %10520 = vmatmul.mubr.bf16.vlgmr.msra.gmra.mxu1 %v18601_v15  ;;  %10529 = vmatpush1.bf16.msra.mxu0 %v16376_v38  ;;  %v16601_v23 = vcombine.high %v4498_v14, %v4506_v53  ;;  %v16553_v38 = vcombine.high %v4450_v34, %v4458_v35  ;;  %v4162_v14 = vld [vmem:[#allocation12 + $0x1020] sm:$0xff] }
 0x6c7   :  { %10560 = vmatprep.mubr.bf16.mxu0 %v18617_v49  ;;  %10570 = vmatpush1.bf16.msra.mxu1 %v16632_v40  ;;  %v10236_v46 = vpop.f32.mrf.mxu0  ;;  %v4434_v40 = vld [vmem:[#allocation12 + $0x18a0] sm:$0xff]  ;;  %v16281_v43 = vcombine.high %v4178_v2, %v4186_v39 }
 0x6c8   :  { %v18693_v55 = vadd.f32 %v10275_v18, %v10235_v44  ;;  %10601 = vmatprep.mubr.bf16.mxu1 %v18619_v52  ;;  %v10237_v5 = vadd.f32 %v10236_v46, %v18687_v7  ;;  %v10277_v16 = vpop.f32.mrf.mxu1  ;;  %10530 = vmatprep.subr.bf16.mxu0 %v16361_v41  ;;  %v4442_v41 = vld [vmem:[#allocation12 + $0x18e0] sm:$0xff] }
 0x6c9   :  { %v10238_v13 = vpop.f32.mrf.mxu0  ;;  %10571 = vmatprep.subr.bf16.mxu1 %v16617_v57  ;;  %v16537_v57 = vcombine.high %v4434_v40, %v4442_v41  ;;  %v4170_v53 = vld [vmem:[#allocation12 + $0x1060] sm:$0xff]  ;;  %v16536_v46 = vcombine.low %v4434_v40, %v4442_v41 }
 0x6ca   :  { %v18697_v8 = vadd.f32 %v10277_v16, %v10237_v5  ;;  %v10279_v9 = vpop.f32.mrf.mxu1  ;;  %10531 = vmatpush1.bf16.msra.mxu0 %v16360_v45  ;;  %v4418_v44 = vld [vmem:[#allocation12 + $0x1820] sm:$0xff]  ;;  %v16280_v45 = vcombine.low %v4178_v2, %v4186_v39  ;;  %v16264_v63 = vcombine.low %v4162_v14, %v4170_v53 }
 0x6cb   :  { %10572 = vmatpush1.bf16.msra.mxu1 %v16616_v47  ;;  %v10239_v11 = vpop.f32.mrf.mxu0  ;;  %10532 = vmatprep.subr.bf16.mxu0 %v16345_v51  ;;  %v4426_v18 = vld [vmem:[#allocation12 + $0x1860] sm:$0xff]  ;;  %v16265_v47 = vcombine.high %v4162_v14, %v4170_v53 }
 0x6cc   :  { %v10280_v7 = vpop.f32.mrf.mxu1  ;;  %10573 = vmatprep.subr.bf16.mxu1 %v16601_v23  ;;  %v16521_v51 = vcombine.high %v4418_v44, %v4426_v18  ;;  %v4402_v5 = vld [vmem:[#allocation12 + $0x17a0] sm:$0xff]  ;;  %v16520_v13 = vcombine.low %v4418_v44, %v4426_v18 }
 0x6cd   :  { %v4410_v16 = vld [vmem:[#allocation12 + $0x17e0] sm:$0xff] }
 0x6ce   :  { %10533 = vmatpush1.bf16.msra.mxu0 %v16344_v10  ;;  %v4658_v23 = vld [vmem:[#allocation12 + $0x1fa0] sm:$0xff]  ;;  %v16505_v1 = vcombine.high %v4402_v5, %v4410_v16 }
 0x6cf   :  { %10574 = vmatpush1.bf16.msra.mxu1 %v16600_v12  ;;  %10534 = vmatprep.subr.bf16.mxu0 %v16329_v17  ;;  %v16761_v3 = vcombine.high %v4658_v23, %v4666_v61  ;;  %v4386_v9 = vld [vmem:[#allocation12 + $0x1720] sm:$0xff]  ;;  %v16504_v17 = vcombine.low %v4402_v5, %v4410_v16  ;;  %v16760_v7 = vcombine.low %v4658_v23, %v4666_v61 }
 0x6d0   :  { %10575 = vmatprep.subr.bf16.mxu1 %v16585_v26  ;;  %v4394_v10 = vld [vmem:[#allocation12 + $0x1760] sm:$0xff] }
 0x6d1   :  { %v4642_v11 = vld [vmem:[#allocation12 + $0x1f20] sm:$0xff]  ;;  %v16489_v26 = vcombine.high %v4386_v9, %v4394_v10 }
 0x6d2   :  { %10535 = vmatpush1.bf16.msra.mxu0 %v16328_v27  ;;  %v4650_v12 = vld [vmem:[#allocation12 + $0x1f60] sm:$0xff] }
 0x6d3   :  { %10576 = vmatpush1.bf16.msra.mxu1 %v16584_v29  ;;  %10536 = vmatprep.subr.bf16.mxu0 %v16313_v30  ;;  %v16745_v22 = vcombine.high %v4642_v11, %v4650_v12  ;;  %v4378_v21 = vld [vmem:[#allocation12 + $0x16e0] sm:$0xff]  ;;  %v16488_v29 = vcombine.low %v4386_v9, %v4394_v10  ;;  %v16744_v30 = vcombine.low %v4642_v11, %v4650_v12 }
 0x6d4   :  { %10577 = vmatprep.subr.bf16.mxu1 %v16569_v31  ;;  %v4626_v24 = vld [vmem:[#allocation12 + $0x1ea0] sm:$0xff]  ;;  %v16473_v31 = vcombine.high %v4370_v20, %v4378_v21 }
 0x6d5   :  { %v4634_v27 = vld [vmem:[#allocation12 + $0x1ee0] sm:$0xff] }
 0x6d6   :  { %10537 = vmatpush1.bf16.msra.mxu0 %v16312_v19  ;;  %v16729_v32 = vcombine.high %v4626_v24, %v4634_v27  ;;  %v4354_v33 = vld [vmem:[#allocation12 + $0x1620] sm:$0xff] }
 0x6d7   :  { %10578 = vmatpush1.bf16.msra.mxu1 %v16568_v36  ;;  %10538 = vmatprep.subr.bf16.mxu0 %v16297_v37  ;;  %v4362_v34 = vld [vmem:[#allocation12 + $0x1660] sm:$0xff]  ;;  %v16472_v36 = vcombine.low %v4370_v20, %v4378_v21  ;;  %v16728_v37 = vcombine.low %v4626_v24, %v4634_v27  ;;  %v3763_v21 = vld [vmem:[#allocation12 + $0x3a8] sm:$0xff] }
 0x6d8   :  { %10579 = vmatprep.subr.bf16.mxu1 %v16553_v38  ;;  %v4610_v35 = vld [vmem:[#allocation12 + $0x1e20] sm:$0xff]  ;;  %v16457_v38 = vcombine.high %v4354_v33, %v4362_v34  ;;  %v3771_v24 = vld [vmem:[#allocation12 + $0x3e8] sm:$0xff] }
 0x6d9   :  { %v4618_v19 = vld [vmem:[#allocation12 + $0x1e60] sm:$0xff]  ;;  %v4019_v27 = vld [vmem:[#allocation12 + $0xba8] sm:$0xff] }
 0x6da   :  { %10539 = vmatpush1.bf16.msra.mxu0 %v16296_v42  ;;  %v16713_v2 = vcombine.high %v4610_v35, %v4618_v19  ;;  %v4338_v39 = vld [vmem:[#allocation12 + $0x15a0] sm:$0xff] }
 0x6db   :  { %10580 = vmatpush1.bf16.msra.mxu1 %v16552_v4  ;;  %10540 = vmatprep.subr.bf16.mxu0 %v16281_v43  ;;  %v4346_v40 = vld [vmem:[#allocation12 + $0x15e0] sm:$0xff]  ;;  %v16456_v4 = vcombine.low %v4354_v33, %v4362_v34  ;;  %v16712_v43 = vcombine.low %v4610_v35, %v4618_v19  ;;  %v3747_v34 = vld [vmem:[#allocation12 + $0x328] sm:$0xff]  ;;  %v15866_v19 = vcombine.low %v3763_v21, %v3771_v24 }
 0x6dc   :  { %10581 = vmatprep.subr.bf16.mxu1 %v16537_v57  ;;  %v4594_v41 = vld [vmem:[#allocation12 + $0x1da0] sm:$0xff]  ;;  %v16441_v57 = vcombine.high %v4338_v39, %v4346_v40  ;;  %v3755_v35 = vld [vmem:[#allocation12 + $0x368] sm:$0xff] }
 0x6dd   :  { %v4602_v42 = vld [vmem:[#allocation12 + $0x1de0] sm:$0xff] }
 0x6de   :  { %10541 = vmatpush1.bf16.msra.mxu0 %v16280_v45  ;;  %v16697_v14 = vcombine.high %v4594_v41, %v4602_v42  ;;  %v4322_v53 = vld [vmem:[#allocation12 + $0x1520] sm:$0xff] }
 0x6df   :  { %10582 = vmatpush1.bf16.msra.mxu1 %v16536_v46  ;;  %10542 = vmatprep.subr.bf16.mxu0 %v16265_v47  ;;  %v4330_v44 = vld [vmem:[#allocation12 + $0x1560] sm:$0xff]  ;;  %v16440_v46 = vcombine.low %v4338_v39, %v4346_v40  ;;  %v16696_v47 = vcombine.low %v4594_v41, %v4602_v42  ;;  %v3731_v39 = vld [vmem:[#allocation12 + $0x2a8] sm:$0xff] }
 0x6e0   :  { %10583 = vmatprep.subr.bf16.mxu1 %v16521_v51  ;;  %v4578_v18 = vld [vmem:[#allocation12 + $0x1d20] sm:$0xff]  ;;  %v16425_v51 = vcombine.high %v4322_v53, %v4330_v44  ;;  %v3739_v40 = vld [vmem:[#allocation12 + $0x2e8] sm:$0xff] }
 0x6e1   :  { %v4586_v45 = vld [vmem:[#allocation12 + $0x1d60] sm:$0xff] }
 0x6e2   :  { %10543 = vmatpush1.bf16.msra.mxu0 %v16264_v63  ;;  %v16681_v5 = vcombine.high %v4578_v18, %v4586_v45  ;;  %v4306_v16 = vld [vmem:[#allocation12 + $0x14a0] sm:$0xff] }
 0x6e3   :  { %10584 = vmatpush1.bf16.msra.mxu1 %v16520_v13  ;;  %10544 = vmatprep.subr.bf16.mxu0 %v16505_v1  ;;  %v4314_v23 = vld [vmem:[#allocation12 + $0x14e0] sm:$0xff]  ;;  %v16424_v13 = vcombine.low %v4322_v53, %v4330_v44  ;;  %v16680_v1 = vcombine.low %v4578_v18, %v4586_v45  ;;  %v15835_v45 = vcombine.high %v3731_v39, %v3739_v40 }
 0x6e4   :  { %10585 = vmatprep.subr.bf16.mxu1 %v16761_v3  ;;  %v4562_v61 = vld [vmem:[#allocation12 + $0x1ca0] sm:$0xff]  ;;  %v16409_v3 = vcombine.high %v4306_v16, %v4314_v23 }
 0x6e5   :  { %v4570_v63 = vld [vmem:[#allocation12 + $0x1ce0] sm:$0xff] }
 0x6e6   :  { %10545 = vmatpush2.bf16.msra.mxu0 %v16504_v17  ;;  %v16665_v9 = vcombine.high %v4562_v61, %v4570_v63  ;;  %v4290_v10 = vld [vmem:[#allocation12 + $0x1420] sm:$0xff] }
 0x6e7   :  { %10586 = vmatpush2.bf16.msra.mxu1 %v16760_v7  ;;  %10546 = vmatprep.subr.bf16.mxu0 %v16489_v26  ;;  %v4298_v11 = vld [vmem:[#allocation12 + $0x1460] sm:$0xff]  ;;  %v16408_v7 = vcombine.low %v4306_v16, %v4314_v23  ;;  %v16664_v26 = vcombine.low %v4562_v61, %v4570_v63  ;;  %v3971_v61 = vld [vmem:[#allocation12 + $0xa28] sm:$0xff] }
 0x6e8   :  { %10587 = vmatprep.subr.bf16.mxu1 %v16745_v22  ;;  %v4546_v12 = vld [vmem:[#allocation12 + $0x1c20] sm:$0xff]  ;;  %v16393_v22 = vcombine.high %v4290_v10, %v4298_v11  ;;  %v3979_v63 = vld [vmem:[#allocation12 + $0xa68] sm:$0xff] }
 0x6e9   :  { %v4554_v17 = vld [vmem:[#allocation12 + $0x1c60] sm:$0xff] }
 0x6ea   :  { %10547 = vmatpush2.bf16.msra.mxu0 %v16488_v29  ;;  %v16649_v20 = vcombine.high %v4546_v12, %v4554_v17  ;;  %v4027_v29 = vld [vmem:[#allocation12 + $0xbe8] sm:$0xff] }
 0x6eb   :  { %10588 = vmatpush2.bf16.msra.mxu1 %v16744_v30  ;;  %10548 = vmatprep.subr.bf16.mxu0 %v16473_v31  ;;  %v16392_v30 = vcombine.low %v4290_v10, %v4298_v11  ;;  %v16648_v31 = vcombine.low %v4546_v12, %v4554_v17  ;;  %v16123_v33 = vcombine.high %v4019_v27, %v4027_v29  ;;  %v3699_v17 = vld [vmem:[#allocation12 + $0x1a8] sm:$0xff] }
 0x6ec   :  { %10589 = vmatprep.subr.bf16.mxu1 %v16729_v32  ;;  %v15867_v32 = vcombine.high %v3763_v21, %v3771_v24  ;;  %v16075_v12 = vcombine.high %v3971_v61, %v3979_v63  ;;  %v16074_v21 = vcombine.low %v3971_v61, %v3979_v63 }
 0x6ee   :  { %10549 = vmatpush2.bf16.msra.mxu0 %v16472_v36  ;;  %v4003_v36 = vld [vmem:[#allocation12 + $0xb28] sm:$0xff] }
 0x6ef   :  { %10590 = vmatpush2.bf16.msra.mxu1 %v16728_v37  ;;  %10550 = vmatprep.subr.bf16.mxu0 %v16457_v38  ;;  %v4011_v37 = vld [vmem:[#allocation12 + $0xb68] sm:$0xff]  ;;  %v16122_v38 = vcombine.low %v4019_v27, %v4027_v29 }
 0x6f0   :  { %10591 = vmatprep.subr.bf16.mxu1 %v16713_v2  ;;  %v15851_v2 = vcombine.high %v3747_v34, %v3755_v35  ;;  %v16107_v42 = vcombine.high %v4003_v36, %v4011_v37  ;;  %v16106_v18 = vcombine.low %v4003_v36, %v4011_v37  ;;  %v3683_v29 = vld [vmem:[#allocation12 + $0x128] sm:$0xff] }
 0x6f1   :  { %v3667_v36 = vld [vmem:[#allocation12 + $0xa8] sm:$0xff] }
 0x6f2   :  { %10551 = vmatpush2.bf16.msra.mxu0 %v16456_v4  ;;  %v3987_v4 = vld [vmem:[#allocation12 + $0xaa8] sm:$0xff] }
 0x6f3   :  { %10592 = vmatpush2.bf16.msra.mxu1 %v16712_v43  ;;  %10552 = vmatprep.subr.bf16.mxu0 %v16441_v57  ;;  %v3995_v43 = vld [vmem:[#allocation12 + $0xae8] sm:$0xff] }
 0x6f4   :  { %10593 = vmatprep.subr.bf16.mxu1 %v16697_v14  ;;  %v15850_v14 = vcombine.low %v3747_v34, %v3755_v35  ;;  %v3675_v37 = vld [vmem:[#allocation12 + $0xe8] sm:$0xff] }
 0x6f6   :  { %10553 = vmatpush2.bf16.msra.mxu0 %v16440_v46 }
 0x6f7   :  { %10594 = vmatpush2.bf16.msra.mxu1 %v16696_v47  ;;  %10554 = vmatprep.subr.bf16.mxu0 %v16425_v51  ;;  %v16091_v47 = vcombine.high %v3987_v4, %v3995_v43  ;;  %v3715_v51 = vld [vmem:[#allocation12 + $0x228] sm:$0xff] }
 0x6f8   :  { %10595 = vmatprep.subr.bf16.mxu1 %v16681_v5  ;;  %v3723_v5 = vld [vmem:[#allocation12 + $0x268] sm:$0xff] }
 0x6f9   :  { %v15819_v10 = vcombine.high %v3715_v51, %v3723_v5 }
 0x6fa   :  { %10555 = vmatpush2.bf16.msra.mxu0 %v16424_v13 }
 0x6fb   :  { %10596 = vmatpush2.bf16.msra.mxu1 %v16680_v1  ;;  %10556 = vmatprep.subr.bf16.mxu0 %v16409_v3  ;;  %v15834_v1 = vcombine.low %v3731_v39, %v3739_v40 }
 0x6fc   :  { %10597 = vmatprep.subr.bf16.mxu1 %v16665_v9  ;;  %v16090_v9 = vcombine.low %v3987_v4, %v3995_v43  ;;  %v3651_v4 = vld [vmem:[#allocation12 + $0x28] sm:$0xff] }
 0x6fd   :  { %v3659_v43 = vld [vmem:[#allocation12 + $0x68] sm:$0xff] }
 0x6fe   :  { %10557 = vmatpush2.bf16.msra.mxu0 %v16408_v7  ;;  %v3707_v7 = vld [vmem:[#allocation12 + $0x1e8] sm:$0xff]  ;;  %v15754_v61 = vcombine.low %v3651_v4, %v3659_v43 }
 0x6ff   :  { %10598 = vmatpush2.bf16.msra.mxu1 %v16664_v26  ;;  %10558 = vmatprep.subr.bf16.mxu0 %v16393_v22  ;;  %v3955_v26 = vld [vmem:[#allocation12 + $0x9a8] sm:$0xff]  ;;  %v15803_v24 = vcombine.high %v3699_v17, %v3707_v7 }
 0x700   :  { %10599 = vmatprep.subr.bf16.mxu1 %v16649_v20  ;;  %v3963_v22 = vld [vmem:[#allocation12 + $0x9e8] sm:$0xff]  ;;  %v15818_v20 = vcombine.low %v3715_v51, %v3723_v5 }
 0x701   :  { %v16059_v27 = vcombine.high %v3955_v26, %v3963_v22  ;;  %v16058_v34 = vcombine.low %v3955_v26, %v3963_v22  ;;  %v3899_v51 = vld [vmem:[#allocation12 + $0x7e8] sm:$0xff] }
 0x702   :  { %10559 = vmatpush2.bf16.msra.mxu0 %v16392_v30  ;;  %v3691_v30 = vld [vmem:[#allocation12 + $0x168] sm:$0xff] }
 0x703   :  { %10600 = vmatpush2.bf16.msra.mxu1 %v16648_v31  ;;  %10610 = vmatprep.subr.bf16.mxu0 %v15867_v32  ;;  %v3939_v31 = vld [vmem:[#allocation12 + $0x928] sm:$0xff]  ;;  %v15787_v35 = vcombine.high %v3683_v29, %v3691_v30  ;;  %v15786_v39 = vcombine.low %v3683_v29, %v3691_v30 }
 0x704   :  { %10651 = vmatprep.subr.bf16.mxu1 %v16123_v33  ;;  %v3947_v32 = vld [vmem:[#allocation12 + $0x968] sm:$0xff]  ;;  %v15802_v33 = vcombine.low %v3699_v17, %v3707_v7 }
 0x705   :  { %v10316_v41 = vpop.f32.mrf.mxu0  ;;  %10561 = vmatmul.mubr.bf16.vlgmr.msra.gmra.mxu0 %v18633_v54  ;;  %v16042_v40 = vcombine.low %v3939_v31, %v3947_v32  ;;  %v4147_v5 = vld [vmem:[#allocation12 + $0xfa8] sm:$0xff] }
 0x706   :  { %v10357_v57 = vpop.f32.mrf.mxu1  ;;  %10602 = vmatmul.mubr.bf16.vlgmr.msra.gmra.mxu1 %v18635_v56  ;;  %10611 = vmatpush1.bf16.msra.mxu0 %v15866_v19  ;;  %v16043_v19 = vcombine.high %v3939_v31, %v3947_v32  ;;  %v3859_v22 = vld [vmem:[#allocation12 + $0x6a8] sm:$0xff] }
 0x707   :  { %v18701_v53 = vadd.f32 %v10357_v57, %v10316_v41  ;;  %10642 = vmatprep.mubr.bf16.mxu0 %v18595_v58  ;;  %10652 = vmatpush1.bf16.msra.mxu1 %v16122_v38  ;;  %v10318_v44 = vpop.f32.mrf.mxu0  ;;  %v3923_v38 = vld [vmem:[#allocation12 + $0x8a8] sm:$0xff]  ;;  %v15771_v41 = vcombine.high %v3667_v36, %v3675_v37 }
 0x708   :  { %10683 = vmatprep.mubr.bf16.mxu1 %v18599_v59  ;;  %v10359_v46 = vpop.f32.mrf.mxu1  ;;  %10612 = vmatprep.subr.bf16.mxu0 %v15851_v2  ;;  %v3931_v2 = vld [vmem:[#allocation12 + $0x8e8] sm:$0xff] }
 0x709   :  { %v18705_v16 = vadd.f32 %v10359_v46, %v10318_v44  ;;  %v10320_v23 = vpop.f32.mrf.mxu0  ;;  %10653 = vmatprep.subr.bf16.mxu1 %v16107_v42  ;;  %v16027_v42 = vcombine.high %v3923_v38, %v3931_v2  ;;  %v3907_v57 = vld [vmem:[#allocation12 + $0x828] sm:$0xff]  ;;  %v15770_v44 = vcombine.low %v3667_v36, %v3675_v37 }
 0x70a   :  { %v10361_v13 = vpop.f32.mrf.mxu1  ;;  %10613 = vmatpush1.bf16.msra.mxu0 %v15850_v14  ;;  %v3915_v14 = vld [vmem:[#allocation12 + $0x868] sm:$0xff] }
 0x70b   :  { %10654 = vmatpush1.bf16.msra.mxu1 %v16106_v18  ;;  %v10321_v3 = vpop.f32.mrf.mxu0  ;;  %10614 = vmatprep.subr.bf16.mxu0 %v15835_v45  ;;  %v16026_v18 = vcombine.low %v3923_v38, %v3931_v2  ;;  %v15755_v45 = vcombine.high %v3651_v4, %v3659_v43  ;;  %v16011_v46 = vcombine.high %v3907_v57, %v3915_v14  ;;  %v4155_v23 = vld [vmem:[#allocation12 + $0xfe8] sm:$0xff] }
 0x70c   :  { %v10362_v11 = vpop.f32.mrf.mxu1  ;;  %10655 = vmatprep.subr.bf16.mxu1 %v16091_v47  ;;  %v3891_v47 = vld [vmem:[#allocation12 + $0x7a8] sm:$0xff]  ;;  %v16010_v63 = vcombine.low %v3907_v57, %v3915_v14  ;;  %v16250_v17 = vcombine.low %v4147_v5, %v4155_v23 }
 0x70d   :  { %v15995_v13 = vcombine.high %v3891_v47, %v3899_v51  ;;  %v3875_v3 = vld [vmem:[#allocation12 + $0x728] sm:$0xff] }
 0x70e   :  { %10615 = vmatpush1.bf16.msra.mxu0 %v15834_v1  ;;  %v16251_v1 = vcombine.high %v4147_v5, %v4155_v23  ;;  %v4139_v11 = vld [vmem:[#allocation12 + $0xf68] sm:$0xff] }
 0x70f   :  { %10656 = vmatpush1.bf16.msra.mxu1 %v16090_v9  ;;  %10616 = vmatprep.subr.bf16.mxu0 %v15819_v10  ;;  %v3883_v9 = vld [vmem:[#allocation12 + $0x768] sm:$0xff] }
 0x710   :  { %10657 = vmatprep.subr.bf16.mxu1 %v16075_v12  ;;  %v4131_v10 = vld [vmem:[#allocation12 + $0xf28] sm:$0xff]  ;;  %v15994_v12 = vcombine.low %v3891_v47, %v3899_v51  ;;  %v15979_v7 = vcombine.high %v3875_v3, %v3883_v9 }
 0x711   :  { %v16235_v26 = vcombine.high %v4131_v10, %v4139_v11  ;;  %v16234_v29 = vcombine.low %v4131_v10, %v4139_v11  ;;  %v3843_v32 = vld [vmem:[#allocation12 + $0x628] sm:$0xff] }
 0x712   :  { %10617 = vmatpush1.bf16.msra.mxu0 %v15818_v20  ;;  %v3867_v20 = vld [vmem:[#allocation12 + $0x6e8] sm:$0xff] }
 0x713   :  { %10658 = vmatpush1.bf16.msra.mxu1 %v16074_v21  ;;  %10618 = vmatprep.subr.bf16.mxu0 %v15803_v24  ;;  %v4115_v21 = vld [vmem:[#allocation12 + $0xea8] sm:$0xff]  ;;  %v15963_v30 = vcombine.high %v3859_v22, %v3867_v20 }
 0x714   :  { %10659 = vmatprep.subr.bf16.mxu1 %v16059_v27  ;;  %v4123_v24 = vld [vmem:[#allocation12 + $0xee8] sm:$0xff]  ;;  %v15978_v27 = vcombine.low %v3875_v3, %v3883_v9 }
 0x715   :  { %v16219_v31 = vcombine.high %v4115_v21, %v4123_v24  ;;  %v16218_v36 = vcombine.low %v4115_v21, %v4123_v24  ;;  %v3827_v2 = vld [vmem:[#allocation12 + $0x5a8] sm:$0xff] }
 0x716   :  { %10619 = vmatpush1.bf16.msra.mxu0 %v15802_v33  ;;  %v3851_v33 = vld [vmem:[#allocation12 + $0x668] sm:$0xff] }
 0x717   :  { %10660 = vmatpush1.bf16.msra.mxu1 %v16058_v34  ;;  %10620 = vmatprep.subr.bf16.mxu0 %v15787_v35  ;;  %v4099_v34 = vld [vmem:[#allocation12 + $0xe28] sm:$0xff]  ;;  %v15947_v37 = vcombine.high %v3843_v32, %v3851_v33 }
 0x718   :  { %10661 = vmatprep.subr.bf16.mxu1 %v16043_v19  ;;  %v4107_v35 = vld [vmem:[#allocation12 + $0xe68] sm:$0xff]  ;;  %v15962_v19 = vcombine.low %v3859_v22, %v3867_v20 }
 0x719   :  { %v16203_v38 = vcombine.high %v4099_v34, %v4107_v35  ;;  %v16202_v4 = vcombine.low %v4099_v34, %v4107_v35  ;;  %v3811_v14 = vld [vmem:[#allocation12 + $0x528] sm:$0xff] }
 0x71a   :  { %10621 = vmatpush1.bf16.msra.mxu0 %v15786_v39  ;;  %v3835_v39 = vld [vmem:[#allocation12 + $0x5e8] sm:$0xff] }
 0x71b   :  { %10662 = vmatpush1.bf16.msra.mxu1 %v16042_v40  ;;  %10622 = vmatprep.subr.bf16.mxu0 %v15771_v41  ;;  %v4083_v40 = vld [vmem:[#allocation12 + $0xda8] sm:$0xff]  ;;  %v15931_v43 = vcombine.high %v3827_v2, %v3835_v39 }
 0x71c   :  { %10663 = vmatprep.subr.bf16.mxu1 %v16027_v42  ;;  %v4091_v41 = vld [vmem:[#allocation12 + $0xde8] sm:$0xff]  ;;  %v15946_v42 = vcombine.low %v3843_v32, %v3851_v33 }
 0x71d   :  { %v16187_v57 = vcombine.high %v4083_v40, %v4091_v41  ;;  %v16186_v47 = vcombine.low %v4083_v40, %v4091_v41  ;;  %v3795_v23 = vld [vmem:[#allocation12 + $0x4a8] sm:$0xff] }
 0x71e   :  { %10623 = vmatpush1.bf16.msra.mxu0 %v15770_v44  ;;  %v3819_v44 = vld [vmem:[#allocation12 + $0x568] sm:$0xff] }
 0x71f   :  { %10664 = vmatpush1.bf16.msra.mxu1 %v16026_v18  ;;  %10624 = vmatprep.subr.bf16.mxu0 %v15755_v45  ;;  %v4067_v18 = vld [vmem:[#allocation12 + $0xd28] sm:$0xff]  ;;  %v15915_v51 = vcombine.high %v3811_v14, %v3819_v44 }
 0x720   :  { %10665 = vmatprep.subr.bf16.mxu1 %v16011_v46  ;;  %v4075_v45 = vld [vmem:[#allocation12 + $0xd68] sm:$0xff]  ;;  %v15930_v46 = vcombine.low %v3827_v2, %v3835_v39 }
 0x721   :  { %v16171_v5 = vcombine.high %v4067_v18, %v4075_v45  ;;  %v16170_v3 = vcombine.low %v4067_v18, %v4075_v45  ;;  %v3779_v11 = vld [vmem:[#allocation12 + $0x428] sm:$0xff] }
 0x722   :  { %10625 = vmatpush1.bf16.msra.mxu0 %v15754_v61  ;;  %v3803_v61 = vld [vmem:[#allocation12 + $0x4e8] sm:$0xff] }
 0x723   :  { %10666 = vmatpush1.bf16.msra.mxu1 %v16010_v63  ;;  %10626 = vmatprep.subr.bf16.mxu0 %v15995_v13  ;;  %v4051_v63 = vld [vmem:[#allocation12 + $0xca8] sm:$0xff]  ;;  %v15899_v9 = vcombine.high %v3795_v23, %v3803_v61 }
 0x724   :  { %10667 = vmatprep.subr.bf16.mxu1 %v16251_v1  ;;  %v4059_v13 = vld [vmem:[#allocation12 + $0xce8] sm:$0xff]  ;;  %v15914_v1 = vcombine.low %v3811_v14, %v3819_v44 }
 0x725   :  { %v16155_v10 = vcombine.high %v4051_v63, %v4059_v13  ;;  %v16154_v22 = vcombine.low %v4051_v63, %v4059_v13  ;;  %v4275_v24 = vld [vmem:[#allocation12 + $0x13a8] sm:$0xff] }
 0x726   :  { %10627 = vmatpush2.bf16.msra.mxu0 %v15994_v12  ;;  %v3787_v12 = vld [vmem:[#allocation12 + $0x468] sm:$0xff] }
 0x727   :  { %10668 = vmatpush2.bf16.msra.mxu1 %v16250_v17  ;;  %10628 = vmatprep.subr.bf16.mxu0 %v15979_v7  ;;  %v4035_v17 = vld [vmem:[#allocation12 + $0xc28] sm:$0xff]  ;;  %v15883_v20 = vcombine.high %v3779_v11, %v3787_v12 }
 0x728   :  { %10669 = vmatprep.subr.bf16.mxu1 %v16235_v26  ;;  %v4043_v7 = vld [vmem:[#allocation12 + $0xc68] sm:$0xff]  ;;  %v15898_v26 = vcombine.low %v3795_v23, %v3803_v61 }
 0x729   :  { %v16139_v21 = vcombine.high %v4035_v17, %v4043_v7  ;;  %v16138_v32 = vcombine.low %v4035_v17, %v4043_v7  ;;  %v4259_v35 = vld [vmem:[#allocation12 + $0x1328] sm:$0xff] }
 0x72a   :  { %10629 = vmatpush2.bf16.msra.mxu0 %v15978_v27  ;;  %v4283_v27 = vld [vmem:[#allocation12 + $0x13e8] sm:$0xff] }
 0x72b   :  { %10670 = vmatpush2.bf16.msra.mxu1 %v16234_v29  ;;  %10630 = vmatprep.subr.bf16.mxu0 %v15963_v30  ;;  %v4531_v29 = vld [vmem:[#allocation12 + $0x1ba8] sm:$0xff]  ;;  %v16379_v33 = vcombine.high %v4275_v24, %v4283_v27 }
 0x72c   :  { %10671 = vmatprep.subr.bf16.mxu1 %v16219_v31  ;;  %v4539_v30 = vld [vmem:[#allocation12 + $0x1be8] sm:$0xff]  ;;  %v15882_v31 = vcombine.low %v3779_v11, %v3787_v12 }
 0x72d   :  { %v16635_v34 = vcombine.high %v4531_v29, %v4539_v30  ;;  %v16634_v2 = vcombine.low %v4531_v29, %v4539_v30  ;;  %v4243_v40 = vld [vmem:[#allocation12 + $0x12a8] sm:$0xff] }
 0x72e   :  { %10631 = vmatpush2.bf16.msra.mxu0 %v15962_v19  ;;  %v4267_v19 = vld [vmem:[#allocation12 + $0x1368] sm:$0xff] }
 0x72f   :  { %10672 = vmatpush2.bf16.msra.mxu1 %v16218_v36  ;;  %10632 = vmatprep.subr.bf16.mxu0 %v15947_v37  ;;  %v16378_v36 = vcombine.low %v4275_v24, %v4283_v27  ;;  %v4515_v37 = vld [vmem:[#allocation12 + $0x1b28] sm:$0xff]  ;;  %v16363_v39 = vcombine.high %v4259_v35, %v4267_v19  ;;  %v16362_v18 = vcombine.low %v4259_v35, %v4267_v19 }
 0x730   :  { %10673 = vmatprep.subr.bf16.mxu1 %v16203_v38  ;;  %v4523_v38 = vld [vmem:[#allocation12 + $0x1b68] sm:$0xff] }
 0x731   :  { %v4251_v41 = vld [vmem:[#allocation12 + $0x12e8] sm:$0xff] }
 0x732   :  { %10633 = vmatpush2.bf16.msra.mxu0 %v15946_v42  ;;  %v4227_v61 = vld [vmem:[#allocation12 + $0x1228] sm:$0xff]  ;;  %v16346_v11 = vcombine.low %v4243_v40, %v4251_v41 }
 0x733   :  { %10674 = vmatpush2.bf16.msra.mxu1 %v16202_v4  ;;  %10634 = vmatprep.subr.bf16.mxu0 %v15931_v43  ;;  %v16619_v4 = vcombine.high %v4515_v37, %v4523_v38  ;;  %v4499_v43 = vld [vmem:[#allocation12 + $0x1aa8] sm:$0xff] }
 0x734   :  { %10675 = vmatprep.subr.bf16.mxu1 %v16187_v57  ;;  %v4507_v57 = vld [vmem:[#allocation12 + $0x1ae8] sm:$0xff] }
 0x735   :  { %v4235_v63 = vld [vmem:[#allocation12 + $0x1268] sm:$0xff]  ;;  %v16602_v17 = vcombine.low %v4499_v43, %v4507_v57 }
 0x736   :  { %10635 = vmatpush2.bf16.msra.mxu0 %v15930_v46  ;;  %v16618_v46 = vcombine.low %v4515_v37, %v4523_v38  ;;  %v16331_v7 = vcombine.high %v4227_v61, %v4235_v63  ;;  %v4475_v24 = vld [vmem:[#allocation12 + $0x19e8] sm:$0xff]  ;;  %v16330_v27 = vcombine.low %v4227_v61, %v4235_v63 }
 0x737   :  { %10676 = vmatpush2.bf16.msra.mxu1 %v16186_v47  ;;  %10636 = vmatprep.subr.bf16.mxu0 %v15915_v51  ;;  %v16347_v47 = vcombine.high %v4243_v40, %v4251_v41  ;;  %v4459_v35 = vld [vmem:[#allocation12 + $0x1968] sm:$0xff] }
 0x738   :  { %10677 = vmatprep.subr.bf16.mxu1 %v16171_v5  ;;  %v4435_v40 = vld [vmem:[#allocation12 + $0x18a8] sm:$0xff] }
 0x739   :  { %v4443_v41 = vld [vmem:[#allocation12 + $0x18e8] sm:$0xff] }
 0x73a   :  { %10637 = vmatpush2.bf16.msra.mxu0 %v15914_v1  ;;  %v4483_v1 = vld [vmem:[#allocation12 + $0x1a28] sm:$0xff] }
 0x73b   :  { %10678 = vmatpush2.bf16.msra.mxu1 %v16170_v3  ;;  %10638 = vmatprep.subr.bf16.mxu0 %v15899_v9  ;;  %v4491_v3 = vld [vmem:[#allocation12 + $0x1a68] sm:$0xff] }
 0x73c   :  { %10679 = vmatprep.subr.bf16.mxu1 %v16155_v10  ;;  %v16586_v29 = vcombine.low %v4483_v1, %v4491_v3  ;;  %v4411_v61 = vld [vmem:[#allocation12 + $0x17e8] sm:$0xff] }
 0x73d   :  { %v4659_v63 = vld [vmem:[#allocation12 + $0x1fa8] sm:$0xff] }
 0x73e   :  { %10639 = vmatpush2.bf16.msra.mxu0 %v15898_v26  ;;  %v16587_v26 = vcombine.high %v4483_v1, %v4491_v3 }
 0x73f   :  { %10680 = vmatpush2.bf16.msra.mxu1 %v16154_v22  ;;  %10640 = vmatprep.subr.bf16.mxu0 %v15883_v20  ;;  %v4211_v22 = vld [vmem:[#allocation12 + $0x11a8] sm:$0xff] }
 0x740   :  { %10681 = vmatprep.subr.bf16.mxu1 %v16139_v21  ;;  %v4219_v20 = vld [vmem:[#allocation12 + $0x11e8] sm:$0xff] }
 0x741   :  { %v4467_v21 = vld [vmem:[#allocation12 + $0x19a8] sm:$0xff]  ;;  %v16315_v30 = vcombine.high %v4211_v22, %v4219_v20  ;;  %v16314_v19 = vcombine.low %v4211_v22, %v4219_v20 }
 0x742   :  { %10641 = vmatpush2.bf16.msra.mxu0 %v15882_v31  ;;  %v16571_v31 = vcombine.high %v4467_v21, %v4475_v24 }
 0x743   :  { %10682 = vmatpush2.bf16.msra.mxu1 %v16138_v32  ;;  %10692 = vmatprep.subr.bf16.mxu0 %v16379_v33  ;;  %v4195_v32 = vld [vmem:[#allocation12 + $0x1128] sm:$0xff] }
 0x744   :  { %10733 = vmatprep.subr.bf16.mxu1 %v16635_v34  ;;  %v4203_v33 = vld [vmem:[#allocation12 + $0x1168] sm:$0xff] }
 0x745   :  { %v10398_v42 = vpop.f32.mrf.mxu0  ;;  %10643 = vmatmul.mubr.bf16.vlgmr.msra.gmra.mxu0 %v18597_v60  ;;  %v4451_v34 = vld [vmem:[#allocation12 + $0x1928] sm:$0xff]  ;;  %v16299_v37 = vcombine.high %v4195_v32, %v4203_v33 }
 0x746   :  { %v10399_v14 = vadd.f32 %v10398_v42, %v18701_v53  ;;  %v10439_v44 = vpop.f32.mrf.mxu1  ;;  %10684 = vmatmul.mubr.bf16.vlgmr.msra.gmra.mxu1 %v18601_v15  ;;  %10693 = vmatpush1.bf16.msra.mxu0 %v16378_v36  ;;  %v16603_v53 = vcombine.high %v4499_v43, %v4507_v57  ;;  %v16570_v36 = vcombine.low %v4467_v21, %v4475_v24  ;;  %v4371_v24 = vld [vmem:[#allocation12 + $0x16a8] sm:$0xff] }
 0x747   :  { %10724 = vmatprep.mubr.bf16.mxu0 %v18617_v49  ;;  %10734 = vmatpush1.bf16.msra.mxu1 %v16634_v2  ;;  %v10400_v45 = vpop.f32.mrf.mxu0  ;;  %v16555_v38 = vcombine.high %v4451_v34, %v4459_v35  ;;  %v4179_v2 = vld [vmem:[#allocation12 + $0x10a8] sm:$0xff]  ;;  %v16298_v42 = vcombine.low %v4195_v32, %v4203_v33  ;;  %v16539_v57 = vcombine.high %v4435_v40, %v4443_v41 }
 0x748   :  { %v18711_v51 = vadd.f32 %v10439_v44, %v10399_v14  ;;  %10765 = vmatprep.mubr.bf16.mxu1 %v18619_v52  ;;  %v10401_v5 = vadd.f32 %v10400_v45, %v18705_v16  ;;  %v10441_v23 = vpop.f32.mrf.mxu1  ;;  %10694 = vmatprep.subr.bf16.mxu0 %v16363_v39  ;;  %v4187_v39 = vld [vmem:[#allocation12 + $0x10e8] sm:$0xff] }
 0x749   :  { %v10402_v13 = vpop.f32.mrf.mxu0  ;;  %10735 = vmatprep.subr.bf16.mxu1 %v16619_v4  ;;  %v16554_v4 = vcombine.low %v4451_v34, %v4459_v35  ;;  %v16283_v43 = vcombine.high %v4179_v2, %v4187_v39  ;;  %v4163_v14 = vld [vmem:[#allocation12 + $0x1028] sm:$0xff] }
 0x74a   :  { %v18715_v9 = vadd.f32 %v10441_v23, %v10401_v5  ;;  %v10443_v10 = vpop.f32.mrf.mxu1  ;;  %10695 = vmatpush1.bf16.msra.mxu0 %v16362_v18  ;;  %v4171_v44 = vld [vmem:[#allocation12 + $0x1068] sm:$0xff] }
 0x74b   :  { %10736 = vmatpush1.bf16.msra.mxu1 %v16618_v46  ;;  %v10403_v12 = vpop.f32.mrf.mxu0  ;;  %10696 = vmatprep.subr.bf16.mxu0 %v16347_v47  ;;  %v4419_v18 = vld [vmem:[#allocation12 + $0x1828] sm:$0xff]  ;;  %v16282_v46 = vcombine.low %v4179_v2, %v4187_v39  ;;  %v16538_v47 = vcombine.low %v4435_v40, %v4443_v41  ;;  %v16267_v5 = vcombine.high %v4163_v14, %v4171_v44 }
 0x74c   :  { %v10444_v16 = vpop.f32.mrf.mxu1  ;;  %10737 = vmatprep.subr.bf16.mxu1 %v16603_v53  ;;  %v4427_v45 = vld [vmem:[#allocation12 + $0x1868] sm:$0xff]  ;;  %v16266_v1 = vcombine.low %v4163_v14, %v4171_v44 }
 0x74d   :  { %v16523_v23 = vcombine.high %v4419_v18, %v4427_v45  ;;  %v4403_v53 = vld [vmem:[#allocation12 + $0x17a8] sm:$0xff]  ;;  %v16522_v3 = vcombine.low %v4419_v18, %v4427_v45 }
 0x74e   :  { %10697 = vmatpush1.bf16.msra.mxu0 %v16346_v11  ;;  %v4667_v13 = vld [vmem:[#allocation12 + $0x1fe8] sm:$0xff]  ;;  %v16507_v10 = vcombine.high %v4403_v53, %v4411_v61 }
 0x74f   :  { %10738 = vmatpush1.bf16.msra.mxu1 %v16602_v17  ;;  %10698 = vmatprep.subr.bf16.mxu0 %v16331_v7  ;;  %v16763_v11 = vcombine.high %v4659_v63, %v4667_v13  ;;  %v4387_v12 = vld [vmem:[#allocation12 + $0x1728] sm:$0xff]  ;;  %v16762_v22 = vcombine.low %v4659_v63, %v4667_v13 }
 0x750   :  { %10739 = vmatprep.subr.bf16.mxu1 %v16587_v26  ;;  %v4395_v17 = vld [vmem:[#allocation12 + $0x1768] sm:$0xff]  ;;  %v16506_v26 = vcombine.low %v4403_v53, %v4411_v61 }
 0x751   :  { %v4643_v7 = vld [vmem:[#allocation12 + $0x1f28] sm:$0xff]  ;;  %v16491_v20 = vcombine.high %v4387_v12, %v4395_v17 }
 0x752   :  { %10699 = vmatpush1.bf16.msra.mxu0 %v16330_v27  ;;  %v4651_v16 = vld [vmem:[#allocation12 + $0x1f68] sm:$0xff] }
 0x753   :  { %10740 = vmatpush1.bf16.msra.mxu1 %v16586_v29  ;;  %10700 = vmatprep.subr.bf16.mxu0 %v16315_v30  ;;  %v16747_v21 = vcombine.high %v4643_v7, %v4651_v16  ;;  %v4379_v27 = vld [vmem:[#allocation12 + $0x16e8] sm:$0xff]  ;;  %v16746_v32 = vcombine.low %v4643_v7, %v4651_v16 }
 0x754   :  { %10741 = vmatprep.subr.bf16.mxu1 %v16571_v31  ;;  %v4627_v29 = vld [vmem:[#allocation12 + $0x1ea8] sm:$0xff]  ;;  %v16490_v31 = vcombine.low %v4387_v12, %v4395_v17  ;;  %v16475_v33 = vcombine.high %v4371_v24, %v4379_v27 }
 0x755   :  { %v4635_v30 = vld [vmem:[#allocation12 + $0x1ee8] sm:$0xff] }
 0x756   :  { %10701 = vmatpush1.bf16.msra.mxu0 %v16314_v19  ;;  %v16731_v34 = vcombine.high %v4627_v29, %v4635_v30  ;;  %v4355_v35 = vld [vmem:[#allocation12 + $0x1628] sm:$0xff]  ;;  %v16730_v2 = vcombine.low %v4627_v29, %v4635_v30  ;;  %v3764_v30 = vld [vmem:[#allocation12 + $0x3b0] sm:$0xff] }
 0x757   :  { %10742 = vmatpush1.bf16.msra.mxu1 %v16570_v36  ;;  %10702 = vmatprep.subr.bf16.mxu0 %v16299_v37  ;;  %v4363_v19 = vld [vmem:[#allocation12 + $0x1668] sm:$0xff] }
 0x758   :  { %10743 = vmatprep.subr.bf16.mxu1 %v16555_v38  ;;  %v4611_v36 = vld [vmem:[#allocation12 + $0x1e28] sm:$0xff]  ;;  %v16474_v38 = vcombine.low %v4371_v24, %v4379_v27  ;;  %v16459_v39 = vcombine.high %v4355_v35, %v4363_v19 }
 0x759   :  { %v4619_v37 = vld [vmem:[#allocation12 + $0x1e68] sm:$0xff] }
 0x75a   :  { %10703 = vmatpush1.bf16.msra.mxu0 %v16298_v42  ;;  %v16715_v40 = vcombine.high %v4611_v36, %v4619_v37  ;;  %v4339_v41 = vld [vmem:[#allocation12 + $0x15a8] sm:$0xff]  ;;  %v16714_v14 = vcombine.low %v4611_v36, %v4619_v37  ;;  %v3748_v37 = vld [vmem:[#allocation12 + $0x330] sm:$0xff] }
 0x75b   :  { %10744 = vmatpush1.bf16.msra.mxu1 %v16554_v4  ;;  %10704 = vmatprep.subr.bf16.mxu0 %v16283_v43  ;;  %v4347_v42 = vld [vmem:[#allocation12 + $0x15e8] sm:$0xff] }
 0x75c   :  { %10745 = vmatprep.subr.bf16.mxu1 %v16539_v57  ;;  %v4595_v4 = vld [vmem:[#allocation12 + $0x1da8] sm:$0xff]  ;;  %v16458_v57 = vcombine.low %v4355_v35, %v4363_v19  ;;  %v16443_v44 = vcombine.high %v4339_v41, %v4347_v42 }
 0x75d   :  { %v4603_v43 = vld [vmem:[#allocation12 + $0x1de8] sm:$0xff] }
 0x75e   :  { %10705 = vmatpush1.bf16.msra.mxu0 %v16282_v46  ;;  %v16699_v18 = vcombine.high %v4595_v4, %v4603_v43  ;;  %v4323_v45 = vld [vmem:[#allocation12 + $0x1528] sm:$0xff]  ;;  %v16698_v53 = vcombine.low %v4595_v4, %v4603_v43  ;;  %v3732_v4 = vld [vmem:[#allocation12 + $0x2b0] sm:$0xff] }
 0x75f   :  { %10746 = vmatpush1.bf16.msra.mxu1 %v16538_v47  ;;  %10706 = vmatprep.subr.bf16.mxu0 %v16267_v5  ;;  %v4331_v46 = vld [vmem:[#allocation12 + $0x1568] sm:$0xff]  ;;  %v3740_v43 = vld [vmem:[#allocation12 + $0x2f0] sm:$0xff] }
 0x760   :  { %10747 = vmatprep.subr.bf16.mxu1 %v16523_v23  ;;  %v4579_v47 = vld [vmem:[#allocation12 + $0x1d28] sm:$0xff]  ;;  %v16442_v23 = vcombine.low %v4339_v41, %v4347_v42  ;;  %v16427_v61 = vcombine.high %v4323_v45, %v4331_v46 }
 0x761   :  { %v4587_v5 = vld [vmem:[#allocation12 + $0x1d68] sm:$0xff] }
 0x762   :  { %10707 = vmatpush1.bf16.msra.mxu0 %v16266_v1  ;;  %v16683_v63 = vcombine.high %v4579_v47, %v4587_v5  ;;  %v4307_v13 = vld [vmem:[#allocation12 + $0x14a8] sm:$0xff]  ;;  %v16682_v12 = vcombine.low %v4579_v47, %v4587_v5 }
 0x763   :  { %10748 = vmatpush1.bf16.msra.mxu1 %v16522_v3  ;;  %10708 = vmatprep.subr.bf16.mxu0 %v16507_v10  ;;  %v4315_v1 = vld [vmem:[#allocation12 + $0x14e8] sm:$0xff] }
 0x764   :  { %10749 = vmatprep.subr.bf16.mxu1 %v16763_v11  ;;  %v4563_v3 = vld [vmem:[#allocation12 + $0x1ca8] sm:$0xff]  ;;  %v16426_v11 = vcombine.low %v4323_v45, %v4331_v46  ;;  %v16411_v17 = vcombine.high %v4307_v13, %v4315_v1 }
 0x765   :  { %v4571_v10 = vld [vmem:[#allocation12 + $0x1ce8] sm:$0xff] }
 0x766   :  { %10709 = vmatpush2.bf16.msra.mxu0 %v16506_v26  ;;  %v16667_v7 = vcombine.high %v4563_v3, %v4571_v10  ;;  %v4291_v16 = vld [vmem:[#allocation12 + $0x1428] sm:$0xff]  ;;  %v16666_v24 = vcombine.low %v4563_v3, %v4571_v10 }
 0x767   :  { %10750 = vmatpush2.bf16.msra.mxu1 %v16762_v22  ;;  %10710 = vmatprep.subr.bf16.mxu0 %v16491_v20  ;;  %v4299_v26 = vld [vmem:[#allocation12 + $0x1468] sm:$0xff] }
 0x768   :  { %10751 = vmatprep.subr.bf16.mxu1 %v16747_v21  ;;  %v4547_v22 = vld [vmem:[#allocation12 + $0x1c28] sm:$0xff]  ;;  %v16410_v21 = vcombine.low %v4307_v13, %v4315_v1  ;;  %v16395_v27 = vcombine.high %v4291_v16, %v4299_v26  ;;  %v3716_v13 = vld [vmem:[#allocation12 + $0x230] sm:$0xff] }
 0x769   :  { %v4555_v20 = vld [vmem:[#allocation12 + $0x1c68] sm:$0xff]  ;;  %v3724_v1 = vld [vmem:[#allocation12 + $0x270] sm:$0xff] }
 0x76a   :  { %10711 = vmatpush2.bf16.msra.mxu0 %v16490_v31  ;;  %v16651_v29 = vcombine.high %v4547_v22, %v4555_v20  ;;  %v3772_v31 = vld [vmem:[#allocation12 + $0x3f0] sm:$0xff]  ;;  %v16650_v35 = vcombine.low %v4547_v22, %v4555_v20  ;;  %v15821_v22 = vcombine.high %v3716_v13, %v3724_v1 }
 0x76b   :  { %10752 = vmatpush2.bf16.msra.mxu1 %v16746_v32  ;;  %10712 = vmatprep.subr.bf16.mxu0 %v16475_v33  ;;  %v4020_v32 = vld [vmem:[#allocation12 + $0xbb0] sm:$0xff]  ;;  %v15869_v19 = vcombine.high %v3764_v30, %v3772_v31 }
 0x76c   :  { %10753 = vmatprep.subr.bf16.mxu1 %v16731_v34  ;;  %v4028_v33 = vld [vmem:[#allocation12 + $0xbf0] sm:$0xff]  ;;  %v16394_v34 = vcombine.low %v4291_v16, %v4299_v26 }
 0x76d   :  { %v16125_v36 = vcombine.high %v4020_v32, %v4028_v33  ;;  %v16124_v41 = vcombine.low %v4020_v32, %v4028_v33 }
 0x76e   :  { %10713 = vmatpush2.bf16.msra.mxu0 %v16474_v38  ;;  %v3756_v38 = vld [vmem:[#allocation12 + $0x370] sm:$0xff] }
 0x76f   :  { %10754 = vmatpush2.bf16.msra.mxu1 %v16730_v2  ;;  %10714 = vmatprep.subr.bf16.mxu0 %v16459_v39  ;;  %v15868_v2 = vcombine.low %v3764_v30, %v3772_v31  ;;  %v4004_v39 = vld [vmem:[#allocation12 + $0xb30] sm:$0xff]  ;;  %v15853_v42 = vcombine.high %v3748_v37, %v3756_v38  ;;  %v15852_v46 = vcombine.low %v3748_v37, %v3756_v38 }
 0x770   :  { %10755 = vmatprep.subr.bf16.mxu1 %v16715_v40  ;;  %v4012_v40 = vld [vmem:[#allocation12 + $0xb70] sm:$0xff]  ;;  %v15820_v31 = vcombine.low %v3716_v13, %v3724_v1 }
 0x771   :  { %v3964_v30 = vld [vmem:[#allocation12 + $0x9f0] sm:$0xff] }
 0x772   :  { %10715 = vmatpush2.bf16.msra.mxu0 %v16458_v57  ;;  %v3948_v37 = vld [vmem:[#allocation12 + $0x970] sm:$0xff] }
 0x773   :  { %10756 = vmatpush2.bf16.msra.mxu1 %v16714_v14  ;;  %10716 = vmatprep.subr.bf16.mxu0 %v16443_v44  ;;  %v16109_v14 = vcombine.high %v4004_v39, %v4012_v40  ;;  %v3988_v44 = vld [vmem:[#allocation12 + $0xab0] sm:$0xff] }
 0x774   :  { %10757 = vmatprep.subr.bf16.mxu1 %v16699_v18  ;;  %v3996_v18 = vld [vmem:[#allocation12 + $0xaf0] sm:$0xff] }
 0x775   :  { %v16092_v26 = vcombine.low %v3988_v44, %v3996_v18  ;;  %v3892_v1 = vld [vmem:[#allocation12 + $0x7b0] sm:$0xff] }
 0x776   :  { %10717 = vmatpush2.bf16.msra.mxu0 %v16442_v23  ;;  %v16108_v23 = vcombine.low %v4004_v39, %v4012_v40 }
 0x777   :  { %10758 = vmatpush2.bf16.msra.mxu1 %v16698_v53  ;;  %10718 = vmatprep.subr.bf16.mxu0 %v16427_v61  ;;  %v15837_v53 = vcombine.high %v3732_v4, %v3740_v43 }
 0x778   :  { %10759 = vmatprep.subr.bf16.mxu1 %v16683_v63  ;;  %v16093_v63 = vcombine.high %v3988_v44, %v3996_v18 }
 0x77a   :  { %10719 = vmatpush2.bf16.msra.mxu0 %v16426_v11  ;;  %v3972_v11 = vld [vmem:[#allocation12 + $0xa30] sm:$0xff] }
 0x77b   :  { %10760 = vmatpush2.bf16.msra.mxu1 %v16682_v12  ;;  %10720 = vmatprep.subr.bf16.mxu0 %v16411_v17  ;;  %v3980_v12 = vld [vmem:[#allocation12 + $0xa70] sm:$0xff] }
 0x77c   :  { %10761 = vmatprep.subr.bf16.mxu1 %v16667_v7  ;;  %v15836_v7 = vcombine.low %v3732_v4, %v3740_v43  ;;  %v16076_v32 = vcombine.low %v3972_v11, %v3980_v12  ;;  %v3924_v4 = vld [vmem:[#allocation12 + $0x8b0] sm:$0xff] }
 0x77d   :  { %v3932_v43 = vld [vmem:[#allocation12 + $0x8f0] sm:$0xff] }
 0x77e   :  { %10721 = vmatpush2.bf16.msra.mxu0 %v16410_v21  ;;  %v16077_v21 = vcombine.high %v3972_v11, %v3980_v12  ;;  %v16029_v18 = vcombine.high %v3924_v4, %v3932_v43  ;;  %v4148_v11 = vld [vmem:[#allocation12 + $0xfb0] sm:$0xff] }
 0x77f   :  { %10762 = vmatpush2.bf16.msra.mxu1 %v16666_v24  ;;  %10722 = vmatprep.subr.bf16.mxu0 %v16395_v27  ;;  %v3700_v24 = vld [vmem:[#allocation12 + $0x1b0] sm:$0xff] }
 0x780   :  { %10763 = vmatprep.subr.bf16.mxu1 %v16651_v29  ;;  %v3708_v27 = vld [vmem:[#allocation12 + $0x1f0] sm:$0xff] }
 0x781   :  { %v3956_v29 = vld [vmem:[#allocation12 + $0x9b0] sm:$0xff]  ;;  %v15805_v33 = vcombine.high %v3700_v24, %v3708_v27  ;;  %v15804_v38 = vcombine.low %v3700_v24, %v3708_v27 }
 0x782   :  { %10723 = vmatpush2.bf16.msra.mxu0 %v16394_v34  ;;  %v16061_v34 = vcombine.high %v3956_v29, %v3964_v30  ;;  %v4156_v12 = vld [vmem:[#allocation12 + $0xff0] sm:$0xff] }
 0x783   :  { %10764 = vmatpush2.bf16.msra.mxu1 %v16650_v35  ;;  %10774 = vmatprep.subr.bf16.mxu0 %v15869_v19  ;;  %v3684_v35 = vld [vmem:[#allocation12 + $0x130] sm:$0xff] }
 0x784   :  { %10815 = vmatprep.subr.bf16.mxu1 %v16125_v36  ;;  %v3692_v19 = vld [vmem:[#allocation12 + $0x170] sm:$0xff] }
 0x785   :  { %v10480_v57 = vpop.f32.mrf.mxu0  ;;  %10725 = vmatmul.mubr.bf16.vlgmr.msra.gmra.mxu0 %v18633_v54  ;;  %v3940_v36 = vld [vmem:[#allocation12 + $0x930] sm:$0xff]  ;;  %v15789_v39 = vcombine.high %v3684_v35, %v3692_v19 }
 0x786   :  { %v10521_v45 = vpop.f32.mrf.mxu1  ;;  %10766 = vmatmul.mubr.bf16.vlgmr.msra.gmra.mxu1 %v18635_v56  ;;  %10775 = vmatpush1.bf16.msra.mxu0 %v15868_v2  ;;  %v16060_v2 = vcombine.low %v3956_v29, %v3964_v30  ;;  %v16045_v40 = vcombine.high %v3940_v36, %v3948_v37  ;;  %v4140_v24 = vld [vmem:[#allocation12 + $0xf70] sm:$0xff]  ;;  %v16252_v29 = vcombine.low %v4148_v11, %v4156_v12 }
 0x787   :  { %v18719_v47 = vadd.f32 %v10521_v45, %v10480_v57  ;;  %10806 = vmatprep.mubr.bf16.mxu0 %v18595_v58  ;;  %10816 = vmatpush1.bf16.msra.mxu1 %v16124_v41  ;;  %v10482_v5 = vpop.f32.mrf.mxu0  ;;  %v3668_v41 = vld [vmem:[#allocation12 + $0xb0] sm:$0xff]  ;;  %v15788_v57 = vcombine.low %v3684_v35, %v3692_v19 }
 0x788   :  { %10847 = vmatprep.mubr.bf16.mxu1 %v18599_v59  ;;  %v10523_v61 = vpop.f32.mrf.mxu1  ;;  %10776 = vmatprep.subr.bf16.mxu0 %v15853_v42  ;;  %v3676_v42 = vld [vmem:[#allocation12 + $0xf0] sm:$0xff] }
 0x789   :  { %v18723_v3 = vadd.f32 %v10523_v61, %v10482_v5  ;;  %v10484_v10 = vpop.f32.mrf.mxu0  ;;  %10817 = vmatprep.subr.bf16.mxu1 %v16109_v14  ;;  %v16044_v14 = vcombine.low %v3940_v36, %v3948_v37  ;;  %v15773_v44 = vcombine.high %v3668_v41, %v3676_v42  ;;  %v3652_v45 = vld [vmem:[#allocation12 + $0x30] sm:$0xff]  ;;  %v16028_v61 = vcombine.low %v3924_v4, %v3932_v43 }
 0x78a   :  { %v10525_v17 = vpop.f32.mrf.mxu1  ;;  %10777 = vmatpush1.bf16.msra.mxu0 %v15852_v46  ;;  %v3660_v46 = vld [vmem:[#allocation12 + $0x70] sm:$0xff] }
 0x78b   :  { %10818 = vmatpush1.bf16.msra.mxu1 %v16108_v23  ;;  %v10485_v16 = vpop.f32.mrf.mxu0  ;;  %10778 = vmatprep.subr.bf16.mxu0 %v15837_v53  ;;  %v3908_v5 = vld [vmem:[#allocation12 + $0x830] sm:$0xff]  ;;  %v15772_v53 = vcombine.low %v3668_v41, %v3676_v42  ;;  %v15756_v17 = vcombine.low %v3652_v45, %v3660_v46 }
 0x78c   :  { %v10526_v20 = vpop.f32.mrf.mxu1  ;;  %10819 = vmatprep.subr.bf16.mxu1 %v16093_v63  ;;  %v3916_v23 = vld [vmem:[#allocation12 + $0x870] sm:$0xff]  ;;  %v15757_v63 = vcombine.high %v3652_v45, %v3660_v46 }
 0x78d   :  { %v16013_v13 = vcombine.high %v3908_v5, %v3916_v23  ;;  %v3900_v10 = vld [vmem:[#allocation12 + $0x7f0] sm:$0xff] }
 0x78e   :  { %10779 = vmatpush1.bf16.msra.mxu0 %v15836_v7  ;;  %v16012_v7 = vcombine.low %v3908_v5, %v3916_v23  ;;  %v15997_v16 = vcombine.high %v3892_v1, %v3900_v10  ;;  %v3884_v20 = vld [vmem:[#allocation12 + $0x770] sm:$0xff]  ;;  %v15996_v27 = vcombine.low %v3892_v1, %v3900_v10 }
 0x78f   :  { %10820 = vmatpush1.bf16.msra.mxu1 %v16092_v26  ;;  %10780 = vmatprep.subr.bf16.mxu0 %v15821_v22  ;;  %v16253_v26 = vcombine.high %v4148_v11, %v4156_v12  ;;  %v3876_v22 = vld [vmem:[#allocation12 + $0x730] sm:$0xff] }
 0x790   :  { %10821 = vmatprep.subr.bf16.mxu1 %v16077_v21  ;;  %v4132_v21 = vld [vmem:[#allocation12 + $0xf30] sm:$0xff]  ;;  %v15981_v30 = vcombine.high %v3876_v22, %v3884_v20  ;;  %v15980_v19 = vcombine.low %v3876_v22, %v3884_v20 }
 0x791   :  { %v4124_v35 = vld [vmem:[#allocation12 + $0xef0] sm:$0xff]  ;;  %v16236_v36 = vcombine.low %v4132_v21, %v4140_v24 }
 0x792   :  { %10781 = vmatpush1.bf16.msra.mxu0 %v15820_v31  ;;  %v16237_v31 = vcombine.high %v4132_v21, %v4140_v24  ;;  %v4108_v41 = vld [vmem:[#allocation12 + $0xe70] sm:$0xff] }
 0x793   :  { %10822 = vmatpush1.bf16.msra.mxu1 %v16076_v32  ;;  %10782 = vmatprep.subr.bf16.mxu0 %v15805_v33  ;;  %v3860_v32 = vld [vmem:[#allocation12 + $0x6b0] sm:$0xff] }
 0x794   :  { %10823 = vmatprep.subr.bf16.mxu1 %v16061_v34  ;;  %v3868_v33 = vld [vmem:[#allocation12 + $0x6f0] sm:$0xff] }
 0x795   :  { %v4116_v34 = vld [vmem:[#allocation12 + $0xeb0] sm:$0xff]  ;;  %v15965_v37 = vcombine.high %v3860_v32, %v3868_v33  ;;  %v15964_v42 = vcombine.low %v3860_v32, %v3868_v33 }
 0x796   :  { %10783 = vmatpush1.bf16.msra.mxu0 %v15804_v38  ;;  %v16221_v38 = vcombine.high %v4116_v34, %v4124_v35  ;;  %v16220_v4 = vcombine.low %v4116_v34, %v4124_v35  ;;  %v4092_v45 = vld [vmem:[#allocation12 + $0xdf0] sm:$0xff] }
 0x797   :  { %10824 = vmatpush1.bf16.msra.mxu1 %v16060_v2  ;;  %10784 = vmatprep.subr.bf16.mxu0 %v15789_v39  ;;  %v3844_v2 = vld [vmem:[#allocation12 + $0x630] sm:$0xff] }
 0x798   :  { %10825 = vmatprep.subr.bf16.mxu1 %v16045_v40  ;;  %v3852_v39 = vld [vmem:[#allocation12 + $0x670] sm:$0xff] }
 0x799   :  { %v4100_v40 = vld [vmem:[#allocation12 + $0xe30] sm:$0xff]  ;;  %v15949_v43 = vcombine.high %v3844_v2, %v3852_v39  ;;  %v15948_v46 = vcombine.low %v3844_v2, %v3852_v39 }
 0x79a   :  { %10785 = vmatpush1.bf16.msra.mxu0 %v15788_v57  ;;  %v16205_v57 = vcombine.high %v4100_v40, %v4108_v41  ;;  %v16204_v5 = vcombine.low %v4100_v40, %v4108_v41  ;;  %v4076_v1 = vld [vmem:[#allocation12 + $0xd70] sm:$0xff] }
 0x79b   :  { %10826 = vmatpush1.bf16.msra.mxu1 %v16044_v14  ;;  %10786 = vmatprep.subr.bf16.mxu0 %v15773_v44  ;;  %v3828_v14 = vld [vmem:[#allocation12 + $0x5b0] sm:$0xff] }
 0x79c   :  { %10827 = vmatprep.subr.bf16.mxu1 %v16029_v18  ;;  %v3836_v44 = vld [vmem:[#allocation12 + $0x5f0] sm:$0xff] }
 0x79d   :  { %v4084_v18 = vld [vmem:[#allocation12 + $0xdb0] sm:$0xff]  ;;  %v15933_v23 = vcombine.high %v3828_v14, %v3836_v44  ;;  %v15932_v10 = vcombine.low %v3828_v14, %v3836_v44 }
 0x79e   :  { %10787 = vmatpush1.bf16.msra.mxu0 %v15772_v53  ;;  %v16189_v53 = vcombine.high %v4084_v18, %v4092_v45  ;;  %v16188_v11 = vcombine.low %v4084_v18, %v4092_v45  ;;  %v4060_v22 = vld [vmem:[#allocation12 + $0xcf0] sm:$0xff] }
 0x79f   :  { %10828 = vmatpush1.bf16.msra.mxu1 %v16028_v61  ;;  %10788 = vmatprep.subr.bf16.mxu0 %v15757_v63  ;;  %v3812_v61 = vld [vmem:[#allocation12 + $0x530] sm:$0xff] }
 0x7a0   :  { %10829 = vmatprep.subr.bf16.mxu1 %v16013_v13  ;;  %v3820_v63 = vld [vmem:[#allocation12 + $0x570] sm:$0xff] }
 0x7a1   :  { %v4068_v13 = vld [vmem:[#allocation12 + $0xd30] sm:$0xff]  ;;  %v15917_v12 = vcombine.high %v3812_v61, %v3820_v63  ;;  %v15916_v20 = vcombine.low %v3812_v61, %v3820_v63 }
 0x7a2   :  { %10789 = vmatpush1.bf16.msra.mxu0 %v15756_v17  ;;  %v16173_v17 = vcombine.high %v4068_v13, %v4076_v1  ;;  %v16172_v21 = vcombine.low %v4068_v13, %v4076_v1  ;;  %v4044_v32 = vld [vmem:[#allocation12 + $0xc70] sm:$0xff] }
 0x7a3   :  { %10830 = vmatpush1.bf16.msra.mxu1 %v16012_v7  ;;  %10790 = vmatprep.subr.bf16.mxu0 %v15997_v16  ;;  %v3796_v7 = vld [vmem:[#allocation12 + $0x4b0] sm:$0xff] }
 0x7a4   :  { %10831 = vmatprep.subr.bf16.mxu1 %v16253_v26  ;;  %v3804_v16 = vld [vmem:[#allocation12 + $0x4f0] sm:$0xff] }
 0x7a5   :  { %v4052_v26 = vld [vmem:[#allocation12 + $0xcb0] sm:$0xff]  ;;  %v15901_v24 = vcombine.high %v3796_v7, %v3804_v16  ;;  %v15900_v33 = vcombine.low %v3796_v7, %v3804_v16 }
 0x7a6   :  { %10791 = vmatpush2.bf16.msra.mxu0 %v15996_v27  ;;  %v16157_v27 = vcombine.high %v4052_v26, %v4060_v22  ;;  %v16156_v34 = vcombine.low %v4052_v26, %v4060_v22  ;;  %v4540_v2 = vld [vmem:[#allocation12 + $0x1bf0] sm:$0xff] }
 0x7a7   :  { %10832 = vmatpush2.bf16.msra.mxu1 %v16252_v29  ;;  %10792 = vmatprep.subr.bf16.mxu0 %v15981_v30  ;;  %v3780_v29 = vld [vmem:[#allocation12 + $0x430] sm:$0xff] }
 0x7a8   :  { %10833 = vmatprep.subr.bf16.mxu1 %v16237_v31  ;;  %v3788_v30 = vld [vmem:[#allocation12 + $0x470] sm:$0xff] }
 0x7a9   :  { %v4036_v31 = vld [vmem:[#allocation12 + $0xc30] sm:$0xff]  ;;  %v15885_v35 = vcombine.high %v3780_v29, %v3788_v30  ;;  %v15884_v39 = vcombine.low %v3780_v29, %v3788_v30 }
 0x7aa   :  { %10793 = vmatpush2.bf16.msra.mxu0 %v15980_v19  ;;  %v16141_v19 = vcombine.high %v4036_v31, %v4044_v32  ;;  %v16140_v40 = vcombine.low %v4036_v31, %v4044_v32  ;;  %v4516_v14 = vld [vmem:[#allocation12 + $0x1b30] sm:$0xff] }
 0x7ab   :  { %10834 = vmatpush2.bf16.msra.mxu1 %v16236_v36  ;;  %10794 = vmatprep.subr.bf16.mxu0 %v15965_v37  ;;  %v4276_v36 = vld [vmem:[#allocation12 + $0x13b0] sm:$0xff] }
 0x7ac   :  { %10835 = vmatprep.subr.bf16.mxu1 %v16221_v38  ;;  %v4284_v37 = vld [vmem:[#allocation12 + $0x13f0] sm:$0xff] }
 0x7ad   :  { %v4532_v38 = vld [vmem:[#allocation12 + $0x1bb0] sm:$0xff]  ;;  %v16381_v41 = vcombine.high %v4276_v36, %v4284_v37 }
 0x7ae   :  { %10795 = vmatpush2.bf16.msra.mxu0 %v15964_v42  ;;  %v16637_v42 = vcombine.high %v4532_v38, %v4540_v2  ;;  %v4524_v44 = vld [vmem:[#allocation12 + $0x1b70] sm:$0xff]  ;;  %v16636_v18 = vcombine.low %v4532_v38, %v4540_v2 }
 0x7af   :  { %10836 = vmatpush2.bf16.msra.mxu1 %v16220_v4  ;;  %10796 = vmatprep.subr.bf16.mxu0 %v15949_v43  ;;  %v4260_v4 = vld [vmem:[#allocation12 + $0x1330] sm:$0xff] }
 0x7b0   :  { %10837 = vmatprep.subr.bf16.mxu1 %v16205_v57  ;;  %v4268_v43 = vld [vmem:[#allocation12 + $0x1370] sm:$0xff]  ;;  %v16380_v57 = vcombine.low %v4276_v36, %v4284_v37 }
 0x7b1   :  { %v16365_v45 = vcombine.high %v4260_v4, %v4268_v43  ;;  %v4500_v61 = vld [vmem:[#allocation12 + $0x1ab0] sm:$0xff] }
 0x7b2   :  { %10797 = vmatpush2.bf16.msra.mxu0 %v15948_v46  ;;  %v4244_v46 = vld [vmem:[#allocation12 + $0x12b0] sm:$0xff] }
 0x7b3   :  { %10838 = vmatpush2.bf16.msra.mxu1 %v16204_v5  ;;  %10798 = vmatprep.subr.bf16.mxu0 %v15933_v23  ;;  %v4252_v5 = vld [vmem:[#allocation12 + $0x12f0] sm:$0xff] }
 0x7b4   :  { %10839 = vmatprep.subr.bf16.mxu1 %v16189_v53  ;;  %v16621_v53 = vcombine.high %v4516_v14, %v4524_v44  ;;  %v4508_v63 = vld [vmem:[#allocation12 + $0x1af0] sm:$0xff]  ;;  %v16348_v31 = vcombine.low %v4244_v46, %v4252_v5 }
 0x7b5   :  { %v4228_v22 = vld [vmem:[#allocation12 + $0x1230] sm:$0xff] }
 0x7b6   :  { %10799 = vmatpush2.bf16.msra.mxu0 %v15932_v10  ;;  %v16364_v10 = vcombine.low %v4260_v4, %v4268_v43  ;;  %v4220_v36 = vld [vmem:[#allocation12 + $0x11f0] sm:$0xff] }
 0x7b7   :  { %10840 = vmatpush2.bf16.msra.mxu1 %v16188_v11  ;;  %10800 = vmatprep.subr.bf16.mxu0 %v15917_v12  ;;  %v16620_v12 = vcombine.low %v4516_v14, %v4524_v44  ;;  %v4468_v37 = vld [vmem:[#allocation12 + $0x19b0] sm:$0xff] }
 0x7b8   :  { %10841 = vmatprep.subr.bf16.mxu1 %v16173_v17  ;;  %v16349_v17 = vcombine.high %v4244_v46, %v4252_v5  ;;  %v4476_v38 = vld [vmem:[#allocation12 + $0x19f0] sm:$0xff] }
 0x7b9   :  { %v4204_v4 = vld [vmem:[#allocation12 + $0x1170] sm:$0xff]  ;;  %v16572_v44 = vcombine.low %v4468_v37, %v4476_v38 }
 0x7ba   :  { %10801 = vmatpush2.bf16.msra.mxu0 %v15916_v20  ;;  %v4236_v20 = vld [vmem:[#allocation12 + $0x1270] sm:$0xff] }
 0x7bb   :  { %10842 = vmatpush2.bf16.msra.mxu1 %v16172_v21  ;;  %10802 = vmatprep.subr.bf16.mxu0 %v15901_v24  ;;  %v4484_v24 = vld [vmem:[#allocation12 + $0x1a30] sm:$0xff]  ;;  %v16332_v2 = vcombine.low %v4228_v22, %v4236_v20 }
 0x7bc   :  { %10843 = vmatprep.subr.bf16.mxu1 %v16157_v27  ;;  %v4492_v27 = vld [vmem:[#allocation12 + $0x1a70] sm:$0xff] }
 0x7bd   :  { %v4452_v43 = vld [vmem:[#allocation12 + $0x1930] sm:$0xff] }
 0x7be   :  { %10803 = vmatpush2.bf16.msra.mxu0 %v15900_v33  ;;  %v16604_v33 = vcombine.low %v4500_v61, %v4508_v63  ;;  %v4180_v46 = vld [vmem:[#allocation12 + $0x10b0] sm:$0xff] }
 0x7bf   :  { %10844 = vmatpush2.bf16.msra.mxu1 %v16156_v34  ;;  %10804 = vmatprep.subr.bf16.mxu0 %v15885_v35  ;;  %v16333_v34 = vcombine.high %v4228_v22, %v4236_v20  ;;  %v16589_v35 = vcombine.high %v4484_v24, %v4492_v27  ;;  %v4188_v5 = vld [vmem:[#allocation12 + $0x10f0] sm:$0xff] }
 0x7c0   :  { %10845 = vmatprep.subr.bf16.mxu1 %v16141_v19  ;;  %v4212_v19 = vld [vmem:[#allocation12 + $0x11b0] sm:$0xff] }
 0x7c1   :  { %v16316_v14 = vcombine.low %v4212_v19, %v4220_v36  ;;  %v4404_v20 = vld [vmem:[#allocation12 + $0x17b0] sm:$0xff] }
 0x7c2   :  { %10805 = vmatpush2.bf16.msra.mxu0 %v15884_v39  ;;  %v16588_v39 = vcombine.low %v4484_v24, %v4492_v27  ;;  %v4660_v24 = vld [vmem:[#allocation12 + $0x1fb0] sm:$0xff] }
 0x7c3   :  { %10846 = vmatpush2.bf16.msra.mxu1 %v16140_v40  ;;  %10856 = vmatprep.subr.bf16.mxu0 %v16381_v41  ;;  %v16317_v40 = vcombine.high %v4212_v19, %v4220_v36  ;;  %v16573_v41 = vcombine.high %v4468_v37, %v4476_v38  ;;  %v4668_v27 = vld [vmem:[#allocation12 + $0x1ff0] sm:$0xff] }
 0x7c4   :  { %10897 = vmatprep.subr.bf16.mxu1 %v16637_v42  ;;  %v4196_v42 = vld [vmem:[#allocation12 + $0x1130] sm:$0xff]  ;;  %v16764_v37 = vcombine.low %v4660_v24, %v4668_v27 }
 0x7c5   :  { %v10562_v23 = vpop.f32.mrf.mxu0  ;;  %10807 = vmatmul.mubr.bf16.vlgmr.msra.gmra.mxu0 %v18597_v60  ;;  %v4652_v19 = vld [vmem:[#allocation12 + $0x1f70] sm:$0xff] }
 0x7c6   :  { %v10563_v13 = vadd.f32 %v10562_v23, %v18719_v47  ;;  %v10603_v1 = vpop.f32.mrf.mxu1  ;;  %10848 = vmatmul.mubr.bf16.vlgmr.msra.gmra.mxu1 %v18601_v15  ;;  %10857 = vmatpush1.bf16.msra.mxu0 %v16380_v57  ;;  %v16605_v47 = vcombine.high %v4500_v61, %v4508_v63  ;;  %v4460_v57 = vld [vmem:[#allocation12 + $0x1970] sm:$0xff]  ;;  %v16300_v61 = vcombine.low %v4196_v42, %v4204_v4 }
 0x7c7   :  { %10888 = vmatprep.mubr.bf16.mxu0 %v18617_v49  ;;  %10898 = vmatpush1.bf16.msra.mxu1 %v16636_v18  ;;  %v10564_v11 = vpop.f32.mrf.mxu0  ;;  %v16301_v18 = vcombine.high %v4196_v42, %v4204_v4  ;;  %v4436_v23 = vld [vmem:[#allocation12 + $0x18b0] sm:$0xff]  ;;  %v16556_v63 = vcombine.low %v4452_v43, %v4460_v57 }
 0x7c8   :  { %v18729_v7 = vadd.f32 %v10603_v1, %v10563_v13  ;;  %10929 = vmatprep.mubr.bf16.mxu1 %v18619_v52  ;;  %v10565_v16 = vadd.f32 %v10564_v11, %v18723_v3  ;;  %v10605_v26 = vpop.f32.mrf.mxu1  ;;  %10858 = vmatprep.subr.bf16.mxu0 %v16365_v45  ;;  %v16557_v45 = vcombine.high %v4452_v43, %v4460_v57  ;;  %v4172_v11 = vld [vmem:[#allocation12 + $0x1070] sm:$0xff] }
 0x7c9   :  { %v10566_v21 = vpop.f32.mrf.mxu0  ;;  %10899 = vmatprep.subr.bf16.mxu1 %v16621_v53  ;;  %v4444_v53 = vld [vmem:[#allocation12 + $0x18f0] sm:$0xff]  ;;  %v16285_v13 = vcombine.high %v4180_v46, %v4188_v5 }
 0x7ca   :  { %v18733_v29 = vadd.f32 %v10605_v26, %v10565_v16  ;;  %v10607_v30 = vpop.f32.mrf.mxu1  ;;  %10859 = vmatpush1.bf16.msra.mxu0 %v16364_v10  ;;  %v16541_v1 = vcombine.high %v4436_v23, %v4444_v53  ;;  %v4164_v10 = vld [vmem:[#allocation12 + $0x1030] sm:$0xff]  ;;  %v16284_v16 = vcombine.low %v4180_v46, %v4188_v5  ;;  %v16540_v26 = vcombine.low %v4436_v23, %v4444_v53 }
 0x7cb   :  { %10900 = vmatpush1.bf16.msra.mxu1 %v16620_v12  ;;  %v10567_v32 = vpop.f32.mrf.mxu0  ;;  %10860 = vmatprep.subr.bf16.mxu0 %v16349_v17  ;;  %v4420_v12 = vld [vmem:[#allocation12 + $0x1830] sm:$0xff]  ;;  %v16268_v30 = vcombine.low %v4164_v10, %v4172_v11 }
 0x7cc   :  { %v10608_v3 = vpop.f32.mrf.mxu1  ;;  %10901 = vmatprep.subr.bf16.mxu1 %v16605_v47  ;;  %v4428_v17 = vld [vmem:[#allocation12 + $0x1870] sm:$0xff]  ;;  %v16269_v47 = vcombine.high %v4164_v10, %v4172_v11 }
 0x7cd   :  { %v16525_v22 = vcombine.high %v4420_v12, %v4428_v17  ;;  %v4412_v21 = vld [vmem:[#allocation12 + $0x17f0] sm:$0xff] }
 0x7ce   :  { %10861 = vmatpush1.bf16.msra.mxu0 %v16348_v31  ;;  %v16524_v31 = vcombine.low %v4420_v12, %v4428_v17  ;;  %v16509_v32 = vcombine.high %v4404_v20, %v4412_v21  ;;  %v4396_v3 = vld [vmem:[#allocation12 + $0x1770] sm:$0xff]  ;;  %v16508_v36 = vcombine.low %v4404_v20, %v4412_v21 }
 0x7cf   :  { %10902 = vmatpush1.bf16.msra.mxu1 %v16604_v33  ;;  %10862 = vmatprep.subr.bf16.mxu0 %v16333_v34  ;;  %v16765_v33 = vcombine.high %v4660_v24, %v4668_v27  ;;  %v4388_v34 = vld [vmem:[#allocation12 + $0x1730] sm:$0xff] }
 0x7d0   :  { %10903 = vmatprep.subr.bf16.mxu1 %v16589_v35  ;;  %v4644_v35 = vld [vmem:[#allocation12 + $0x1f30] sm:$0xff]  ;;  %v16493_v38 = vcombine.high %v4388_v34, %v4396_v3  ;;  %v16492_v4 = vcombine.low %v4388_v34, %v4396_v3 }
 0x7d1   :  { %v4636_v42 = vld [vmem:[#allocation12 + $0x1ef0] sm:$0xff]  ;;  %v16748_v43 = vcombine.low %v4644_v35, %v4652_v19 }
 0x7d2   :  { %10863 = vmatpush1.bf16.msra.mxu0 %v16332_v2  ;;  %v16749_v2 = vcombine.high %v4644_v35, %v4652_v19  ;;  %v4620_v46 = vld [vmem:[#allocation12 + $0x1e70] sm:$0xff] }
 0x7d3   :  { %10904 = vmatpush1.bf16.msra.mxu1 %v16588_v39  ;;  %10864 = vmatprep.subr.bf16.mxu0 %v16317_v40  ;;  %v4372_v39 = vld [vmem:[#allocation12 + $0x16b0] sm:$0xff] }
 0x7d4   :  { %10905 = vmatprep.subr.bf16.mxu1 %v16573_v41  ;;  %v4380_v40 = vld [vmem:[#allocation12 + $0x16f0] sm:$0xff] }
 0x7d5   :  { %v4628_v41 = vld [vmem:[#allocation12 + $0x1eb0] sm:$0xff]  ;;  %v16477_v57 = vcombine.high %v4372_v39, %v4380_v40  ;;  %v16476_v5 = vcombine.low %v4372_v39, %v4380_v40 }
 0x7d6   :  { %10865 = vmatpush1.bf16.msra.mxu0 %v16316_v14  ;;  %v16733_v14 = vcombine.high %v4628_v41, %v4636_v42  ;;  %v16732_v23 = vcombine.low %v4628_v41, %v4636_v42  ;;  %v4604_v10 = vld [vmem:[#allocation12 + $0x1df0] sm:$0xff] }
 0x7d7   :  { %10906 = vmatpush1.bf16.msra.mxu1 %v16572_v44  ;;  %10866 = vmatprep.subr.bf16.mxu0 %v16301_v18  ;;  %v4356_v44 = vld [vmem:[#allocation12 + $0x1630] sm:$0xff] }
 0x7d8   :  { %10907 = vmatprep.subr.bf16.mxu1 %v16557_v45  ;;  %v4364_v18 = vld [vmem:[#allocation12 + $0x1670] sm:$0xff] }
 0x7d9   :  { %v4612_v45 = vld [vmem:[#allocation12 + $0x1e30] sm:$0xff]  ;;  %v16461_v53 = vcombine.high %v4356_v44, %v4364_v18  ;;  %v16460_v11 = vcombine.low %v4356_v44, %v4364_v18  ;;  %v4029_v44 = vld [vmem:[#allocation12 + $0xbf8] sm:$0xff] }
 0x7da   :  { %10867 = vmatpush1.bf16.msra.mxu0 %v16300_v61  ;;  %v16717_v61 = vcombine.high %v4612_v45, %v4620_v46  ;;  %v16716_v12 = vcombine.low %v4612_v45, %v4620_v46  ;;  %v4588_v20 = vld [vmem:[#allocation12 + $0x1d70] sm:$0xff] }
 0x7db   :  { %10908 = vmatpush1.bf16.msra.mxu1 %v16556_v63  ;;  %10868 = vmatprep.subr.bf16.mxu0 %v16285_v13  ;;  %v4340_v63 = vld [vmem:[#allocation12 + $0x15b0] sm:$0xff] }
 0x7dc   :  { %10909 = vmatprep.subr.bf16.mxu1 %v16541_v1  ;;  %v4348_v13 = vld [vmem:[#allocation12 + $0x15f0] sm:$0xff] }
 0x7dd   :  { %v4596_v1 = vld [vmem:[#allocation12 + $0x1db0] sm:$0xff]  ;;  %v16445_v17 = vcombine.high %v4340_v63, %v4348_v13  ;;  %v16444_v21 = vcombine.low %v4340_v63, %v4348_v13  ;;  %v4005_v63 = vld [vmem:[#allocation12 + $0xb38] sm:$0xff] }
 0x7de   :  { %10869 = vmatpush1.bf16.msra.mxu0 %v16284_v16  ;;  %v16701_v16 = vcombine.high %v4596_v1, %v4604_v10  ;;  %v16700_v24 = vcombine.low %v4596_v1, %v4604_v10  ;;  %v4572_v34 = vld [vmem:[#allocation12 + $0x1cf0] sm:$0xff]  ;;  %v4013_v13 = vld [vmem:[#allocation12 + $0xb78] sm:$0xff] }
 0x7df   :  { %10910 = vmatpush1.bf16.msra.mxu1 %v16540_v26  ;;  %10870 = vmatprep.subr.bf16.mxu0 %v16269_v47  ;;  %v4324_v26 = vld [vmem:[#allocation12 + $0x1530] sm:$0xff] }
 0x7e0   :  { %10911 = vmatprep.subr.bf16.mxu1 %v16525_v22  ;;  %v4332_v47 = vld [vmem:[#allocation12 + $0x1570] sm:$0xff] }
 0x7e1   :  { %v4580_v22 = vld [vmem:[#allocation12 + $0x1d30] sm:$0xff]  ;;  %v16429_v27 = vcombine.high %v4324_v26, %v4332_v47  ;;  %v16428_v3 = vcombine.low %v4324_v26, %v4332_v47  ;;  %v3989_v26 = vld [vmem:[#allocation12 + $0xab8] sm:$0xff] }
 0x7e2   :  { %10871 = vmatpush1.bf16.msra.mxu0 %v16268_v30  ;;  %v16685_v30 = vcombine.high %v4580_v22, %v4588_v20  ;;  %v16684_v35 = vcombine.low %v4580_v22, %v4588_v20  ;;  %v4556_v39 = vld [vmem:[#allocation12 + $0x1c70] sm:$0xff]  ;;  %v3997_v47 = vld [vmem:[#allocation12 + $0xaf8] sm:$0xff] }
 0x7e3   :  { %10912 = vmatpush1.bf16.msra.mxu1 %v16524_v31  ;;  %10872 = vmatprep.subr.bf16.mxu0 %v16509_v32  ;;  %v4308_v31 = vld [vmem:[#allocation12 + $0x14b0] sm:$0xff] }
 0x7e4   :  { %10913 = vmatprep.subr.bf16.mxu1 %v16765_v33  ;;  %v4316_v32 = vld [vmem:[#allocation12 + $0x14f0] sm:$0xff] }
 0x7e5   :  { %v4564_v33 = vld [vmem:[#allocation12 + $0x1cb0] sm:$0xff]  ;;  %v16413_v19 = vcombine.high %v4308_v31, %v4316_v32  ;;  %v16412_v40 = vcombine.low %v4308_v31, %v4316_v32  ;;  %v16095_v32 = vcombine.high %v3989_v26, %v3997_v47 }
 0x7e6   :  { %10873 = vmatpush2.bf16.msra.mxu0 %v16508_v36  ;;  %v16669_v36 = vcombine.high %v4564_v33, %v4572_v34  ;;  %v16668_v41 = vcombine.low %v4564_v33, %v4572_v34  ;;  %v3717_v33 = vld [vmem:[#allocation12 + $0x238] sm:$0xff] }
 0x7e7   :  { %10914 = vmatpush2.bf16.msra.mxu1 %v16764_v37  ;;  %10874 = vmatprep.subr.bf16.mxu0 %v16493_v38  ;;  %v4292_v37 = vld [vmem:[#allocation12 + $0x1430] sm:$0xff]  ;;  %v3725_v34 = vld [vmem:[#allocation12 + $0x278] sm:$0xff] }
 0x7e8   :  { %10915 = vmatprep.subr.bf16.mxu1 %v16749_v2  ;;  %v4300_v38 = vld [vmem:[#allocation12 + $0x1470] sm:$0xff] }
 0x7e9   :  { %v4548_v2 = vld [vmem:[#allocation12 + $0x1c30] sm:$0xff]  ;;  %v16397_v42 = vcombine.high %v4292_v37, %v4300_v38  ;;  %v16396_v18 = vcombine.low %v4292_v37, %v4300_v38 }
 0x7ea   :  { %10875 = vmatpush2.bf16.msra.mxu0 %v16492_v4  ;;  %v16653_v4 = vcombine.high %v4548_v2, %v4556_v39  ;;  %v16652_v45 = vcombine.low %v4548_v2, %v4556_v39  ;;  %v16094_v2 = vcombine.low %v3989_v26, %v3997_v47  ;;  %v15823_v39 = vcombine.high %v3717_v33, %v3725_v34 }
 0x7eb   :  { %10916 = vmatpush2.bf16.msra.mxu1 %v16748_v43  ;;  %10876 = vmatprep.subr.bf16.mxu0 %v16477_v57  ;;  %v3765_v43 = vld [vmem:[#allocation12 + $0x3b8] sm:$0xff] }
 0x7ec   :  { %10917 = vmatprep.subr.bf16.mxu1 %v16733_v14  ;;  %v3773_v57 = vld [vmem:[#allocation12 + $0x3f8] sm:$0xff] }
 0x7ed   :  { %v4021_v14 = vld [vmem:[#allocation12 + $0xbb8] sm:$0xff]  ;;  %v15871_v46 = vcombine.high %v3765_v43, %v3773_v57 }
 0x7ee   :  { %10877 = vmatpush2.bf16.msra.mxu0 %v16476_v5  ;;  %v16127_v5 = vcombine.high %v4021_v14, %v4029_v44  ;;  %v16126_v1 = vcombine.low %v4021_v14, %v4029_v44 }
 0x7ef   :  { %10918 = vmatpush2.bf16.msra.mxu1 %v16732_v23  ;;  %10878 = vmatprep.subr.bf16.mxu0 %v16461_v53  ;;  %v3749_v23 = vld [vmem:[#allocation12 + $0x338] sm:$0xff] }
 0x7f0   :  { %10919 = vmatprep.subr.bf16.mxu1 %v16717_v61  ;;  %v3757_v53 = vld [vmem:[#allocation12 + $0x378] sm:$0xff]  ;;  %v15870_v61 = vcombine.low %v3765_v43, %v3773_v57  ;;  %v15822_v57 = vcombine.low %v3717_v33, %v3725_v34 }
 0x7f1   :  { %v15855_v10 = vcombine.high %v3749_v23, %v3757_v53  ;;  %v15854_v20 = vcombine.low %v3749_v23, %v3757_v53  ;;  %v3965_v43 = vld [vmem:[#allocation12 + $0x9f8] sm:$0xff] }
 0x7f2   :  { %10879 = vmatpush2.bf16.msra.mxu0 %v16460_v11  ;;  %v3733_v11 = vld [vmem:[#allocation12 + $0x2b8] sm:$0xff] }
 0x7f3   :  { %10920 = vmatpush2.bf16.msra.mxu1 %v16716_v12  ;;  %10880 = vmatprep.subr.bf16.mxu0 %v16445_v17  ;;  %v3741_v12 = vld [vmem:[#allocation12 + $0x2f8] sm:$0xff] }
 0x7f4   :  { %10921 = vmatprep.subr.bf16.mxu1 %v16701_v16  ;;  %v16111_v16 = vcombine.high %v4005_v63, %v4013_v13  ;;  %v3949_v23 = vld [vmem:[#allocation12 + $0x978] sm:$0xff] }
 0x7f5   :  { %v3893_v34 = vld [vmem:[#allocation12 + $0x7b8] sm:$0xff] }
 0x7f6   :  { %10881 = vmatpush2.bf16.msra.mxu0 %v16444_v21 }
 0x7f7   :  { %10922 = vmatpush2.bf16.msra.mxu1 %v16700_v24  ;;  %10882 = vmatprep.subr.bf16.mxu0 %v16429_v27  ;;  %v16110_v27 = vcombine.low %v4005_v63, %v4013_v13 }
 0x7f8   :  { %10923 = vmatprep.subr.bf16.mxu1 %v16685_v30  ;;  %v15839_v30 = vcombine.high %v3733_v11, %v3741_v12 }
 0x7fa   :  { %10883 = vmatpush2.bf16.msra.mxu0 %v16428_v3 }
 0x7fb   :  { %10924 = vmatpush2.bf16.msra.mxu1 %v16684_v35  ;;  %10884 = vmatprep.subr.bf16.mxu0 %v16413_v19  ;;  %v3973_v19 = vld [vmem:[#allocation12 + $0xa38] sm:$0xff] }
 0x7fc   :  { %10925 = vmatprep.subr.bf16.mxu1 %v16669_v36  ;;  %v3981_v36 = vld [vmem:[#allocation12 + $0xa78] sm:$0xff] }
 0x7fd   :  { %v16078_v14 = vcombine.low %v3973_v19, %v3981_v36 }
 0x7fe   :  { %10885 = vmatpush2.bf16.msra.mxu0 %v16412_v40  ;;  %v16079_v40 = vcombine.high %v3973_v19, %v3981_v36  ;;  %v4149_v19 = vld [vmem:[#allocation12 + $0xfb8] sm:$0xff] }
 0x7ff   :  { %10926 = vmatpush2.bf16.msra.mxu1 %v16668_v41  ;;  %10886 = vmatprep.subr.bf16.mxu0 %v16397_v42  ;;  %v3701_v41 = vld [vmem:[#allocation12 + $0x1b8] sm:$0xff] }
 0x800   :  { %10927 = vmatprep.subr.bf16.mxu1 %v16653_v4  ;;  %v3709_v42 = vld [vmem:[#allocation12 + $0x1f8] sm:$0xff] }
 0x801   :  { %v3957_v4 = vld [vmem:[#allocation12 + $0x9b8] sm:$0xff]  ;;  %v15807_v44 = vcombine.high %v3701_v41, %v3709_v42  ;;  %v15806_v53 = vcombine.low %v3701_v41, %v3709_v42 }
 0x802   :  { %10887 = vmatpush2.bf16.msra.mxu0 %v16396_v18  ;;  %v16063_v18 = vcombine.high %v3957_v4, %v3965_v43  ;;  %v4157_v36 = vld [vmem:[#allocation12 + $0xff8] sm:$0xff] }
 0x803   :  { %10928 = vmatpush2.bf16.msra.mxu1 %v16652_v45  ;;  %10938 = vmatprep.subr.bf16.mxu0 %v15871_v46  ;;  %v3685_v45 = vld [vmem:[#allocation12 + $0x138] sm:$0xff] }
 0x804   :  { %10979 = vmatprep.subr.bf16.mxu1 %v16127_v5  ;;  %v3693_v46 = vld [vmem:[#allocation12 + $0x178] sm:$0xff] }
 0x805   :  { %v10644_v17 = vpop.f32.mrf.mxu0  ;;  %10889 = vmatmul.mubr.bf16.vlgmr.msra.gmra.mxu0 %v18633_v54  ;;  %v3941_v5 = vld [vmem:[#allocation12 + $0x938] sm:$0xff]  ;;  %v15791_v63 = vcombine.high %v3685_v45, %v3693_v46 }
 0x806   :  { %v10685_v22 = vpop.f32.mrf.mxu1  ;;  %10930 = vmatmul.mubr.bf16.vlgmr.msra.gmra.mxu1 %v18635_v56  ;;  %10939 = vmatpush1.bf16.msra.mxu0 %v15870_v61  ;;  %v16062_v61 = vcombine.low %v3957_v4, %v3965_v43  ;;  %v16047_v13 = vcombine.high %v3941_v5, %v3949_v23  ;;  %v4141_v41 = vld [vmem:[#allocation12 + $0xf78] sm:$0xff]  ;;  %v16254_v4 = vcombine.low %v4149_v19, %v4157_v36 }
 0x807   :  { %v18737_v21 = vadd.f32 %v10685_v22, %v10644_v17  ;;  %10970 = vmatprep.mubr.bf16.mxu0 %v18595_v58  ;;  %10980 = vmatpush1.bf16.msra.mxu1 %v16126_v1  ;;  %v10646_v24 = vpop.f32.mrf.mxu0  ;;  %v15838_v58 = vcombine.low %v3733_v11, %v3741_v12  ;;  %v3669_v1 = vld [vmem:[#allocation12 + $0xb8] sm:$0xff]  ;;  %v15790_v17 = vcombine.low %v3685_v45, %v3693_v46 }
 0x808   :  { %11011 = vmatprep.mubr.bf16.mxu1 %v18599_v59  ;;  %v10687_v31 = vpop.f32.mrf.mxu1  ;;  %10940 = vmatprep.subr.bf16.mxu0 %v15855_v10  ;;  %v3677_v10 = vld [vmem:[#allocation12 + $0xf8] sm:$0xff] }
 0x809   :  { %v18741_v3 = vadd.f32 %v10687_v31, %v10646_v24  ;;  %v10648_v35 = vpop.f32.mrf.mxu0  ;;  %10981 = vmatprep.subr.bf16.mxu1 %v16111_v16  ;;  %v3925_v11 = vld [vmem:[#allocation12 + $0x8b8] sm:$0xff]  ;;  %v16046_v16 = vcombine.low %v3941_v5, %v3949_v23  ;;  %v15775_v26 = vcombine.high %v3669_v1, %v3677_v10 }
 0x80a   :  { %v10689_v37 = vpop.f32.mrf.mxu1  ;;  %10941 = vmatpush1.bf16.msra.mxu0 %v15854_v20  ;;  %v3933_v12 = vld [vmem:[#allocation12 + $0x8f8] sm:$0xff] }
 0x80b   :  { %10982 = vmatpush1.bf16.msra.mxu1 %v16110_v27  ;;  %v10649_v38 = vpop.f32.mrf.mxu0  ;;  %10942 = vmatprep.subr.bf16.mxu0 %v15839_v30  ;;  %v16031_v47 = vcombine.high %v3925_v11, %v3933_v12  ;;  %v3653_v22 = vld [vmem:[#allocation12 + $0x38] sm:$0xff]  ;;  %v15774_v30 = vcombine.low %v3669_v1, %v3677_v10  ;;  %v16030_v31 = vcombine.low %v3925_v11, %v3933_v12 }
 0x80c   :  { %v10690_v59 = vpop.f32.mrf.mxu1  ;;  %10983 = vmatprep.subr.bf16.mxu1 %v16095_v32  ;;  %v3661_v20 = vld [vmem:[#allocation12 + $0x78] sm:$0xff] }
 0x80d   :  { %v3909_v24 = vld [vmem:[#allocation12 + $0x838] sm:$0xff]  ;;  %v15759_v32 = vcombine.high %v3653_v22, %v3661_v20  ;;  %v15758_v37 = vcombine.low %v3653_v22, %v3661_v20 }
 0x80e   :  { %10943 = vmatpush1.bf16.msra.mxu0 %v15838_v58  ;;  %v3917_v27 = vld [vmem:[#allocation12 + $0x878] sm:$0xff] }
 0x80f   :  { %10984 = vmatpush1.bf16.msra.mxu1 %v16094_v2  ;;  %10944 = vmatprep.subr.bf16.mxu0 %v15823_v39  ;;  %v16015_v33 = vcombine.high %v3909_v24, %v3917_v27  ;;  %v3901_v35 = vld [vmem:[#allocation12 + $0x7f8] sm:$0xff]  ;;  %v16014_v58 = vcombine.low %v3909_v24, %v3917_v27  ;;  %v16255_v2 = vcombine.high %v4149_v19, %v4157_v36 }
 0x810   :  { %10985 = vmatprep.subr.bf16.mxu1 %v16079_v40  ;;  %v15999_v38 = vcombine.high %v3893_v34, %v3901_v35  ;;  %v3877_v39 = vld [vmem:[#allocation12 + $0x738] sm:$0xff]  ;;  %v15998_v42 = vcombine.low %v3893_v34, %v3901_v35 }
 0x811   :  { %v3885_v59 = vld [vmem:[#allocation12 + $0x778] sm:$0xff] }
 0x812   :  { %10945 = vmatpush1.bf16.msra.mxu0 %v15822_v57  ;;  %v4133_v40 = vld [vmem:[#allocation12 + $0xf38] sm:$0xff]  ;;  %v15983_v43 = vcombine.high %v3877_v39, %v3885_v59  ;;  %v15982_v46 = vcombine.low %v3877_v39, %v3885_v59 }
 0x813   :  { %10986 = vmatpush1.bf16.msra.mxu1 %v16078_v14  ;;  %10946 = vmatprep.subr.bf16.mxu0 %v15807_v44  ;;  %v16239_v57 = vcombine.high %v4133_v40, %v4141_v41  ;;  %v3861_v14 = vld [vmem:[#allocation12 + $0x6b8] sm:$0xff]  ;;  %v16238_v5 = vcombine.low %v4133_v40, %v4141_v41 }
 0x814   :  { %10987 = vmatprep.subr.bf16.mxu1 %v16063_v18  ;;  %v3869_v44 = vld [vmem:[#allocation12 + $0x6f8] sm:$0xff] }
 0x815   :  { %v4117_v18 = vld [vmem:[#allocation12 + $0xeb8] sm:$0xff]  ;;  %v15967_v23 = vcombine.high %v3861_v14, %v3869_v44  ;;  %v15966_v10 = vcombine.low %v3861_v14, %v3869_v44 }
 0x816   :  { %10947 = vmatpush1.bf16.msra.mxu0 %v15806_v53  ;;  %v4125_v45 = vld [vmem:[#allocation12 + $0xef8] sm:$0xff] }
 0x817   :  { %10988 = vmatpush1.bf16.msra.mxu1 %v16062_v61  ;;  %10948 = vmatprep.subr.bf16.mxu0 %v15791_v63  ;;  %v16223_v53 = vcombine.high %v4117_v18, %v4125_v45  ;;  %v3845_v61 = vld [vmem:[#allocation12 + $0x638] sm:$0xff]  ;;  %v16222_v11 = vcombine.low %v4117_v18, %v4125_v45 }
 0x818   :  { %10989 = vmatprep.subr.bf16.mxu1 %v16047_v13  ;;  %v3853_v63 = vld [vmem:[#allocation12 + $0x678] sm:$0xff] }
 0x819   :  { %v4101_v13 = vld [vmem:[#allocation12 + $0xe38] sm:$0xff]  ;;  %v15951_v12 = vcombine.high %v3845_v61, %v3853_v63  ;;  %v15950_v20 = vcombine.low %v3845_v61, %v3853_v63 }
 0x81a   :  { %10949 = vmatpush1.bf16.msra.mxu0 %v15790_v17  ;;  %v4109_v1 = vld [vmem:[#allocation12 + $0xe78] sm:$0xff] }
 0x81b   :  { %10990 = vmatpush1.bf16.msra.mxu1 %v16046_v16  ;;  %10950 = vmatprep.subr.bf16.mxu0 %v15775_v26  ;;  %v16207_v17 = vcombine.high %v4101_v13, %v4109_v1  ;;  %v3829_v16 = vld [vmem:[#allocation12 + $0x5b8] sm:$0xff]  ;;  %v16206_v24 = vcombine.low %v4101_v13, %v4109_v1 }
 0x81c   :  { %10991 = vmatprep.subr.bf16.mxu1 %v16031_v47  ;;  %v3837_v26 = vld [vmem:[#allocation12 + $0x5f8] sm:$0xff] }
 0x81d   :  { %v4085_v47 = vld [vmem:[#allocation12 + $0xdb8] sm:$0xff]  ;;  %v15935_v27 = vcombine.high %v3829_v16, %v3837_v26  ;;  %v15934_v35 = vcombine.low %v3829_v16, %v3837_v26 }
 0x81e   :  { %10951 = vmatpush1.bf16.msra.mxu0 %v15774_v30  ;;  %v4093_v22 = vld [vmem:[#allocation12 + $0xdf8] sm:$0xff] }
 0x81f   :  { %10992 = vmatpush1.bf16.msra.mxu1 %v16030_v31  ;;  %10952 = vmatprep.subr.bf16.mxu0 %v15759_v32  ;;  %v16191_v30 = vcombine.high %v4085_v47, %v4093_v22  ;;  %v3813_v31 = vld [vmem:[#allocation12 + $0x538] sm:$0xff]  ;;  %v16190_v19 = vcombine.low %v4085_v47, %v4093_v22 }
 0x820   :  { %10993 = vmatprep.subr.bf16.mxu1 %v16015_v33  ;;  %v3821_v32 = vld [vmem:[#allocation12 + $0x578] sm:$0xff] }
 0x821   :  { %v4069_v33 = vld [vmem:[#allocation12 + $0xd38] sm:$0xff]  ;;  %v15919_v36 = vcombine.high %v3813_v31, %v3821_v32  ;;  %v15918_v59 = vcombine.low %v3813_v31, %v3821_v32 }
 0x822   :  { %10953 = vmatpush1.bf16.msra.mxu0 %v15758_v37  ;;  %v4077_v34 = vld [vmem:[#allocation12 + $0xd78] sm:$0xff] }
 0x823   :  { %10994 = vmatpush1.bf16.msra.mxu1 %v16014_v58  ;;  %10954 = vmatprep.subr.bf16.mxu0 %v15999_v38  ;;  %v16175_v37 = vcombine.high %v4069_v33, %v4077_v34  ;;  %v3797_v58 = vld [vmem:[#allocation12 + $0x4b8] sm:$0xff]  ;;  %v16174_v40 = vcombine.low %v4069_v33, %v4077_v34 }
 0x824   :  { %10995 = vmatprep.subr.bf16.mxu1 %v16255_v2  ;;  %v3805_v38 = vld [vmem:[#allocation12 + $0x4f8] sm:$0xff] }
 0x825   :  { %v4053_v2 = vld [vmem:[#allocation12 + $0xcb8] sm:$0xff]  ;;  %v15903_v41 = vcombine.high %v3797_v58, %v3805_v38  ;;  %v15902_v44 = vcombine.low %v3797_v58, %v3805_v38 }
 0x826   :  { %10955 = vmatpush2.bf16.msra.mxu0 %v15998_v42  ;;  %v4061_v39 = vld [vmem:[#allocation12 + $0xcf8] sm:$0xff] }
 0x827   :  { %10996 = vmatpush2.bf16.msra.mxu1 %v16254_v4  ;;  %10956 = vmatprep.subr.bf16.mxu0 %v15983_v43  ;;  %v16159_v42 = vcombine.high %v4053_v2, %v4061_v39  ;;  %v3781_v4 = vld [vmem:[#allocation12 + $0x438] sm:$0xff]  ;;  %v16158_v18 = vcombine.low %v4053_v2, %v4061_v39 }
 0x828   :  { %10997 = vmatprep.subr.bf16.mxu1 %v16239_v57  ;;  %v3789_v43 = vld [vmem:[#allocation12 + $0x478] sm:$0xff] }
 0x829   :  { %v4037_v57 = vld [vmem:[#allocation12 + $0xc38] sm:$0xff]  ;;  %v15887_v45 = vcombine.high %v3781_v4, %v3789_v43  ;;  %v15886_v63 = vcombine.low %v3781_v4, %v3789_v43 }
 0x82a   :  { %10957 = vmatpush2.bf16.msra.mxu0 %v15982_v46  ;;  %v4045_v14 = vld [vmem:[#allocation12 + $0xc78] sm:$0xff] }
 0x82b   :  { %10998 = vmatpush2.bf16.msra.mxu1 %v16238_v5  ;;  %10958 = vmatprep.subr.bf16.mxu0 %v15967_v23  ;;  %v16143_v46 = vcombine.high %v4037_v57, %v4045_v14  ;;  %v4277_v5 = vld [vmem:[#allocation12 + $0x13b8] sm:$0xff]  ;;  %v16142_v13 = vcombine.low %v4037_v57, %v4045_v14 }
 0x82c   :  { %10999 = vmatprep.subr.bf16.mxu1 %v16223_v53  ;;  %v4285_v23 = vld [vmem:[#allocation12 + $0x13f8] sm:$0xff] }
 0x82d   :  { %v4533_v53 = vld [vmem:[#allocation12 + $0x1bb8] sm:$0xff]  ;;  %v16383_v1 = vcombine.high %v4277_v5, %v4285_v23 }
 0x82e   :  { %10959 = vmatpush2.bf16.msra.mxu0 %v15966_v10  ;;  %v4541_v61 = vld [vmem:[#allocation12 + $0x1bf8] sm:$0xff] }
 0x82f   :  { %11000 = vmatpush2.bf16.msra.mxu1 %v16222_v11  ;;  %10960 = vmatprep.subr.bf16.mxu0 %v15951_v12  ;;  %v16639_v10 = vcombine.high %v4533_v53, %v4541_v61  ;;  %v4261_v11 = vld [vmem:[#allocation12 + $0x1338] sm:$0xff]  ;;  %v16638_v47 = vcombine.low %v4533_v53, %v4541_v61 }
 0x830   :  { %11001 = vmatprep.subr.bf16.mxu1 %v16207_v17  ;;  %v4269_v12 = vld [vmem:[#allocation12 + $0x1378] sm:$0xff]  ;;  %v16382_v17 = vcombine.low %v4277_v5, %v4285_v23 }
 0x831   :  { %v4517_v16 = vld [vmem:[#allocation12 + $0x1b38] sm:$0xff]  ;;  %v16367_v22 = vcombine.high %v4261_v11, %v4269_v12 }
 0x832   :  { %10961 = vmatpush2.bf16.msra.mxu0 %v15950_v20  ;;  %v4525_v26 = vld [vmem:[#allocation12 + $0x1b78] sm:$0xff] }
 0x833   :  { %11002 = vmatpush2.bf16.msra.mxu1 %v16206_v24  ;;  %10962 = vmatprep.subr.bf16.mxu0 %v15935_v27  ;;  %v4245_v20 = vld [vmem:[#allocation12 + $0x12b8] sm:$0xff] }
 0x834   :  { %11003 = vmatprep.subr.bf16.mxu1 %v16191_v30  ;;  %v4253_v24 = vld [vmem:[#allocation12 + $0x12f8] sm:$0xff]  ;;  %v16623_v30 = vcombine.high %v4517_v16, %v4525_v26 }
 0x835   :  { %v4501_v31 = vld [vmem:[#allocation12 + $0x1ab8] sm:$0xff] }
 0x836   :  { %10963 = vmatpush2.bf16.msra.mxu0 %v15934_v35  ;;  %v4509_v32 = vld [vmem:[#allocation12 + $0x1af8] sm:$0xff]  ;;  %v16366_v35 = vcombine.low %v4261_v11, %v4269_v12 }
 0x837   :  { %11004 = vmatpush2.bf16.msra.mxu1 %v16190_v19  ;;  %10964 = vmatprep.subr.bf16.mxu0 %v15919_v36  ;;  %v16622_v36 = vcombine.low %v4517_v16, %v4525_v26  ;;  %v4229_v2 = vld [vmem:[#allocation12 + $0x1238] sm:$0xff] }
 0x838   :  { %11005 = vmatprep.subr.bf16.mxu1 %v16175_v37  ;;  %v16351_v37 = vcombine.high %v4245_v20, %v4253_v24  ;;  %v4237_v39 = vld [vmem:[#allocation12 + $0x1278] sm:$0xff] }
 0x839   :  { %v16335_v43 = vcombine.high %v4229_v2, %v4237_v39  ;;  %v4213_v14 = vld [vmem:[#allocation12 + $0x11b8] sm:$0xff] }
 0x83a   :  { %10965 = vmatpush2.bf16.msra.mxu0 %v15918_v59  ;;  %v4485_v59 = vld [vmem:[#allocation12 + $0x1a38] sm:$0xff] }
 0x83b   :  { %11006 = vmatpush2.bf16.msra.mxu1 %v16174_v40  ;;  %10966 = vmatprep.subr.bf16.mxu0 %v15903_v41  ;;  %v4493_v40 = vld [vmem:[#allocation12 + $0x1a78] sm:$0xff] }
 0x83c   :  { %11007 = vmatprep.subr.bf16.mxu1 %v16159_v42  ;;  %v16350_v42 = vcombine.low %v4245_v20, %v4253_v24  ;;  %v16591_v57 = vcombine.high %v4485_v59, %v4493_v40  ;;  %v16590_v5 = vcombine.low %v4485_v59, %v4493_v40  ;;  %v4197_v61 = vld [vmem:[#allocation12 + $0x1138] sm:$0xff] }
 0x83d   :  { %v4181_v16 = vld [vmem:[#allocation12 + $0x10b8] sm:$0xff] }
 0x83e   :  { %10967 = vmatpush2.bf16.msra.mxu0 %v15902_v44  ;;  %v4221_v44 = vld [vmem:[#allocation12 + $0x11f8] sm:$0xff] }
 0x83f   :  { %11008 = vmatpush2.bf16.msra.mxu1 %v16158_v18  ;;  %10968 = vmatprep.subr.bf16.mxu0 %v15887_v45  ;;  %v4469_v18 = vld [vmem:[#allocation12 + $0x19b8] sm:$0xff]  ;;  %v16319_v23 = vcombine.high %v4213_v14, %v4221_v44 }
 0x840   :  { %11009 = vmatprep.subr.bf16.mxu1 %v16143_v46  ;;  %v4477_v45 = vld [vmem:[#allocation12 + $0x19f8] sm:$0xff]  ;;  %v16334_v46 = vcombine.low %v4229_v2, %v4237_v39 }
 0x841   :  { %v16575_v53 = vcombine.high %v4469_v18, %v4477_v45  ;;  %v16574_v11 = vcombine.low %v4469_v18, %v4477_v45  ;;  %v4189_v26 = vld [vmem:[#allocation12 + $0x10f8] sm:$0xff] }
 0x842   :  { %10969 = vmatpush2.bf16.msra.mxu0 %v15886_v63  ;;  %v4205_v63 = vld [vmem:[#allocation12 + $0x1178] sm:$0xff] }
 0x843   :  { %11010 = vmatpush2.bf16.msra.mxu1 %v16142_v13  ;;  %11020 = vmatprep.subr.bf16.mxu0 %v16383_v1  ;;  %v4453_v13 = vld [vmem:[#allocation12 + $0x1938] sm:$0xff]  ;;  %v16303_v12 = vcombine.high %v4197_v61, %v4205_v63  ;;  %v16302_v20 = vcombine.low %v4197_v61, %v4205_v63 }
 0x844   :  { %11061 = vmatprep.subr.bf16.mxu1 %v16639_v10  ;;  %v4461_v1 = vld [vmem:[#allocation12 + $0x1978] sm:$0xff]  ;;  %v16318_v10 = vcombine.low %v4213_v14, %v4221_v44  ;;  %v11217_v44 = vmul.f32 %v18679_v28, %v18679_v28 }
 0x845   :  { %v10726_v27 = vpop.f32.mrf.mxu0  ;;  %10971 = vmatmul.mubr.bf16.vlgmr.msra.gmra.mxu0 %v18597_v60  ;;  %v16558_v24 = vcombine.low %v4453_v13, %v4461_v1  ;;  %v4669_v2 = vld [vmem:[#allocation12 + $0x1ff8] sm:$0xff] }
 0x846   :  { %v10727_v33 = vadd.f32 %v10726_v27, %v18737_v21  ;;  %v10767_v34 = vpop.f32.mrf.mxu1  ;;  %11012 = vmatmul.mubr.bf16.vlgmr.msra.gmra.mxu1 %v18601_v15  ;;  %11021 = vmatpush1.bf16.msra.mxu0 %v16382_v17  ;;  %v16607_v21 = vcombine.high %v4501_v31, %v4509_v32  ;;  %v16559_v17 = vcombine.high %v4453_v13, %v4461_v1  ;;  %v4373_v45 = vld [vmem:[#allocation12 + $0x16b8] sm:$0xff]  ;;  %v11251_v1 = vsel %vm2358_vm0, %v11217_v44, 0.0 }
 0x847   :  { %11052 = vmatprep.mubr.bf16.mxu0 %v18617_v49  ;;  %11062 = vmatpush1.bf16.msra.mxu1 %v16638_v47  ;;  %v10728_v19 = vpop.f32.mrf.mxu0  ;;  %v4437_v47 = vld [vmem:[#allocation12 + $0x18b8] sm:$0xff]  ;;  %v16287_v27 = vcombine.high %v4181_v16, %v4189_v26 }
 0x848   :  { %v18747_v58 = vadd.f32 %v10767_v34, %v10727_v33  ;;  %11093 = vmatprep.mubr.bf16.mxu1 %v18619_v52  ;;  %v10729_v60 = vadd.f32 %v10728_v19, %v18741_v3  ;;  %v10769_v38 = vpop.f32.mrf.mxu1  ;;  %11022 = vmatprep.subr.bf16.mxu0 %v16367_v22  ;;  %v16606_v52 = vcombine.low %v4501_v31, %v4509_v32  ;;  %v4445_v22 = vld [vmem:[#allocation12 + $0x18f8] sm:$0xff] }
 0x849   :  { %v10730_v15 = vpop.f32.mrf.mxu0  ;;  %11063 = vmatprep.subr.bf16.mxu1 %v16623_v30  ;;  %v16543_v30 = vcombine.high %v4437_v47, %v4445_v22  ;;  %v4165_v31 = vld [vmem:[#allocation12 + $0x1038] sm:$0xff]  ;;  %v16542_v19 = vcombine.low %v4437_v47, %v4445_v22  ;;  %v11123_v22 = vsel %vm2358_vm0, %v18679_v28, 0.0 }
 0x84a   :  { %v18751_v49 = vadd.f32 %v10769_v38, %v10729_v60  ;;  %v10771_v41 = vpop.f32.mrf.mxu1  ;;  %11023 = vmatpush1.bf16.msra.mxu0 %v16366_v35  ;;  %v4173_v32 = vld [vmem:[#allocation12 + $0x1078] sm:$0xff]  ;;  %v16286_v35 = vcombine.low %v4181_v16, %v4189_v26 }
 0x84b   :  { %11064 = vmatpush1.bf16.msra.mxu1 %v16622_v36  ;;  %v10731_v4 = vpop.f32.mrf.mxu0  ;;  %11024 = vmatprep.subr.bf16.mxu0 %v16351_v37  ;;  %v4421_v33 = vld [vmem:[#allocation12 + $0x1838] sm:$0xff]  ;;  %v16271_v36 = vcombine.high %v4165_v31, %v4173_v32  ;;  %v16270_v39 = vcombine.low %v4165_v31, %v4173_v32 }
 0x84c   :  { %v10772_v3 = vpop.f32.mrf.mxu1  ;;  %11065 = vmatprep.subr.bf16.mxu1 %v16607_v21  ;;  %v4429_v34 = vld [vmem:[#allocation12 + $0x1878] sm:$0xff] }
 0x84d   :  { %v16527_v37 = vcombine.high %v4421_v33, %v4429_v34  ;;  %v4405_v60 = vld [vmem:[#allocation12 + $0x17b8] sm:$0xff]  ;;  %v16526_v15 = vcombine.low %v4421_v33, %v4429_v34  ;;  %v11215_v3 = vmul.f32 %v18661_v6, %v18661_v6 }
 0x84e   :  { %11025 = vmatpush1.bf16.msra.mxu0 %v16350_v42  ;;  %v4413_v38 = vld [vmem:[#allocation12 + $0x17f8] sm:$0xff] }
 0x84f   :  { %11066 = vmatpush1.bf16.msra.mxu1 %v16606_v52  ;;  %11026 = vmatprep.subr.bf16.mxu0 %v16335_v43  ;;  %v4661_v21 = vld [vmem:[#allocation12 + $0x1fb8] sm:$0xff]  ;;  %v16511_v59 = vcombine.high %v4405_v60, %v4413_v38  ;;  %v16510_v43 = vcombine.low %v4405_v60, %v4413_v38  ;;  %v11237_v61 = vsel %vm2358_vm0, %v11215_v3, 0.0 }
 0x850   :  { %11067 = vmatprep.subr.bf16.mxu1 %v16591_v57  ;;  %v16767_v40 = vcombine.high %v4661_v21, %v4669_v2  ;;  %v4389_v41 = vld [vmem:[#allocation12 + $0x1738] sm:$0xff]  ;;  %v16766_v57 = vcombine.low %v4661_v21, %v4669_v2  ;;  %v11238_v47 = vrot.slane %v11237_v61, 4 }
 0x851   :  { %v4397_v42 = vld [vmem:[#allocation12 + $0x1778] sm:$0xff] }
 0x852   :  { %11027 = vmatpush1.bf16.msra.mxu0 %v16334_v46  ;;  %v4645_v4 = vld [vmem:[#allocation12 + $0x1f38] sm:$0xff]  ;;  %v16495_v14 = vcombine.high %v4389_v41, %v4397_v42 }
 0x853   :  { %11068 = vmatpush1.bf16.msra.mxu1 %v16590_v5  ;;  %11028 = vmatprep.subr.bf16.mxu0 %v16319_v23  ;;  %v4653_v52 = vld [vmem:[#allocation12 + $0x1f78] sm:$0xff] }
 0x854   :  { %11069 = vmatprep.subr.bf16.mxu1 %v16575_v53  ;;  %v16751_v18 = vcombine.high %v4645_v4, %v4653_v52  ;;  %v4381_v46 = vld [vmem:[#allocation12 + $0x16f8] sm:$0xff]  ;;  %v16494_v53 = vcombine.low %v4389_v41, %v4397_v42  ;;  %v16750_v63 = vcombine.low %v4645_v4, %v4653_v52 }
 0x855   :  { %v4629_v5 = vld [vmem:[#allocation12 + $0x1eb8] sm:$0xff]  ;;  %v16479_v13 = vcombine.high %v4373_v45, %v4381_v46 }
 0x856   :  { %11029 = vmatpush1.bf16.msra.mxu0 %v16318_v10  ;;  %v4637_v23 = vld [vmem:[#allocation12 + $0x1ef8] sm:$0xff] }
 0x857   :  { %11070 = vmatpush1.bf16.msra.mxu1 %v16574_v11  ;;  %11030 = vmatprep.subr.bf16.mxu0 %v16303_v12  ;;  %v16735_v10 = vcombine.high %v4629_v5, %v4637_v23  ;;  %v4357_v11 = vld [vmem:[#allocation12 + $0x1638] sm:$0xff] }
 0x858   :  { %11071 = vmatprep.subr.bf16.mxu1 %v16559_v17  ;;  %v4365_v12 = vld [vmem:[#allocation12 + $0x1678] sm:$0xff]  ;;  %v11109_v17 = vsel %vm2358_vm0, %v18661_v6, 0.0 }
 0x859   :  { %v4613_v16 = vld [vmem:[#allocation12 + $0x1e38] sm:$0xff]  ;;  %v11110_v31 = vrot.slane %v11109_v17, 4  ;;  %v16462_v60 = vcombine.low %v4357_v11, %v4365_v12 }
 0x85a   :  { %11031 = vmatpush1.bf16.msra.mxu0 %v16302_v20  ;;  %v4621_v26 = vld [vmem:[#allocation12 + $0x1e78] sm:$0xff]  ;;  %v16478_v20 = vcombine.low %v4373_v45, %v4381_v46 }
 0x85b   :  { %11072 = vmatpush1.bf16.msra.mxu1 %v16558_v24  ;;  %11032 = vmatprep.subr.bf16.mxu0 %v16287_v27  ;;  %v11252_v24 = vrot.slane %v11251_v1, 4  ;;  %v16734_v27 = vcombine.low %v4629_v5, %v4637_v23  ;;  %v16719_v32 = vcombine.high %v4613_v16, %v4621_v26  ;;  %v4341_v33 = vld [vmem:[#allocation12 + $0x15b8] sm:$0xff]  ;;  %v16718_v21 = vcombine.low %v4613_v16, %v4621_v26 }
 0x85c   :  { %11073 = vmatprep.subr.bf16.mxu1 %v16543_v30  ;;  %v16463_v30 = vcombine.high %v4357_v11, %v4365_v12  ;;  %v4349_v34 = vld [vmem:[#allocation12 + $0x15f8] sm:$0xff] }
 0x85d   :  { %v11253_v38 = vadd.f32 %v11252_v24, %v11251_v1  ;;  %v16447_v2 = vcombine.high %v4341_v33, %v4349_v34  ;;  %v4581_v42 = vld [vmem:[#allocation12 + $0x1d38] sm:$0xff] }
 0x85e   :  { %11033 = vmatpush1.bf16.msra.mxu0 %v16286_v35  ;;  %v11124_v35 = vrot.slane %v11123_v22, 4  ;;  %v4589_v4 = vld [vmem:[#allocation12 + $0x1d78] sm:$0xff] }
 0x85f   :  { %11074 = vmatpush1.bf16.msra.mxu1 %v16542_v19  ;;  %11034 = vmatprep.subr.bf16.mxu0 %v16271_v36  ;;  %v4597_v19 = vld [vmem:[#allocation12 + $0x1db8] sm:$0xff]  ;;  %v11254_v3 = vrot.slane %v11253_v38, 2  ;;  %v16686_v1 = vcombine.low %v4581_v42, %v4589_v4 }
 0x860   :  { %11075 = vmatprep.subr.bf16.mxu1 %v16527_v37  ;;  %v4605_v36 = vld [vmem:[#allocation12 + $0x1df8] sm:$0xff]  ;;  %v11239_v37 = vadd.f32 %v11238_v47, %v11237_v61  ;;  %v11125_v41 = vadd.f32 %v11124_v35, %v11123_v22 }
 0x861   :  { %v4309_v45 = vld [vmem:[#allocation12 + $0x14b8] sm:$0xff] }
 0x862   :  { %11035 = vmatpush1.bf16.msra.mxu0 %v16270_v39  ;;  %v11111_v39 = vadd.f32 %v11110_v31, %v11109_v17  ;;  %v11240_v52 = vrot.slane %v11239_v37, 2  ;;  %v4317_v46 = vld [vmem:[#allocation12 + $0x14f8] sm:$0xff]  ;;  %v11126_v5 = vrot.slane %v11125_v41, 2 }
 0x863   :  { %11076 = vmatpush1.bf16.msra.mxu1 %v16526_v15  ;;  %11036 = vmatprep.subr.bf16.mxu0 %v16511_v59  ;;  %v16703_v15 = vcombine.high %v4597_v19, %v4605_v36  ;;  %v4325_v59 = vld [vmem:[#allocation12 + $0x1538] sm:$0xff] }
 0x864   :  { %11077 = vmatprep.subr.bf16.mxu1 %v16767_v40  ;;  %v4333_v40 = vld [vmem:[#allocation12 + $0x1578] sm:$0xff]  ;;  %v11112_v44 = vrot.slane %v11111_v39, 2  ;;  %v11241_v61 = vadd.f32 %v11240_v52, %v11239_v37  ;;  %v11127_v26 = vadd.f32 %v11126_v5, %v11125_v41  ;;  %v11219_v41 = vmul.f32 %v18697_v8, %v18697_v8  ;;  %v17596_v5 = vld [vmem:[#allocation13 + $0x30] sm:$0xff]  }
 0x865   :  { %v4565_v23 = vld [vmem:[#allocation12 + $0x1cb8] sm:$0xff]  ;;  %v11221_v52 = vmul.f32 %v18715_v9, %v18715_v9 }
 0x866   :  { %11037 = vmatpush2.bf16.msra.mxu0 %v16510_v43  ;;  %v16446_v43 = vcombine.low %v4341_v33, %v4349_v34  ;;  %v11113_v11 = vadd.f32 %v11112_v44, %v11111_v39  ;;  %v4293_v17 = vld [vmem:[#allocation12 + $0x1438] sm:$0xff]  ;;  %v11242_v24 = vrot.slane %v11241_v61, 1  ;;  %v11128_v34 = vrot.slane %v11127_v26, 1  ;;  %v17595_v44 = vld [vmem:[#allocation13 + $0xf0] sm:$0xff]  }
 0x867   :  { %11078 = vmatpush2.bf16.msra.mxu1 %v16766_v57  ;;  %11038 = vmatprep.subr.bf16.mxu0 %v16495_v14  ;;  %v16702_v57 = vcombine.low %v4597_v19, %v4605_v36  ;;  %v16431_v14 = vcombine.high %v4325_v59, %v4333_v40  ;;  %v4301_v16 = vld [vmem:[#allocation12 + $0x1478] sm:$0xff] }
 0x868   :  { %11079 = vmatprep.subr.bf16.mxu1 %v16751_v18  ;;  %v16687_v18 = vcombine.high %v4581_v42, %v4589_v4  ;;  %v4549_v47 = vld [vmem:[#allocation12 + $0x1c38] sm:$0xff]  ;;  %v16398_v35 = vcombine.low %v4293_v17, %v4301_v16  ;;  %v11243_v19 = vadd.f32 %v11242_v24, %v11241_v61  ;;  %v11129_v39 = vadd.f32 %v11128_v34, %v11127_v26  ;;  %v17601_v34 = vld [vmem:[#allocation13 + $0xa8] sm:$0xff]  }
 0x869   :  { %v4557_v22 = vld [vmem:[#allocation12 + $0x1c78] sm:$0xff]  ;;  %v11151_v24 = vsel %vm2358_vm0, %v18715_v9, 0.0 }
 0x86a   :  { %11039 = vmatpush2.bf16.msra.mxu0 %v16494_v53  ;;  %v4573_v53 = vld [vmem:[#allocation12 + $0x1cf8] sm:$0xff]  ;;  %v16655_v33 = vcombine.high %v4549_v47, %v4557_v22  ;;  %v16654_v36 = vcombine.low %v4549_v47, %v4557_v22 }
 0x86b   :  { %11080 = vmatpush2.bf16.msra.mxu1 %v16750_v63  ;;  %11040 = vmatprep.subr.bf16.mxu0 %v16479_v13  ;;  %v16430_v63 = vcombine.low %v4325_v59, %v4333_v40  ;;  %v11255_v13 = vadd.f32 %v11254_v3, %v11253_v38  ;;  %v16671_v12 = vcombine.high %v4565_v23, %v4573_v53  ;;  %v17590_v37 = vld [vmem:[#allocation13 + $0x78] sm:$0xff]  }
 0x86c   :  { %11081 = vmatprep.subr.bf16.mxu1 %v16735_v10  ;;  %v16415_v10 = vcombine.high %v4309_v45, %v4317_v46  ;;  %v17591_v38 = vld [vmem:[#allocation13 + $0xf8] sm:$0xff]  }
 0x86d   :  { %v11256_v31 = vrot.slane %v11255_v13, 1  ;;  %v17592_v59 = vld [vmem:[#allocation13 + $0x38] sm:$0xff]  }
 0x86e   :  { %11041 = vmatpush2.bf16.msra.mxu0 %v16478_v20  ;;  %v16414_v20 = vcombine.low %v4309_v45, %v4317_v46  ;;  %v17593_v42 = vld [vmem:[#allocation13 + $0xb8] sm:$0xff]  }
 0x86f   :  { %11082 = vmatpush2.bf16.msra.mxu1 %v16734_v27  ;;  %11042 = vmatprep.subr.bf16.mxu0 %v16463_v30  ;;  %v16670_v27 = vcombine.low %v4565_v23, %v4573_v53  ;;  %v16399_v30 = vcombine.high %v4293_v17, %v4301_v16  ;;  %v11102_v23 = vsel %vm2358_vm0, %v18657_v25, 0.0  ;;  %v11265_v53 = vsel %vm2358_vm0, %v11219_v41, 0.0  ;;  %v17605_v41 = vld [vmem:[#allocation13 + $0xa0] sm:$0xff]  }
 0x870   :  { %11083 = vmatprep.subr.bf16.mxu1 %v16719_v32  ;;  %v11114_v32 = vrot.slane %v11113_v11, 1  ;;  %v11137_v16 = vsel %vm2358_vm0, %v18697_v8, 0.0  ;;  %v11103_v22 = vrot.slane %v11102_v23, 4 }
 0x872   :  { %11043 = vmatpush2.bf16.msra.mxu0 %v16462_v60  ;;  %v11257_v60 = vadd.f32 %v11256_v31, %v11255_v13  ;;  %v17598_v13 = vld [vmem:[#allocation13 + $0x68] sm:$0xff]  }
 0x873   :  { %11084 = vmatpush2.bf16.msra.mxu1 %v16718_v21  ;;  %11044 = vmatprep.subr.bf16.mxu0 %v16447_v2  ;;  %v11115_v21 = vadd.f32 %v11114_v32, %v11113_v11  ;;  %v11214_v2 = vmul.f32 %v18657_v25, %v18657_v25 }
 0x874   :  { %11085 = vmatprep.subr.bf16.mxu1 %v16703_v15  ;;  %v11216_v15 = vmul.f32 %v18675_v62, %v18675_v62  ;;  %v11345_v4 = vsel %vm2479_vm1, %v11129_v39, %v11257_v60  ;;  %v17603_v60 = vld [vmem:[#allocation13 + $0xe0] sm:$0xff]  }
 0x875   :  { %v11343_v40 = vsel %vm2479_vm1, %v11115_v21, %v11243_v19  ;;  %v11230_v3 = vsel %vm2358_vm0, %v11214_v2, 0.0  ;;  %v11361_v46 = vpack.c.bf16 %v11345_v4, %v11345_v4  ;;  %v11152_v21 = vrot.slane %v11151_v24, 4 }
 0x876   :  { %11045 = vmatpush2.bf16.msra.mxu0 %v16446_v43  ;;  %v17594_v43 = vld [vmem:[#allocation13 + $0x70] sm:$0xff]   ;;  %v11104_v2 = vadd.f32 %v11103_v22, %v11102_v23 }
 0x877   :  { %11086 = vmatpush2.bf16.msra.mxu1 %v16702_v57  ;;  %11046 = vmatprep.subr.bf16.mxu0 %v16431_v14  ;;  %v11359_v14 = vpack.c.bf16 %v11343_v40, %v11343_v40  ;;  %v17610_v23 = vld [vmem:[#allocation13 + $0x50] sm:$0xff]  }
 0x878   :  { %11087 = vmatprep.subr.bf16.mxu1 %v16687_v18  ;;  %v11244_v18 = vsel %vm2358_vm0, %v11216_v15, 0.0  ;;  %v17604_v15 = vld [vmem:[#allocation13 + $0x20] sm:$0xff]  }
 0x879   :  { %v11245_v17 = vrot.slane %v11244_v18, 4 }
 0x87a   :  { %11047 = vmatpush2.bf16.msra.mxu0 %v16430_v63  ;;  %v17597_v63 = vld [vmem:[#allocation13 + $0xb0] sm:$0xff]  }
 0x87b   :  { %11088 = vmatpush2.bf16.msra.mxu1 %v16686_v1  ;;  %11048 = vmatprep.subr.bf16.mxu0 %v16415_v10  ;;  %v11231_v1 = vrot.slane %v11230_v3, 4  ;;  %v11116_v10 = vsel %vm2358_vm0, %v18675_v62, 0.0 }
 0x87c   :  { %11089 = vmatprep.subr.bf16.mxu1 %v16671_v12  ;;  %v17599_v12 = vld [vmem:[#allocation13 + $0xe8] sm:$0xff]   ;;  %v11117_v31 = vrot.slane %v11116_v10, 4 }
 0x87d   :  { %v11232_v19 = vadd.f32 %v11231_v1, %v11230_v3 }
 0x87e   :  { %11049 = vmatpush2.bf16.msra.mxu0 %v16414_v20  ;;  %v11266_v20 = vrot.slane %v11265_v53, 4 }
 0x87f   :  { %11090 = vmatpush2.bf16.msra.mxu1 %v16670_v27  ;;  %11050 = vmatprep.subr.bf16.mxu0 %v16399_v30  ;;  %v17600_v30 = vld [vmem:[#allocation13 + $0x28] sm:$0xff]   ;;  %v11233_v4 = vrot.slane %v11232_v19, 2 }
 0x880   :  { %11091 = vmatprep.subr.bf16.mxu1 %v16655_v33  ;;  %v11267_v39 = vadd.f32 %v11266_v20, %v11265_v53 }
 0x881   :  { %v11234_v53 = vadd.f32 %v11233_v4, %v11232_v19  ;;  %v17618_v19 = vld [vmem:[#allocation13 + $0x40] sm:$0xff]  }
 0x882   :  { %11051 = vmatpush2.bf16.msra.mxu0 %v16398_v35  ;;  %v17602_v35 = vld [vmem:[#allocation13 + $0x60] sm:$0xff]  }
 0x883   :  { %11092 = vmatpush2.bf16.msra.mxu1 %v16654_v36  ;;  %17281 = vmatprep.subr.bf16.mxu0 %v17590_v37  ;;  %v11138_v36 = vrot.slane %v11137_v16, 4  ;;  %v11235_v22 = vrot.slane %v11234_v53, 1 }
 0x884   :  { %17303 = vmatprep.subr.bf16.mxu1 %v17591_v38  ;;  %v11246_v38 = vadd.f32 %v11245_v17, %v11244_v18  ;;  %v17608_v18 = vld [vmem:[#allocation13 + $0x18] sm:$0xff]  }
 0x885   :  { %v10808_v57 = vpop.f32.mrf.mxu0  ;;  %11053 = vmatmul.mubr.bf16.vlgmr.msra.gmra.mxu0 %v18633_v54 }
 0x886   :  { %v10849_v45 = vpop.f32.mrf.mxu1  ;;  %11094 = vmatmul.mubr.bf16.vlgmr.msra.gmra.mxu1 %v18635_v56  ;;  %17282 = vmatpush3.bf16.msra.mxu0 %v17592_v59  ;;  %v11279_v56 = vsel %vm2358_vm0, %v11221_v52, 0.0  ;;  %v11118_v59 = vadd.f32 %v11117_v31, %v11116_v10  ;;  %v11139_v52 = vadd.f32 %v11138_v36, %v11137_v16  ;;  %v11247_v3 = vrot.slane %v11246_v38, 2  ;;  %v17613_v16 = vld [vmem:[#allocation13 + $0x90] sm:$0xff]  }
 0x887   :  { %v18780_v61 = vadd.f32 %v10849_v45, %v10808_v57  ;;  %12430 = vmatprep.mubr.bf16.mxu0 %v11359_v14  ;;  %17304 = vmatpush3.bf16.msra.mxu1 %v17593_v42  ;;  %v10810_v54 = vpop.f32.mrf.mxu0  ;;  %v11280_v32 = vrot.slane %v11279_v56, 4  ;;  %v17606_v42 = vld [vmem:[#allocation13 + $0x58] sm:$0xff]   ;;  %v11153_v57 = vadd.f32 %v11152_v21, %v11151_v24  ;;  %v11105_v14 = vrot.slane %v11104_v2, 2  ;;  %v17615_v24 = vld [vmem:[#allocation13 + $0xc8] sm:$0xff]  }
 0x888   :  { %12470 = vmatprep.mubr.bf16.mxu1 %v11361_v46  ;;  %v10851_v11 = vpop.f32.mrf.mxu1  ;;  %17283 = vmatprep.subr.bf16.mxu0 %v17594_v43  ;;  %v17607_v43 = vld [vmem:[#allocation13 + $0xd8] sm:$0xff]   ;;  %v11119_v45 = vrot.slane %v11118_v59, 2 }
 0x889   :  { %v18787_v26 = vadd.f32 %v10851_v11, %v10810_v54  ;;  %v10812_v47 = vpop.f32.mrf.mxu0  ;;  %17305 = vmatprep.subr.bf16.mxu1 %v17595_v44  ;;  %v11281_v40 = vadd.f32 %v11280_v32, %v11279_v56  ;;  %v11268_v44 = vrot.slane %v11267_v39, 2  ;;  %v11140_v54 = vrot.slane %v11139_v52, 2  ;;  %v17612_v11 = vld [vmem:[#allocation13 + $0x10] sm:$0xff]   ;;  %v17616_v32 = vld [vmem:[#allocation13 + $0x8] sm:$0xff]  }
 0x88a   :  { %v10853_v27 = vpop.f32.mrf.mxu1  ;;  %17284 = vmatpush3.bf16.msra.mxu0 %v17596_v5  ;;  %v17609_v5 = vld [vmem:[#allocation13 + $0x98] sm:$0xff]   ;;  %v11154_v1 = vrot.slane %v11153_v57, 2  ;;  %v11106_v10 = vadd.f32 %v11105_v14, %v11104_v2  ;;  %v17614_v47 = vld [vmem:[#allocation13 + $0x48] sm:$0xff]  }
 0x88b   :  { %17306 = vmatpush3.bf16.msra.mxu1 %v17597_v63  ;;  %v10813_v33 = vpop.f32.mrf.mxu0  ;;  %17285 = vmatprep.subr.bf16.mxu0 %v17598_v13  ;;  %v11282_v46 = vrot.slane %v11281_v40, 2  ;;  %v17611_v63 = vld [vmem:[#allocation13 + $0xd0] sm:$0xff]   ;;  %v11248_v13 = vadd.f32 %v11247_v3, %v11246_v38  ;;  %v11269_v56 = vadd.f32 %v11268_v44, %v11267_v39  ;;  %v11141_v20 = vadd.f32 %v11140_v54, %v11139_v52  ;;  %v17619_v38 = vld [vmem:[#allocation13 + $0xc0] sm:$0xff]  }
 0x88c   :  { %v10854_v37 = vpop.f32.mrf.mxu1  ;;  %17307 = vmatprep.subr.bf16.mxu1 %v17599_v12  ;;  %v11120_v12 = vadd.f32 %v11119_v45, %v11118_v59  ;;  %v11107_v31 = vrot.slane %v11106_v10, 1  ;;  %v17624_v45 = vld [vmem:[#allocation13 + $0x138] sm:$0xff]  }
 0x88d   :  { %v11283_v17 = vadd.f32 %v11282_v46, %v11281_v40  ;;  %v11249_v27 = vrot.slane %v11248_v13, 1  ;;  %v11270_v33 = vrot.slane %v11269_v56, 1  ;;  %v11236_v37 = vadd.f32 %v11235_v22, %v11234_v53  ;;  %v17625_v53 = vld [vmem:[#allocation13 + $0x1b8] sm:$0xff]  }
 0x88e   :  { %17286 = vmatpush3.bf16.msra.mxu0 %v17600_v30  ;;  %v11155_v30 = vadd.f32 %v11154_v1, %v11153_v57  ;;  %v11108_v39 = vadd.f32 %v11107_v31, %v11106_v10  ;;  %v11218_v57 = vmul.f32 %v18693_v55, %v18693_v55  ;;  %v17626_v1 = vld [vmem:[#allocation13 + $0x170] sm:$0xff]  }
 0x88f   :  { %17308 = vmatpush3.bf16.msra.mxu1 %v17601_v34  ;;  %17287 = vmatprep.subr.bf16.mxu0 %v17602_v35  ;;  %v11121_v34 = vrot.slane %v11120_v12, 1  ;;  %v17617_v35 = vld [vmem:[#allocation13 + $0x88] sm:$0xff]   ;;  %v11284_v36 = vrot.slane %v11283_v17, 1  ;;  %v11250_v21 = vadd.f32 %v11249_v27, %v11248_v13  ;;  %v11271_v59 = vadd.f32 %v11270_v33, %v11269_v56 }
 0x890   :  { %17309 = vmatprep.subr.bf16.mxu1 %v17603_v60  ;;  %v11142_v60 = vrot.slane %v11141_v20, 1  ;;  %v11156_v2 = vrot.slane %v11155_v30, 1  ;;  %v11342_v52 = vsel %vm2479_vm1, %v11108_v39, %v11236_v37  ;;  %v11258_v10 = vsel %vm2358_vm0, %v11218_v57, 0.0  ;;  %v17632_v37 = vld [vmem:[#allocation13 + $0x128] sm:$0xff]   ;;  %v17637_v57 = vld [vmem:[#allocation13 + $0x1a0] sm:$0xff]  }
 0x891   :  { %v11122_v40 = vadd.f32 %v11121_v34, %v11120_v12  ;;  %v11285_v4 = vadd.f32 %v11284_v36, %v11283_v17  ;;  %v11259_v27 = vrot.slane %v11258_v10, 4  ;;  %v11165_v34 = vsel %vm2358_vm0, %v18733_v29, 0.0 }
 0x892   :  { %17288 = vmatpush3.bf16.msra.mxu0 %v17604_v15  ;;  %v17620_v15 = vld [vmem:[#allocation13] sm:$0xff]   ;;  %v11143_v3 = vadd.f32 %v11142_v60, %v11141_v20  ;;  %v11157_v44 = vadd.f32 %v11156_v2, %v11155_v30  ;;  %v17629_v20 = vld [vmem:[#allocation13 + $0x1b0] sm:$0xff]   ;;  %v11144_v30 = vsel %vm2358_vm0, %v18711_v51, 0.0  ;;  %v11179_v36 = vsel %vm2358_vm0, %v18751_v49, 0.0 }
 0x893   :  { %17310 = vmatpush3.bf16.msra.mxu1 %v17605_v41  ;;  %17289 = vmatprep.subr.bf16.mxu0 %v17606_v42  ;;  %v17621_v41 = vld [vmem:[#allocation13 + $0x80] sm:$0xff]   ;;  %v17622_v42 = vld [vmem:[#allocation13 + $0x178] sm:$0xff]   ;;  %v11344_v14 = vsel %vm2479_vm1, %v11122_v40, %v11250_v21  ;;  %v11145_v60 = vrot.slane %v11144_v30, 4  ;;  %v17633_v21 = vld [vmem:[#allocation13 + $0x1a8] sm:$0xff]   ;;  %v11260_v39 = vadd.f32 %v11259_v27, %v11258_v10 }
 0x894   :  { %17311 = vmatprep.subr.bf16.mxu1 %v17607_v43  ;;  %v17623_v43 = vld [vmem:[#allocation13 + $0x1f8] sm:$0xff]   ;;  %v11347_v46 = vsel %vm2479_vm1, %v11143_v3, %v11271_v59  ;;  %v11349_v54 = vsel %vm2479_vm1, %v11157_v44, %v11285_v4  ;;  %v11360_v13 = vpack.c.bf16 %v11344_v14, %v11344_v14  ;;  %v17634_v2 = vld [vmem:[#allocation13 + $0x160] sm:$0xff]   ;;  %v17642_v10 = vld [vmem:[#allocation13 + $0x150] sm:$0xff]  }
 0x895   :  { %v11363_v56 = vpack.c.bf16 %v11347_v46, %v11347_v46  ;;  %v11365_v17 = vpack.c.bf16 %v11349_v54, %v11349_v54  ;;  %v17635_v59 = vld [vmem:[#allocation13 + $0x1e0] sm:$0xff]   ;;  %v17638_v14 = vld [vmem:[#allocation13 + $0x158] sm:$0xff]   ;;  %v11261_v44 = vrot.slane %v11260_v39, 2 }
 0x896   :  { %17290 = vmatpush3.bf16.msra.mxu0 %v17608_v18  ;;  %v11220_v18 = vmul.f32 %v18711_v51, %v18711_v51  ;;  %v17640_v54 = vld [vmem:[#allocation13 + $0x118] sm:$0xff]  }
 0x897   :  { %17312 = vmatpush3.bf16.msra.mxu1 %v17609_v5  ;;  %17291 = vmatprep.subr.bf16.mxu0 %v17610_v23  ;;  %v11223_v5 = vmul.f32 %v18733_v29, %v18733_v29  ;;  %v11358_v23 = vpack.c.bf16 %v11342_v52, %v11342_v52  ;;  %v17636_v52 = vld [vmem:[#allocation13 + $0x120] sm:$0xff]  }
 0x898   :  { %17313 = vmatprep.subr.bf16.mxu1 %v17611_v63  ;;  %v11225_v63 = vmul.f32 %v18751_v49, %v18751_v49  ;;  %v11272_v12 = vsel %vm2358_vm0, %v11220_v18, 0.0 }
 0x899   :  { %v11293_v22 = vsel %vm2358_vm0, %v11223_v5, 0.0  ;;  %v11273_v33 = vrot.slane %v11272_v12, 4 }
 0x89a   :  { %17292 = vmatpush3.bf16.msra.mxu0 %v17612_v11  ;;  %v17627_v11 = vld [vmem:[#allocation13 + $0x1f0] sm:$0xff]   ;;  %v11307_v31 = vsel %vm2358_vm0, %v11225_v63, 0.0 }
 0x89b   :  { %17314 = vmatpush3.bf16.msra.mxu1 %v17613_v16  ;;  %17293 = vmatprep.subr.bf16.mxu0 %v17614_v47  ;;  %v17628_v16 = vld [vmem:[#allocation13 + $0x130] sm:$0xff]   ;;  %v11130_v47 = vsel %vm2358_vm0, %v18693_v55, 0.0  ;;  %v11274_v40 = vadd.f32 %v11273_v33, %v11272_v12 }
 0x89c   :  { %17315 = vmatprep.subr.bf16.mxu1 %v17615_v24  ;;  %v17630_v24 = vld [vmem:[#allocation13 + $0x168] sm:$0xff]   ;;  %v17643_v12 = vld [vmem:[#allocation13 + $0x1d0] sm:$0xff]  }
 0x89d   :  { %v11275_v46 = vrot.slane %v11274_v40, 2 }
 0x89e   :  { %17294 = vmatpush3.bf16.msra.mxu0 %v17616_v32  ;;  %v17631_v32 = vld [vmem:[#allocation13 + $0x1e8] sm:$0xff]  }
 0x89f   :  { %17316 = vmatpush3.bf16.msra.mxu1 %v17617_v35  ;;  %17295 = vmatprep.subr.bf16.mxu0 %v17618_v19  ;;  %v11131_v35 = vrot.slane %v11130_v47, 4  ;;  %v11294_v19 = vrot.slane %v11293_v22, 4 }
 0x8a0   :  { %17317 = vmatprep.subr.bf16.mxu1 %v17619_v38  ;;  %v11308_v38 = vrot.slane %v11307_v31, 4 }
 0x8a1   :  { %v11295_v4 = vadd.f32 %v11294_v19, %v11293_v22 }
 0x8a2   :  { %17296 = vmatpush3.bf16.msra.mxu0 %v17620_v15  ;;  %v11166_v15 = vrot.slane %v11165_v34, 4  ;;  %v11309_v3 = vadd.f32 %v11308_v38, %v11307_v31  ;;  %v17646_v31 = vld [vmem:[#allocation13 + $0x148] sm:$0xff]  }
 0x8a3   :  { %17318 = vmatpush3.bf16.msra.mxu1 %v17621_v41  ;;  %17325 = vmatprep.subr.bf16.mxu0 %v17622_v42  ;;  %v11180_v41 = vrot.slane %v11179_v36, 4  ;;  %v11132_v42 = vadd.f32 %v11131_v35, %v11130_v47 }
 0x8a4   :  { %17347 = vmatprep.subr.bf16.mxu1 %v17623_v43  ;;  %v11146_v43 = vadd.f32 %v11145_v60, %v11144_v30  ;;  %v11167_v18 = vadd.f32 %v11166_v15, %v11165_v34  ;;  %v17645_v30 = vld [vmem:[#allocation13 + $0x190] sm:$0xff]   ;;  %v17647_v34 = vld [vmem:[#allocation13 + $0x1c8] sm:$0xff]  }
 0x8a5   :  { %12431 = vmatmul.mubr.bf16.vlgmr.msra.gmra.mxu0 %v11358_v23  ;;  %v11181_v5 = vadd.f32 %v11180_v41, %v11179_v36  ;;  %v11133_v23 = vrot.slane %v11132_v42, 2 }
 0x8a6   :  { %12471 = vmatmul.mubr.bf16.vlgmr.msra.gmra.mxu1 %v11360_v13  ;;  %17326 = vmatpush3.bf16.msra.mxu0 %v17624_v45  ;;  %v17639_v45 = vld [vmem:[#allocation13 + $0x1d8] sm:$0xff]   ;;  %v11147_v63 = vrot.slane %v11146_v43, 2  ;;  %v11310_v13 = vrot.slane %v11309_v3, 2 }
 0x8a7   :  { %12510 = vmatprep.mubr.bf16.mxu0 %v11363_v56  ;;  %17348 = vmatpush3.bf16.msra.mxu1 %v17625_v53  ;;  %v11296_v53 = vrot.slane %v11295_v4, 2  ;;  %v11262_v56 = vadd.f32 %v11261_v44, %v11260_v39  ;;  %v11134_v47 = vadd.f32 %v11133_v23, %v11132_v42 }
 0x8a8   :  { %12550 = vmatprep.mubr.bf16.mxu1 %v11365_v17  ;;  %17327 = vmatprep.subr.bf16.mxu0 %v17626_v1  ;;  %v17641_v1 = vld [vmem:[#allocation13 + $0x198] sm:$0xff]   ;;  %v11276_v17 = vadd.f32 %v11275_v46, %v11274_v40  ;;  %v11311_v27 = vadd.f32 %v11310_v13, %v11309_v3  ;;  %v17651_v40 = vld [vmem:[#allocation13 + $0x1c0] sm:$0xff]  }
 0x8a9   :  { %17349 = vmatprep.subr.bf16.mxu1 %v17627_v11  ;;  %v11168_v11 = vrot.slane %v11167_v18, 2  ;;  %v11297_v22 = vadd.f32 %v11296_v53, %v11295_v4  ;;  %v11135_v36 = vrot.slane %v11134_v47, 1 }
 0x8aa   :  { %17328 = vmatpush3.bf16.msra.mxu0 %v17628_v16  ;;  %v11182_v16 = vrot.slane %v11181_v5, 2  ;;  %v11277_v35 = vrot.slane %v11276_v17, 1  ;;  %v11312_v39 = vrot.slane %v11311_v27, 1 }
 0x8ab   :  { %17350 = vmatpush3.bf16.msra.mxu1 %v17629_v20  ;;  %17329 = vmatprep.subr.bf16.mxu0 %v17630_v24  ;;  %v17644_v20 = vld [vmem:[#allocation13 + $0x110] sm:$0xff]   ;;  %v11148_v24 = vadd.f32 %v11147_v63, %v11146_v43  ;;  %v11169_v33 = vadd.f32 %v11168_v11, %v11167_v18  ;;  %v11298_v60 = vrot.slane %v11297_v22, 1  ;;  %v11136_v4 = vadd.f32 %v11135_v36, %v11134_v47  ;;  %v17656_v63 = vld [vmem:[#allocation13 + $0x238] sm:$0xff]  }
 0x8ac   :  { %17351 = vmatprep.subr.bf16.mxu1 %v17631_v32  ;;  %v11263_v32 = vrot.slane %v11262_v56, 1  ;;  %v11183_v19 = vadd.f32 %v11182_v16, %v11181_v5  ;;  %v11278_v41 = vadd.f32 %v11277_v35, %v11276_v17  ;;  %v11313_v44 = vadd.f32 %v11312_v39, %v11311_v27 }
 0x8ad   :  { %v11149_v38 = vrot.slane %v11148_v24, 1  ;;  %v11299_v43 = vadd.f32 %v11298_v60, %v11297_v22  ;;  %v11222_v5 = vmul.f32 %v18729_v7, %v18729_v7  ;;  %v17659_v22 = vld [vmem:[#allocation13 + $0x2f0] sm:$0xff]   ;;  %v17663_v60 = vld [vmem:[#allocation13 + $0x2e8] sm:$0xff]  }
 0x8ae   :  { %17330 = vmatpush3.bf16.msra.mxu0 %v17632_v37  ;;  %v17648_v37 = vld [vmem:[#allocation13 + $0x108] sm:$0xff]   ;;  %v11264_v15 = vadd.f32 %v11263_v32, %v11262_v56  ;;  %v11184_v42 = vrot.slane %v11183_v19, 1 }
 0x8af   :  { %17352 = vmatpush3.bf16.msra.mxu1 %v17633_v21  ;;  %17331 = vmatprep.subr.bf16.mxu0 %v17634_v2  ;;  %v17649_v21 = vld [vmem:[#allocation13 + $0x188] sm:$0xff]   ;;  %v17650_v2 = vld [vmem:[#allocation13 + $0x140] sm:$0xff]   ;;  %v11150_v3 = vadd.f32 %v11149_v38, %v11148_v24  ;;  %v11286_v17 = vsel %vm2358_vm0, %v11222_v5, 0.0 }
 0x8b0   :  { %17353 = vmatprep.subr.bf16.mxu1 %v17635_v59  ;;  %v11170_v59 = vrot.slane %v11169_v33, 1  ;;  %v11346_v18 = vsel %vm2479_vm1, %v11136_v4, %v11264_v15  ;;  %v11185_v53 = vadd.f32 %v11184_v42, %v11183_v19  ;;  %v11287_v35 = vrot.slane %v11286_v17, 4  ;;  %v17665_v42 = vld [vmem:[#allocation13 + $0x2a8] sm:$0xff]   ;;  %v17666_v4 = vld [vmem:[#allocation13 + $0x260] sm:$0xff]  }
 0x8b1   :  { %v11348_v23 = vsel %vm2479_vm1, %v11150_v3, %v11278_v41  ;;  %v11172_v19 = vsel %vm2358_vm0, %v18747_v58, 0.0 }
 0x8b2   :  { %17332 = vmatpush3.bf16.msra.mxu0 %v17636_v52  ;;  %v17652_v52 = vld [vmem:[#allocation13 + $0x100] sm:$0xff]   ;;  %v11171_v46 = vadd.f32 %v11170_v59, %v11169_v33  ;;  %v11353_v56 = vsel %vm2479_vm1, %v11185_v53, %v11313_v44  ;;  %v11364_v11 = vpack.c.bf16 %v11348_v23, %v11348_v23  ;;  %v17661_v33 = vld [vmem:[#allocation13 + $0x2b0] sm:$0xff]   ;;  %v17664_v59 = vld [vmem:[#allocation13 + $0x228] sm:$0xff]  }
 0x8b3   :  { %17354 = vmatpush3.bf16.msra.mxu1 %v17637_v57  ;;  %17333 = vmatprep.subr.bf16.mxu0 %v17638_v14  ;;  %v17653_v57 = vld [vmem:[#allocation13 + $0x180] sm:$0xff]   ;;  %v17654_v14 = vld [vmem:[#allocation13 + $0x278] sm:$0xff]   ;;  %v11369_v27 = vpack.c.bf16 %v11353_v56, %v11353_v56 }
 0x8b4   :  { %17355 = vmatprep.subr.bf16.mxu1 %v17639_v45  ;;  %v17655_v45 = vld [vmem:[#allocation13 + $0x2f8] sm:$0xff]   ;;  %v11351_v13 = vsel %vm2479_vm1, %v11171_v46, %v11299_v43  ;;  %v17668_v46 = vld [vmem:[#allocation13 + $0x220] sm:$0xff]  }
 0x8b5   :  { %v11367_v47 = vpack.c.bf16 %v11351_v13, %v11351_v13  ;;  %v17669_v53 = vld [vmem:[#allocation13 + $0x2a0] sm:$0xff]  }
 0x8b6   :  { %17334 = vmatpush3.bf16.msra.mxu0 %v17640_v54  ;;  %v11224_v54 = vmul.f32 %v18747_v58, %v18747_v58 }
 0x8b7   :  { %17356 = vmatpush3.bf16.msra.mxu1 %v17641_v1  ;;  %17335 = vmatprep.subr.bf16.mxu0 %v17642_v10  ;;  %v11362_v1 = vpack.c.bf16 %v11346_v18, %v11346_v18  ;;  %v17657_v10 = vld [vmem:[#allocation13 + $0x2b8] sm:$0xff]  }
 0x8b8   :  { %17357 = vmatprep.subr.bf16.mxu1 %v17643_v12  ;;  %v17658_v12 = vld [vmem:[#allocation13 + $0x270] sm:$0xff]  }
 0x8ba   :  { %17336 = vmatpush3.bf16.msra.mxu0 %v17644_v20  ;;  %v11300_v20 = vsel %vm2358_vm0, %v11224_v54, 0.0  ;;  %v17670_v54 = vld [vmem:[#allocation13 + $0x258] sm:$0xff]  }
 0x8bb   :  { %17358 = vmatpush3.bf16.msra.mxu1 %v17645_v30  ;;  %17337 = vmatprep.subr.bf16.mxu0 %v17646_v31  ;;  %v17660_v30 = vld [vmem:[#allocation13 + $0x230] sm:$0xff]   ;;  %v11158_v31 = vsel %vm2358_vm0, %v18729_v7, 0.0  ;;  %v11301_v38 = vrot.slane %v11300_v20, 4 }
 0x8bc   :  { %17359 = vmatprep.subr.bf16.mxu1 %v17647_v34  ;;  %v17662_v34 = vld [vmem:[#allocation13 + $0x268] sm:$0xff]  }
 0x8be   :  { %17338 = vmatpush3.bf16.msra.mxu0 %v17648_v37 }
 0x8bf   :  { %17360 = vmatpush3.bf16.msra.mxu1 %v17649_v21  ;;  %17339 = vmatprep.subr.bf16.mxu0 %v17650_v2  ;;  %v11159_v2 = vrot.slane %v11158_v31, 4 }
 0x8c0   :  { %17361 = vmatprep.subr.bf16.mxu1 %v17651_v40  ;;  %v11173_v40 = vrot.slane %v11172_v19, 4 }
 0x8c1   :  { %v11160_v18 = vadd.f32 %v11159_v2, %v11158_v31  ;;  %v17675_v31 = vld [vmem:[#allocation13 + $0x2d0] sm:$0xff]  }
 0x8c2   :  { %17340 = vmatpush3.bf16.msra.mxu0 %v17652_v52  ;;  %v11288_v52 = vadd.f32 %v11287_v35, %v11286_v17  ;;  %v11174_v5 = vadd.f32 %v11173_v40, %v11172_v19  ;;  %v17676_v35 = vld [vmem:[#allocation13 + $0x210] sm:$0xff]   ;;  %v17680_v40 = vld [vmem:[#allocation13 + $0x208] sm:$0xff]  }
 0x8c3   :  { %17362 = vmatpush3.bf16.msra.mxu1 %v17653_v57  ;;  %17369 = vmatprep.subr.bf16.mxu0 %v17654_v14  ;;  %v17667_v57 = vld [vmem:[#allocation13 + $0x2e0] sm:$0xff]   ;;  %v11302_v14 = vadd.f32 %v11301_v38, %v11300_v20  ;;  %v17674_v20 = vld [vmem:[#allocation13 + $0x250] sm:$0xff]  }
 0x8c4   :  { %17391 = vmatprep.subr.bf16.mxu1 %v17655_v45  ;;  %v11175_v17 = vrot.slane %v11174_v5, 2 }
 0x8c5   :  { %v18824_v16 = vpop.f32.mrf.mxu0  ;;  %12511 = vmatmul.mubr.bf16.vlgmr.msra.gmra.mxu0 %v11362_v1  ;;  %v17671_v1 = vld [vmem:[#allocation13 + $0x2d8] sm:$0xff]  }
 0x8c6   :  { %v18827_v24 = vpop.f32.mrf.mxu1  ;;  %12551 = vmatmul.mubr.bf16.vlgmr.msra.gmra.mxu1 %v11364_v11  ;;  %17370 = vmatpush3.bf16.msra.mxu0 %v17656_v63  ;;  %v11289_v63 = vrot.slane %v11288_v52, 2  ;;  %v11161_v11 = vrot.slane %v11160_v18, 2  ;;  %v11176_v19 = vadd.f32 %v11175_v17, %v11174_v5 }
 0x8c7   :  { %12590 = vmatprep.mubr.bf16.mxu0 %v11367_v47  ;;  %17392 = vmatpush3.bf16.msra.mxu1 %v17657_v10  ;;  %v10892_v32 = vpop.f32.mrf.mxu0  ;;  %v11303_v10 = vrot.slane %v11302_v14, 2 }
 0x8c8   :  { %12630 = vmatprep.mubr.bf16.mxu1 %v11369_v27  ;;  %v10893_v36 = vadd.f32 %v10892_v32, %v18787_v26  ;;  %v10933_v37 = vpop.f32.mrf.mxu1  ;;  %17371 = vmatprep.subr.bf16.mxu0 %v17658_v12  ;;  %v17672_v12 = vld [vmem:[#allocation13 + $0x218] sm:$0xff]   ;;  %v11290_v27 = vadd.f32 %v11289_v63, %v11288_v52  ;;  %v17682_v52 = vld [vmem:[#allocation13 + $0x240] sm:$0xff]  }
 0x8c9   :  { %v10894_v21 = vpop.f32.mrf.mxu0  ;;  %17393 = vmatprep.subr.bf16.mxu1 %v17659_v22  ;;  %v17673_v22 = vld [vmem:[#allocation13 + $0x298] sm:$0xff]   ;;  %v11304_v32 = vadd.f32 %v11303_v10, %v11302_v14  ;;  %v17688_v10 = vld [vmem:[#allocation13 + $0x370] sm:$0xff]  }
 0x8ca   :  { %v18834_v39 = vadd.f32 %v10933_v37, %v10893_v36  ;;  %v10935_v15 = vpop.f32.mrf.mxu1  ;;  %17372 = vmatpush3.bf16.msra.mxu0 %v17660_v30  ;;  %v17677_v36 = vld [vmem:[#allocation13 + $0x290] sm:$0xff]   ;;  %v17678_v37 = vld [vmem:[#allocation13 + $0x248] sm:$0xff]   ;;  %v17687_v63 = vld [vmem:[#allocation13 + $0x338] sm:$0xff]  }
 0x8cb   :  { %17394 = vmatpush3.bf16.msra.mxu1 %v17661_v33  ;;  %v10895_v41 = vpop.f32.mrf.mxu0  ;;  %17373 = vmatprep.subr.bf16.mxu0 %v17662_v34  ;;  %v11162_v33 = vadd.f32 %v11161_v11, %v11160_v18  ;;  %v17679_v21 = vld [vmem:[#allocation13 + $0x2c8] sm:$0xff]   ;;  %v11305_v2 = vrot.slane %v11304_v32, 1  ;;  %v10891_v15 = vadd.f32 %v18824_v16, %v18780_v61  ;;  %v17684_v61 = vld [vmem:[#allocation13 + $0x200] sm:$0xff]   ;;  %v17703_v11 = vld [vmem:[#allocation13 + $0x3b8] sm:$0xff]  }
 0x8cc   :  { %v11193_v26 = vsel %vm2358_vm0, %v18834_v39, 0.0  ;;  %v11227_v43 = vmul.f32 %v18834_v39, %v18834_v39  ;;  %v10936_v3 = vpop.f32.mrf.mxu1  ;;  %17395 = vmatprep.subr.bf16.mxu1 %v17663_v60  ;;  %v11291_v60 = vrot.slane %v11290_v27, 1 }
 0x8cd   :  { %v11194_v44 = vrot.slane %v11193_v26, 4  ;;  %v17683_v3 = vld [vmem:[#allocation13 + $0x2c0] sm:$0xff]   ;;  %v18844_v14 = vadd.f32 %v18827_v24, %v10891_v15 }
 0x8ce   :  { %v11321_v45 = vsel %vm2358_vm0, %v11227_v43, 0.0  ;;  %17374 = vmatpush3.bf16.msra.mxu0 %v17664_v59  ;;  %v11163_v59 = vrot.slane %v11162_v33, 1  ;;  %v17709_v15 = vld [vmem:[#allocation13 + $0x3a0] sm:$0xff]  }
 0x8cf   :  { %v11322_v23 = vrot.slane %v11321_v45, 4  ;;  %17396 = vmatpush3.bf16.msra.mxu1 %v17665_v42  ;;  %17375 = vmatprep.subr.bf16.mxu0 %v17666_v4  ;;  %v11195_v13 = vadd.f32 %v11194_v44, %v11193_v26  ;;  %v11177_v42 = vrot.slane %v11176_v19, 1  ;;  %v17681_v4 = vld [vmem:[#allocation13 + $0x288] sm:$0xff]   ;;  %v11292_v26 = vadd.f32 %v11291_v60, %v11290_v27 }
 0x8d0   :  { %17397 = vmatprep.subr.bf16.mxu1 %v17667_v57  ;;  %v11306_v57 = vadd.f32 %v11305_v2, %v11304_v32  ;;  %v11164_v44 = vadd.f32 %v11163_v59, %v11162_v33  ;;  %v17690_v27 = vld [vmem:[#allocation13 + $0x368] sm:$0xff]   ;;  %v17710_v59 = vld [vmem:[#allocation13 + $0x3d8] sm:$0xff]  }
 0x8d1   :  { %v11323_v56 = vadd.f32 %v11322_v23, %v11321_v45  ;;  %v11196_v30 = vrot.slane %v11195_v13, 2  ;;  %v11178_v18 = vadd.f32 %v11177_v42, %v11176_v19  ;;  %v17685_v45 = vld [vmem:[#allocation13 + $0x280] sm:$0xff]   ;;  %v17706_v32 = vld [vmem:[#allocation13 + $0x3e8] sm:$0xff]   ;;  %v17696_v42 = vld [vmem:[#allocation13 + $0x350] sm:$0xff]  }
 0x8d2   :  { %17376 = vmatpush3.bf16.msra.mxu0 %v17668_v46  ;;  %v17686_v46 = vld [vmem:[#allocation13 + $0x378] sm:$0xff]   ;;  %v11350_v5 = vsel %vm2479_vm1, %v11164_v44, %v11292_v26  ;;  %v17712_v26 = vld [vmem:[#allocation13 + $0x3d0] sm:$0xff]  }
 0x8d3   :  { %v11324_v47 = vrot.slane %v11323_v56, 2  ;;  %17398 = vmatpush3.bf16.msra.mxu1 %v17669_v53  ;;  %17377 = vmatprep.subr.bf16.mxu0 %v17670_v54  ;;  %v11197_v38 = vadd.f32 %v11196_v30, %v11195_v13  ;;  %v17702_v53 = vld [vmem:[#allocation13 + $0x3f8] sm:$0xff]   ;;  %v11226_v54 = vmul.f32 %v18844_v14, %v18844_v14  ;;  %v11352_v24 = vsel %vm2479_vm1, %v11178_v18, %v11306_v57  ;;  %v17698_v57 = vld [vmem:[#allocation13 + $0x348] sm:$0xff]  }
 0x8d4   :  { %17399 = vmatprep.subr.bf16.mxu1 %v17671_v1  ;;  %v11366_v1 = vpack.c.bf16 %v11350_v5, %v11350_v5 }
 0x8d5   :  { %v11325_v34 = vadd.f32 %v11324_v47, %v11323_v56  ;;  %v11198_v43 = vrot.slane %v11197_v38, 1  ;;  %v11368_v56 = vpack.c.bf16 %v11352_v24, %v11352_v24  ;;  %v17704_v47 = vld [vmem:[#allocation13 + $0x3f0] sm:$0xff]   ;;  %v17701_v24 = vld [vmem:[#allocation13 + $0x300] sm:$0xff]  }
 0x8d6   :  { %17378 = vmatpush3.bf16.msra.mxu0 %v17672_v12  ;;  %v11314_v12 = vsel %vm2358_vm0, %v11226_v54, 0.0 }
 0x8d7   :  { %17400 = vmatpush3.bf16.msra.mxu1 %v17673_v22  ;;  %17379 = vmatprep.subr.bf16.mxu0 %v17674_v20  ;;  %v11326_v41 = vrot.slane %v11325_v34, 1  ;;  %v11199_v23 = vadd.f32 %v11198_v43, %v11197_v38  ;;  %v17689_v22 = vld [vmem:[#allocation13 + $0x330] sm:$0xff]   ;;  %v11186_v20 = vsel %vm2358_vm0, %v18844_v14, 0.0  ;;  %v11315_v30 = vrot.slane %v11314_v12, 4  ;;  %v17693_v38 = vld [vmem:[#allocation13 + $0x320] sm:$0xff]  }
 0x8d8   :  { %17401 = vmatprep.subr.bf16.mxu1 %v17675_v31  ;;  %v17705_v31 = vld [vmem:[#allocation13 + $0x3b0] sm:$0xff]   ;;  %v11187_v33 = vrot.slane %v11186_v20, 4 }
 0x8d9   :  { %v11327_v16 = vadd.f32 %v11326_v41, %v11325_v34  ;;  %v17691_v34 = vld [vmem:[#allocation13 + $0x328] sm:$0xff]   ;;  %v11316_v19 = vadd.f32 %v11315_v30, %v11314_v12  ;;  %v17695_v41 = vld [vmem:[#allocation13 + $0x318] sm:$0xff]  }
 0x8da   :  { %17380 = vmatpush3.bf16.msra.mxu0 %v17676_v35  ;;  %v17692_v35 = vld [vmem:[#allocation13 + $0x360] sm:$0xff]   ;;  %v11188_v60 = vadd.f32 %v11187_v33, %v11186_v20 }
 0x8db   :  { %17402 = vmatpush3.bf16.msra.mxu1 %v17677_v36  ;;  %17381 = vmatprep.subr.bf16.mxu0 %v17678_v37  ;;  %v11355_v13 = vsel %vm2479_vm1, %v11199_v23, %v11327_v16  ;;  %v17707_v36 = vld [vmem:[#allocation13 + $0x3a8] sm:$0xff]   ;;  %v17708_v37 = vld [vmem:[#allocation13 + $0x3e0] sm:$0xff]   ;;  %v11317_v2 = vrot.slane %v11316_v19, 2 }
 0x8dc   :  { %17403 = vmatprep.subr.bf16.mxu1 %v17679_v21  ;;  %v11371_v17 = vpack.c.bf16 %v11355_v13, %v11355_v13  ;;  %v17694_v21 = vld [vmem:[#allocation13 + $0x358] sm:$0xff]   ;;  %v17714_v16 = vld [vmem:[#allocation13 + $0x3c8] sm:$0xff]   ;;  %v17717_v13 = vld [vmem:[#allocation13 + $0x380] sm:$0xff]  }
 0x8dd   :  { %v17715_v23 = vld [vmem:[#allocation13 + $0x388] sm:$0xff]  }
 0x8de   :  { %17382 = vmatpush3.bf16.msra.mxu0 %v17680_v40  ;;  %v11189_v40 = vrot.slane %v11188_v60, 2 }
 0x8df   :  { %17404 = vmatpush3.bf16.msra.mxu1 %v17681_v4  ;;  %17383 = vmatprep.subr.bf16.mxu0 %v17682_v52  ;;  %v11318_v4 = vadd.f32 %v11317_v2, %v11316_v19  ;;  %v17711_v52 = vld [vmem:[#allocation13 + $0x398] sm:$0xff]  }
 0x8e0   :  { %17405 = vmatprep.subr.bf16.mxu1 %v17683_v3  ;;  %v11190_v43 = vadd.f32 %v11189_v40, %v11188_v60  ;;  %v17697_v3 = vld [vmem:[#allocation13 + $0x310] sm:$0xff]  }
 0x8e1   :  { %v11319_v44 = vrot.slane %v11318_v4, 1 }
 0x8e2   :  { %17384 = vmatpush3.bf16.msra.mxu0 %v17684_v61  ;;  %v17713_v61 = vld [vmem:[#allocation13 + $0x390] sm:$0xff]   ;;  %v11191_v18 = vrot.slane %v11190_v43, 1 }
 0x8e3   :  { %17406 = vmatpush3.bf16.msra.mxu1 %v17685_v45  ;;  %17413 = vmatprep.subr.bf16.mxu0 %v17686_v46  ;;  %v17699_v45 = vld [vmem:[#allocation13 + $0x308] sm:$0xff]   ;;  %v17700_v46 = vld [vmem:[#allocation13 + $0x340] sm:$0xff]   ;;  %v11320_v5 = vadd.f32 %v11319_v44, %v11318_v4 }
 0x8e4   :  { %17435 = vmatprep.subr.bf16.mxu1 %v17702_v53  ;;  %v17716_v53 = vld [vmem:[#allocation13 + $0x3c0] sm:$0xff]   ;;  %v11192_v54 = vadd.f32 %v11191_v18, %v11190_v43 }
 0x8e5   :  { %12591 = vmatmul.mubr.bf16.vlgmr.msra.gmra.mxu0 %v11366_v1 }
 0x8e6   :  { %12631 = vmatmul.mubr.bf16.vlgmr.msra.gmra.mxu1 %v11368_v56  ;;  %17414 = vmatpush3.bf16.msra.mxu0 %v17687_v63  ;;  %v11354_v63 = vsel %vm2479_vm1, %v11192_v54, %v11320_v5 }
 0x8e7   :  { %12670 = vmatprep.mubr.bf16.mxu0 %v11371_v17  ;;  %17415 = vmatprep.subr.bf16.mxu0 %v17688_v10  ;;  %v11370_v1 = vpack.c.bf16 %v11354_v63, %v11354_v63 }
 0x8e8   :  { %17436 = vmatpush3.bf16.msra.mxu1 %v17703_v11 }
 0x8e9   :  { %17437 = vmatprep.subr.bf16.mxu1 %v17704_v47 }
 0x8ea   :  { %17416 = vmatpush3.bf16.msra.mxu0 %v17689_v22 }
 0x8eb   :  { %17417 = vmatprep.subr.bf16.mxu0 %v17690_v27 }
 0x8ec   :  { %17438 = vmatpush3.bf16.msra.mxu1 %v17705_v31 }
 0x8ed   :  { %17439 = vmatprep.subr.bf16.mxu1 %v17706_v32 }
 0x8ee   :  { %17418 = vmatpush3.bf16.msra.mxu0 %v17691_v34 }
 0x8ef   :  { %17419 = vmatprep.subr.bf16.mxu0 %v17692_v35 }
 0x8f0   :  { %17440 = vmatpush3.bf16.msra.mxu1 %v17707_v36 }
 0x8f1   :  { %17441 = vmatprep.subr.bf16.mxu1 %v17708_v37 }
 0x8f2   :  { %17420 = vmatpush3.bf16.msra.mxu0 %v17693_v38 }
 0x8f3   :  { %17421 = vmatprep.subr.bf16.mxu0 %v17694_v21 }
 0x8f4   :  { %17442 = vmatpush3.bf16.msra.mxu1 %v17709_v15 }
 0x8f5   :  { %17443 = vmatprep.subr.bf16.mxu1 %v17710_v59 }
 0x8f6   :  { %17422 = vmatpush3.bf16.msra.mxu0 %v17695_v41 }
 0x8f7   :  { %17423 = vmatprep.subr.bf16.mxu0 %v17696_v42 }
 0x8f8   :  { %17444 = vmatpush3.bf16.msra.mxu1 %v17711_v52 }
 0x8f9   :  { %17445 = vmatprep.subr.bf16.mxu1 %v17712_v26 }
 0x8fa   :  { %17424 = vmatpush3.bf16.msra.mxu0 %v17697_v3 }
 0x8fb   :  { %17425 = vmatprep.subr.bf16.mxu0 %v17698_v57 }
 0x8fc   :  { %17446 = vmatpush3.bf16.msra.mxu1 %v17713_v61 }
 0x8fd   :  { %17447 = vmatprep.subr.bf16.mxu1 %v17714_v16 }
 0x8fe   :  { %17426 = vmatpush3.bf16.msra.mxu0 %v17699_v45 }
 0x8ff   :  { %17427 = vmatprep.subr.bf16.mxu0 %v17700_v46 }
 0x900   :  { %17448 = vmatpush3.bf16.msra.mxu1 %v17715_v23 }
 0x901   :  { %17449 = vmatprep.subr.bf16.mxu1 %v17716_v53 }
 0x902   :  { %17428 = vmatpush3.bf16.msra.mxu0 %v17701_v24 }
 0x904   :  { %17450 = vmatpush3.bf16.msra.mxu1 %v17717_v13 }
 0x905   :  { %v10972_v10 = vpop.f32.mrf.mxu0  ;;  %12671 = vmatmul.mubr.bf16.vlgmr.msra.gmra.mxu0 %v11370_v1 }
 0x906   :  { %v11013_v56 = vpop.f32.mrf.mxu1  ;;  %12968 = vmatprep.mubr.bf16.mxu0 %v18362_v0 }
 0x907   :  { %v11014_v11 = vadd.f32 %v11013_v56, %v10972_v10  ;;  %v10974_v12 = vpop.f32.mrf.mxu0 }
 0x908   :  { %v11015_v17 = vpop.f32.mrf.mxu1 }
 0x909   :  { %v10976_v47 = vpop.f32.mrf.mxu0  ;;  %v11016_v31 = vadd.f32 %v11015_v17, %v10974_v12 }
 0x90a   :  { %v11017_v22 = vpop.f32.mrf.mxu1 }
 0x90b   :  { %v10977_v20 = vpop.f32.mrf.mxu0 }
 0x90c   :  { %v11018_v27 = vpop.f32.mrf.mxu1 }
 0x945   :  { %v11054_v30 = vpop.f32.mrf.mxu0 }
 0x946   :  { %v11055_v32 = vadd.f32 %v11054_v30, %v11014_v11  ;;  %v11095_v33 = vpop.f32.mrf.mxu1 }
 0x947   :  { %v11056_v34 = vpop.f32.mrf.mxu0 }
 0x948   :  { %v18856_v35 = vadd.f32 %v11095_v33, %v11055_v32  ;;  %v11057_v19 = vadd.f32 %v11056_v34, %v11016_v31  ;;  %v11097_v36 = vpop.f32.mrf.mxu1 }
 0x949   :  { %v11058_v37 = vpop.f32.mrf.mxu0 }
 0x94a   :  { %v11200_v60 = vsel %vm2358_vm0, %v18856_v35, 0.0  ;;  %v11228_v38 = vmul.f32 %v18856_v35, %v18856_v35  ;;  %v18862_v21 = vadd.f32 %v11097_v36, %v11057_v19  ;;  %v11099_v2 = vpop.f32.mrf.mxu1 }
 0x94b   :  { %v11201_v15 = vrot.slane %v11200_v60, 4  ;;  %v11059_v59 = vpop.f32.mrf.mxu0 }
 0x94c   :  { %v11328_v40 = vsel %vm2358_vm0, %v11228_v38, 0.0  ;;  %v11207_v41 = vsel %vm2358_vm0, %v18862_v21, 0.0  ;;  %v11229_v42 = vmul.f32 %v18862_v21, %v18862_v21  ;;  %v11100_v4 = vpop.f32.mrf.mxu1 }
 0x94d   :  { %v11202_v52 = vadd.f32 %v11201_v15, %v11200_v60  ;;  %v11329_v26 = vrot.slane %v11328_v40, 4  ;;  %v11208_v43 = vrot.slane %v11207_v41, 4 }
 0x94e   :  { %v11335_v3 = vsel %vm2358_vm0, %v11229_v42, 0.0 }
 0x94f   :  { %v11203_v57 = vrot.slane %v11202_v52, 2  ;;  %v11330_v44 = vadd.f32 %v11329_v26, %v11328_v40  ;;  %v11209_v61 = vadd.f32 %v11208_v43, %v11207_v41  ;;  %v11336_v16 = vrot.slane %v11335_v3, 4 }
 0x951   :  { %v11204_v18 = vadd.f32 %v11203_v57, %v11202_v52  ;;  %v11331_v45 = vrot.slane %v11330_v44, 2  ;;  %v11210_v46 = vrot.slane %v11209_v61, 2  ;;  %v11337_v5 = vadd.f32 %v11336_v16, %v11335_v3 }
 0x953   :  { %v11332_v23 = vadd.f32 %v11331_v45, %v11330_v44  ;;  %v11211_v53 = vadd.f32 %v11210_v46, %v11209_v61  ;;  %v11338_v54 = vrot.slane %v11337_v5, 2  ;;  %v11205_v24 = vrot.slane %v11204_v18, 1 }
 0x955   :  { %v11333_v63 = vrot.slane %v11332_v23, 1  ;;  %v11212_v13 = vrot.slane %v11211_v53, 1  ;;  %v11339_v1 = vadd.f32 %v11338_v54, %v11337_v5  ;;  %v11206_v11 = vadd.f32 %v11205_v24, %v11204_v18 }
 0x957   :  { %v11334_v10 = vadd.f32 %v11333_v63, %v11332_v23  ;;  %v11340_v56 = vrot.slane %v11339_v1, 1  ;;  %v11213_v12 = vadd.f32 %v11212_v13, %v11211_v53 }
 0x959   :  { %v11341_v17 = vadd.f32 %v11340_v56, %v11339_v1  ;;  %v11356_v47 = vsel %vm2479_vm1, %v11206_v11, %v11334_v10  ;;  %v12756_v1 = vld [vmem:[#allocation15 + $0x80] sm:$0xff]  ;;  %v12757_v56 = vld [vmem:[#allocation15 + $0x88] sm:$0xff] }
 0x95a   :  { %v11372_v27 = vpack.c.bf16 %v11356_v47, %v11356_v47  ;;  %v12764_v10 = vld [vmem:[#allocation15 + $0xc0] sm:$0xff] }
 0x95b   :  { %v11357_v22 = vsel %vm2479_vm1, %v11213_v12, %v11341_v17  ;;  %v16913_v12 = vcombine.high %v12756_v1, %v12764_v10  ;;  %v12765_v17 = vld [vmem:[#allocation15 + $0xc8] sm:$0xff]  ;;  %v16912_v47 = vcombine.low %v12756_v1, %v12764_v10  ;;  %v12732_v10 = vld [vmem:[#allocation16 + $0x1] sm:$0x1] }
 0x95c   :  { %v11373_v20 = vpack.c.bf16 %v11357_v22, %v11357_v22  ;;  %v16914_v22 = vcombine.low %v12757_v56, %v12765_v17 }
 0x95d   :  { %12948 = vmatprep.subr.bf16.mxu0 %v16913_v12  ;;  %v12742_v12 = vld [vmem:[#allocation15 + $0x10] sm:$0xff] }
 0x95e   :  { %12710 = vmatprep.mubr.bf16.mxu1 %v11373_v20  ;;  %v16915_v20 = vcombine.high %v12757_v56, %v12765_v17  ;;  %12949 = vmatpush1.bf16.msra.mxu0 %v16912_v47  ;;  %v12750_v47 = vld [vmem:[#allocation15 + $0x50] sm:$0xff] }
 0x95f   :  { %12711 = vmatmul.mubr.bf16.vlgmr.msra.gmra.mxu1 %v11372_v27 }
 0x960   :  { %13009 = vmatprep.mubr.bf16.mxu1 %v18362_v0  ;;  %12989 = vmatprep.subr.bf16.mxu1 %v16915_v20  ;;  %v12751_v20 = vld [vmem:[#allocation15 + $0x58] sm:$0xff] }
 0x961   :  { %12990 = vmatpush1.bf16.msra.mxu1 %v16914_v22  ;;  %v12743_v22 = vld [vmem:[#allocation15 + $0x18] sm:$0xff] }
 0x965   :  { %v17297_v30 = vpop.f32.mrf.mxu0 }
 0x966   :  { %v17319_v31 = vpop.f32.mrf.mxu1 }
 0x967   :  { %v17298_v32 = vpop.f32.mrf.mxu0 }
 0x968   :  { %v17299_v33 = vadd.f32 %v17298_v32, %v17297_v30  ;;  %v17320_v34 = vpop.f32.mrf.mxu1  ;;  %v12748_v32 = vld [vmem:[#allocation15 + $0x40] sm:$0xff] }
 0x969   :  { %v17321_v19 = vadd.f32 %v17320_v34, %v17319_v31  ;;  %v17300_v36 = vpop.f32.mrf.mxu0  ;;  %v12740_v31 = vld [vmem:[#allocation15] sm:$0xff] }
 0x96a   :  { %v17322_v37 = vpop.f32.mrf.mxu1  ;;  %v12749_v36 = vld [vmem:[#allocation15 + $0x48] sm:$0xff] }
 0x96b   :  { %v12473_v60 = vadd.f32 %v17321_v19, %v17299_v33  ;;  %v17301_v38 = vpop.f32.mrf.mxu0  ;;  %v12741_v33 = vld [vmem:[#allocation15 + $0x8] sm:$0xff]  ;;  %v16897_v19 = vcombine.high %v12740_v31, %v12748_v32 }
 0x96c   :  { %v17323_v2 = vpop.f32.mrf.mxu1  ;;  %v16898_v38 = vcombine.low %v12741_v33, %v12749_v36 }
 0x96d   :  { %v16899_v2 = vcombine.high %v12741_v33, %v12749_v36  ;;  %12950 = vmatprep.subr.bf16.mxu0 %v16897_v19  ;;  %v12760_v33 = vld [vmem:[#allocation15 + $0xa0] sm:$0xff]  ;;  %v12761_v19 = vld [vmem:[#allocation15 + $0xa8] sm:$0xff] }
 0x96e   :  { %v12769_v36 = vld [vmem:[#allocation15 + $0xe8] sm:$0xff] }
 0x96f   :  { %12991 = vmatprep.subr.bf16.mxu1 %v16899_v2  ;;  %v16923_v2 = vcombine.high %v12761_v19, %v12769_v36 }
 0x970   :  { %12992 = vmatpush1.bf16.msra.mxu1 %v16898_v38 }
 0x985   :  { %v17341_v15 = vpop.f32.mrf.mxu0 }
 0x986   :  { %v17363_v59 = vpop.f32.mrf.mxu1 }
 0x987   :  { %v17342_v40 = vpop.f32.mrf.mxu0 }
 0x988   :  { %v17343_v41 = vadd.f32 %v17342_v40, %v17341_v15  ;;  %v17364_v42 = vpop.f32.mrf.mxu1  ;;  %v12766_v40 = vld [vmem:[#allocation15 + $0xd0] sm:$0xff] }
 0x989   :  { %v17365_v4 = vadd.f32 %v17364_v42, %v17363_v59  ;;  %v17344_v52 = vpop.f32.mrf.mxu0  ;;  %v12758_v59 = vld [vmem:[#allocation15 + $0x90] sm:$0xff] }
 0x98a   :  { %v12513_v26 = vadd.f32 %v17343_v41, %v12473_v60  ;;  %v17366_v43 = vpop.f32.mrf.mxu1  ;;  %v16896_v60 = vcombine.low %v12740_v31, %v12748_v32  ;;  %v12759_v41 = vld [vmem:[#allocation15 + $0x98] sm:$0xff]  ;;  %v16916_v42 = vcombine.low %v12758_v59, %v12766_v40  ;;  %v16901_v31 = vcombine.high %v12742_v12, %v12750_v47 }
 0x98b   :  { %v17345_v3 = vpop.f32.mrf.mxu0  ;;  %v12767_v52 = vld [vmem:[#allocation15 + $0xd8] sm:$0xff]  ;;  %v16903_v32 = vcombine.high %v12743_v22, %v12751_v20 }
 0x98c   :  { %v12553_v57 = vadd.f32 %v17365_v4, %v12513_v26  ;;  %v17367_v44 = vpop.f32.mrf.mxu1  ;;  %12951 = vmatpush1.bf16.msra.mxu0 %v16896_v60  ;;  %v16917_v4 = vcombine.high %v12758_v59, %v12766_v40  ;;  %v16918_v26 = vcombine.low %v12759_v41, %v12767_v52  ;;  %v16919_v43 = vcombine.high %v12759_v41, %v12767_v52  ;;  %v12752_v59 = vld [vmem:[#allocation15 + $0x60] sm:$0xff]  ;;  %v12745_v40 = vld [vmem:[#allocation15 + $0x28] sm:$0xff] }
 0x98d   :  { %v16902_v60 = vcombine.low %v12743_v22, %v12751_v20  ;;  %v12753_v41 = vld [vmem:[#allocation15 + $0x68] sm:$0xff]  ;;  %v16922_v52 = vcombine.low %v12761_v19, %v12769_v36 }
 0x98e   :  { %13030 = vmatprep.subr.bf16.mxu0 %v16917_v4  ;;  %13071 = vmatprep.subr.bf16.mxu1 %v16919_v43  ;;  %v12762_v43 = vld [vmem:[#allocation15 + $0xb0] sm:$0xff]  ;;  %v17724_v20 = vld [vmem:[#allocation18 + $0x60] ss:$8 sps:$4 sm:$0xff]  }
 0x98f   :  { %v17729_v22 = vld [vmem:[#allocation18 + $0x164] ss:$8 sps:$4 sm:$0xff]   ;;  %v17736_v36 = vld [vmem:[#allocation18 + $0x40] ss:$8 sps:$4 sm:$0xff]  }
 0x990   :  { %v17741_v19 = vld [vmem:[#allocation18 + $0x144] ss:$8 sps:$4 sm:$0xff]  }
 0x9a5   :  { %v17385_v61 = vpop.f32.mrf.mxu0 }
 0x9a6   :  { %v17407_v16 = vpop.f32.mrf.mxu1 }
 0x9a7   :  { %v17386_v18 = vpop.f32.mrf.mxu0 }
 0x9a8   :  { %v17387_v45 = vadd.f32 %v17386_v18, %v17385_v61  ;;  %v17408_v46 = vpop.f32.mrf.mxu1 }
 0x9a9   :  { %v17409_v5 = vadd.f32 %v17408_v46, %v17407_v16  ;;  %v17388_v23 = vpop.f32.mrf.mxu0 }
 0x9aa   :  { %v12593_v53 = vadd.f32 %v17387_v45, %v12553_v57  ;;  %v17410_v54 = vpop.f32.mrf.mxu1 }
 0x9ab   :  { %v17389_v24 = vpop.f32.mrf.mxu0 }
 0x9ac   :  { %v12633_v63 = vadd.f32 %v17409_v5, %v12593_v53  ;;  %v17411_v13 = vpop.f32.mrf.mxu1 }
 0x9c5   :  { %v17429_v11 = vpop.f32.mrf.mxu0 }
 0x9c7   :  { %v17430_v27 = vpop.f32.mrf.mxu0 }
 0x9c8   :  { %v17431_v30 = vadd.f32 %v17430_v27, %v17429_v11 }
 0x9c9   :  { %v17432_v34 = vpop.f32.mrf.mxu0 }
 0x9ca   :  { %v12673_v37 = vadd.f32 %v17431_v30, %v12633_v63  ;;  %v12725_v63 = vld [vmem:[#allocation16] sm:$0x1] }
 0x9cb   :  { %v17433_v15 = vpop.f32.mrf.mxu0  ;;  %v12768_v34 = vld [vmem:[#allocation15 + $0xe0] sm:$0xff] }
 0x9cc   :  { %v16921_v38 = vcombine.high %v12760_v33, %v12768_v34  ;;  %v12744_v15 = vld [vmem:[#allocation15 + $0x20] sm:$0xff]  ;;  %v16920_v4 = vcombine.low %v12760_v33, %v12768_v34  ;;  %v17733_v33 = vld [vmem:[#allocation18 + $0x150] ss:$8 sps:$4 sm:$0xff]  }
 0x9cd   :  { %v17738_v34 = vld [vmem:[#allocation18 + $0x44] ss:$8 sps:$4 sm:$0xff]  }
 0xa1f   :  { %v17451_v3 = vpop.f32.mrf.mxu1 }
 0xa21   :  { %v17452_v57 = vpop.f32.mrf.mxu1 }
 0xa22   :  { %v17453_v44 = vadd.f32 %v17452_v57, %v17451_v3  ;;  %v12770_v3 = vld [vmem:[#allocation15 + $0xf0] sm:$0xff]  ;;  %v12763_v57 = vld [vmem:[#allocation15 + $0xb8] sm:$0xff] }
 0xa23   :  { %v17454_v61 = vpop.f32.mrf.mxu1 }
 0xa24   :  { %v12713_v16 = vadd.f32 %v17453_v44, %v12673_v37  ;;  %v16900_v37 = vcombine.low %v12742_v12, %v12750_v47  ;;  %v12771_v44 = vld [vmem:[#allocation15 + $0xf8] sm:$0xff]  ;;  %v16904_v61 = vcombine.low %v12744_v15, %v12752_v59  ;;  %v17726_v47 = vld [vmem:[#allocation18 + $0x64] ss:$8 sps:$4 sm:$0xff]  }
 0xa25   :  { %v17455_v18 = vpop.f32.mrf.mxu1  ;;  %v17718_v12 = vld [vmem:[#allocation18 + $0x70] ss:$8 sps:$4 sm:$0xff]  }
 0xa26   :  { %v12718_v45 = vmul.f32 0.0078125, %v12713_v16  ;;  %v16906_v16 = vcombine.low %v12745_v40, %v12753_v41  ;;  %v16925_v18 = vcombine.high %v12762_v43, %v12770_v3 }
 0xa28   :  { %v12719_v46 = vmul.f32 %v12718_v45, %v12718_v45 }
 0xa2a   :  { %v12721_v5 = vrot.slane %v12719_v46, 7  ;;  %v12746_v46 = vld [vmem:[#allocation15 + $0x30] sm:$0xff] }
 0xa2c   :  { %v12723_v23 = vsub.f32 %v12718_v45, %v12721_v5  ;;  %v12754_v5 = vld [vmem:[#allocation15 + $0x70] sm:$0xff] }
 0xa2e   :  { %v12724_v53 = vmax.f32 %v12723_v23, 0.0  ;;  %v12747_v23 = vld [vmem:[#allocation15 + $0x38] sm:$0xff] }
 0xa30   :  { %v12726_v54 = vadd.f32 1e-05, %v12724_v53  ;;  %v12755_v53 = vld [vmem:[#allocation15 + $0x78] sm:$0xff] }
 0xa32   :  { %18104 = vrsqrt.f32 %v12726_v54  ;;  %v16924_v54 = vcombine.low %v12762_v43, %v12770_v3  ;;  %v17762_v43 = vld [vmem:[#allocation18 + $0x4] ss:$8 sps:$4 sm:$0xff]  }
 0xa33   :  { %v17765_v3 = vld [vmem:[#allocation18 + $0x104] ss:$8 sps:$4 sm:$0xff]  }
 0xa3f   :  { %v18105_v24 = vpop.eup %18104 }
 0xa40   :  { %v12729_v13 = vrot.slane %v18105_v24, 1  ;;  %v16926_v24 = vcombine.low %v12763_v57, %v12771_v44 }
 0xa42   :  { %v12731_v1 = vmul.f32 %v12729_v13, %v12725_v63  ;;  %v16909_v63 = vcombine.high %v12746_v46, %v12754_v5  ;;  %v16911_v13 = vcombine.high %v12747_v23, %v12755_v53 }
 0xa44   :  { %v12733_v56 = vmul.f32 %v12731_v1, %v12718_v45  ;;  %v16927_v45 = vcombine.high %v12763_v57, %v12771_v44  ;;  %v17760_v57 = vld [vmem:[#allocation18] ss:$8 sps:$4 sm:$0xff]  }
 0xa45   :  { %v17763_v44 = vld [vmem:[#allocation18 + $0x100] ss:$8 sps:$4 sm:$0xff]  }
 0xa46   :  { %v12734_v11 = vsub.f32 %v12732_v10, %v12733_v56  ;;  %v16910_v10 = vcombine.low %v12747_v23, %v12755_v53  ;;  %v17720_v56 = vld [vmem:[#allocation18 + $0x74] ss:$8 sps:$4 sm:$0xff]   ;;  %v17772_v23 = vld [vmem:[#allocation18 + $0xe0] ss:$8 sps:$4 sm:$0xff]  }
 0xa47   :  { %v17775_v53 = vld [vmem:[#allocation18 + $0x1e0] ss:$8 sps:$4 sm:$0xff]  }
 0xa48   :  { %v12736_v17 = vrot.slane %v12734_v11, 7  ;;  %v17723_v11 = vld [vmem:[#allocation18 + $0x174] ss:$8 sps:$4 sm:$0xff]  }
 0xa4a   :  { %v12738_v27 = vsel %vm2479_vm1, %v12731_v1, %v12736_v17  ;;  %v16908_v1 = vcombine.low %v12746_v46, %v12754_v5  ;;  %v17721_v17 = vld [vmem:[#allocation18 + $0x170] ss:$8 sps:$4 sm:$0xff]   ;;  %v17774_v46 = vld [vmem:[#allocation18 + $0xe4] ss:$8 sps:$4 sm:$0xff]  }
 0xa4b   :  { %v18874_v30 = vpack.c.bf16 %v12738_v27, %v12738_v27  ;;  %v17727_v27 = vld [vmem:[#allocation18 + $0x160] ss:$8 sps:$4 sm:$0xff]   ;;  %v17777_v5 = vld [vmem:[#allocation18 + $0x1e4] ss:$8 sps:$4 sm:$0xff]  }
 0xa4d   :  { %16928 = vmatmul.mubr.msk.bf16.vlgmr.msra.gmra.mxu0 %vm12932_vm3, %v18874_v30  ;;  %16929 = vmatmul.mubr.msk.bf16.vlgmr.msra.gmra.mxu1 %vm12932_vm3, %v18874_v30 }
 0xa4e   :  { %13031 = vmatpush1.bf16.msra.mxu0 %v16916_v42  ;;  %13072 = vmatpush1.bf16.msra.mxu1 %v16918_v26  ;;  %v16905_v42 = vcombine.high %v12744_v15, %v12752_v59  ;;  %v16907_v26 = vcombine.high %v12745_v40, %v12753_v41  ;;  %v17750_v15 = vld [vmem:[#allocation18 + $0x24] ss:$8 sps:$4 sm:$0xff]   ;;  %v17748_v40 = vld [vmem:[#allocation18 + $0x20] ss:$8 sps:$4 sm:$0xff]  }
 0xa4f   :  { %13032 = vmatprep.subr.bf16.mxu0 %v16901_v31  ;;  %13073 = vmatprep.subr.bf16.mxu1 %v16903_v32  ;;  %v17735_v31 = vld [vmem:[#allocation18 + $0x154] ss:$8 sps:$4 sm:$0xff]   ;;  %v17730_v32 = vld [vmem:[#allocation18 + $0x50] ss:$8 sps:$4 sm:$0xff]   ;;  %v17753_v59 = vld [vmem:[#allocation18 + $0x124] ss:$8 sps:$4 sm:$0xff]  }
 0xa50   :  { %13050 = vmatprep.mubr.bf16.mxu0 %v18362_v0  ;;  %13091 = vmatprep.mubr.bf16.mxu1 %v18362_v0  ;;  %v17751_v41 = vld [vmem:[#allocation18 + $0x120] ss:$8 sps:$4 sm:$0xff]  }
 0xa52   :  { %13033 = vmatpush1.bf16.msra.mxu0 %v16900_v37  ;;  %13074 = vmatpush1.bf16.msra.mxu1 %v16902_v60  ;;  %v17744_v37 = vld [vmem:[#allocation18 + $0x34] ss:$8 sps:$4 sm:$0xff]  }
 0xa53   :  { %13112 = vmatprep.subr.bf16.mxu0 %v16921_v38  ;;  %13153 = vmatprep.subr.bf16.mxu1 %v16923_v2  ;;  %v17747_v60 = vld [vmem:[#allocation18 + $0x134] ss:$8 sps:$4 sm:$0xff]   ;;  %v17742_v38 = vld [vmem:[#allocation18 + $0x30] ss:$8 sps:$4 sm:$0xff]  }
 0xa54   :  { %v17745_v2 = vld [vmem:[#allocation18 + $0x130] ss:$8 sps:$4 sm:$0xff]  }
 0xa55   :  { %16930 = vmatmul.mubr.msk.bf16.vlgmr.msra.gmra.mxu0 %vm12932_vm3, %v18874_v30  ;;  %16931 = vmatmul.mubr.msk.bf16.vlgmr.msra.gmra.mxu1 %vm12932_vm3, %v18874_v30 }
 0xa56   :  { %13113 = vmatpush1.bf16.msra.mxu0 %v16920_v4  ;;  %13154 = vmatpush1.bf16.msra.mxu1 %v16922_v52  ;;  %v17756_v4 = vld [vmem:[#allocation18 + $0x14] ss:$8 sps:$4 sm:$0xff]  }
 0xa57   :  { %13114 = vmatprep.subr.bf16.mxu0 %v16905_v42  ;;  %13155 = vmatprep.subr.bf16.mxu1 %v16907_v26  ;;  %v17759_v52 = vld [vmem:[#allocation18 + $0x114] ss:$8 sps:$4 sm:$0xff]   ;;  %v17754_v42 = vld [vmem:[#allocation18 + $0x10] ss:$8 sps:$4 sm:$0xff]  }
 0xa58   :  { %13132 = vmatprep.mubr.bf16.mxu0 %v18362_v0  ;;  %13173 = vmatprep.mubr.bf16.mxu1 %v18362_v0  ;;  %v17757_v26 = vld [vmem:[#allocation18 + $0x110] ss:$8 sps:$4 sm:$0xff]  }
 0xa5a   :  { %13115 = vmatpush1.bf16.msra.mxu0 %v16904_v61  ;;  %13156 = vmatpush1.bf16.msra.mxu1 %v16906_v16  ;;  %v17768_v61 = vld [vmem:[#allocation18 + $0xf4] ss:$8 sps:$4 sm:$0xff]  }
 0xa5b   :  { %13194 = vmatprep.subr.bf16.mxu0 %v16925_v18  ;;  %13235 = vmatprep.subr.bf16.mxu1 %v16927_v45  ;;  %v17771_v16 = vld [vmem:[#allocation18 + $0x1f4] ss:$8 sps:$4 sm:$0xff]   ;;  %v17766_v18 = vld [vmem:[#allocation18 + $0xf0] ss:$8 sps:$4 sm:$0xff]  }
 0xa5c   :  { %v17769_v45 = vld [vmem:[#allocation18 + $0x1f0] ss:$8 sps:$4 sm:$0xff]  }
 0xa5d   :  { %16932 = vmatmul.mubr.msk.bf16.vlgmr.msra.gmra.mxu0 %vm12932_vm3, %v18874_v30  ;;  %16933 = vmatmul.mubr.msk.bf16.vlgmr.msra.gmra.mxu1 %vm12932_vm3, %v18874_v30 }
 0xa5e   :  { %13195 = vmatpush1.bf16.msra.mxu0 %v16924_v54  ;;  %13236 = vmatpush1.bf16.msra.mxu1 %v16926_v24  ;;  %v17780_v54 = vld [vmem:[#allocation18 + $0xd4] ss:$8 sps:$4 sm:$0xff]  }
 0xa5f   :  { %13196 = vmatprep.subr.bf16.mxu0 %v16909_v63  ;;  %13237 = vmatprep.subr.bf16.mxu1 %v16911_v13  ;;  %v17783_v24 = vld [vmem:[#allocation18 + $0x1d4] ss:$8 sps:$4 sm:$0xff]   ;;  %v17778_v63 = vld [vmem:[#allocation18 + $0xd0] ss:$8 sps:$4 sm:$0xff]  }
 0xa60   :  { %13214 = vmatprep.mubr.bf16.mxu0 %v18362_v0  ;;  %13255 = vmatprep.mubr.bf16.mxu1 %v18362_v0  ;;  %v17732_v0 = vld [vmem:[#allocation18 + $0x54] ss:$8 sps:$4 sm:$0xff]   ;;  %v17781_v13 = vld [vmem:[#allocation18 + $0x1d0] ss:$8 sps:$4 sm:$0xff]  }
 0xa62   :  { %13197 = vmatpush1.bf16.msra.mxu0 %v16908_v1  ;;  %13238 = vmatpush1.bf16.msra.mxu1 %v16910_v10  ;;  %v17786_v1 = vld [vmem:[#allocation18 + $0xc4] ss:$8 sps:$4 sm:$0xff]  }
 0xa63   :  { %15004 = vmatprep.subr.bf16.mxu0 %v17720_v56  ;;  %15045 = vmatprep.subr.bf16.mxu1 %v17723_v11  ;;  %v17789_v10 = vld [vmem:[#allocation18 + $0x1c4] ss:$8 sps:$4 sm:$0xff]   ;;  %v17784_v56 = vld [vmem:[#allocation18 + $0xc0] ss:$8 sps:$4 sm:$0xff]  }
 0xa64   :  { %v17787_v11 = vld [vmem:[#allocation18 + $0x1c0] ss:$8 sps:$4 sm:$0xff]  }
 0xa65   :  { %16934 = vmatmul.mubr.msk.bf16.vlgmr.msra.gmra.mxu0 %vm12932_vm3, %v18874_v30  ;;  %16935 = vmatmul.mubr.msk.bf16.vlgmr.msra.gmra.mxu1 %vm12932_vm3, %v18874_v30  ;;  %v17739_v30 = vld [vmem:[#allocation18 + $0x140] ss:$8 sps:$4 sm:$0xff]  }
 0xa66   :  { %15005 = vmatpush1.bf16.msra.mxu0 %v17718_v12  ;;  %15046 = vmatpush1.bf16.msra.mxu1 %v17721_v17  ;;  %v17792_v12 = vld [vmem:[#allocation18 + $0xb4] ss:$8 sps:$4 sm:$0xff]  }
 0xa67   :  { %15006 = vmatprep.subr.bf16.mxu0 %v17726_v47  ;;  %15047 = vmatprep.subr.bf16.mxu1 %v17729_v22  ;;  %v17795_v17 = vld [vmem:[#allocation18 + $0x1b4] ss:$8 sps:$4 sm:$0xff]   ;;  %v17790_v47 = vld [vmem:[#allocation18 + $0xb0] ss:$8 sps:$4 sm:$0xff]  }
 0xa68   :  { %v17793_v22 = vld [vmem:[#allocation18 + $0x1b0] ss:$8 sps:$4 sm:$0xff]  }
 0xa6a   :  { %15007 = vmatpush1.bf16.msra.mxu0 %v17724_v20  ;;  %15048 = vmatpush1.bf16.msra.mxu1 %v17727_v27  ;;  %v17798_v20 = vld [vmem:[#allocation18 + $0xa4] ss:$8 sps:$4 sm:$0xff]  }
 0xa6b   :  { %15008 = vmatprep.subr.bf16.mxu0 %v17732_v0  ;;  %15049 = vmatprep.subr.bf16.mxu1 %v17735_v31  ;;  %v17801_v27 = vld [vmem:[#allocation18 + $0x1a4] ss:$8 sps:$4 sm:$0xff]   ;;  %v17796_v0 = vld [vmem:[#allocation18 + $0xa0] ss:$8 sps:$4 sm:$0xff]  }
 0xa6c   :  { %v17799_v31 = vld [vmem:[#allocation18 + $0x1a0] ss:$8 sps:$4 sm:$0xff]  }
 0xa6e   :  { %15009 = vmatpush1.bf16.msra.mxu0 %v17730_v32  ;;  %15050 = vmatpush1.bf16.msra.mxu1 %v17733_v33  ;;  %v17804_v32 = vld [vmem:[#allocation18 + $0x94] ss:$8 sps:$4 sm:$0xff]  }
 0xa6f   :  { %15010 = vmatprep.subr.bf16.mxu0 %v17738_v34  ;;  %15051 = vmatprep.subr.bf16.mxu1 %v17741_v19  ;;  %v17807_v33 = vld [vmem:[#allocation18 + $0x194] ss:$8 sps:$4 sm:$0xff]   ;;  %v17802_v34 = vld [vmem:[#allocation18 + $0x90] ss:$8 sps:$4 sm:$0xff]  }
 0xa70   :  { %v17805_v19 = vld [vmem:[#allocation18 + $0x190] ss:$8 sps:$4 sm:$0xff]  }
 0xa72   :  { %15011 = vmatpush1.bf16.msra.mxu0 %v17736_v36  ;;  %15052 = vmatpush1.bf16.msra.mxu1 %v17739_v30  ;;  %v17810_v36 = vld [vmem:[#allocation18 + $0x84] ss:$8 sps:$4 sm:$0xff]  }
 0xa73   :  { %15012 = vmatprep.subr.bf16.mxu0 %v17744_v37  ;;  %15053 = vmatprep.subr.bf16.mxu1 %v17747_v60  ;;  %v17813_v30 = vld [vmem:[#allocation18 + $0x184] ss:$8 sps:$4 sm:$0xff]   ;;  %v17808_v37 = vld [vmem:[#allocation18 + $0x80] ss:$8 sps:$4 sm:$0xff]  }
 0xa74   :  { %v17811_v60 = vld [vmem:[#allocation18 + $0x180] ss:$8 sps:$4 sm:$0xff]  }
 0xa76   :  { %15013 = vmatpush1.bf16.msra.mxu0 %v17742_v38  ;;  %15054 = vmatpush1.bf16.msra.mxu1 %v17745_v2  ;;  %v17816_v38 = vld [vmem:[#allocation18 + $0x274] ss:$8 sps:$4 sm:$0xff]  }
 0xa77   :  { %15014 = vmatprep.subr.bf16.mxu0 %v17750_v15  ;;  %15055 = vmatprep.subr.bf16.mxu1 %v17753_v59  ;;  %v17819_v2 = vld [vmem:[#allocation18 + $0x374] ss:$8 sps:$4 sm:$0xff]  }
 0xa7a   :  { %15015 = vmatpush1.bf16.msra.mxu0 %v17748_v40  ;;  %15056 = vmatpush1.bf16.msra.mxu1 %v17751_v41 }
 0xa7b   :  { %15016 = vmatprep.subr.bf16.mxu0 %v17756_v4  ;;  %15057 = vmatprep.subr.bf16.mxu1 %v17759_v52 }
 0xa7e   :  { %15017 = vmatpush1.bf16.msra.mxu0 %v17754_v42  ;;  %15058 = vmatpush1.bf16.msra.mxu1 %v17757_v26 }
 0xa7f   :  { %15018 = vmatprep.subr.bf16.mxu0 %v17762_v43  ;;  %15059 = vmatprep.subr.bf16.mxu1 %v17765_v3 }
 0xa82   :  { %15019 = vmatpush1.bf16.msra.mxu0 %v17760_v57  ;;  %15060 = vmatpush1.bf16.msra.mxu1 %v17763_v44 }
 0xa83   :  { %15020 = vmatprep.subr.bf16.mxu0 %v17768_v61  ;;  %15061 = vmatprep.subr.bf16.mxu1 %v17771_v16 }
 0xa86   :  { %15021 = vmatpush2.bf16.msra.mxu0 %v17766_v18  ;;  %15062 = vmatpush2.bf16.msra.mxu1 %v17769_v45 }
 0xa87   :  { %15022 = vmatprep.subr.bf16.mxu0 %v17774_v46  ;;  %15063 = vmatprep.subr.bf16.mxu1 %v17777_v5 }
 0xa8a   :  { %15023 = vmatpush2.bf16.msra.mxu0 %v17772_v23  ;;  %15064 = vmatpush2.bf16.msra.mxu1 %v17775_v53 }
 0xa8b   :  { %15024 = vmatprep.subr.bf16.mxu0 %v17780_v54  ;;  %15065 = vmatprep.subr.bf16.mxu1 %v17783_v24 }
 0xa8e   :  { %15025 = vmatpush2.bf16.msra.mxu0 %v17778_v63  ;;  %15066 = vmatpush2.bf16.msra.mxu1 %v17781_v13 }
 0xa8f   :  { %15026 = vmatprep.subr.bf16.mxu0 %v17786_v1  ;;  %15067 = vmatprep.subr.bf16.mxu1 %v17789_v10 }
 0xa92   :  { %15027 = vmatpush2.bf16.msra.mxu0 %v17784_v56  ;;  %15068 = vmatpush2.bf16.msra.mxu1 %v17787_v11 }
 0xa93   :  { %15028 = vmatprep.subr.bf16.mxu0 %v17792_v12  ;;  %15069 = vmatprep.subr.bf16.mxu1 %v17795_v17 }
 0xa96   :  { %15029 = vmatpush2.bf16.msra.mxu0 %v17790_v47  ;;  %15070 = vmatpush2.bf16.msra.mxu1 %v17793_v22 }
 0xa97   :  { %15030 = vmatprep.subr.bf16.mxu0 %v17798_v20  ;;  %15071 = vmatprep.subr.bf16.mxu1 %v17801_v27 }
 0xa9a   :  { %15031 = vmatpush2.bf16.msra.mxu0 %v17796_v0  ;;  %15072 = vmatpush2.bf16.msra.mxu1 %v17799_v31 }
 0xa9b   :  { %15032 = vmatprep.subr.bf16.mxu0 %v17804_v32  ;;  %15073 = vmatprep.subr.bf16.mxu1 %v17807_v33  ;;  %v17814_v32 = vld [vmem:[#allocation18 + $0x270] ss:$8 sps:$4 sm:$0xff]  }
 0xa9c   :  { %v17817_v33 = vld [vmem:[#allocation18 + $0x370] ss:$8 sps:$4 sm:$0xff]  }
 0xa9e   :  { %15033 = vmatpush2.bf16.msra.mxu0 %v17802_v34  ;;  %15074 = vmatpush2.bf16.msra.mxu1 %v17805_v19 }
 0xa9f   :  { %15034 = vmatprep.subr.bf16.mxu0 %v17810_v36  ;;  %15075 = vmatprep.subr.bf16.mxu1 %v17813_v30 }
 0xaa2   :  { %15035 = vmatpush2.bf16.msra.mxu0 %v17808_v37  ;;  %15076 = vmatpush2.bf16.msra.mxu1 %v17811_v60  ;;  %v17822_v37 = vld [vmem:[#allocation18 + $0x264] ss:$8 sps:$4 sm:$0xff]  }
 0xaa3   :  { %15086 = vmatprep.subr.bf16.mxu0 %v17816_v38  ;;  %15127 = vmatprep.subr.bf16.mxu1 %v17819_v2  ;;  %v17825_v60 = vld [vmem:[#allocation18 + $0x364] ss:$8 sps:$4 sm:$0xff]  }
 0xb0d   :  { %v12970_v15 = vpop.f32.mrf.mxu0  ;;  %v13011_v59 = vpop.f32.mrf.mxu1 }
 0xb0e   :  { %v13267_v40 = vrot.slane %v12970_v15, %v18477_v48  ;;  %v13275_v41 = vrot.slane %v13011_v59, %v18477_v48  ;;  %v13347_v4 = vrot.slane %v12970_v15, %v18479_v50  ;;  %v13355_v3 = vrot.slane %v13011_v59, %v18479_v50 }
 0xb0f   :  { %v12972_v52 = vpop.f32.mrf.mxu0  ;;  %v13013_v42 = vpop.f32.mrf.mxu1 }
 0xb10   :  { %v13328_v26 = vmul.f32 %v13267_v40, %v18657_v25  ;;  %v13330_v43 = vmul.f32 %v13275_v41, %v18675_v62  ;;  %v13271_v57 = vrot.slane %v12972_v52, %v18477_v48  ;;  %v13279_v44 = vrot.slane %v13013_v42, %v18477_v48  ;;  %v17820_v41 = vld [vmem:[#allocation18 + $0x260] ss:$8 sps:$4 sm:$0xff]  }
 0xb11   :  { %v12974_v61 = vpop.f32.mrf.mxu0  ;;  %v13015_v16 = vpop.f32.mrf.mxu1  ;;  %v13351_v5 = vrot.slane %v12972_v52, %v18479_v50  ;;  %v13359_v25 = vrot.slane %v13013_v42, %v18479_v50  ;;  %v17828_v52 = vld [vmem:[#allocation18 + $0x254] ss:$8 sps:$4 sm:$0xff]  }
 0xb12   :  { %v13408_v18 = vadd.f32 %v13347_v4, %v13328_v26  ;;  %v13410_v45 = vadd.f32 %v13355_v3, %v13330_v43  ;;  %v13329_v46 = vmul.f32 %v13271_v57, %v18661_v6  ;;  %v13331_v23 = vmul.f32 %v13279_v44, %v18679_v28  ;;  %v17831_v42 = vld [vmem:[#allocation18 + $0x354] ss:$8 sps:$4 sm:$0xff]   ;;  %v17826_v61 = vld [vmem:[#allocation18 + $0x250] ss:$8 sps:$4 sm:$0xff]  }
 0xb13   :  { %v12975_v53 = vpop.f32.mrf.mxu0  ;;  %v13016_v62 = vpop.f32.mrf.mxu1 }
 0xb14   :  { %v13409_v54 = vadd.f32 %v13351_v5, %v13329_v46  ;;  %v13424_v24 = vmax.f32 %v13408_v18, 0.0  ;;  %v13426_v63 = vmax.f32 %v13410_v45, 0.0  ;;  %v13411_v13 = vadd.f32 %v13359_v25, %v13331_v23  ;;  %v17829_v18 = vld [vmem:[#allocation18 + $0x350] ss:$8 sps:$4 sm:$0xff]   ;;  %v17834_v45 = vld [vmem:[#allocation18 + $0x244] ss:$8 sps:$4 sm:$0xff]  }
 0xb15   :  { %v18910_v1 = vpop.f32.mrf.mxu0  ;;  %v18912_v10 = vpop.f32.mrf.mxu1  ;;  %v17837_v25 = vld [vmem:[#allocation18 + $0x344] ss:$8 sps:$4 sm:$0xff]  }
 0xb16   :  { %v13425_v56 = vmax.f32 %v13409_v54, 0.0  ;;  %v13427_v11 = vmax.f32 %v13411_v13, 0.0  ;;  %v13440_v47 = vpack.c.bf16 %v13424_v24, %v13424_v24  ;;  %v13442_v22 = vpack.c.bf16 %v13426_v63, %v13426_v63  ;;  %v17832_v54 = vld [vmem:[#allocation18 + $0x240] ss:$8 sps:$4 sm:$0xff]   ;;  %v17840_v63 = vld [vmem:[#allocation18 + $0x234] ss:$8 sps:$4 sm:$0xff]  }
 0xb17   :  { %v13054_v12 = vpop.f32.mrf.mxu0  ;;  %v13095_v6 = vpop.f32.mrf.mxu1  ;;  %v17835_v24 = vld [vmem:[#allocation18 + $0x340] ss:$8 sps:$4 sm:$0xff]  }
 0xb18   :  { %v13287_v17 = vrot.slane %v13054_v12, %v18477_v48  ;;  %v13295_v28 = vrot.slane %v13095_v6, %v18477_v48  ;;  %v13441_v0 = vpack.c.bf16 %v13425_v56, %v13425_v56  ;;  %v13443_v31 = vpack.c.bf16 %v13427_v11, %v13427_v11  ;;  %v17843_v11 = vld [vmem:[#allocation18 + $0x334] ss:$8 sps:$4 sm:$0xff]  }
 0xb19   :  { %v13056_v20 = vpop.f32.mrf.mxu0  ;;  %v13097_v27 = vpop.f32.mrf.mxu1  ;;  %v13367_v19 = vrot.slane %v13054_v12, %v18479_v50  ;;  %v13375_v30 = vrot.slane %v13095_v6, %v18479_v50 }
 0xb1a   :  { %v13333_v34 = vmul.f32 %v13287_v17, %v18697_v8  ;;  %v13335_v36 = vmul.f32 %v13295_v28, %v18715_v9  ;;  %15036 = vmatprep.mubr.bf16.mxu0 %v13441_v0  ;;  %15077 = vmatprep.mubr.bf16.mxu1 %v13443_v31  ;;  %v17823_v9 = vld [vmem:[#allocation18 + $0x360] ss:$8 sps:$4 sm:$0xff]   ;;  %v17838_v17 = vld [vmem:[#allocation18 + $0x230] ss:$8 sps:$4 sm:$0xff]   ;;  %v17849_v27 = vld [vmem:[#allocation18 + $0x324] ss:$8 sps:$4 sm:$0xff]  }
 0xb1b   :  { %v13057_v38 = vpop.f32.mrf.mxu0  ;;  %v13098_v2 = vpop.f32.mrf.mxu1  ;;  %15037 = vmatmul.mubr.bf16.vlgmr.msra.gmra.mxu0 %v13440_v47  ;;  %15078 = vmatmul.mubr.bf16.vlgmr.msra.gmra.mxu1 %v13442_v22  ;;  %v17841_v28 = vld [vmem:[#allocation18 + $0x330] ss:$8 sps:$4 sm:$0xff]   ;;  %v17846_v47 = vld [vmem:[#allocation18 + $0x224] ss:$8 sps:$4 sm:$0xff]   ;;  %v17844_v0 = vld [vmem:[#allocation18 + $0x220] ss:$8 sps:$4 sm:$0xff]  }
 0xb1c   :  { %v13413_v15 = vadd.f32 %v13367_v19, %v13333_v34  ;;  %v13415_v59 = vadd.f32 %v13375_v30, %v13335_v36  ;;  %15087 = vmatpush1.bf16.msra.mxu0 %v17814_v32  ;;  %15128 = vmatpush1.bf16.msra.mxu1 %v17817_v33  ;;  %v17847_v31 = vld [vmem:[#allocation18 + $0x320] ss:$8 sps:$4 sm:$0xff]   ;;  %v17852_v32 = vld [vmem:[#allocation18 + $0x214] ss:$8 sps:$4 sm:$0xff]   ;;  %v17850_v34 = vld [vmem:[#allocation18 + $0x210] ss:$8 sps:$4 sm:$0xff]  }
 0xb1d   :  { %v18920_v40 = vpop.f32.mrf.mxu0  ;;  %v18922_v8 = vpop.f32.mrf.mxu1  ;;  %15088 = vmatprep.subr.bf16.mxu0 %v17822_v37  ;;  %15129 = vmatprep.subr.bf16.mxu1 %v17825_v60  ;;  %v17855_v33 = vld [vmem:[#allocation18 + $0x314] ss:$8 sps:$4 sm:$0xff]   ;;  %v17853_v19 = vld [vmem:[#allocation18 + $0x310] ss:$8 sps:$4 sm:$0xff]   ;;  %v17858_v36 = vld [vmem:[#allocation18 + $0x204] ss:$8 sps:$4 sm:$0xff]  }
 0xb1e   :  { %v13429_v4 = vmax.f32 %v13413_v15, 0.0  ;;  %v13431_v26 = vmax.f32 %v13415_v59, 0.0  ;;  %v17861_v30 = vld [vmem:[#allocation18 + $0x304] ss:$8 sps:$4 sm:$0xff]   ;;  %v17856_v37 = vld [vmem:[#allocation18 + $0x200] ss:$8 sps:$4 sm:$0xff]  }
 0xb1f   :  { %v18924_v43 = vpop.f32.mrf.mxu0  ;;  %v18926_v3 = vpop.f32.mrf.mxu1  ;;  %v17859_v60 = vld [vmem:[#allocation18 + $0x300] ss:$8 sps:$4 sm:$0xff]   ;;  %v17864_v38 = vld [vmem:[#allocation18 + $0x2f4] ss:$8 sps:$4 sm:$0xff]   ;;  %v17862_v15 = vld [vmem:[#allocation18 + $0x2f0] ss:$8 sps:$4 sm:$0xff]  }
 0xb20   :  { %15089 = vmatpush1.bf16.msra.mxu0 %v17820_v41  ;;  %15130 = vmatpush1.bf16.msra.mxu1 %v17823_v9  ;;  %v13445_v16 = vpack.c.bf16 %v13429_v4, %v13429_v4  ;;  %v13447_v46 = vpack.c.bf16 %v13431_v26, %v13431_v26  ;;  %v17867_v2 = vld [vmem:[#allocation18 + $0x3f4] ss:$8 sps:$4 sm:$0xff]   ;;  %v17865_v59 = vld [vmem:[#allocation18 + $0x3f0] ss:$8 sps:$4 sm:$0xff]   ;;  %v17870_v41 = vld [vmem:[#allocation18 + $0x2e4] ss:$8 sps:$4 sm:$0xff]  }
 0xb21   :  { %v13138_v57 = vpop.f32.mrf.mxu0  ;;  %v13179_v44 = vpop.f32.mrf.mxu1  ;;  %15090 = vmatprep.subr.bf16.mxu0 %v17828_v52  ;;  %15131 = vmatprep.subr.bf16.mxu1 %v17831_v42  ;;  %v17873_v9 = vld [vmem:[#allocation18 + $0x3e4] ss:$8 sps:$4 sm:$0xff]   ;;  %v17868_v4 = vld [vmem:[#allocation18 + $0x2e0] ss:$8 sps:$4 sm:$0xff]   ;;  %v17876_v42 = vld [vmem:[#allocation18 + $0x2d4] ss:$8 sps:$4 sm:$0xff]  }
 0xb22   :  { %15118 = vmatprep.mubr.bf16.mxu0 %v13445_v16  ;;  %15159 = vmatprep.mubr.bf16.mxu1 %v13447_v46  ;;  %v17871_v52 = vld [vmem:[#allocation18 + $0x3e0] ss:$8 sps:$4 sm:$0xff]   ;;  %v17879_v26 = vld [vmem:[#allocation18 + $0x3d4] ss:$8 sps:$4 sm:$0xff]   ;;  %v17874_v57 = vld [vmem:[#allocation18 + $0x2d0] ss:$8 sps:$4 sm:$0xff]  }
 0xb23   :  { %v13139_v5 = vpop.f32.mrf.mxu0  ;;  %v13180_v23 = vpop.f32.mrf.mxu1  ;;  %v17877_v44 = vld [vmem:[#allocation18 + $0x3d0] ss:$8 sps:$4 sm:$0xff]   ;;  %v17885_v16 = vld [vmem:[#allocation18 + $0x3c4] ss:$8 sps:$4 sm:$0xff]   ;;  %v17888_v46 = vld [vmem:[#allocation18 + $0x2b4] ss:$8 sps:$4 sm:$0xff]  }
 0xb24   :  { %15091 = vmatpush1.bf16.msra.mxu0 %v17826_v61  ;;  %15132 = vmatpush1.bf16.msra.mxu1 %v17829_v18  ;;  %v17882_v61 = vld [vmem:[#allocation18 + $0x2c4] ss:$8 sps:$4 sm:$0xff]   ;;  %v17880_v18 = vld [vmem:[#allocation18 + $0x2c0] ss:$8 sps:$4 sm:$0xff]   ;;  %v17891_v5 = vld [vmem:[#allocation18 + $0x3b4] ss:$8 sps:$4 sm:$0xff]  }
 0xb25   :  { %v18928_v53 = vpop.f32.mrf.mxu0  ;;  %v18930_v62 = vpop.f32.mrf.mxu1  ;;  %15092 = vmatprep.subr.bf16.mxu0 %v17834_v45  ;;  %15133 = vmatprep.subr.bf16.mxu1 %v17837_v25  ;;  %v17883_v45 = vld [vmem:[#allocation18 + $0x3c0] ss:$8 sps:$4 sm:$0xff]   ;;  %v17886_v23 = vld [vmem:[#allocation18 + $0x2b0] ss:$8 sps:$4 sm:$0xff]   ;;  %v13283_v25 = vrot.slane %v18910_v1, %v18477_v48 }
 0xb27   :  { %v18932_v13 = vpop.f32.mrf.mxu0  ;;  %v18934_v56 = vpop.f32.mrf.mxu1 }
 0xb28   :  { %15093 = vmatpush1.bf16.msra.mxu0 %v17832_v54  ;;  %15134 = vmatpush1.bf16.msra.mxu1 %v17835_v24  ;;  %v17889_v54 = vld [vmem:[#allocation18 + $0x3b0] ss:$8 sps:$4 sm:$0xff]   ;;  %v17894_v24 = vld [vmem:[#allocation18 + $0x2a4] ss:$8 sps:$4 sm:$0xff]  }
 0xb29   :  { %v13220_v12 = vpop.f32.mrf.mxu0  ;;  %v13261_v6 = vpop.f32.mrf.mxu1  ;;  %15094 = vmatprep.subr.bf16.mxu0 %v17840_v63  ;;  %15135 = vmatprep.subr.bf16.mxu1 %v17843_v11  ;;  %v13291_v63 = vrot.slane %v18912_v10, %v18477_v48  ;;  %v17897_v11 = vld [vmem:[#allocation18 + $0x3a4] ss:$8 sps:$4 sm:$0xff]  }
 0xb2a   :  { %v13303_v12 = vrot.slane %v18924_v43, %v18477_v48  ;;  %v13311_v6 = vrot.slane %v18926_v3, %v18477_v48 }
 0xb2b   :  { %v13221_v22 = vpop.f32.mrf.mxu0  ;;  %v13262_v20 = vpop.f32.mrf.mxu1 }
 0xb2c   :  { %15095 = vmatpush1.bf16.msra.mxu0 %v17838_v17  ;;  %15136 = vmatpush1.bf16.msra.mxu1 %v17841_v28  ;;  %v17892_v17 = vld [vmem:[#allocation18 + $0x2a0] ss:$8 sps:$4 sm:$0xff]   ;;  %v13332_v28 = vmul.f32 %v13283_v25, %v18693_v55  ;;  %v17900_v22 = vld [vmem:[#allocation18 + $0x294] ss:$8 sps:$4 sm:$0xff]   ;;  %v13334_v20 = vmul.f32 %v13291_v63, %v18711_v51  ;;  %v17898_v55 = vld [vmem:[#allocation18 + $0x290] ss:$8 sps:$4 sm:$0xff]  }
 0xb2d   :  { %15096 = vmatprep.subr.bf16.mxu0 %v17846_v47  ;;  %15137 = vmatprep.subr.bf16.mxu1 %v17849_v27  ;;  %v17895_v47 = vld [vmem:[#allocation18 + $0x3a0] ss:$8 sps:$4 sm:$0xff]   ;;  %v17903_v27 = vld [vmem:[#allocation18 + $0x394] ss:$8 sps:$4 sm:$0xff]   ;;  %v17901_v51 = vld [vmem:[#allocation18 + $0x390] ss:$8 sps:$4 sm:$0xff]  }
 0xb2e   :  { %v17933_v25 = vld [vmem:[#allocation18 + $0x544] ss:$8 sps:$4 sm:$0xff]   ;;  %v17936_v63 = vld [vmem:[#allocation18 + $0x434] ss:$8 sps:$4 sm:$0xff]  }
 0xb30   :  { %15097 = vmatpush1.bf16.msra.mxu0 %v17844_v0  ;;  %15138 = vmatpush1.bf16.msra.mxu1 %v17847_v31  ;;  %v13363_v0 = vrot.slane %v18910_v1, %v18479_v50  ;;  %v13337_v31 = vmul.f32 %v13303_v12, %v18733_v29  ;;  %v13391_v1 = vrot.slane %v18926_v3, %v18479_v50  ;;  %v17909_v29 = vld [vmem:[#allocation18 + $0x384] ss:$8 sps:$4 sm:$0xff]   ;;  %v17913_v3 = vld [vmem:[#allocation18 + $0x570] ss:$8 sps:$4 sm:$0xff]  }
 0xb31   :  { %15098 = vmatprep.subr.bf16.mxu0 %v17852_v32  ;;  %15139 = vmatprep.subr.bf16.mxu1 %v17855_v33  ;;  %v13371_v32 = vrot.slane %v18912_v10, %v18479_v50  ;;  %v13339_v33 = vmul.f32 %v13311_v6, %v18751_v49  ;;  %v17904_v49 = vld [vmem:[#allocation18 + $0x280] ss:$8 sps:$4 sm:$0xff]   ;;  %v17934_v12 = vld [vmem:[#allocation18 + $0x430] ss:$8 sps:$4 sm:$0xff]  }
 0xb32   :  { %v17937_v6 = vld [vmem:[#allocation18 + $0x530] ss:$8 sps:$4 sm:$0xff]  }
 0xb33   :  { %v13419_v10 = vadd.f32 %v13391_v1, %v13339_v33  ;;  %v17957_v33 = vld [vmem:[#allocation18 + $0x504] ss:$8 sps:$4 sm:$0xff]  }
 0xb34   :  { %15099 = vmatpush1.bf16.msra.mxu0 %v17850_v34  ;;  %15140 = vmatpush1.bf16.msra.mxu1 %v17853_v19  ;;  %v13412_v34 = vadd.f32 %v13363_v0, %v13332_v28  ;;  %v13383_v19 = vrot.slane %v18924_v43, %v18479_v50  ;;  %v17945_v28 = vld [vmem:[#allocation18 + $0x524] ss:$8 sps:$4 sm:$0xff]   ;;  %v17946_v0 = vld [vmem:[#allocation18 + $0x410] ss:$8 sps:$4 sm:$0xff]  }
 0xb35   :  { %15100 = vmatprep.subr.bf16.mxu0 %v17858_v36  ;;  %15141 = vmatprep.subr.bf16.mxu1 %v17861_v30  ;;  %v17906_v36 = vld [vmem:[#allocation18 + $0x284] ss:$8 sps:$4 sm:$0xff]   ;;  %v13414_v30 = vadd.f32 %v13371_v32, %v13334_v20  ;;  %v17948_v20 = vld [vmem:[#allocation18 + $0x414] ss:$8 sps:$4 sm:$0xff]  }
 0xb36   :  { %v17954_v32 = vld [vmem:[#allocation18 + $0x404] ss:$8 sps:$4 sm:$0xff]  }
 0xb37   :  { %v13430_v43 = vmax.f32 %v13414_v30, 0.0  ;;  %v17961_v30 = vld [vmem:[#allocation18 + $0x5f0] ss:$8 sps:$4 sm:$0xff]   ;;  %v17966_v1 = vld [vmem:[#allocation18 + $0x4e4] ss:$8 sps:$4 sm:$0xff]  }
 0xb38   :  { %15101 = vmatpush1.bf16.msra.mxu0 %v17856_v37  ;;  %15142 = vmatpush1.bf16.msra.mxu1 %v17859_v60  ;;  %v13417_v37 = vadd.f32 %v13383_v19, %v13337_v31  ;;  %v13428_v60 = vmax.f32 %v13412_v34, 0.0  ;;  %v17949_v31 = vld [vmem:[#allocation18 + $0x510] ss:$8 sps:$4 sm:$0xff]   ;;  %v17955_v34 = vld [vmem:[#allocation18 + $0x500] ss:$8 sps:$4 sm:$0xff]  }
 0xb39   :  { %15102 = vmatprep.subr.bf16.mxu0 %v17864_v38  ;;  %15143 = vmatprep.subr.bf16.mxu1 %v17867_v2  ;;  %v17907_v38 = vld [vmem:[#allocation18 + $0x380] ss:$8 sps:$4 sm:$0xff]   ;;  %v17912_v2 = vld [vmem:[#allocation18 + $0x474] ss:$8 sps:$4 sm:$0xff]  }
 0xb3a   :  { %v17960_v19 = vld [vmem:[#allocation18 + $0x4f4] ss:$8 sps:$4 sm:$0xff]  }
 0xb3c   :  { %15103 = vmatpush2.bf16.msra.mxu0 %v17862_v15  ;;  %15144 = vmatpush2.bf16.msra.mxu1 %v17865_v59  ;;  %v17915_v15 = vld [vmem:[#allocation18 + $0x574] ss:$8 sps:$4 sm:$0xff]   ;;  %v13433_v59 = vmax.f32 %v13417_v37, 0.0  ;;  %v17964_v37 = vld [vmem:[#allocation18 + $0x4e0] ss:$8 sps:$4 sm:$0xff]  }
 0xb3d   :  { %15104 = vmatprep.subr.bf16.mxu0 %v17870_v41  ;;  %15145 = vmatprep.subr.bf16.mxu1 %v17873_v9  ;;  %v13435_v41 = vmax.f32 %v13419_v10, 0.0  ;;  %v17910_v9 = vld [vmem:[#allocation18 + $0x470] ss:$8 sps:$4 sm:$0xff]   ;;  %v17967_v10 = vld [vmem:[#allocation18 + $0x5e0] ss:$8 sps:$4 sm:$0xff]  }
 0xb40   :  { %15105 = vmatpush2.bf16.msra.mxu0 %v17868_v4  ;;  %15146 = vmatpush2.bf16.msra.mxu1 %v17871_v52  ;;  %v13444_v4 = vpack.c.bf16 %v13428_v60, %v13428_v60  ;;  %v13446_v52 = vpack.c.bf16 %v13430_v43, %v13430_v43  ;;  %v17975_v60 = vld [vmem:[#allocation18 + $0x5d4] ss:$8 sps:$4 sm:$0xff]   ;;  %v17978_v43 = vld [vmem:[#allocation18 + $0x4c4] ss:$8 sps:$4 sm:$0xff]  }
 0xb41   :  { %15106 = vmatprep.subr.bf16.mxu0 %v17876_v42  ;;  %15147 = vmatprep.subr.bf16.mxu1 %v17879_v26  ;;  %v17918_v42 = vld [vmem:[#allocation18 + $0x464] ss:$8 sps:$4 sm:$0xff]   ;;  %v13449_v26 = vpack.c.bf16 %v13433_v59, %v13433_v59  ;;  %v17976_v59 = vld [vmem:[#allocation18 + $0x4c0] ss:$8 sps:$4 sm:$0xff]  }
 0xb44   :  { %15107 = vmatpush2.bf16.msra.mxu0 %v17874_v57  ;;  %15148 = vmatpush2.bf16.msra.mxu1 %v17877_v44  ;;  %v17921_v57 = vld [vmem:[#allocation18 + $0x564] ss:$8 sps:$4 sm:$0xff]   ;;  %v13451_v44 = vpack.c.bf16 %v13435_v41, %v13435_v41  ;;  %v17979_v41 = vld [vmem:[#allocation18 + $0x5c0] ss:$8 sps:$4 sm:$0xff]  }
 0xb45   :  { %15108 = vmatprep.subr.bf16.mxu0 %v17882_v61  ;;  %15149 = vmatprep.subr.bf16.mxu1 %v17885_v16  ;;  %v17916_v61 = vld [vmem:[#allocation18 + $0x460] ss:$8 sps:$4 sm:$0xff]  }
 0xb46   :  { %v17919_v16 = vld [vmem:[#allocation18 + $0x560] ss:$8 sps:$4 sm:$0xff]  }
 0xb48   :  { %15109 = vmatpush2.bf16.msra.mxu0 %v17880_v18  ;;  %15150 = vmatpush2.bf16.msra.mxu1 %v17883_v45  ;;  %v17924_v18 = vld [vmem:[#allocation18 + $0x454] ss:$8 sps:$4 sm:$0xff]  }
 0xb49   :  { %15110 = vmatprep.subr.bf16.mxu0 %v17888_v46  ;;  %15151 = vmatprep.subr.bf16.mxu1 %v17891_v5  ;;  %v17927_v45 = vld [vmem:[#allocation18 + $0x554] ss:$8 sps:$4 sm:$0xff]   ;;  %v17922_v46 = vld [vmem:[#allocation18 + $0x450] ss:$8 sps:$4 sm:$0xff]  }
 0xb4a   :  { %v17925_v5 = vld [vmem:[#allocation18 + $0x550] ss:$8 sps:$4 sm:$0xff]  }
 0xb4c   :  { %15111 = vmatpush2.bf16.msra.mxu0 %v17886_v23  ;;  %15152 = vmatpush2.bf16.msra.mxu1 %v17889_v54  ;;  %v17930_v23 = vld [vmem:[#allocation18 + $0x444] ss:$8 sps:$4 sm:$0xff]   ;;  %v17928_v54 = vld [vmem:[#allocation18 + $0x440] ss:$8 sps:$4 sm:$0xff]  }
 0xb4d   :  { %15112 = vmatprep.subr.bf16.mxu0 %v17894_v24  ;;  %15153 = vmatprep.subr.bf16.mxu1 %v17897_v11  ;;  %v17931_v24 = vld [vmem:[#allocation18 + $0x540] ss:$8 sps:$4 sm:$0xff]   ;;  %v17939_v11 = vld [vmem:[#allocation18 + $0x534] ss:$8 sps:$4 sm:$0xff]  }
 0xb50   :  { %15113 = vmatpush2.bf16.msra.mxu0 %v17892_v17  ;;  %15154 = vmatpush2.bf16.msra.mxu1 %v17895_v47  ;;  %v17942_v17 = vld [vmem:[#allocation18 + $0x424] ss:$8 sps:$4 sm:$0xff]   ;;  %v17940_v47 = vld [vmem:[#allocation18 + $0x420] ss:$8 sps:$4 sm:$0xff]  }
 0xb51   :  { %15114 = vmatprep.subr.bf16.mxu0 %v17900_v22  ;;  %15155 = vmatprep.subr.bf16.mxu1 %v17903_v27  ;;  %v17943_v22 = vld [vmem:[#allocation18 + $0x520] ss:$8 sps:$4 sm:$0xff]   ;;  %v17951_v27 = vld [vmem:[#allocation18 + $0x514] ss:$8 sps:$4 sm:$0xff]  }
 0xb54   :  { %15115 = vmatpush2.bf16.msra.mxu0 %v17898_v55  ;;  %15156 = vmatpush2.bf16.msra.mxu1 %v17901_v51  ;;  %v17952_v55 = vld [vmem:[#allocation18 + $0x400] ss:$8 sps:$4 sm:$0xff]   ;;  %v17963_v51 = vld [vmem:[#allocation18 + $0x5f4] ss:$8 sps:$4 sm:$0xff]  }
 0xb55   :  { %15116 = vmatprep.subr.bf16.mxu0 %v17906_v36  ;;  %15157 = vmatprep.subr.bf16.mxu1 %v17909_v29  ;;  %v17958_v36 = vld [vmem:[#allocation18 + $0x4f0] ss:$8 sps:$4 sm:$0xff]   ;;  %v17969_v29 = vld [vmem:[#allocation18 + $0x5e4] ss:$8 sps:$4 sm:$0xff]  }
 0xb58   :  { %15117 = vmatpush2.bf16.msra.mxu0 %v17904_v49  ;;  %15158 = vmatpush2.bf16.msra.mxu1 %v17907_v38  ;;  %v17972_v49 = vld [vmem:[#allocation18 + $0x4d4] ss:$8 sps:$4 sm:$0xff]   ;;  %v17970_v38 = vld [vmem:[#allocation18 + $0x4d0] ss:$8 sps:$4 sm:$0xff]  }
 0xb59   :  { %15168 = vmatprep.subr.bf16.mxu0 %v17912_v2  ;;  %15209 = vmatprep.subr.bf16.mxu1 %v17915_v15  ;;  %v17973_v2 = vld [vmem:[#allocation18 + $0x5d0] ss:$8 sps:$4 sm:$0xff]   ;;  %v17981_v15 = vld [vmem:[#allocation18 + $0x5c4] ss:$8 sps:$4 sm:$0xff]  }
 0xb5b   :  { %15119 = vmatmul.mubr.bf16.vlgmr.msra.gmra.mxu0 %v13444_v4  ;;  %15160 = vmatmul.mubr.bf16.vlgmr.msra.gmra.mxu1 %v13446_v52  ;;  %v17987_v4 = vld [vmem:[#allocation18 + $0x5b4] ss:$8 sps:$4 sm:$0xff]   ;;  %v13299_v52 = vrot.slane %v18920_v40, %v18477_v48 }
 0xb5c   :  { %15169 = vmatpush1.bf16.msra.mxu0 %v17910_v9  ;;  %15200 = vmatprep.mubr.bf16.mxu0 %v13449_v26  ;;  %v17984_v9 = vld [vmem:[#allocation18 + $0x4b4] ss:$8 sps:$4 sm:$0xff]   ;;  %v17990_v26 = vld [vmem:[#allocation18 + $0x4a4] ss:$8 sps:$4 sm:$0xff]  }
 0xb5d   :  { %15210 = vmatpush1.bf16.msra.mxu1 %v17913_v3  ;;  %15241 = vmatprep.mubr.bf16.mxu1 %v13451_v44  ;;  %v17982_v3 = vld [vmem:[#allocation18 + $0x4b0] ss:$8 sps:$4 sm:$0xff]   ;;  %v17993_v44 = vld [vmem:[#allocation18 + $0x5a4] ss:$8 sps:$4 sm:$0xff]  }
 0xb5e   :  { %15170 = vmatprep.subr.bf16.mxu0 %v17918_v42  ;;  %15211 = vmatprep.subr.bf16.mxu1 %v17921_v57  ;;  %v17985_v42 = vld [vmem:[#allocation18 + $0x5b0] ss:$8 sps:$4 sm:$0xff]   ;;  %v13307_v57 = vrot.slane %v18922_v8, %v18477_v48 }
 0xb60   :  { %15171 = vmatpush1.bf16.msra.mxu0 %v17916_v61  ;;  %v13319_v61 = vrot.slane %v18932_v13, %v18477_v48 }
 0xb61   :  { %15212 = vmatpush1.bf16.msra.mxu1 %v17919_v16  ;;  %15172 = vmatprep.subr.bf16.mxu0 %v17924_v18  ;;  %v13327_v16 = vrot.slane %v18934_v56, %v18477_v48  ;;  %v17988_v18 = vld [vmem:[#allocation18 + $0x4a0] ss:$8 sps:$4 sm:$0xff]  }
 0xb62   :  { %15213 = vmatprep.subr.bf16.mxu1 %v17927_v45  ;;  %v13336_v45 = vmul.f32 %v13299_v52, %v18729_v7  ;;  %v17994_v7 = vld [vmem:[#allocation18 + $0x490] ss:$8 sps:$4 sm:$0xff]   ;;  %v18041_v52 = vld [vmem:[#allocation18 + $0x724] ss:$8 sps:$4 sm:$0xff]  }
 0xb64   :  { %15173 = vmatpush1.bf16.msra.mxu0 %v17922_v46  ;;  %v17991_v46 = vld [vmem:[#allocation18 + $0x5a0] ss:$8 sps:$4 sm:$0xff]  }
 0xb65   :  { %15214 = vmatpush1.bf16.msra.mxu1 %v17925_v5  ;;  %15174 = vmatprep.subr.bf16.mxu0 %v17930_v23  ;;  %v17996_v5 = vld [vmem:[#allocation18 + $0x494] ss:$8 sps:$4 sm:$0xff]   ;;  %v13338_v23 = vmul.f32 %v13307_v57, %v18747_v58  ;;  %v17997_v58 = vld [vmem:[#allocation18 + $0x590] ss:$8 sps:$4 sm:$0xff]  }
 0xb66   :  { %15215 = vmatprep.subr.bf16.mxu1 %v17933_v25  ;;  %v17999_v25 = vld [vmem:[#allocation18 + $0x594] ss:$8 sps:$4 sm:$0xff]  }
 0xb67   :  { %v18044_v57 = vld [vmem:[#allocation18 + $0x614] ss:$8 sps:$4 sm:$0xff]  }
 0xb68   :  { %15175 = vmatpush1.bf16.msra.mxu0 %v17928_v54  ;;  %v13379_v54 = vrot.slane %v18920_v40, %v18479_v50  ;;  %v13407_v40 = vrot.slane %v18934_v56, %v18479_v50  ;;  %v18009_v56 = vld [vmem:[#allocation18 + $0x770] ss:$8 sps:$4 sm:$0xff]  }
 0xb69   :  { %15216 = vmatpush1.bf16.msra.mxu1 %v17931_v24  ;;  %15176 = vmatprep.subr.bf16.mxu0 %v17936_v63  ;;  %v13341_v24 = vmul.f32 %v13319_v61, %v18834_v39  ;;  %v13387_v63 = vrot.slane %v18922_v8, %v18479_v50  ;;  %v18005_v39 = vld [vmem:[#allocation18 + $0x584] ss:$8 sps:$4 sm:$0xff]   ;;  %v18042_v61 = vld [vmem:[#allocation18 + $0x610] ss:$8 sps:$4 sm:$0xff]  }
 0xb6a   :  { %15217 = vmatprep.subr.bf16.mxu1 %v17939_v11  ;;  %v13343_v11 = vmul.f32 %v13327_v16, %v18862_v21  ;;  %v18000_v21 = vld [vmem:[#allocation18 + $0x480] ss:$8 sps:$4 sm:$0xff]   ;;  %v18045_v16 = vld [vmem:[#allocation18 + $0x710] ss:$8 sps:$4 sm:$0xff]  }
 0xb6c   :  { %15177 = vmatpush1.bf16.msra.mxu0 %v17934_v12  ;;  %v13416_v12 = vadd.f32 %v13379_v54, %v13336_v45  ;;  %v13423_v8 = vadd.f32 %v13407_v40, %v13343_v11  ;;  %v18053_v45 = vld [vmem:[#allocation18 + $0x704] ss:$8 sps:$4 sm:$0xff]   ;;  %v18054_v54 = vld [vmem:[#allocation18 + $0x6f0] ss:$8 sps:$4 sm:$0xff]  }
 0xb6d   :  { %15218 = vmatpush1.bf16.msra.mxu1 %v17937_v6  ;;  %15178 = vmatprep.subr.bf16.mxu0 %v17942_v17  ;;  %v13399_v6 = vrot.slane %v18932_v13, %v18479_v50  ;;  %v18002_v17 = vld [vmem:[#allocation18 + $0x484] ss:$8 sps:$4 sm:$0xff]  }
 0xb6e   :  { %15219 = vmatprep.subr.bf16.mxu1 %v17945_v28  ;;  %v13418_v28 = vadd.f32 %v13387_v63, %v13338_v23  ;;  %v18056_v23 = vld [vmem:[#allocation18 + $0x6f4] ss:$8 sps:$4 sm:$0xff]   ;;  %v18062_v63 = vld [vmem:[#allocation18 + $0x6e4] ss:$8 sps:$4 sm:$0xff]  }
 0xb6f   :  { %v18065_v11 = vld [vmem:[#allocation18 + $0x7e4] ss:$8 sps:$4 sm:$0xff]  }
 0xb70   :  { %15179 = vmatpush1.bf16.msra.mxu0 %v17940_v47  ;;  %v13421_v47 = vadd.f32 %v13399_v6, %v13341_v24  ;;  %v13434_v13 = vmax.f32 %v13418_v28, 0.0  ;;  %v18057_v24 = vld [vmem:[#allocation18 + $0x7f0] ss:$8 sps:$4 sm:$0xff]   ;;  %v18068_v6 = vld [vmem:[#allocation18 + $0x6d4] ss:$8 sps:$4 sm:$0xff]  }
 0xb71   :  { %15220 = vmatpush1.bf16.msra.mxu1 %v17943_v22  ;;  %15180 = vmatprep.subr.bf16.mxu0 %v17948_v20  ;;  %v13432_v22 = vmax.f32 %v13416_v12, 0.0  ;;  %v18003_v20 = vld [vmem:[#allocation18 + $0x580] ss:$8 sps:$4 sm:$0xff]   ;;  %v18069_v28 = vld [vmem:[#allocation18 + $0x7d0] ss:$8 sps:$4 sm:$0xff]  }
 0xb72   :  { %15221 = vmatprep.subr.bf16.mxu1 %v17951_v27  ;;  %v18008_v27 = vld [vmem:[#allocation18 + $0x674] ss:$8 sps:$4 sm:$0xff]   ;;  %v18063_v12 = vld [vmem:[#allocation18 + $0x7e0] ss:$8 sps:$4 sm:$0xff]   ;;  %v18074_v40 = vld [vmem:[#allocation18 + $0x6c4] ss:$8 sps:$4 sm:$0xff]  }
 0xb74   :  { %15181 = vmatpush1.bf16.msra.mxu0 %v17946_v0  ;;  %v18011_v0 = vld [vmem:[#allocation18 + $0x774] ss:$8 sps:$4 sm:$0xff]  }
 0xb75   :  { %15222 = vmatpush1.bf16.msra.mxu1 %v17949_v31  ;;  %15182 = vmatprep.subr.bf16.mxu0 %v17954_v32  ;;  %v13437_v31 = vmax.f32 %v13421_v47, 0.0  ;;  %v13439_v32 = vmax.f32 %v13423_v8, 0.0  ;;  %v18072_v47 = vld [vmem:[#allocation18 + $0x6c0] ss:$8 sps:$4 sm:$0xff]  }
 0xb76   :  { %15223 = vmatprep.subr.bf16.mxu1 %v17957_v33  ;;  %v18006_v33 = vld [vmem:[#allocation18 + $0x670] ss:$8 sps:$4 sm:$0xff]   ;;  %v18075_v8 = vld [vmem:[#allocation18 + $0x7c0] ss:$8 sps:$4 sm:$0xff]  }
 0xb78   :  { %15183 = vmatpush1.bf16.msra.mxu0 %v17952_v55  ;;  %v13448_v55 = vpack.c.bf16 %v13432_v22, %v13432_v22  ;;  %v18083_v22 = vld [vmem:[#allocation18 + $0x7b4] ss:$8 sps:$4 sm:$0xff]  }
 0xb79   :  { %15224 = vmatpush1.bf16.msra.mxu1 %v17955_v34  ;;  %15184 = vmatprep.subr.bf16.mxu0 %v17960_v19  ;;  %v13450_v34 = vpack.c.bf16 %v13434_v13, %v13434_v13  ;;  %v18014_v19 = vld [vmem:[#allocation18 + $0x664] ss:$8 sps:$4 sm:$0xff]   ;;  %v18081_v13 = vld [vmem:[#allocation18 + $0x7b0] ss:$8 sps:$4 sm:$0xff]  }
 0xb7a   :  { %15225 = vmatprep.subr.bf16.mxu1 %v17963_v51  ;;  %v13453_v51 = vpack.c.bf16 %v13437_v31, %v13437_v31  ;;  %v13323_v31 = vrot.slane %v18930_v62, %v18477_v48 }
 0xb7c   :  { %15185 = vmatpush2.bf16.msra.mxu0 %v17958_v36  ;;  %v18017_v36 = vld [vmem:[#allocation18 + $0x764] ss:$8 sps:$4 sm:$0xff]  }
 0xb7d   :  { %15226 = vmatpush2.bf16.msra.mxu1 %v17961_v30  ;;  %15186 = vmatprep.subr.bf16.mxu0 %v17966_v1  ;;  %v13455_v30 = vpack.c.bf16 %v13439_v32, %v13439_v32  ;;  %v18012_v1 = vld [vmem:[#allocation18 + $0x660] ss:$8 sps:$4 sm:$0xff]   ;;  %v18089_v32 = vld [vmem:[#allocation18 + $0x7a4] ss:$8 sps:$4 sm:$0xff]  }
 0xb7e   :  { %15227 = vmatprep.subr.bf16.mxu1 %v17969_v29  ;;  %v18015_v29 = vld [vmem:[#allocation18 + $0x760] ss:$8 sps:$4 sm:$0xff]  }
 0xb80   :  { %15187 = vmatpush2.bf16.msra.mxu0 %v17964_v37  ;;  %v18020_v37 = vld [vmem:[#allocation18 + $0x654] ss:$8 sps:$4 sm:$0xff]  }
 0xb81   :  { %15228 = vmatpush2.bf16.msra.mxu1 %v17967_v10  ;;  %15188 = vmatprep.subr.bf16.mxu0 %v17972_v49  ;;  %v18023_v10 = vld [vmem:[#allocation18 + $0x754] ss:$8 sps:$4 sm:$0xff]   ;;  %v18018_v49 = vld [vmem:[#allocation18 + $0x650] ss:$8 sps:$4 sm:$0xff]  }
 0xb82   :  { %15229 = vmatprep.subr.bf16.mxu1 %v17975_v60  ;;  %v18021_v60 = vld [vmem:[#allocation18 + $0x750] ss:$8 sps:$4 sm:$0xff]  }
 0xb84   :  { %15189 = vmatpush2.bf16.msra.mxu0 %v17970_v38  ;;  %v18026_v38 = vld [vmem:[#allocation18 + $0x644] ss:$8 sps:$4 sm:$0xff]  }
 0xb85   :  { %15230 = vmatpush2.bf16.msra.mxu1 %v17973_v2  ;;  %15190 = vmatprep.subr.bf16.mxu0 %v17978_v43  ;;  %v18029_v2 = vld [vmem:[#allocation18 + $0x744] ss:$8 sps:$4 sm:$0xff]   ;;  %v18024_v43 = vld [vmem:[#allocation18 + $0x640] ss:$8 sps:$4 sm:$0xff]  }
 0xb86   :  { %15231 = vmatprep.subr.bf16.mxu1 %v17981_v15  ;;  %v18027_v15 = vld [vmem:[#allocation18 + $0x740] ss:$8 sps:$4 sm:$0xff]  }
 0xb88   :  { %15191 = vmatpush2.bf16.msra.mxu0 %v17976_v59  ;;  %v18032_v59 = vld [vmem:[#allocation18 + $0x634] ss:$8 sps:$4 sm:$0xff]  }
 0xb89   :  { %15232 = vmatpush2.bf16.msra.mxu1 %v17979_v41  ;;  %15192 = vmatprep.subr.bf16.mxu0 %v17984_v9  ;;  %v18035_v41 = vld [vmem:[#allocation18 + $0x734] ss:$8 sps:$4 sm:$0xff]   ;;  %v18030_v9 = vld [vmem:[#allocation18 + $0x630] ss:$8 sps:$4 sm:$0xff]  }
 0xb8a   :  { %15233 = vmatprep.subr.bf16.mxu1 %v17987_v4  ;;  %v18033_v4 = vld [vmem:[#allocation18 + $0x730] ss:$8 sps:$4 sm:$0xff]  }
 0xb8c   :  { %15193 = vmatpush2.bf16.msra.mxu0 %v17982_v3  ;;  %v18038_v3 = vld [vmem:[#allocation18 + $0x624] ss:$8 sps:$4 sm:$0xff]  }
 0xb8d   :  { %15234 = vmatpush2.bf16.msra.mxu1 %v17985_v42  ;;  %15194 = vmatprep.subr.bf16.mxu0 %v17990_v26  ;;  %v18036_v42 = vld [vmem:[#allocation18 + $0x620] ss:$8 sps:$4 sm:$0xff]  }
 0xb8e   :  { %15235 = vmatprep.subr.bf16.mxu1 %v17993_v44  ;;  %v18039_v26 = vld [vmem:[#allocation18 + $0x720] ss:$8 sps:$4 sm:$0xff]   ;;  %v18047_v44 = vld [vmem:[#allocation18 + $0x714] ss:$8 sps:$4 sm:$0xff]  }
 0xb90   :  { %15195 = vmatpush2.bf16.msra.mxu0 %v17988_v18  ;;  %v18050_v18 = vld [vmem:[#allocation18 + $0x604] ss:$8 sps:$4 sm:$0xff]  }
 0xb91   :  { %15236 = vmatpush2.bf16.msra.mxu1 %v17991_v46  ;;  %15196 = vmatprep.subr.bf16.mxu0 %v17996_v5  ;;  %v18048_v46 = vld [vmem:[#allocation18 + $0x600] ss:$8 sps:$4 sm:$0xff]  }
 0xb92   :  { %15237 = vmatprep.subr.bf16.mxu1 %v17999_v25  ;;  %v18051_v5 = vld [vmem:[#allocation18 + $0x700] ss:$8 sps:$4 sm:$0xff]   ;;  %v18059_v25 = vld [vmem:[#allocation18 + $0x7f4] ss:$8 sps:$4 sm:$0xff]  }
 0xb94   :  { %15197 = vmatpush2.bf16.msra.mxu0 %v17994_v7  ;;  %v18060_v7 = vld [vmem:[#allocation18 + $0x6e0] ss:$8 sps:$4 sm:$0xff]  }
 0xb95   :  { %15238 = vmatpush2.bf16.msra.mxu1 %v17997_v58  ;;  %15198 = vmatprep.subr.bf16.mxu0 %v18002_v17  ;;  %v18071_v58 = vld [vmem:[#allocation18 + $0x7d4] ss:$8 sps:$4 sm:$0xff]   ;;  %v18066_v17 = vld [vmem:[#allocation18 + $0x6d0] ss:$8 sps:$4 sm:$0xff]  }
 0xb96   :  { %15239 = vmatprep.subr.bf16.mxu1 %v18005_v39  ;;  %v18077_v39 = vld [vmem:[#allocation18 + $0x7c4] ss:$8 sps:$4 sm:$0xff]  }
 0xb98   :  { %15199 = vmatpush2.bf16.msra.mxu0 %v18000_v21  ;;  %v18080_v21 = vld [vmem:[#allocation18 + $0x6b4] ss:$8 sps:$4 sm:$0xff]  }
 0xb99   :  { %15240 = vmatpush2.bf16.msra.mxu1 %v18003_v20  ;;  %15250 = vmatprep.subr.bf16.mxu0 %v18008_v27  ;;  %v18078_v20 = vld [vmem:[#allocation18 + $0x6b0] ss:$8 sps:$4 sm:$0xff]   ;;  %v13315_v27 = vrot.slane %v18928_v53, %v18477_v48 }
 0xb9a   :  { %15291 = vmatprep.subr.bf16.mxu1 %v18011_v0  ;;  %v18086_v0 = vld [vmem:[#allocation18 + $0x6a4] ss:$8 sps:$4 sm:$0xff]  }
 0xb9b   :  { %15201 = vmatmul.mubr.bf16.vlgmr.msra.gmra.mxu0 %v13448_v55  ;;  %v13340_v55 = vmul.f32 %v13315_v27, %v18844_v14  ;;  %v18093_v14 = vld [vmem:[#allocation18 + $0x790] ss:$8 sps:$4 sm:$0xff]  }
 0xb9c   :  { %15242 = vmatmul.mubr.bf16.vlgmr.msra.gmra.mxu1 %v13450_v34  ;;  %15251 = vmatpush1.bf16.msra.mxu0 %v18006_v33  ;;  %v18084_v33 = vld [vmem:[#allocation18 + $0x6a0] ss:$8 sps:$4 sm:$0xff]   ;;  %v18092_v34 = vld [vmem:[#allocation18 + $0x694] ss:$8 sps:$4 sm:$0xff]  }
 0xb9d   :  { %15282 = vmatprep.mubr.bf16.mxu0 %v13453_v51  ;;  %15292 = vmatpush1.bf16.msra.mxu1 %v18009_v56  ;;  %v18087_v56 = vld [vmem:[#allocation18 + $0x7a0] ss:$8 sps:$4 sm:$0xff]   ;;  %v18095_v51 = vld [vmem:[#allocation18 + $0x794] ss:$8 sps:$4 sm:$0xff]  }
 0xb9e   :  { %15323 = vmatprep.mubr.bf16.mxu1 %v13455_v30  ;;  %15252 = vmatprep.subr.bf16.mxu0 %v18014_v19  ;;  %v13342_v19 = vmul.f32 %v13323_v31, %v18856_v35  ;;  %v13403_v30 = vrot.slane %v18930_v62, %v18479_v50  ;;  %v18096_v35 = vld [vmem:[#allocation18 + $0x680] ss:$8 sps:$4 sm:$0xff]  }
 0xb9f   :  { %15293 = vmatprep.subr.bf16.mxu1 %v18017_v36  ;;  %v13395_v36 = vrot.slane %v18928_v53, %v18479_v50  ;;  %v13712_v53 = vld [vmem:[%s19006_s12] sm:$0x3] }
 0xba0   :  { %15253 = vmatpush1.bf16.msra.mxu0 %v18012_v1  ;;  %v18090_v1 = vld [vmem:[#allocation18 + $0x690] ss:$8 sps:$4 sm:$0xff]  }
 0xba1   :  { %15294 = vmatpush1.bf16.msra.mxu1 %v18015_v29  ;;  %15254 = vmatprep.subr.bf16.mxu0 %v18020_v37  ;;  %v13420_v29 = vadd.f32 %v13395_v36, %v13340_v55  ;;  %v18098_v37 = vld [vmem:[#allocation18 + $0x684] ss:$8 sps:$4 sm:$0xff]  }
 0xba2   :  { %15295 = vmatprep.subr.bf16.mxu1 %v18023_v10  ;;  %v13422_v10 = vadd.f32 %v13403_v30, %v13342_v19 }
 0xba4   :  { %15255 = vmatpush1.bf16.msra.mxu0 %v18018_v49  ;;  %v18101_v49 = vld [vmem:[#allocation18 + $0x784] ss:$8 sps:$4 sm:$0xff]   ;;  %v13438_v62 = vmax.f32 %v13422_v10, 0.0 }
 0xba5   :  { %15296 = vmatpush1.bf16.msra.mxu1 %v18021_v60  ;;  %15256 = vmatprep.subr.bf16.mxu0 %v18026_v38  ;;  %v13436_v60 = vmax.f32 %v13420_v29, 0.0  ;;  %v18099_v38 = vld [vmem:[#allocation18 + $0x780] ss:$8 sps:$4 sm:$0xff]  }
 0xba6   :  { %15297 = vmatprep.subr.bf16.mxu1 %v18029_v2  ;;  %v13717_v2 = vrot.slane %v13712_v53, %v18477_v48 }
 0xba8   :  { %15257 = vmatpush1.bf16.msra.mxu0 %v18024_v43  ;;  %v13452_v43 = vpack.c.bf16 %v13436_v60, %v13436_v60 }
 0xba9   :  { %15298 = vmatpush1.bf16.msra.mxu1 %v18027_v15  ;;  %15258 = vmatprep.subr.bf16.mxu0 %v18032_v59  ;;  %v13454_v15 = vpack.c.bf16 %v13438_v62, %v13438_v62  ;;  %v13721_v59 = vrot.slane %v13712_v53, %v18479_v50 }
 0xbaa   :  { %15299 = vmatprep.subr.bf16.mxu1 %v18035_v41 }
 0xbac   :  { %15259 = vmatpush1.bf16.msra.mxu0 %v18030_v9 }
 0xbad   :  { %15300 = vmatpush1.bf16.msra.mxu1 %v18033_v4  ;;  %15260 = vmatprep.subr.bf16.mxu0 %v18038_v3 }
 0xbae   :  { %15301 = vmatprep.subr.bf16.mxu1 %v18041_v52 }
 0xbb0   :  { %15261 = vmatpush1.bf16.msra.mxu0 %v18036_v42 }
 0xbb1   :  { %15302 = vmatpush1.bf16.msra.mxu1 %v18039_v26  ;;  %15262 = vmatprep.subr.bf16.mxu0 %v18044_v57 }
 0xbb2   :  { %15303 = vmatprep.subr.bf16.mxu1 %v18047_v44 }
 0xbb4   :  { %15263 = vmatpush1.bf16.msra.mxu0 %v18042_v61 }
 0xbb5   :  { %15304 = vmatpush1.bf16.msra.mxu1 %v18045_v16  ;;  %15264 = vmatprep.subr.bf16.mxu0 %v18050_v18 }
 0xbb6   :  { %15305 = vmatprep.subr.bf16.mxu1 %v18053_v45 }
 0xbb8   :  { %15265 = vmatpush1.bf16.msra.mxu0 %v18048_v46 }
 0xbb9   :  { %15306 = vmatpush1.bf16.msra.mxu1 %v18051_v5  ;;  %15266 = vmatprep.subr.bf16.mxu0 %v18056_v23 }
 0xbba   :  { %15307 = vmatprep.subr.bf16.mxu1 %v18059_v25 }
 0xbbc   :  { %15267 = vmatpush2.bf16.msra.mxu0 %v18054_v54 }
 0xbbd   :  { %15308 = vmatpush2.bf16.msra.mxu1 %v18057_v24  ;;  %15268 = vmatprep.subr.bf16.mxu0 %v18062_v63 }
 0xbbe   :  { %15309 = vmatprep.subr.bf16.mxu1 %v18065_v11 }
 0xbc0   :  { %15269 = vmatpush2.bf16.msra.mxu0 %v18060_v7 }
 0xbc1   :  { %15310 = vmatpush2.bf16.msra.mxu1 %v18063_v12  ;;  %15270 = vmatprep.subr.bf16.mxu0 %v18068_v6 }
 0xbc2   :  { %15311 = vmatprep.subr.bf16.mxu1 %v18071_v58 }
 0xbc4   :  { %15271 = vmatpush2.bf16.msra.mxu0 %v18066_v17 }
 0xbc5   :  { %15312 = vmatpush2.bf16.msra.mxu1 %v18069_v28  ;;  %15272 = vmatprep.subr.bf16.mxu0 %v18074_v40 }
 0xbc6   :  { %15313 = vmatprep.subr.bf16.mxu1 %v18077_v39 }
 0xbc8   :  { %15273 = vmatpush2.bf16.msra.mxu0 %v18072_v47 }
 0xbc9   :  { %15314 = vmatpush2.bf16.msra.mxu1 %v18075_v8  ;;  %15274 = vmatprep.subr.bf16.mxu0 %v18080_v21 }
 0xbca   :  { %15315 = vmatprep.subr.bf16.mxu1 %v18083_v22 }
 0xbcc   :  { %15275 = vmatpush2.bf16.msra.mxu0 %v18078_v20 }
 0xbcd   :  { %15316 = vmatpush2.bf16.msra.mxu1 %v18081_v13  ;;  %15276 = vmatprep.subr.bf16.mxu0 %v18086_v0 }
 0xbce   :  { %15317 = vmatprep.subr.bf16.mxu1 %v18089_v32 }
 0xbd0   :  { %15277 = vmatpush2.bf16.msra.mxu0 %v18084_v33 }
 0xbd1   :  { %15318 = vmatpush2.bf16.msra.mxu1 %v18087_v56  ;;  %15278 = vmatprep.subr.bf16.mxu0 %v18092_v34 }
 0xbd2   :  { %15319 = vmatprep.subr.bf16.mxu1 %v18095_v51 }
 0xbd4   :  { %15279 = vmatpush2.bf16.msra.mxu0 %v18090_v1 }
 0xbd5   :  { %15320 = vmatpush2.bf16.msra.mxu1 %v18093_v14  ;;  %15280 = vmatprep.subr.bf16.mxu0 %v18098_v37 }
 0xbd6   :  { %15321 = vmatprep.subr.bf16.mxu1 %v18101_v49 }
 0xbd8   :  { %15281 = vmatpush2.bf16.msra.mxu0 %v18096_v35 }
 0xbd9   :  { %15322 = vmatpush2.bf16.msra.mxu1 %v18099_v38 }
 0xbdb   :  { %15283 = vmatmul.mubr.bf16.vlgmr.msra.gmra.mxu0 %v13452_v43  ;;  %v15038_v41 = vpop.f32.mrf.mxu0  ;;  %v15079_v9 = vpop.f32.mrf.mxu1 }
 0xbdc   :  { %15324 = vmatmul.mubr.bf16.vlgmr.msra.gmra.mxu1 %v13454_v15  ;;  %v15039_v4 = vadd.f32 %v15038_v41, %v13717_v2 }
 0xbdd   :  { %v15040_v3 = vpop.f32.mrf.mxu0  ;;  %v15081_v52 = vpop.f32.mrf.mxu1 }
 0xbde   :  { %v15080_v42 = vadd.f32 %v15079_v9, %v15039_v4  ;;  %v15041_v26 = vadd.f32 %v15040_v3, %v13721_v59 }
 0xbdf   :  { %v15042_v57 = vpop.f32.mrf.mxu0  ;;  %v15083_v44 = vpop.f32.mrf.mxu1 }
 0xbe0   :  { %v15082_v61 = vadd.f32 %v15081_v52, %v15041_v26 }
 0xbe1   :  { %v15043_v16 = vpop.f32.mrf.mxu0  ;;  %v15084_v18 = vpop.f32.mrf.mxu1 }
 0xc1b   :  { %v15120_v48 = vpop.f32.mrf.mxu0  ;;  %v15161_v46 = vpop.f32.mrf.mxu1 }
 0xc1c   :  { %v15121_v45 = vadd.f32 %v15120_v48, %v15080_v42 }
 0xc1d   :  { %v15122_v5 = vpop.f32.mrf.mxu0  ;;  %v15163_v25 = vpop.f32.mrf.mxu1 }
 0xc1e   :  { %v15162_v23 = vadd.f32 %v15161_v46, %v15121_v45  ;;  %v15123_v50 = vadd.f32 %v15122_v5, %v15082_v61 }
 0xc1f   :  { %v15124_v54 = vpop.f32.mrf.mxu0  ;;  %v15165_v63 = vpop.f32.mrf.mxu1 }
 0xc20   :  { %v15164_v24 = vadd.f32 %v15163_v25, %v15123_v50 }
 0xc21   :  { %v15125_v11 = vpop.f32.mrf.mxu0  ;;  %v15166_v7 = vpop.f32.mrf.mxu1 }
 0xc5b   :  { %v15202_v12 = vpop.f32.mrf.mxu0 }
 0xc5c   :  { %v15243_v6 = vpop.f32.mrf.mxu1  ;;  %v15203_v8 = vadd.f32 %v15202_v12, %v15162_v23 }
 0xc5d   :  { %v15204_v58 = vpop.f32.mrf.mxu0 }
 0xc5e   :  { %v15245_v17 = vpop.f32.mrf.mxu1  ;;  %v15205_v21 = vadd.f32 %v15204_v58, %v15164_v24  ;;  %v15244_v22 = vadd.f32 %v15243_v6, %v15203_v8 }
 0xc5f   :  { %v15206_v28 = vpop.f32.mrf.mxu0 }
 0xc60   :  { %v15247_v40 = vpop.f32.mrf.mxu1  ;;  %v15246_v27 = vadd.f32 %v15245_v17, %v15205_v21 }
 0xc61   :  { %v15207_v39 = vpop.f32.mrf.mxu0 }
 0xc62   :  { %v15248_v47 = vpop.f32.mrf.mxu1 }
 0xc9b   :  { %v15284_v20 = vpop.f32.mrf.mxu0 }
 0xc9c   :  { %v15285_v13 = vadd.f32 %v15284_v20, %v15244_v22  ;;  %v15325_v0 = vpop.f32.mrf.mxu1 }
 0xc9d   :  { %v15286_v31 = vpop.f32.mrf.mxu0 }
 0xc9e   :  { %v15326_v32 = vadd.f32 %v15325_v0, %v15285_v13  ;;  %v15287_v33 = vadd.f32 %v15286_v31, %v15246_v27  ;;  %v15327_v55 = vpop.f32.mrf.mxu1 }
 0xc9f   :  { %v15288_v56 = vpop.f32.mrf.mxu0 }
 0xca0   :  { %v15328_v34 = vadd.f32 %v15327_v55, %v15287_v33  ;;  %v15329_v19 = vpop.f32.mrf.mxu1  ;;  %18106 = vtanh.f32 %v15326_v32 }
 0xca1   :  { %v15289_v51 = vpop.f32.mrf.mxu0 }
 0xca2   :  { %18108 = vtanh.f32 %v15328_v34  ;;  %v15330_v36 = vpop.f32.mrf.mxu1 }
 0xcad   :  { %v18107_v30 = vpop.eup %18106 }
 0xcaf   :  { %v18109_v1 = vpop.eup %18108 }
 0xcb0   :  { %v15336_v29 = vcombine.low %v18107_v30, %v18109_v1 }
 0xcb2   :  { %17192 = vst.sshfl [vmem:[%s19007_s13] sm:$0x33 pattern:$0x76325410] %v15336_v29 }
 0xcb3   :  { %15350 = vsyncpa [#allocation3], 1 }
 0xcb4   :  { %15351 = vsyncpa [#allocation5], 1 }
 0xcb5   :  { %15352 = vsyncpa [#allocation8], 1 }
 0xcb6   :  { %15353 = vsyncpa [#allocation11], 1 }
 0xcb7   :  { %15354 = vsyncpa [#allocation14], 1 }
 0xcb8   :  { %15355 = vsyncpa [#allocation17], 1 }

</bundles_post_ra>
